<compile_context>
chip_gen: v5e
topology: v5e:2x2
jax: 0.10.0
libtpu: 0.0.40
codegen_flags: <defaults>
</compile_context>

<pallas_src>
import functools

import jax
import jax.numpy as jnp
from jax.experimental import pallas as pl
from jax.experimental.pallas import tpu as pltpu


def _round_up(x, m):
    return (x + m - 1) // m * m


def _cdiv(a, b):
    return -(-a // b)


# ----------------------------------------------------------------------------
# Pallas kernels: matmul + bias + optional ReLU (fused epilogue)
# ----------------------------------------------------------------------------
def _mm_bias_act_kernel_1k(x_ref, w_ref, b_ref, o_ref, *, relu):
    # Whole K reduction in one step: bf16 operands, f32 accumulation on the MXU.
    out = jnp.dot(x_ref[...], w_ref[...], preferred_element_type=jnp.float32)
    out = out + b_ref[...]
    if relu:
        out = jnp.maximum(out, 0.0)
    o_ref[...] = out.astype(o_ref.dtype)


def _mm_bias_act_kernel_ksplit(x_ref, w_ref, b_ref, o_ref, acc_ref, *, relu):
    # Fallback for very large K: accumulate in an f32 VMEM scratch across K steps.
    @pl.when(pl.program_id(2) == 0)
    def _():
        acc_ref[...] = jnp.zeros_like(acc_ref)

    acc_ref[...] += jnp.dot(x_ref[...], w_ref[...],
                            preferred_element_type=jnp.float32)

    @pl.when(pl.program_id(2) == pl.num_programs(2) - 1)
    def _():
        out = acc_ref[...] + b_ref[...]
        if relu:
            out = jnp.maximum(out, 0.0)
        o_ref[...] = out.astype(o_ref.dtype)


def matmul_bias_act(x, w, b, relu):
    """out = act(x @ w + b) on the MXU. x:(M,K) w:(K,N) b:(N,). bf16 in, f32 acc/out."""
    M, K = x.shape
    K2, N = w.shape
    assert K == K2

    # --- tile sizes -----------------------------------------------------------
    # M: no padding to 128; pick per-layer tiles that are multiples of 16 (bf16
    # sublane packing) and give >=2 M tiles when M > 128 (feeds both v7x TCs).
    n_m = max(1, _cdiv(M, 128))
    tm = _round_up(_cdiv(M, n_m), 16)
    Mp = tm * n_m

    # N: small-Cout layers (deconvs, Cout*stride^2 <= 32) use a full-extent block
    # (legal because the block equals the array dim) -> no 64x column padding.
    if N >= 128:
        tn = 128
        Np = _round_up(N, tn)
    else:
        tn = N
        Np = N

    # K: single grid step for K up to 4096 (all layers of this network);
    # pad to a lane multiple of 128 for clean MXU/DMA layout.
    single_k = K <= 4096
    tk = _round_up(K, 128) if single_k else 512
    Kp = _round_up(K, tk)

    # --- operand prep (bf16 operands, f32 bias) -------------------------------
    xp = x.astype(jnp.bfloat16)
    if (Mp, Kp) != (M, K):
        xp = jnp.pad(xp, ((0, Mp - M), (0, Kp - K)))
    wp = w.astype(jnp.bfloat16)
    if (Kp, Np) != (K, N):
        wp = jnp.pad(wp, ((0, Kp - K), (0, Np - N)))
    bp = b.astype(jnp.float32).reshape(1, -1)
    if Np != N:
        bp = jnp.pad(bp, ((0, 0), (0, Np - N)))

    if single_k:
        kernel = functools.partial(_mm_bias_act_kernel_1k, relu=relu)
        grid = (Mp // tm, Np // tn)
        in_specs = [
            pl.BlockSpec((tm, tk), lambda i, j: (i, 0)),
            pl.BlockSpec((tk, tn), lambda i, j: (0, j)),
            pl.BlockSpec((1, tn), lambda i, j: (0, j)),
        ]
        out_specs = pl.BlockSpec((tm, tn), lambda i, j: (i, j))
        scratch_shapes = []
        dims = ("parallel", "parallel")
    else:
        kernel = functools.partial(_mm_bias_act_kernel_ksplit, relu=relu)
        grid = (Mp // tm, Np // tn, Kp // tk)
        in_specs = [
            pl.BlockSpec((tm, tk), lambda i, j, k: (i, k)),
            pl.BlockSpec((tk, tn), lambda i, j, k: (k, j)),
            pl.BlockSpec((1, tn), lambda i, j, k: (0, j)),
        ]
        out_specs = pl.BlockSpec((tm, tn), lambda i, j, k: (i, j))
        scratch_shapes = [pltpu.VMEM((tm, tn), jnp.float32)]
        dims = ("parallel", "parallel", "arbitrary")

    out = pl.pallas_call(
        kernel,
        out_shape=jax.ShapeDtypeStruct((Mp, Np), jnp.float32),
        grid_spec=pltpu.PrefetchScalarGridSpec(
            num_scalar_prefetch=0,
            grid=grid,
            in_specs=in_specs,
            out_specs=out_specs,
            scratch_shapes=scratch_shapes,
        ),
        compiler_params=pltpu.CompilerParams(dimension_semantics=dims),
    )(xp, wp, bp)

    if (Mp, Np) != (M, N):
        out = out[:M, :N]
    return out


# ----------------------------------------------------------------------------
# Conv / ConvTranspose built on the Pallas matmul kernel
# ----------------------------------------------------------------------------
def _im2col(x, kh, kw, stride, pad):
    # x: (N, H, W, C) NHWC
    x = jnp.pad(x, ((0, 0), (pad, pad), (pad, pad), (0, 0)))
    N, Hp, Wp, C = x.shape
    Ho = (Hp - kh) // stride + 1
    Wo = (Wp - kw) // stride + 1
    cols = []
    for i in range(kh):
        for j in range(kw):
            cols.append(x[:, i:i + stride * Ho:stride, j:j + stride * Wo:stride, :])
    patches = jnp.concatenate(cols, axis=-1)  # (N, Ho, Wo, kh*kw*C)
    return patches.reshape(N * Ho * Wo, kh * kw * C), (N, Ho, Wo)


def conv2d(x, w, b, stride=1, pad=0, relu=False):
    """x: NHWC. w: PyTorch Conv2d weight (Cout, Cin, kh, kw)."""
    Cout, Cin, kh, kw = w.shape
    if kh == 1 and kw == 1 and stride == 1 and pad == 0:
        # 1x1 conv: no im2col, just a reshape + matmul.
        N, H, W, C = x.shape
        out = matmul_bias_act(x.reshape(N * H * W, C),
                              w.reshape(Cout, Cin).T, b, relu=relu)
        return out.reshape(N, H, W, Cout)
    cols, (N, Ho, Wo) = _im2col(x, kh, kw, stride, pad)
    w_mat = jnp.transpose(w, (2, 3, 1, 0)).reshape(kh * kw * Cin, Cout)
    out = matmul_bias_act(cols, w_mat, b, relu=relu)
    return out.reshape(N, Ho, Wo, Cout)


def conv_transpose2d(x, w, b, stride, pad, relu=False):
    """x: NHWC. w: PyTorch ConvTranspose2d weight (Cin, Cout, kh, kw).

    Sub-pixel (phase-split) formulation: split the kernel into stride^2 phases,
    run ONE matmul on the UNdilated input producing stride^2 * Cout columns
    (phase sub-kernels padded to a uniform ceil(k/stride) tap count), then
    interleave phases into the spatial dims and crop by `pad`.
    Exact equivalence with output_padding=0.
    """
    Cin, Cout, kh, kw = w.shape
    assert kh == kw, "square kernels only"
    s = stride
    K = _cdiv(kh, s)                      # taps per phase (uniform, zero-padded)
    N, H, W, C = x.shape
    assert C == Cin
    H_out = (H - 1) * s - 2 * pad + kh
    W_out = (W - 1) * s - 2 * pad + kw

    # Phase-split weight matrix: (K*K*Cin, s*s*Cout).
    # Row index = (j_h*K + j_w)*Cin + ci (im2col patch order, taps pre-flipped),
    # col index = (r_h*s + r_w)*Cout + co (phase-major, channel-minor).
    w_pad = jnp.zeros((Cin, Cout, K * s, K * s), w.dtype).at[:, :, :kh, :kw].set(w)
    w_r = w_pad.reshape(Cin, Cout, K, s, K, s)
    w_r = jnp.flip(w_r, axis=(2, 4))                       # flip tap axes
    w_mat = jnp.transpose(w_r, (2, 4, 0, 3, 5, 1)).reshape(K * K * Cin, s * s * Cout)

    # im2col of the undilated input with "full" padding K-1, stride 1.
    cols, (N2, Qh, Qw) = _im2col(x, K, K, 1, K - 1)        # Qh = H + K - 1
    b_tiled = jnp.tile(b, s * s)
    out = matmul_bias_act(cols, w_mat, b_tiled, relu=relu)

    # Interleave phases into the spatial grid, then crop by `pad`.
    out = out.reshape(N2, Qh, Qw, s, s, Cout)
    out = jnp.transpose(out, (0, 1, 3, 2, 4, 5)).reshape(N2, Qh * s, Qw * s, Cout)
    return out[:, pad:pad + H_out, pad:pad + W_out, :]


# ----------------------------------------------------------------------------
# Parameters (deterministic synthetic init, PyTorch weight-layout conventions)
# ----------------------------------------------------------------------------
def _kaiming_uniform(key, shape, fan_in):
    bound = (6.0 / fan_in) ** 0.5
    return jax.random.uniform(key, shape, jnp.float32, -bound, bound)


def init_refine_params(key):
    specs = {
        # name: (weight_shape, bias_size)   weight shapes follow torch conventions
        "conv_s16": ((256, 2048, 1, 1), 256),
        "blend_s16": ((128, 270, 3, 3), 128),
        "conv_s8": ((128, 512, 1, 1), 128),
        "blend_s8": ((128, 130, 3, 3), 128),
        "conv_s4": ((128, 256, 1, 1), 128),
        "blend_s4": ((128, 130, 3, 3), 128),
        # ConvTranspose2d weights: (Cin, Cout, kh, kw)
        "deconv1_1": ((128, 2, 4, 4), 2),
        "deconv1_2": ((2, 2, 4, 4), 2),
        "deconv2": ((128, 2, 4, 4), 2),
        "deconv3": ((128, 2, 3, 3), 2),
        "predictor": ((6, 2, 6, 6), 2),
    }
    params = {}
    keys = jax.random.split(key, len(specs))
    for (name, (wshape, bsize)), k in zip(specs.items(), keys):
        if name.startswith("conv") or name.startswith("blend"):
            fan_in = wshape[1] * wshape[2] * wshape[3]   # Cin * kh * kw
        else:  # transposed conv: fan_in is Cin * kh * kw with Cin = wshape[0]
            fan_in = wshape[0] * wshape[2] * wshape[3]
        params[name + "_w"] = _kaiming_uniform(k, wshape, fan_in)
        params[name + "_b"] = jnp.zeros((bsize,), jnp.float32)
    return params


# ----------------------------------------------------------------------------
# REFINE forward
# ----------------------------------------------------------------------------
def refine_forward(params, feats, sa_cor_bg, ca_cor_bg, sa_cor_fg, ca_cor_fg, state):
    p = params
    c16 = conv2d(feats["s16"], p["conv_s16_w"], p["conv_s16_b"], 1, 0, relu=True)
    u = jnp.concatenate(
        [c16, sa_cor_bg, ca_cor_bg, sa_cor_fg, ca_cor_fg, state["prev_seg"]], axis=-1)
    u = conv2d(u, p["blend_s16_w"], p["blend_s16_b"], 1, 1, relu=True)
    out_16 = conv_transpose2d(u, p["deconv1_1_w"], p["deconv1_1_b"], 2, 1)

    c8 = conv2d(feats["s8"], p["conv_s8_w"], p["conv_s8_b"], 1, 0, relu=True)
    u = jnp.concatenate([c8, out_16], axis=-1)
    u = conv2d(u, p["blend_s8_w"], p["blend_s8_b"], 1, 1, relu=True)
    out_8 = conv_transpose2d(u, p["deconv2_w"], p["deconv2_b"], 2, 1)

    c4 = conv2d(feats["s4"], p["conv_s4_w"], p["conv_s4_b"], 1, 0, relu=True)
    u = jnp.concatenate([c4, out_8], axis=-1)
    u = conv2d(u, p["blend_s4_w"], p["blend_s4_b"], 1, 1, relu=True)
    out_4 = conv_transpose2d(u, p["deconv3_w"], p["deconv3_b"], 1, 1)

    a = conv_transpose2d(out_16, p["deconv1_2_w"], p["deconv1_2_b"], 2, 1)
    segscore = conv_transpose2d(
        jnp.concatenate([a, out_8, out_4], axis=-1),
        p["predictor_w"], p["predictor_b"], 4, 1)
    return segscore  # NHWC, 2 channels, full (s1) resolution


if __name__ == "__main__":
    key = jax.random.PRNGKey(0)
    kp, k1, k2, k3, k4, k5, k6, k7, k8 = jax.random.split(key, 9)

    params = init_refine_params(kp)

    N = 2
    H16, H8, H4 = 4, 8, 16      # image size 64 -> s16=4, s8=8, s4=16
    feats = {
        "s16": jax.random.normal(k1, (N, H16, H16, 2048), jnp.float32),
        "s8": jax.random.normal(k2, (N, H8, H8, 512), jnp.float32),
        "s4": jax.random.normal(k3, (N, H4, H4, 256), jnp.float32),
    }
    sa_cor_bg = jax.random.normal(k4, (N, H16, H16, 3), jnp.float32)
    ca_cor_bg = jax.random.normal(k5, (N, H16, H16, 3), jnp.float32)
    sa_cor_fg = jax.random.normal(k6, (N, H16, H16, 3), jnp.float32)
    ca_cor_fg = jax.random.normal(k7, (N, H16, H16, 3), jnp.float32)
    state = {"prev_seg": jax.random.normal(k8, (N, H16, H16, 2), jnp.float32)}

    fwd = jax.jit(refine_forward)
    segscore = fwd(params, feats, sa_cor_bg, ca_cor_bg, sa_cor_fg, ca_cor_fg, state)
    segscore = jax.block_until_ready(segscore)

    assert segscore.shape == (N, 64, 64, 2), segscore.shape
    assert jnp.all(jnp.isfinite(segscore))
    print("KERNEL_OK")
</pallas_src>

<mosaic_0001>
module attributes {stable_mosaic.version = 11 : i64} {
  func.func @_mm_bias_act_kernel_1k(%arg0: i32, %arg1: i32, %arg2: memref<32x2048xbf16, #tpu.memory_space<vmem>>, %arg3: memref<2048x128xbf16, #tpu.memory_space<vmem>>, %arg4: memref<1x128xf32, #tpu.memory_space<vmem>>, %arg5: memref<32x128xf32, #tpu.memory_space<vmem>>) attributes {dimension_semantics = [#tpu.dimension_semantics<parallel>, #tpu.dimension_semantics<parallel>], iteration_bounds = array<i64: 1, 2>, scalar_prefetch = 0 : i64, scratch_operands = 0 : i64, tpu.core_type = #tpu.core_type<tc>, window_params = [{transform_indices = @transform_0, window_bounds = array<i64: 32, 2048>}, {transform_indices = @transform_1, window_bounds = array<i64: 2048, 128>}, {transform_indices = @transform_2, window_bounds = array<i64: 1, 128>}, {transform_indices = @transform_3, window_bounds = array<i64: 32, 128>}]} {
    %c0 = arith.constant 0 : index
    %c0_0 = arith.constant 0 : index
    %0 = vector.load %arg2[%c0, %c0_0] : memref<32x2048xbf16, #tpu.memory_space<vmem>>, vector<32x2048xbf16>
    %c0_1 = arith.constant 0 : index
    %c0_2 = arith.constant 0 : index
    %1 = vector.load %arg3[%c0_1, %c0_2] : memref<2048x128xbf16, #tpu.memory_space<vmem>>, vector<2048x128xbf16>
    %cst = arith.constant dense<0.000000e+00> : vector<32x128xf32>
    %2 = tpu.matmul %0, %1, %cst {dimension_numbers = #tpu.dot_dimension_numbers<[1], [0], [0], [1], [0, 0, 1, 1], [], []>} : vector<32x2048xbf16>, vector<2048x128xbf16>, vector<32x128xf32> -> vector<32x128xf32>
    %c0_3 = arith.constant 0 : index
    %c0_4 = arith.constant 0 : index
    %3 = vector.load %arg4[%c0_3, %c0_4] : memref<1x128xf32, #tpu.memory_space<vmem>>, vector<1x128xf32>
    %4 = vector.broadcast %3 : vector<1x128xf32> to vector<32x128xf32>
    %5 = arith.addf %2, %4 : vector<32x128xf32>
    %cst_5 = arith.constant 0.000000e+00 : f32
    %6 = vector.broadcast %cst_5 : f32 to vector<32x128xf32>
    %7 = arith.maximumf %5, %6 : vector<32x128xf32>
    %c0_6 = arith.constant 0 : index
    %c0_7 = arith.constant 0 : index
    %8 = vector.load %arg5[%c0_6, %c0_7] : memref<32x128xf32, #tpu.memory_space<vmem>>, vector<32x128xf32>
    tpu.vector_store %arg5[%c0_6, %c0_7], %7 {strides = array<i32>} : memref<32x128xf32, #tpu.memory_space<vmem>>, vector<32x128xf32>,
    return
  }
  func.func @transform_0(%arg0: i32, %arg1: i32) -> (i32, i32) {
    %c0_i32 = arith.constant 0 : i32
    %c0_i32_0 = arith.constant 0 : i32
    return %arg0, %c0_i32 : i32, i32
  }
  func.func @transform_1(%arg0: i32, %arg1: i32) -> (i32, i32) {
    %c0_i32 = arith.constant 0 : i32
    %c0_i32_0 = arith.constant 0 : i32
    return %c0_i32, %arg1 : i32, i32
  }
  func.func @transform_2(%arg0: i32, %arg1: i32) -> (i32, i32) {
    %c0_i32 = arith.constant 0 : i32
    %c0_i32_0 = arith.constant 0 : i32
    return %c0_i32, %arg1 : i32, i32
  }
  func.func @transform_3(%arg0: i32, %arg1: i32) -> (i32, i32) {
    %c0_i32 = arith.constant 0 : i32
    return %arg0, %arg1 : i32, i32
  }
}

module attributes {stable_mosaic.version = 11 : i64} {
  func.func @_mm_bias_act_kernel_1k(%arg0: i32, %arg1: i32, %arg2: memref<32x2432xbf16, #tpu.memory_space<vmem>>, %arg3: memref<2432x128xbf16, #tpu.memory_space<vmem>>, %arg4: memref<1x128xf32, #tpu.memory_space<vmem>>, %arg5: memref<32x128xf32, #tpu.memory_space<vmem>>) attributes {dimension_semantics = [#tpu.dimension_semantics<parallel>, #tpu.dimension_semantics<parallel>], iteration_bounds = array<i64: 1, 1>, scalar_prefetch = 0 : i64, scratch_operands = 0 : i64, tpu.core_type = #tpu.core_type<tc>, window_params = [{transform_indices = @transform_0, window_bounds = array<i64: 32, 2432>}, {transform_indices = @transform_1, window_bounds = array<i64: 2432, 128>}, {transform_indices = @transform_2, window_bounds = array<i64: 1, 128>}, {transform_indices = @transform_3, window_bounds = array<i64: 32, 128>}]} {
    %c0 = arith.constant 0 : index
    %c0_0 = arith.constant 0 : index
    %0 = vector.load %arg2[%c0, %c0_0] : memref<32x2432xbf16, #tpu.memory_space<vmem>>, vector<32x2432xbf16>
    %c0_1 = arith.constant 0 : index
    %c0_2 = arith.constant 0 : index
    %1 = vector.load %arg3[%c0_1, %c0_2] : memref<2432x128xbf16, #tpu.memory_space<vmem>>, vector<2432x128xbf16>
    %cst = arith.constant dense<0.000000e+00> : vector<32x128xf32>
    %2 = tpu.matmul %0, %1, %cst {dimension_numbers = #tpu.dot_dimension_numbers<[1], [0], [0], [1], [0, 0, 1, 1], [], []>} : vector<32x2432xbf16>, vector<2432x128xbf16>, vector<32x128xf32> -> vector<32x128xf32>
    %c0_3 = arith.constant 0 : index
    %c0_4 = arith.constant 0 : index
    %3 = vector.load %arg4[%c0_3, %c0_4] : memref<1x128xf32, #tpu.memory_space<vmem>>, vector<1x128xf32>
    %4 = vector.broadcast %3 : vector<1x128xf32> to vector<32x128xf32>
    %5 = arith.addf %2, %4 : vector<32x128xf32>
    %cst_5 = arith.constant 0.000000e+00 : f32
    %6 = vector.broadcast %cst_5 : f32 to vector<32x128xf32>
    %7 = arith.maximumf %5, %6 : vector<32x128xf32>
    %c0_6 = arith.constant 0 : index
    %c0_7 = arith.constant 0 : index
    %8 = vector.load %arg5[%c0_6, %c0_7] : memref<32x128xf32, #tpu.memory_space<vmem>>, vector<32x128xf32>
    tpu.vector_store %arg5[%c0_6, %c0_7], %7 {strides = array<i32>} : memref<32x128xf32, #tpu.memory_space<vmem>>, vector<32x128xf32>,
    return
  }
  func.func @transform_0(%arg0: i32, %arg1: i32) -> (i32, i32) {
    %c0_i32 = arith.constant 0 : i32
    %c0_i32_0 = arith.constant 0 : i32
    return %arg0, %c0_i32 : i32, i32
  }
  func.func @transform_1(%arg0: i32, %arg1: i32) -> (i32, i32) {
    %c0_i32 = arith.constant 0 : i32
    %c0_i32_0 = arith.constant 0 : i32
    return %c0_i32, %arg1 : i32, i32
  }
  func.func @transform_2(%arg0: i32, %arg1: i32) -> (i32, i32) {
    %c0_i32 = arith.constant 0 : i32
    %c0_i32_0 = arith.constant 0 : i32
    return %c0_i32, %arg1 : i32, i32
  }
  func.func @transform_3(%arg0: i32, %arg1: i32) -> (i32, i32) {
    %c0_i32 = arith.constant 0 : i32
    return %arg0, %arg1 : i32, i32
  }
}

module attributes {stable_mosaic.version = 11 : i64} {
  func.func @_mm_bias_act_kernel_1k(%arg0: i32, %arg1: i32, %arg2: memref<64x512xbf16, #tpu.memory_space<vmem>>, %arg3: memref<512x8xbf16, #tpu.memory_space<vmem>>, %arg4: memref<1x8xf32, #tpu.memory_space<vmem>>, %arg5: memref<64x8xf32, #tpu.memory_space<vmem>>) attributes {dimension_semantics = [#tpu.dimension_semantics<parallel>, #tpu.dimension_semantics<parallel>], iteration_bounds = array<i64: 1, 1>, scalar_prefetch = 0 : i64, scratch_operands = 0 : i64, tpu.core_type = #tpu.core_type<tc>, window_params = [{transform_indices = @transform_0, window_bounds = array<i64: 64, 512>}, {transform_indices = @transform_1, window_bounds = array<i64: 512, 8>}, {transform_indices = @transform_2, window_bounds = array<i64: 1, 8>}, {transform_indices = @transform_3, window_bounds = array<i64: 64, 8>}]} {
    %c0 = arith.constant 0 : index
    %c0_0 = arith.constant 0 : index
    %0 = vector.load %arg2[%c0, %c0_0] : memref<64x512xbf16, #tpu.memory_space<vmem>>, vector<64x512xbf16>
    %c0_1 = arith.constant 0 : index
    %c0_2 = arith.constant 0 : index
    %1 = vector.load %arg3[%c0_1, %c0_2] : memref<512x8xbf16, #tpu.memory_space<vmem>>, vector<512x8xbf16>
    %cst = arith.constant dense<0.000000e+00> : vector<64x8xf32>
    %2 = tpu.matmul %0, %1, %cst {dimension_numbers = #tpu.dot_dimension_numbers<[1], [0], [0], [1], [0, 0, 1, 1], [], []>} : vector<64x512xbf16>, vector<512x8xbf16>, vector<64x8xf32> -> vector<64x8xf32>
    %c0_3 = arith.constant 0 : index
    %c0_4 = arith.constant 0 : index
    %3 = vector.load %arg4[%c0_3, %c0_4] : memref<1x8xf32, #tpu.memory_space<vmem>>, vector<1x8xf32>
    %4 = vector.broadcast %3 : vector<1x8xf32> to vector<64x8xf32>
    %5 = arith.addf %2, %4 : vector<64x8xf32>
    %c0_5 = arith.constant 0 : index
    %c0_6 = arith.constant 0 : index
    %6 = vector.load %arg5[%c0_5, %c0_6] : memref<64x8xf32, #tpu.memory_space<vmem>>, vector<64x8xf32>
    tpu.vector_store %arg5[%c0_5, %c0_6], %5 {strides = array<i32>} : memref<64x8xf32, #tpu.memory_space<vmem>>, vector<64x8xf32>,
    return
  }
  func.func @transform_0(%arg0: i32, %arg1: i32) -> (i32, i32) {
    %c0_i32 = arith.constant 0 : i32
    %c0_i32_0 = arith.constant 0 : i32
    return %arg0, %c0_i32 : i32, i32
  }
  func.func @transform_1(%arg0: i32, %arg1: i32) -> (i32, i32) {
    %c0_i32 = arith.constant 0 : i32
    %c0_i32_0 = arith.constant 0 : i32
    return %c0_i32, %arg1 : i32, i32
  }
  func.func @transform_2(%arg0: i32, %arg1: i32) -> (i32, i32) {
    %c0_i32 = arith.constant 0 : i32
    %c0_i32_0 = arith.constant 0 : i32
    return %c0_i32, %arg1 : i32, i32
  }
  func.func @transform_3(%arg0: i32, %arg1: i32) -> (i32, i32) {
    %c0_i32 = arith.constant 0 : i32
    return %arg0, %arg1 : i32, i32
  }
}

module attributes {stable_mosaic.version = 11 : i64} {
  func.func @_mm_bias_act_kernel_1k(%arg0: i32, %arg1: i32, %arg2: memref<128x512xbf16, #tpu.memory_space<vmem>>, %arg3: memref<512x128xbf16, #tpu.memory_space<vmem>>, %arg4: memref<1x128xf32, #tpu.memory_space<vmem>>, %arg5: memref<128x128xf32, #tpu.memory_space<vmem>>) attributes {dimension_semantics = [#tpu.dimension_semantics<parallel>, #tpu.dimension_semantics<parallel>], iteration_bounds = array<i64: 1, 1>, scalar_prefetch = 0 : i64, scratch_operands = 0 : i64, tpu.core_type = #tpu.core_type<tc>, window_params = [{transform_indices = @transform_0, window_bounds = array<i64: 128, 512>}, {transform_indices = @transform_1, window_bounds = array<i64: 512, 128>}, {transform_indices = @transform_2, window_bounds = array<i64: 1, 128>}, {transform_indices = @transform_3, window_bounds = array<i64: 128, 128>}]} {
    %c0 = arith.constant 0 : index
    %c0_0 = arith.constant 0 : index
    %0 = vector.load %arg2[%c0, %c0_0] : memref<128x512xbf16, #tpu.memory_space<vmem>>, vector<128x512xbf16>
    %c0_1 = arith.constant 0 : index
    %c0_2 = arith.constant 0 : index
    %1 = vector.load %arg3[%c0_1, %c0_2] : memref<512x128xbf16, #tpu.memory_space<vmem>>, vector<512x128xbf16>
    %cst = arith.constant dense<0.000000e+00> : vector<128x128xf32>
    %2 = tpu.matmul %0, %1, %cst {dimension_numbers = #tpu.dot_dimension_numbers<[1], [0], [0], [1], [0, 0, 1, 1], [], []>} : vector<128x512xbf16>, vector<512x128xbf16>, vector<128x128xf32> -> vector<128x128xf32>
    %c0_3 = arith.constant 0 : index
    %c0_4 = arith.constant 0 : index
    %3 = vector.load %arg4[%c0_3, %c0_4] : memref<1x128xf32, #tpu.memory_space<vmem>>, vector<1x128xf32>
    %4 = vector.broadcast %3 : vector<1x128xf32> to vector<128x128xf32>
    %5 = arith.addf %2, %4 : vector<128x128xf32>
    %cst_5 = arith.constant 0.000000e+00 : f32
    %6 = vector.broadcast %cst_5 : f32 to vector<128x128xf32>
    %7 = arith.maximumf %5, %6 : vector<128x128xf32>
    %c0_6 = arith.constant 0 : index
    %c0_7 = arith.constant 0 : index
    %8 = vector.load %arg5[%c0_6, %c0_7] : memref<128x128xf32, #tpu.memory_space<vmem>>, vector<128x128xf32>
    tpu.vector_store %arg5[%c0_6, %c0_7], %7 {strides = array<i32>} : memref<128x128xf32, #tpu.memory_space<vmem>>, vector<128x128xf32>,
    return
  }
  func.func @transform_0(%arg0: i32, %arg1: i32) -> (i32, i32) {
    %c0_i32 = arith.constant 0 : i32
    %c0_i32_0 = arith.constant 0 : i32
    return %arg0, %c0_i32 : i32, i32
  }
  func.func @transform_1(%arg0: i32, %arg1: i32) -> (i32, i32) {
    %c0_i32 = arith.constant 0 : i32
    %c0_i32_0 = arith.constant 0 : i32
    return %c0_i32, %arg1 : i32, i32
  }
  func.func @transform_2(%arg0: i32, %arg1: i32) -> (i32, i32) {
    %c0_i32 = arith.constant 0 : i32
    %c0_i32_0 = arith.constant 0 : i32
    return %c0_i32, %arg1 : i32, i32
  }
  func.func @transform_3(%arg0: i32, %arg1: i32) -> (i32, i32) {
    %c0_i32 = arith.constant 0 : i32
    return %arg0, %arg1 : i32, i32
  }
}

module attributes {stable_mosaic.version = 11 : i64} {
  func.func @_mm_bias_act_kernel_1k(%arg0: i32, %arg1: i32, %arg2: memref<128x1280xbf16, #tpu.memory_space<vmem>>, %arg3: memref<1280x128xbf16, #tpu.memory_space<vmem>>, %arg4: memref<1x128xf32, #tpu.memory_space<vmem>>, %arg5: memref<128x128xf32, #tpu.memory_space<vmem>>) attributes {dimension_semantics = [#tpu.dimension_semantics<parallel>, #tpu.dimension_semantics<parallel>], iteration_bounds = array<i64: 1, 1>, scalar_prefetch = 0 : i64, scratch_operands = 0 : i64, tpu.core_type = #tpu.core_type<tc>, window_params = [{transform_indices = @transform_0, window_bounds = array<i64: 128, 1280>}, {transform_indices = @transform_1, window_bounds = array<i64: 1280, 128>}, {transform_indices = @transform_2, window_bounds = array<i64: 1, 128>}, {transform_indices = @transform_3, window_bounds = array<i64: 128, 128>}]} {
    %c0 = arith.constant 0 : index
    %c0_0 = arith.constant 0 : index
    %0 = vector.load %arg2[%c0, %c0_0] : memref<128x1280xbf16, #tpu.memory_space<vmem>>, vector<128x1280xbf16>
    %c0_1 = arith.constant 0 : index
    %c0_2 = arith.constant 0 : index
    %1 = vector.load %arg3[%c0_1, %c0_2] : memref<1280x128xbf16, #tpu.memory_space<vmem>>, vector<1280x128xbf16>
    %cst = arith.constant dense<0.000000e+00> : vector<128x128xf32>
    %2 = tpu.matmul %0, %1, %cst {dimension_numbers = #tpu.dot_dimension_numbers<[1], [0], [0], [1], [0, 0, 1, 1], [], []>} : vector<128x1280xbf16>, vector<1280x128xbf16>, vector<128x128xf32> -> vector<128x128xf32>
    %c0_3 = arith.constant 0 : index
    %c0_4 = arith.constant 0 : index
    %3 = vector.load %arg4[%c0_3, %c0_4] : memref<1x128xf32, #tpu.memory_space<vmem>>, vector<1x128xf32>
    %4 = vector.broadcast %3 : vector<1x128xf32> to vector<128x128xf32>
    %5 = arith.addf %2, %4 : vector<128x128xf32>
    %cst_5 = arith.constant 0.000000e+00 : f32
    %6 = vector.broadcast %cst_5 : f32 to vector<128x128xf32>
    %7 = arith.maximumf %5, %6 : vector<128x128xf32>
    %c0_6 = arith.constant 0 : index
    %c0_7 = arith.constant 0 : index
    %8 = vector.load %arg5[%c0_6, %c0_7] : memref<128x128xf32, #tpu.memory_space<vmem>>, vector<128x128xf32>
    tpu.vector_store %arg5[%c0_6, %c0_7], %7 {strides = array<i32>} : memref<128x128xf32, #tpu.memory_space<vmem>>, vector<128x128xf32>,
    return
  }
  func.func @transform_0(%arg0: i32, %arg1: i32) -> (i32, i32) {
    %c0_i32 = arith.constant 0 : i32
    %c0_i32_0 = arith.constant 0 : i32
    return %arg0, %c0_i32 : i32, i32
  }
  func.func @transform_1(%arg0: i32, %arg1: i32) -> (i32, i32) {
    %c0_i32 = arith.constant 0 : i32
    %c0_i32_0 = arith.constant 0 : i32
    return %c0_i32, %arg1 : i32, i32
  }
  func.func @transform_2(%arg0: i32, %arg1: i32) -> (i32, i32) {
    %c0_i32 = arith.constant 0 : i32
    %c0_i32_0 = arith.constant 0 : i32
    return %c0_i32, %arg1 : i32, i32
  }
  func.func @transform_3(%arg0: i32, %arg1: i32) -> (i32, i32) {
    %c0_i32 = arith.constant 0 : i32
    return %arg0, %arg1 : i32, i32
  }
}

module attributes {stable_mosaic.version = 11 : i64} {
  func.func @_mm_bias_act_kernel_1k(%arg0: i32, %arg1: i32, %arg2: memref<96x512xbf16, #tpu.memory_space<vmem>>, %arg3: memref<512x8xbf16, #tpu.memory_space<vmem>>, %arg4: memref<1x8xf32, #tpu.memory_space<vmem>>, %arg5: memref<96x8xf32, #tpu.memory_space<vmem>>) attributes {dimension_semantics = [#tpu.dimension_semantics<parallel>, #tpu.dimension_semantics<parallel>], iteration_bounds = array<i64: 2, 1>, scalar_prefetch = 0 : i64, scratch_operands = 0 : i64, tpu.core_type = #tpu.core_type<tc>, window_params = [{transform_indices = @transform_0, window_bounds = array<i64: 96, 512>}, {transform_indices = @transform_1, window_bounds = array<i64: 512, 8>}, {transform_indices = @transform_2, window_bounds = array<i64: 1, 8>}, {transform_indices = @transform_3, window_bounds = array<i64: 96, 8>}]} {
    %c0 = arith.constant 0 : index
    %c0_0 = arith.constant 0 : index
    %0 = vector.load %arg2[%c0, %c0_0] : memref<96x512xbf16, #tpu.memory_space<vmem>>, vector<96x512xbf16>
    %c0_1 = arith.constant 0 : index
    %c0_2 = arith.constant 0 : index
    %1 = vector.load %arg3[%c0_1, %c0_2] : memref<512x8xbf16, #tpu.memory_space<vmem>>, vector<512x8xbf16>
    %cst = arith.constant dense<0.000000e+00> : vector<96x8xf32>
    %2 = tpu.matmul %0, %1, %cst {dimension_numbers = #tpu.dot_dimension_numbers<[1], [0], [0], [1], [0, 0, 1, 1], [], []>} : vector<96x512xbf16>, vector<512x8xbf16>, vector<96x8xf32> -> vector<96x8xf32>
    %c0_3 = arith.constant 0 : index
    %c0_4 = arith.constant 0 : index
    %3 = vector.load %arg4[%c0_3, %c0_4] : memref<1x8xf32, #tpu.memory_space<vmem>>, vector<1x8xf32>
    %4 = vector.broadcast %3 : vector<1x8xf32> to vector<96x8xf32>
    %5 = arith.addf %2, %4 : vector<96x8xf32>
    %c0_5 = arith.constant 0 : index
    %c0_6 = arith.constant 0 : index
    %6 = vector.load %arg5[%c0_5, %c0_6] : memref<96x8xf32, #tpu.memory_space<vmem>>, vector<96x8xf32>
    tpu.vector_store %arg5[%c0_5, %c0_6], %5 {strides = array<i32>} : memref<96x8xf32, #tpu.memory_space<vmem>>, vector<96x8xf32>,
    return
  }
  func.func @transform_0(%arg0: i32, %arg1: i32) -> (i32, i32) {
    %c0_i32 = arith.constant 0 : i32
    %c0_i32_0 = arith.constant 0 : i32
    return %arg0, %c0_i32 : i32, i32
  }
  func.func @transform_1(%arg0: i32, %arg1: i32) -> (i32, i32) {
    %c0_i32 = arith.constant 0 : i32
    %c0_i32_0 = arith.constant 0 : i32
    return %c0_i32, %arg1 : i32, i32
  }
  func.func @transform_2(%arg0: i32, %arg1: i32) -> (i32, i32) {
    %c0_i32 = arith.constant 0 : i32
    %c0_i32_0 = arith.constant 0 : i32
    return %c0_i32, %arg1 : i32, i32
  }
  func.func @transform_3(%arg0: i32, %arg1: i32) -> (i32, i32) {
    %c0_i32 = arith.constant 0 : i32
    return %arg0, %arg1 : i32, i32
  }
}

module attributes {stable_mosaic.version = 11 : i64} {
  func.func @_mm_bias_act_kernel_1k(%arg0: i32, %arg1: i32, %arg2: memref<128x256xbf16, #tpu.memory_space<vmem>>, %arg3: memref<256x128xbf16, #tpu.memory_space<vmem>>, %arg4: memref<1x128xf32, #tpu.memory_space<vmem>>, %arg5: memref<128x128xf32, #tpu.memory_space<vmem>>) attributes {dimension_semantics = [#tpu.dimension_semantics<parallel>, #tpu.dimension_semantics<parallel>], iteration_bounds = array<i64: 4, 1>, scalar_prefetch = 0 : i64, scratch_operands = 0 : i64, tpu.core_type = #tpu.core_type<tc>, window_params = [{transform_indices = @transform_0, window_bounds = array<i64: 128, 256>}, {transform_indices = @transform_1, window_bounds = array<i64: 256, 128>}, {transform_indices = @transform_2, window_bounds = array<i64: 1, 128>}, {transform_indices = @transform_3, window_bounds = array<i64: 128, 128>}]} {
    %c0 = arith.constant 0 : index
    %c0_0 = arith.constant 0 : index
    %0 = vector.load %arg2[%c0, %c0_0] : memref<128x256xbf16, #tpu.memory_space<vmem>>, vector<128x256xbf16>
    %c0_1 = arith.constant 0 : index
    %c0_2 = arith.constant 0 : index
    %1 = vector.load %arg3[%c0_1, %c0_2] : memref<256x128xbf16, #tpu.memory_space<vmem>>, vector<256x128xbf16>
    %cst = arith.constant dense<0.000000e+00> : vector<128x128xf32>
    %2 = tpu.matmul %0, %1, %cst {dimension_numbers = #tpu.dot_dimension_numbers<[1], [0], [0], [1], [0, 0, 1, 1], [], []>} : vector<128x256xbf16>, vector<256x128xbf16>, vector<128x128xf32> -> vector<128x128xf32>
    %c0_3 = arith.constant 0 : index
    %c0_4 = arith.constant 0 : index
    %3 = vector.load %arg4[%c0_3, %c0_4] : memref<1x128xf32, #tpu.memory_space<vmem>>, vector<1x128xf32>
    %4 = vector.broadcast %3 : vector<1x128xf32> to vector<128x128xf32>
    %5 = arith.addf %2, %4 : vector<128x128xf32>
    %cst_5 = arith.constant 0.000000e+00 : f32
    %6 = vector.broadcast %cst_5 : f32 to vector<128x128xf32>
    %7 = arith.maximumf %5, %6 : vector<128x128xf32>
    %c0_6 = arith.constant 0 : index
    %c0_7 = arith.constant 0 : index
    %8 = vector.load %arg5[%c0_6, %c0_7] : memref<128x128xf32, #tpu.memory_space<vmem>>, vector<128x128xf32>
    tpu.vector_store %arg5[%c0_6, %c0_7], %7 {strides = array<i32>} : memref<128x128xf32, #tpu.memory_space<vmem>>, vector<128x128xf32>,
    return
  }
  func.func @transform_0(%arg0: i32, %arg1: i32) -> (i32, i32) {
    %c0_i32 = arith.constant 0 : i32
    %c0_i32_0 = arith.constant 0 : i32
    return %arg0, %c0_i32 : i32, i32
  }
  func.func @transform_1(%arg0: i32, %arg1: i32) -> (i32, i32) {
    %c0_i32 = arith.constant 0 : i32
    %c0_i32_0 = arith.constant 0 : i32
    return %c0_i32, %arg1 : i32, i32
  }
  func.func @transform_2(%arg0: i32, %arg1: i32) -> (i32, i32) {
    %c0_i32 = arith.constant 0 : i32
    %c0_i32_0 = arith.constant 0 : i32
    return %c0_i32, %arg1 : i32, i32
  }
  func.func @transform_3(%arg0: i32, %arg1: i32) -> (i32, i32) {
    %c0_i32 = arith.constant 0 : i32
    return %arg0, %arg1 : i32, i32
  }
}

module attributes {stable_mosaic.version = 11 : i64} {
  func.func @_mm_bias_act_kernel_1k(%arg0: i32, %arg1: i32, %arg2: memref<128x1280xbf16, #tpu.memory_space<vmem>>, %arg3: memref<1280x128xbf16, #tpu.memory_space<vmem>>, %arg4: memref<1x128xf32, #tpu.memory_space<vmem>>, %arg5: memref<128x128xf32, #tpu.memory_space<vmem>>) attributes {dimension_semantics = [#tpu.dimension_semantics<parallel>, #tpu.dimension_semantics<parallel>], iteration_bounds = array<i64: 4, 1>, scalar_prefetch = 0 : i64, scratch_operands = 0 : i64, tpu.core_type = #tpu.core_type<tc>, window_params = [{transform_indices = @transform_0, window_bounds = array<i64: 128, 1280>}, {transform_indices = @transform_1, window_bounds = array<i64: 1280, 128>}, {transform_indices = @transform_2, window_bounds = array<i64: 1, 128>}, {transform_indices = @transform_3, window_bounds = array<i64: 128, 128>}]} {
    %c0 = arith.constant 0 : index
    %c0_0 = arith.constant 0 : index
    %0 = vector.load %arg2[%c0, %c0_0] : memref<128x1280xbf16, #tpu.memory_space<vmem>>, vector<128x1280xbf16>
    %c0_1 = arith.constant 0 : index
    %c0_2 = arith.constant 0 : index
    %1 = vector.load %arg3[%c0_1, %c0_2] : memref<1280x128xbf16, #tpu.memory_space<vmem>>, vector<1280x128xbf16>
    %cst = arith.constant dense<0.000000e+00> : vector<128x128xf32>
    %2 = tpu.matmul %0, %1, %cst {dimension_numbers = #tpu.dot_dimension_numbers<[1], [0], [0], [1], [0, 0, 1, 1], [], []>} : vector<128x1280xbf16>, vector<1280x128xbf16>, vector<128x128xf32> -> vector<128x128xf32>
    %c0_3 = arith.constant 0 : index
    %c0_4 = arith.constant 0 : index
    %3 = vector.load %arg4[%c0_3, %c0_4] : memref<1x128xf32, #tpu.memory_space<vmem>>, vector<1x128xf32>
    %4 = vector.broadcast %3 : vector<1x128xf32> to vector<128x128xf32>
    %5 = arith.addf %2, %4 : vector<128x128xf32>
    %cst_5 = arith.constant 0.000000e+00 : f32
    %6 = vector.broadcast %cst_5 : f32 to vector<128x128xf32>
    %7 = arith.maximumf %5, %6 : vector<128x128xf32>
    %c0_6 = arith.constant 0 : index
    %c0_7 = arith.constant 0 : index
    %8 = vector.load %arg5[%c0_6, %c0_7] : memref<128x128xf32, #tpu.memory_space<vmem>>, vector<128x128xf32>
    tpu.vector_store %arg5[%c0_6, %c0_7], %7 {strides = array<i32>} : memref<128x128xf32, #tpu.memory_space<vmem>>, vector<128x128xf32>,
    return
  }
  func.func @transform_0(%arg0: i32, %arg1: i32) -> (i32, i32) {
    %c0_i32 = arith.constant 0 : i32
    %c0_i32_0 = arith.constant 0 : i32
    return %arg0, %c0_i32 : i32, i32
  }
  func.func @transform_1(%arg0: i32, %arg1: i32) -> (i32, i32) {
    %c0_i32 = arith.constant 0 : i32
    %c0_i32_0 = arith.constant 0 : i32
    return %c0_i32, %arg1 : i32, i32
  }
  func.func @transform_2(%arg0: i32, %arg1: i32) -> (i32, i32) {
    %c0_i32 = arith.constant 0 : i32
    %c0_i32_0 = arith.constant 0 : i32
    return %c0_i32, %arg1 : i32, i32
  }
  func.func @transform_3(%arg0: i32, %arg1: i32) -> (i32, i32) {
    %c0_i32 = arith.constant 0 : i32
    return %arg0, %arg1 : i32, i32
  }
}

module attributes {stable_mosaic.version = 11 : i64} {
  func.func @_mm_bias_act_kernel_1k(%arg0: i32, %arg1: i32, %arg2: memref<112x1152xbf16, #tpu.memory_space<vmem>>, %arg3: memref<1152x2xbf16, #tpu.memory_space<vmem>>, %arg4: memref<1x2xf32, #tpu.memory_space<vmem>>, %arg5: memref<112x2xf32, #tpu.memory_space<vmem>>) attributes {dimension_semantics = [#tpu.dimension_semantics<parallel>, #tpu.dimension_semantics<parallel>], iteration_bounds = array<i64: 6, 1>, scalar_prefetch = 0 : i64, scratch_operands = 0 : i64, tpu.core_type = #tpu.core_type<tc>, window_params = [{transform_indices = @transform_0, window_bounds = array<i64: 112, 1152>}, {transform_indices = @transform_1, window_bounds = array<i64: 1152, 2>}, {transform_indices = @transform_2, window_bounds = array<i64: 1, 2>}, {transform_indices = @transform_3, window_bounds = array<i64: 112, 2>}]} {
    %c0 = arith.constant 0 : index
    %c0_0 = arith.constant 0 : index
    %0 = vector.load %arg2[%c0, %c0_0] : memref<112x1152xbf16, #tpu.memory_space<vmem>>, vector<112x1152xbf16>
    %c0_1 = arith.constant 0 : index
    %c0_2 = arith.constant 0 : index
    %1 = vector.load %arg3[%c0_1, %c0_2] : memref<1152x2xbf16, #tpu.memory_space<vmem>>, vector<1152x2xbf16>
    %cst = arith.constant dense<0.000000e+00> : vector<112x2xf32>
    %2 = tpu.matmul %0, %1, %cst {dimension_numbers = #tpu.dot_dimension_numbers<[1], [0], [0], [1], [0, 0, 1, 1], [], []>} : vector<112x1152xbf16>, vector<1152x2xbf16>, vector<112x2xf32> -> vector<112x2xf32>
    %c0_3 = arith.constant 0 : index
    %c0_4 = arith.constant 0 : index
    %3 = vector.load %arg4[%c0_3, %c0_4] : memref<1x2xf32, #tpu.memory_space<vmem>>, vector<1x2xf32>
    %4 = vector.broadcast %3 : vector<1x2xf32> to vector<112x2xf32>
    %5 = arith.addf %2, %4 : vector<112x2xf32>
    %c0_5 = arith.constant 0 : index
    %c0_6 = arith.constant 0 : index
    %6 = vector.load %arg5[%c0_5, %c0_6] : memref<112x2xf32, #tpu.memory_space<vmem>>, vector<112x2xf32>
    tpu.vector_store %arg5[%c0_5, %c0_6], %5 {strides = array<i32>} : memref<112x2xf32, #tpu.memory_space<vmem>>, vector<112x2xf32>,
    return
  }
  func.func @transform_0(%arg0: i32, %arg1: i32) -> (i32, i32) {
    %c0_i32 = arith.constant 0 : i32
    %c0_i32_0 = arith.constant 0 : i32
    return %arg0, %c0_i32 : i32, i32
  }
  func.func @transform_1(%arg0: i32, %arg1: i32) -> (i32, i32) {
    %c0_i32 = arith.constant 0 : i32
    %c0_i32_0 = arith.constant 0 : i32
    return %c0_i32, %arg1 : i32, i32
  }
  func.func @transform_2(%arg0: i32, %arg1: i32) -> (i32, i32) {
    %c0_i32 = arith.constant 0 : i32
    %c0_i32_0 = arith.constant 0 : i32
    return %c0_i32, %arg1 : i32, i32
  }
  func.func @transform_3(%arg0: i32, %arg1: i32) -> (i32, i32) {
    %c0_i32 = arith.constant 0 : i32
    return %arg0, %arg1 : i32, i32
  }
}

module attributes {stable_mosaic.version = 11 : i64} {
  func.func @_mm_bias_act_kernel_1k(%arg0: i32, %arg1: i32, %arg2: memref<96x128xbf16, #tpu.memory_space<vmem>>, %arg3: memref<128x8xbf16, #tpu.memory_space<vmem>>, %arg4: memref<1x8xf32, #tpu.memory_space<vmem>>, %arg5: memref<96x8xf32, #tpu.memory_space<vmem>>) attributes {dimension_semantics = [#tpu.dimension_semantics<parallel>, #tpu.dimension_semantics<parallel>], iteration_bounds = array<i64: 2, 1>, scalar_prefetch = 0 : i64, scratch_operands = 0 : i64, tpu.core_type = #tpu.core_type<tc>, window_params = [{transform_indices = @transform_0, window_bounds = array<i64: 96, 128>}, {transform_indices = @transform_1, window_bounds = array<i64: 128, 8>}, {transform_indices = @transform_2, window_bounds = array<i64: 1, 8>}, {transform_indices = @transform_3, window_bounds = array<i64: 96, 8>}]} {
    %c0 = arith.constant 0 : index
    %c0_0 = arith.constant 0 : index
    %0 = vector.load %arg2[%c0, %c0_0] : memref<96x128xbf16, #tpu.memory_space<vmem>>, vector<96x128xbf16>
    %c0_1 = arith.constant 0 : index
    %c0_2 = arith.constant 0 : index
    %1 = vector.load %arg3[%c0_1, %c0_2] : memref<128x8xbf16, #tpu.memory_space<vmem>>, vector<128x8xbf16>
    %cst = arith.constant dense<0.000000e+00> : vector<96x8xf32>
    %2 = tpu.matmul %0, %1, %cst {dimension_numbers = #tpu.dot_dimension_numbers<[1], [0], [0], [1], [0, 0, 1, 1], [], []>} : vector<96x128xbf16>, vector<128x8xbf16>, vector<96x8xf32> -> vector<96x8xf32>
    %c0_3 = arith.constant 0 : index
    %c0_4 = arith.constant 0 : index
    %3 = vector.load %arg4[%c0_3, %c0_4] : memref<1x8xf32, #tpu.memory_space<vmem>>, vector<1x8xf32>
    %4 = vector.broadcast %3 : vector<1x8xf32> to vector<96x8xf32>
    %5 = arith.addf %2, %4 : vector<96x8xf32>
    %c0_5 = arith.constant 0 : index
    %c0_6 = arith.constant 0 : index
    %6 = vector.load %arg5[%c0_5, %c0_6] : memref<96x8xf32, #tpu.memory_space<vmem>>, vector<96x8xf32>
    tpu.vector_store %arg5[%c0_5, %c0_6], %5 {strides = array<i32>} : memref<96x8xf32, #tpu.memory_space<vmem>>, vector<96x8xf32>,
    return
  }
  func.func @transform_0(%arg0: i32, %arg1: i32) -> (i32, i32) {
    %c0_i32 = arith.constant 0 : i32
    %c0_i32_0 = arith.constant 0 : i32
    return %arg0, %c0_i32 : i32, i32
  }
  func.func @transform_1(%arg0: i32, %arg1: i32) -> (i32, i32) {
    %c0_i32 = arith.constant 0 : i32
    %c0_i32_0 = arith.constant 0 : i32
    return %c0_i32, %arg1 : i32, i32
  }
  func.func @transform_2(%arg0: i32, %arg1: i32) -> (i32, i32) {
    %c0_i32 = arith.constant 0 : i32
    %c0_i32_0 = arith.constant 0 : i32
    return %c0_i32, %arg1 : i32, i32
  }
  func.func @transform_3(%arg0: i32, %arg1: i32) -> (i32, i32) {
    %c0_i32 = arith.constant 0 : i32
    return %arg0, %arg1 : i32, i32
  }
}

module attributes {stable_mosaic.version = 11 : i64} {
  func.func @_mm_bias_act_kernel_1k(%arg0: i32, %arg1: i32, %arg2: memref<128x128xbf16, #tpu.memory_space<vmem>>, %arg3: memref<128x32xbf16, #tpu.memory_space<vmem>>, %arg4: memref<1x32xf32, #tpu.memory_space<vmem>>, %arg5: memref<128x32xf32, #tpu.memory_space<vmem>>) attributes {dimension_semantics = [#tpu.dimension_semantics<parallel>, #tpu.dimension_semantics<parallel>], iteration_bounds = array<i64: 5, 1>, scalar_prefetch = 0 : i64, scratch_operands = 0 : i64, tpu.core_type = #tpu.core_type<tc>, window_params = [{transform_indices = @transform_0, window_bounds = array<i64: 128, 128>}, {transform_indices = @transform_1, window_bounds = array<i64: 128, 32>}, {transform_indices = @transform_2, window_bounds = array<i64: 1, 32>}, {transform_indices = @transform_3, window_bounds = array<i64: 128, 32>}]} {
    %c0 = arith.constant 0 : index
    %c0_0 = arith.constant 0 : index
    %0 = vector.load %arg2[%c0, %c0_0] : memref<128x128xbf16, #tpu.memory_space<vmem>>, vector<128x128xbf16>
    %c0_1 = arith.constant 0 : index
    %c0_2 = arith.constant 0 : index
    %1 = vector.load %arg3[%c0_1, %c0_2] : memref<128x32xbf16, #tpu.memory_space<vmem>>, vector<128x32xbf16>
    %cst = arith.constant dense<0.000000e+00> : vector<128x32xf32>
    %2 = tpu.matmul %0, %1, %cst {dimension_numbers = #tpu.dot_dimension_numbers<[1], [0], [0], [1], [0, 0, 1, 1], [], []>} : vector<128x128xbf16>, vector<128x32xbf16>, vector<128x32xf32> -> vector<128x32xf32>
    %c0_3 = arith.constant 0 : index
    %c0_4 = arith.constant 0 : index
    %3 = vector.load %arg4[%c0_3, %c0_4] : memref<1x32xf32, #tpu.memory_space<vmem>>, vector<1x32xf32>
    %4 = vector.broadcast %3 : vector<1x32xf32> to vector<128x32xf32>
    %5 = arith.addf %2, %4 : vector<128x32xf32>
    %c0_5 = arith.constant 0 : index
    %c0_6 = arith.constant 0 : index
    %6 = vector.load %arg5[%c0_5, %c0_6] : memref<128x32xf32, #tpu.memory_space<vmem>>, vector<128x32xf32>
    tpu.vector_store %arg5[%c0_5, %c0_6], %5 {strides = array<i32>} : memref<128x32xf32, #tpu.memory_space<vmem>>, vector<128x32xf32>,
    return
  }
  func.func @transform_0(%arg0: i32, %arg1: i32) -> (i32, i32) {
    %c0_i32 = arith.constant 0 : i32
    %c0_i32_0 = arith.constant 0 : i32
    return %arg0, %c0_i32 : i32, i32
  }
  func.func @transform_1(%arg0: i32, %arg1: i32) -> (i32, i32) {
    %c0_i32 = arith.constant 0 : i32
    %c0_i32_0 = arith.constant 0 : i32
    return %c0_i32, %arg1 : i32, i32
  }
  func.func @transform_2(%arg0: i32, %arg1: i32) -> (i32, i32) {
    %c0_i32 = arith.constant 0 : i32
    %c0_i32_0 = arith.constant 0 : i32
    return %c0_i32, %arg1 : i32, i32
  }
  func.func @transform_3(%arg0: i32, %arg1: i32) -> (i32, i32) {
    %c0_i32 = arith.constant 0 : i32
    return %arg0, %arg1 : i32, i32
  }
}

</mosaic_0001>

<bundles_post_ra>
// kernel: refine_forward.11
= control target key start
LH: loop header
LB: loop body
LE: loop exit
PB: predicated region body
PF: predicated region fallthrough
CT: control target
= control target key end

     0   :  { %s4935_s12 = smov 0   ;;  %s4937_s13 = smov 0   ;;  %s5872_s0 = inlined_call_operand.vmem [shape: bf16[32,2048], index: 0, kind: input, shape index: {}]   ;;  %s5873_s1 = inlined_call_operand.vmem [shape: bf16[2048,256], index: 1, kind: input, shape index: {}]   ;;  %s5874_s2 = inlined_call_operand.vmem [shape: f32[1,256], index: 2, kind: input, shape index: {}]   ;;  %s5875_s3 = inlined_call_operand.vmem [shape: f32[32,256], index: 3, kind: output, shape index: {}]  }
   0x1   :  { %s4939_s14 = smov 0   ;;  %s4941_s15 = smov 0  }
   0x2   :  { %s4943_s16 = smov 0  }
   0x3 LB: > { %s22_s17 = sadd.s32 1, %s4909_s15  ;;  %s4020_s18 = sadd.s32 4294967295, %s4913_s16   ;;  %s4913_s16 = sphi %s4943_s16, %s13_s16   ;;  %s4909_s15 = sphi %s4941_s15, %s5880_s15   ;;  %s4905_s14 = sphi %s4939_s14, %s5879_s14   ;;  %s4901_s13 = sphi %s4937_s13, %s5878_s13   ;;  %s4897_s12 = sphi %s4935_s12, %s5877_s12  }
   0x4   : > { %p23_p0 = scmp.ge.s32.totalorder %s22_s17, 2  ;;  %p65_p1 = scmp.ne.s32.totalorder %s4901_s13, %s4897_s12 }
   0x5   : > { %p66_p2 = scmp.eq.s32.totalorder %s4913_s16, 0  ;;  %p123_p4 = scmp.eq.s32.totalorder %s4020_s18, 1 }
   0x6   : > { %s5882_s17 = smov (%p23_p0, %s22_s17), 0  ;;  %s58_s20 = sadd.s32 1, %s4901_s13 }
   0x7   : > { %p67_p3 = por %p66_p2, %p65_p1  ;;  %s55_s19 = ssub.s32 %s4909_s15, %s5882_s17 }
   0x8   : > { %p56_p5 = scmp.eq.s32.totalorder %s55_s19, 0  ;;  %p4970_p6 = por %p123_p4, %p65_p1 }
   0x9   : > { %p4024_p7 = scmp.ge.s32.totalorder %s4913_s16, 2 }
   0xa   : > { %s4975_s22 = scalar_select %p56_p5, %s4901_s13, %s58_s20  }
   0xb   : > { %155 = sbr.rel (%p4024_p7) target bundleno = 276 (0x114), region = 20 }
  0x10   : > { %158 = sbr.rel (!%p67_p3) target bundleno = 276 (0x114), region = 24  ;;  %s160_s23 = sand.u32 (%p67_p3), 1, %s4901_s13  }
  0x11   : > { %s4026_s24 = sshll.u32 (%p67_p3), %s4909_s15, 2  ;;  %s4025_s25 = sshll.u32 (%p67_p3), %s160_s23, 10 }
  0x12   : > { %s4983_s28 = scalar_lea.vmem (%p67_p3), %s5873_s1, %s4026_s24  ;;  %s4987_s29 = scalar_lea.vmem (%p67_p3), [#allocation2], %s4025_s25 }
  0x13   : > { %v181_v0 = vld [vmem:[%s4983_s28] sm:$0xf] (%p67_p3)  ;;  %v183_v1 = vld [vmem:[%s4983_s28 + $0x8] sm:$0xf] (%p67_p3)  ;;  %v185_v2 = vld [vmem:[%s4983_s28 + $0x10] sm:$0xf] (%p67_p3) }
  0x14   : > { %182 = vst [vmem:[%s4987_s29] sm:$0xf] (%p67_p3), %v181_v0  ;;  %v187_v3 = vld [vmem:[%s4983_s28 + $0x18] sm:$0xf] (%p67_p3)  ;;  %v189_v4 = vld [vmem:[%s4983_s28 + $0x20] sm:$0xf] (%p67_p3) }
  0x15   : > { %184 = vst [vmem:[%s4987_s29 + $0x4] sm:$0xf] %v183_v1  ;;  %v191_v5 = vld [vmem:[%s4983_s28 + $0x28] sm:$0xf]  ;;  %v193_v6 = vld [vmem:[%s4983_s28 + $0x30] sm:$0xf] }
  0x16   : > { %186 = vst [vmem:[%s4987_s29 + $0x8] sm:$0xf] %v185_v2  ;;  %v195_v7 = vld [vmem:[%s4983_s28 + $0x38] sm:$0xf]  ;;  %v197_v8 = vld [vmem:[%s4983_s28 + $0x40] sm:$0xf] }
  0x17   : > { %188 = vst [vmem:[%s4987_s29 + $0xc] sm:$0xf] %v187_v3  ;;  %v199_v9 = vld [vmem:[%s4983_s28 + $0x48] sm:$0xf]  ;;  %v201_v10 = vld [vmem:[%s4983_s28 + $0x50] sm:$0xf] }
  0x18   : > { %190 = vst [vmem:[%s4987_s29 + $0x10] sm:$0xf] %v189_v4  ;;  %v203_v11 = vld [vmem:[%s4983_s28 + $0x58] sm:$0xf]  ;;  %v205_v12 = vld [vmem:[%s4983_s28 + $0x60] sm:$0xf] }
  0x19   : > { %192 = vst [vmem:[%s4987_s29 + $0x14] sm:$0xf] %v191_v5  ;;  %v207_v13 = vld [vmem:[%s4983_s28 + $0x68] sm:$0xf]  ;;  %v209_v14 = vld [vmem:[%s4983_s28 + $0x70] sm:$0xf] }
  0x1a   : > { %194 = vst [vmem:[%s4987_s29 + $0x18] sm:$0xf] %v193_v6  ;;  %v211_v15 = vld [vmem:[%s4983_s28 + $0x78] sm:$0xf]  ;;  %v213_v16 = vld [vmem:[%s4983_s28 + $0x80] sm:$0xf] }
  0x1b   : > { %196 = vst [vmem:[%s4987_s29 + $0x1c] sm:$0xf] %v195_v7  ;;  %v215_v17 = vld [vmem:[%s4983_s28 + $0x88] sm:$0xf]  ;;  %v217_v18 = vld [vmem:[%s4983_s28 + $0x90] sm:$0xf] }
  0x1c   : > { %198 = vst [vmem:[%s4987_s29 + $0x20] sm:$0xf] %v197_v8  ;;  %v219_v19 = vld [vmem:[%s4983_s28 + $0x98] sm:$0xf]  ;;  %v221_v20 = vld [vmem:[%s4983_s28 + $0xa0] sm:$0xf] }
  0x1d   : > { %200 = vst [vmem:[%s4987_s29 + $0x24] sm:$0xf] %v199_v9  ;;  %v223_v21 = vld [vmem:[%s4983_s28 + $0xa8] sm:$0xf]  ;;  %v225_v22 = vld [vmem:[%s4983_s28 + $0xb0] sm:$0xf] }
  0x1e   : > { %202 = vst [vmem:[%s4987_s29 + $0x28] sm:$0xf] %v201_v10  ;;  %v227_v23 = vld [vmem:[%s4983_s28 + $0xb8] sm:$0xf]  ;;  %v229_v24 = vld [vmem:[%s4983_s28 + $0xc0] sm:$0xf] }
  0x1f   : > { %204 = vst [vmem:[%s4987_s29 + $0x2c] sm:$0xf] %v203_v11  ;;  %v231_v25 = vld [vmem:[%s4983_s28 + $0xc8] sm:$0xf]  ;;  %v233_v26 = vld [vmem:[%s4983_s28 + $0xd0] sm:$0xf] }
  0x20   : > { %206 = vst [vmem:[%s4987_s29 + $0x30] sm:$0xf] %v205_v12  ;;  %v235_v27 = vld [vmem:[%s4983_s28 + $0xd8] sm:$0xf]  ;;  %v237_v28 = vld [vmem:[%s4983_s28 + $0xe0] sm:$0xf] }
  0x21   : > { %208 = vst [vmem:[%s4987_s29 + $0x34] sm:$0xf] %v207_v13  ;;  %v239_v29 = vld [vmem:[%s4983_s28 + $0xe8] sm:$0xf]  ;;  %v241_v30 = vld [vmem:[%s4983_s28 + $0xf0] sm:$0xf] }
  0x22   : > { %210 = vst [vmem:[%s4987_s29 + $0x38] sm:$0xf] %v209_v14  ;;  %v243_v31 = vld [vmem:[%s4983_s28 + $0xf8] sm:$0xf]  ;;  %v245_v32 = vld [vmem:[%s4983_s28 + $0x100] sm:$0xf] }
  0x23   : > { %212 = vst [vmem:[%s4987_s29 + $0x3c] sm:$0xf] %v211_v15  ;;  %v247_v33 = vld [vmem:[%s4983_s28 + $0x108] sm:$0xf]  ;;  %v249_v34 = vld [vmem:[%s4983_s28 + $0x110] sm:$0xf] }
  0x24   : > { %214 = vst [vmem:[%s4987_s29 + $0x40] sm:$0xf] %v213_v16  ;;  %v251_v35 = vld [vmem:[%s4983_s28 + $0x118] sm:$0xf]  ;;  %v253_v36 = vld [vmem:[%s4983_s28 + $0x120] sm:$0xf] }
  0x25   : > { %216 = vst [vmem:[%s4987_s29 + $0x44] sm:$0xf] %v215_v17  ;;  %v255_v37 = vld [vmem:[%s4983_s28 + $0x128] sm:$0xf]  ;;  %v257_v38 = vld [vmem:[%s4983_s28 + $0x130] sm:$0xf] }
  0x26   : > { %218 = vst [vmem:[%s4987_s29 + $0x48] sm:$0xf] %v217_v18  ;;  %v259_v39 = vld [vmem:[%s4983_s28 + $0x138] sm:$0xf]  ;;  %v261_v40 = vld [vmem:[%s4983_s28 + $0x140] sm:$0xf] }
  0x27   : > { %220 = vst [vmem:[%s4987_s29 + $0x4c] sm:$0xf] %v219_v19  ;;  %v263_v41 = vld [vmem:[%s4983_s28 + $0x148] sm:$0xf]  ;;  %v265_v42 = vld [vmem:[%s4983_s28 + $0x150] sm:$0xf] }
  0x28   : > { %222 = vst [vmem:[%s4987_s29 + $0x50] sm:$0xf] %v221_v20  ;;  %v267_v43 = vld [vmem:[%s4983_s28 + $0x158] sm:$0xf]  ;;  %v269_v44 = vld [vmem:[%s4983_s28 + $0x160] sm:$0xf] }
  0x29   : > { %224 = vst [vmem:[%s4987_s29 + $0x54] sm:$0xf] %v223_v21  ;;  %v271_v45 = vld [vmem:[%s4983_s28 + $0x168] sm:$0xf]  ;;  %v273_v46 = vld [vmem:[%s4983_s28 + $0x170] sm:$0xf] }
  0x2a   : > { %226 = vst [vmem:[%s4987_s29 + $0x58] sm:$0xf] %v225_v22  ;;  %v275_v47 = vld [vmem:[%s4983_s28 + $0x178] sm:$0xf]  ;;  %v277_v48 = vld [vmem:[%s4983_s28 + $0x180] sm:$0xf] }
  0x2b   : > { %228 = vst [vmem:[%s4987_s29 + $0x5c] sm:$0xf] %v227_v23  ;;  %v279_v49 = vld [vmem:[%s4983_s28 + $0x188] sm:$0xf]  ;;  %v281_v50 = vld [vmem:[%s4983_s28 + $0x190] sm:$0xf] }
  0x2c   : > { %230 = vst [vmem:[%s4987_s29 + $0x60] sm:$0xf] %v229_v24  ;;  %v283_v51 = vld [vmem:[%s4983_s28 + $0x198] sm:$0xf]  ;;  %v285_v52 = vld [vmem:[%s4983_s28 + $0x1a0] sm:$0xf] }
  0x2d   : > { %232 = vst [vmem:[%s4987_s29 + $0x64] sm:$0xf] %v231_v25  ;;  %v287_v53 = vld [vmem:[%s4983_s28 + $0x1a8] sm:$0xf]  ;;  %v289_v54 = vld [vmem:[%s4983_s28 + $0x1b0] sm:$0xf] }
  0x2e   : > { %234 = vst [vmem:[%s4987_s29 + $0x68] sm:$0xf] %v233_v26  ;;  %v291_v55 = vld [vmem:[%s4983_s28 + $0x1b8] sm:$0xf]  ;;  %v293_v56 = vld [vmem:[%s4983_s28 + $0x1c0] sm:$0xf] }
  0x2f   : > { %236 = vst [vmem:[%s4987_s29 + $0x6c] sm:$0xf] %v235_v27  ;;  %v295_v57 = vld [vmem:[%s4983_s28 + $0x1c8] sm:$0xf]  ;;  %v297_v58 = vld [vmem:[%s4983_s28 + $0x1d0] sm:$0xf] }
  0x30   : > { %238 = vst [vmem:[%s4987_s29 + $0x70] sm:$0xf] %v237_v28  ;;  %v299_v59 = vld [vmem:[%s4983_s28 + $0x1d8] sm:$0xf]  ;;  %v301_v60 = vld [vmem:[%s4983_s28 + $0x1e0] sm:$0xf] }
  0x31   : > { %240 = vst [vmem:[%s4987_s29 + $0x74] sm:$0xf] %v239_v29  ;;  %v303_v61 = vld [vmem:[%s4983_s28 + $0x1e8] sm:$0xf]  ;;  %v305_v62 = vld [vmem:[%s4983_s28 + $0x1f0] sm:$0xf] }
  0x32   : > { %242 = vst [vmem:[%s4987_s29 + $0x78] sm:$0xf] %v241_v30  ;;  %v307_v63 = vld [vmem:[%s4983_s28 + $0x1f8] sm:$0xf]  ;;  %v309_v0 = vld [vmem:[%s4983_s28 + $0x200] sm:$0xf] }
  0x33   : > { %244 = vst [vmem:[%s4987_s29 + $0x7c] sm:$0xf] %v243_v31  ;;  %v311_v1 = vld [vmem:[%s4983_s28 + $0x208] sm:$0xf]  ;;  %v313_v2 = vld [vmem:[%s4983_s28 + $0x210] sm:$0xf] }
  0x34   : > { %246 = vst [vmem:[%s4987_s29 + $0x80] sm:$0xf] %v245_v32  ;;  %v315_v3 = vld [vmem:[%s4983_s28 + $0x218] sm:$0xf]  ;;  %v317_v4 = vld [vmem:[%s4983_s28 + $0x220] sm:$0xf] }
  0x35   : > { %248 = vst [vmem:[%s4987_s29 + $0x84] sm:$0xf] %v247_v33  ;;  %v319_v5 = vld [vmem:[%s4983_s28 + $0x228] sm:$0xf]  ;;  %v321_v6 = vld [vmem:[%s4983_s28 + $0x230] sm:$0xf] }
  0x36   : > { %250 = vst [vmem:[%s4987_s29 + $0x88] sm:$0xf] %v249_v34  ;;  %v323_v7 = vld [vmem:[%s4983_s28 + $0x238] sm:$0xf]  ;;  %v325_v8 = vld [vmem:[%s4983_s28 + $0x240] sm:$0xf] }
  0x37   : > { %252 = vst [vmem:[%s4987_s29 + $0x8c] sm:$0xf] %v251_v35  ;;  %v327_v9 = vld [vmem:[%s4983_s28 + $0x248] sm:$0xf]  ;;  %v329_v10 = vld [vmem:[%s4983_s28 + $0x250] sm:$0xf] }
  0x38   : > { %254 = vst [vmem:[%s4987_s29 + $0x90] sm:$0xf] %v253_v36  ;;  %v331_v11 = vld [vmem:[%s4983_s28 + $0x258] sm:$0xf]  ;;  %v333_v12 = vld [vmem:[%s4983_s28 + $0x260] sm:$0xf] }
  0x39   : > { %256 = vst [vmem:[%s4987_s29 + $0x94] sm:$0xf] %v255_v37  ;;  %v335_v13 = vld [vmem:[%s4983_s28 + $0x268] sm:$0xf]  ;;  %v337_v14 = vld [vmem:[%s4983_s28 + $0x270] sm:$0xf] }
  0x3a   : > { %258 = vst [vmem:[%s4987_s29 + $0x98] sm:$0xf] %v257_v38  ;;  %v339_v15 = vld [vmem:[%s4983_s28 + $0x278] sm:$0xf]  ;;  %v341_v16 = vld [vmem:[%s4983_s28 + $0x280] sm:$0xf] }
  0x3b   : > { %260 = vst [vmem:[%s4987_s29 + $0x9c] sm:$0xf] %v259_v39  ;;  %v343_v17 = vld [vmem:[%s4983_s28 + $0x288] sm:$0xf]  ;;  %v345_v18 = vld [vmem:[%s4983_s28 + $0x290] sm:$0xf] }
  0x3c   : > { %262 = vst [vmem:[%s4987_s29 + $0xa0] sm:$0xf] %v261_v40  ;;  %v347_v19 = vld [vmem:[%s4983_s28 + $0x298] sm:$0xf]  ;;  %v349_v20 = vld [vmem:[%s4983_s28 + $0x2a0] sm:$0xf] }
  0x3d   : > { %264 = vst [vmem:[%s4987_s29 + $0xa4] sm:$0xf] %v263_v41  ;;  %v351_v21 = vld [vmem:[%s4983_s28 + $0x2a8] sm:$0xf]  ;;  %v353_v22 = vld [vmem:[%s4983_s28 + $0x2b0] sm:$0xf] }
  0x3e   : > { %266 = vst [vmem:[%s4987_s29 + $0xa8] sm:$0xf] %v265_v42  ;;  %v355_v23 = vld [vmem:[%s4983_s28 + $0x2b8] sm:$0xf]  ;;  %v357_v24 = vld [vmem:[%s4983_s28 + $0x2c0] sm:$0xf] }
  0x3f   : > { %268 = vst [vmem:[%s4987_s29 + $0xac] sm:$0xf] %v267_v43  ;;  %v359_v25 = vld [vmem:[%s4983_s28 + $0x2c8] sm:$0xf]  ;;  %v361_v26 = vld [vmem:[%s4983_s28 + $0x2d0] sm:$0xf] }
  0x40   : > { %270 = vst [vmem:[%s4987_s29 + $0xb0] sm:$0xf] %v269_v44  ;;  %v363_v27 = vld [vmem:[%s4983_s28 + $0x2d8] sm:$0xf]  ;;  %v365_v28 = vld [vmem:[%s4983_s28 + $0x2e0] sm:$0xf] }
  0x41   : > { %272 = vst [vmem:[%s4987_s29 + $0xb4] sm:$0xf] %v271_v45  ;;  %v367_v29 = vld [vmem:[%s4983_s28 + $0x2e8] sm:$0xf]  ;;  %v369_v30 = vld [vmem:[%s4983_s28 + $0x2f0] sm:$0xf] }
  0x42   : > { %274 = vst [vmem:[%s4987_s29 + $0xb8] sm:$0xf] %v273_v46  ;;  %v371_v31 = vld [vmem:[%s4983_s28 + $0x2f8] sm:$0xf]  ;;  %v373_v32 = vld [vmem:[%s4983_s28 + $0x300] sm:$0xf] }
  0x43   : > { %276 = vst [vmem:[%s4987_s29 + $0xbc] sm:$0xf] %v275_v47  ;;  %v375_v33 = vld [vmem:[%s4983_s28 + $0x308] sm:$0xf]  ;;  %v377_v34 = vld [vmem:[%s4983_s28 + $0x310] sm:$0xf] }
  0x44   : > { %278 = vst [vmem:[%s4987_s29 + $0xc0] sm:$0xf] %v277_v48  ;;  %v379_v35 = vld [vmem:[%s4983_s28 + $0x318] sm:$0xf]  ;;  %v381_v36 = vld [vmem:[%s4983_s28 + $0x320] sm:$0xf] }
  0x45   : > { %280 = vst [vmem:[%s4987_s29 + $0xc4] sm:$0xf] %v279_v49  ;;  %v383_v37 = vld [vmem:[%s4983_s28 + $0x328] sm:$0xf]  ;;  %v385_v38 = vld [vmem:[%s4983_s28 + $0x330] sm:$0xf] }
  0x46   : > { %282 = vst [vmem:[%s4987_s29 + $0xc8] sm:$0xf] %v281_v50  ;;  %v387_v39 = vld [vmem:[%s4983_s28 + $0x338] sm:$0xf]  ;;  %v389_v40 = vld [vmem:[%s4983_s28 + $0x340] sm:$0xf] }
  0x47   : > { %284 = vst [vmem:[%s4987_s29 + $0xcc] sm:$0xf] %v283_v51  ;;  %v391_v41 = vld [vmem:[%s4983_s28 + $0x348] sm:$0xf]  ;;  %v393_v42 = vld [vmem:[%s4983_s28 + $0x350] sm:$0xf] }
  0x48   : > { %286 = vst [vmem:[%s4987_s29 + $0xd0] sm:$0xf] %v285_v52  ;;  %v395_v43 = vld [vmem:[%s4983_s28 + $0x358] sm:$0xf]  ;;  %v397_v44 = vld [vmem:[%s4983_s28 + $0x360] sm:$0xf] }
  0x49   : > { %288 = vst [vmem:[%s4987_s29 + $0xd4] sm:$0xf] %v287_v53  ;;  %v399_v45 = vld [vmem:[%s4983_s28 + $0x368] sm:$0xf]  ;;  %v401_v46 = vld [vmem:[%s4983_s28 + $0x370] sm:$0xf] }
  0x4a   : > { %290 = vst [vmem:[%s4987_s29 + $0xd8] sm:$0xf] %v289_v54  ;;  %v403_v47 = vld [vmem:[%s4983_s28 + $0x378] sm:$0xf]  ;;  %v405_v48 = vld [vmem:[%s4983_s28 + $0x380] sm:$0xf] }
  0x4b   : > { %292 = vst [vmem:[%s4987_s29 + $0xdc] sm:$0xf] %v291_v55  ;;  %v407_v49 = vld [vmem:[%s4983_s28 + $0x388] sm:$0xf]  ;;  %v409_v50 = vld [vmem:[%s4983_s28 + $0x390] sm:$0xf] }
  0x4c   : > { %294 = vst [vmem:[%s4987_s29 + $0xe0] sm:$0xf] %v293_v56  ;;  %v411_v51 = vld [vmem:[%s4983_s28 + $0x398] sm:$0xf]  ;;  %v413_v52 = vld [vmem:[%s4983_s28 + $0x3a0] sm:$0xf] }
  0x4d   : > { %296 = vst [vmem:[%s4987_s29 + $0xe4] sm:$0xf] %v295_v57  ;;  %v415_v53 = vld [vmem:[%s4983_s28 + $0x3a8] sm:$0xf]  ;;  %v417_v54 = vld [vmem:[%s4983_s28 + $0x3b0] sm:$0xf] }
  0x4e   : > { %298 = vst [vmem:[%s4987_s29 + $0xe8] sm:$0xf] %v297_v58  ;;  %v419_v55 = vld [vmem:[%s4983_s28 + $0x3b8] sm:$0xf]  ;;  %v421_v56 = vld [vmem:[%s4983_s28 + $0x3c0] sm:$0xf] }
  0x4f   : > { %300 = vst [vmem:[%s4987_s29 + $0xec] sm:$0xf] %v299_v59  ;;  %v423_v57 = vld [vmem:[%s4983_s28 + $0x3c8] sm:$0xf]  ;;  %v425_v58 = vld [vmem:[%s4983_s28 + $0x3d0] sm:$0xf] }
  0x50   : > { %302 = vst [vmem:[%s4987_s29 + $0xf0] sm:$0xf] %v301_v60  ;;  %v427_v59 = vld [vmem:[%s4983_s28 + $0x3d8] sm:$0xf]  ;;  %v429_v60 = vld [vmem:[%s4983_s28 + $0x3e0] sm:$0xf] }
  0x51   : > { %304 = vst [vmem:[%s4987_s29 + $0xf4] sm:$0xf] %v303_v61  ;;  %v431_v61 = vld [vmem:[%s4983_s28 + $0x3e8] sm:$0xf] }
  0x52   : > { %306 = vst [vmem:[%s4987_s29 + $0xf8] sm:$0xf] %v305_v62  ;;  %v433_v62 = vld [vmem:[%s4983_s28 + $0x3f0] sm:$0xf] }
  0x53   : > { %308 = vst [vmem:[%s4987_s29 + $0xfc] sm:$0xf] %v307_v63  ;;  %v435_v63 = vld [vmem:[%s4983_s28 + $0x3f8] sm:$0xf] }
  0x54   : > { %310 = vst [vmem:[%s4987_s29 + $0x100] sm:$0xf] %v309_v0  ;;  %v437_v0 = vld [vmem:[%s4983_s28 + $0x400] sm:$0xf] }
  0x55   : > { %312 = vst [vmem:[%s4987_s29 + $0x104] sm:$0xf] %v311_v1  ;;  %v439_v1 = vld [vmem:[%s4983_s28 + $0x408] sm:$0xf] }
  0x56   : > { %314 = vst [vmem:[%s4987_s29 + $0x108] sm:$0xf] %v313_v2  ;;  %v441_v2 = vld [vmem:[%s4983_s28 + $0x410] sm:$0xf] }
  0x57   : > { %316 = vst [vmem:[%s4987_s29 + $0x10c] sm:$0xf] %v315_v3  ;;  %v443_v3 = vld [vmem:[%s4983_s28 + $0x418] sm:$0xf] }
  0x58   : > { %318 = vst [vmem:[%s4987_s29 + $0x110] sm:$0xf] %v317_v4  ;;  %v445_v4 = vld [vmem:[%s4983_s28 + $0x420] sm:$0xf] }
  0x59   : > { %320 = vst [vmem:[%s4987_s29 + $0x114] sm:$0xf] %v319_v5  ;;  %v447_v5 = vld [vmem:[%s4983_s28 + $0x428] sm:$0xf] }
  0x5a   : > { %322 = vst [vmem:[%s4987_s29 + $0x118] sm:$0xf] %v321_v6  ;;  %v449_v6 = vld [vmem:[%s4983_s28 + $0x430] sm:$0xf] }
  0x5b   : > { %324 = vst [vmem:[%s4987_s29 + $0x11c] sm:$0xf] %v323_v7  ;;  %v451_v7 = vld [vmem:[%s4983_s28 + $0x438] sm:$0xf] }
  0x5c   : > { %326 = vst [vmem:[%s4987_s29 + $0x120] sm:$0xf] %v325_v8  ;;  %v453_v8 = vld [vmem:[%s4983_s28 + $0x440] sm:$0xf] }
  0x5d   : > { %328 = vst [vmem:[%s4987_s29 + $0x124] sm:$0xf] %v327_v9  ;;  %v455_v9 = vld [vmem:[%s4983_s28 + $0x448] sm:$0xf] }
  0x5e   : > { %330 = vst [vmem:[%s4987_s29 + $0x128] sm:$0xf] %v329_v10  ;;  %v457_v10 = vld [vmem:[%s4983_s28 + $0x450] sm:$0xf] }
  0x5f   : > { %332 = vst [vmem:[%s4987_s29 + $0x12c] sm:$0xf] %v331_v11  ;;  %v459_v11 = vld [vmem:[%s4983_s28 + $0x458] sm:$0xf] }
  0x60   : > { %334 = vst [vmem:[%s4987_s29 + $0x130] sm:$0xf] %v333_v12  ;;  %v461_v12 = vld [vmem:[%s4983_s28 + $0x460] sm:$0xf] }
  0x61   : > { %336 = vst [vmem:[%s4987_s29 + $0x134] sm:$0xf] %v335_v13  ;;  %v463_v13 = vld [vmem:[%s4983_s28 + $0x468] sm:$0xf] }
  0x62   : > { %338 = vst [vmem:[%s4987_s29 + $0x138] sm:$0xf] %v337_v14  ;;  %v465_v14 = vld [vmem:[%s4983_s28 + $0x470] sm:$0xf] }
  0x63   : > { %340 = vst [vmem:[%s4987_s29 + $0x13c] sm:$0xf] %v339_v15  ;;  %v467_v15 = vld [vmem:[%s4983_s28 + $0x478] sm:$0xf] }
  0x64   : > { %342 = vst [vmem:[%s4987_s29 + $0x140] sm:$0xf] %v341_v16  ;;  %v469_v16 = vld [vmem:[%s4983_s28 + $0x480] sm:$0xf] }
  0x65   : > { %344 = vst [vmem:[%s4987_s29 + $0x144] sm:$0xf] %v343_v17  ;;  %v471_v17 = vld [vmem:[%s4983_s28 + $0x488] sm:$0xf] }
  0x66   : > { %346 = vst [vmem:[%s4987_s29 + $0x148] sm:$0xf] %v345_v18  ;;  %v473_v18 = vld [vmem:[%s4983_s28 + $0x490] sm:$0xf] }
  0x67   : > { %348 = vst [vmem:[%s4987_s29 + $0x14c] sm:$0xf] %v347_v19  ;;  %v475_v19 = vld [vmem:[%s4983_s28 + $0x498] sm:$0xf] }
  0x68   : > { %350 = vst [vmem:[%s4987_s29 + $0x150] sm:$0xf] %v349_v20  ;;  %v477_v20 = vld [vmem:[%s4983_s28 + $0x4a0] sm:$0xf] }
  0x69   : > { %352 = vst [vmem:[%s4987_s29 + $0x154] sm:$0xf] %v351_v21  ;;  %v479_v21 = vld [vmem:[%s4983_s28 + $0x4a8] sm:$0xf] }
  0x6a   : > { %354 = vst [vmem:[%s4987_s29 + $0x158] sm:$0xf] %v353_v22  ;;  %v481_v22 = vld [vmem:[%s4983_s28 + $0x4b0] sm:$0xf] }
  0x6b   : > { %356 = vst [vmem:[%s4987_s29 + $0x15c] sm:$0xf] %v355_v23  ;;  %v483_v23 = vld [vmem:[%s4983_s28 + $0x4b8] sm:$0xf] }
  0x6c   : > { %358 = vst [vmem:[%s4987_s29 + $0x160] sm:$0xf] %v357_v24  ;;  %v485_v24 = vld [vmem:[%s4983_s28 + $0x4c0] sm:$0xf] }
  0x6d   : > { %360 = vst [vmem:[%s4987_s29 + $0x164] sm:$0xf] %v359_v25  ;;  %v487_v25 = vld [vmem:[%s4983_s28 + $0x4c8] sm:$0xf] }
  0x6e   : > { %362 = vst [vmem:[%s4987_s29 + $0x168] sm:$0xf] %v361_v26  ;;  %v489_v26 = vld [vmem:[%s4983_s28 + $0x4d0] sm:$0xf] }
  0x6f   : > { %364 = vst [vmem:[%s4987_s29 + $0x16c] sm:$0xf] %v363_v27  ;;  %v491_v27 = vld [vmem:[%s4983_s28 + $0x4d8] sm:$0xf] }
  0x70   : > { %366 = vst [vmem:[%s4987_s29 + $0x170] sm:$0xf] %v365_v28  ;;  %v493_v28 = vld [vmem:[%s4983_s28 + $0x4e0] sm:$0xf] }
  0x71   : > { %368 = vst [vmem:[%s4987_s29 + $0x174] sm:$0xf] %v367_v29  ;;  %v495_v29 = vld [vmem:[%s4983_s28 + $0x4e8] sm:$0xf] }
  0x72   : > { %370 = vst [vmem:[%s4987_s29 + $0x178] sm:$0xf] %v369_v30  ;;  %v497_v30 = vld [vmem:[%s4983_s28 + $0x4f0] sm:$0xf] }
  0x73   : > { %372 = vst [vmem:[%s4987_s29 + $0x17c] sm:$0xf] %v371_v31  ;;  %v499_v31 = vld [vmem:[%s4983_s28 + $0x4f8] sm:$0xf] }
  0x74   : > { %374 = vst [vmem:[%s4987_s29 + $0x180] sm:$0xf] %v373_v32  ;;  %v501_v32 = vld [vmem:[%s4983_s28 + $0x500] sm:$0xf] }
  0x75   : > { %376 = vst [vmem:[%s4987_s29 + $0x184] sm:$0xf] %v375_v33  ;;  %v503_v33 = vld [vmem:[%s4983_s28 + $0x508] sm:$0xf] }
  0x76   : > { %378 = vst [vmem:[%s4987_s29 + $0x188] sm:$0xf] %v377_v34  ;;  %v505_v34 = vld [vmem:[%s4983_s28 + $0x510] sm:$0xf] }
  0x77   : > { %380 = vst [vmem:[%s4987_s29 + $0x18c] sm:$0xf] %v379_v35  ;;  %v507_v35 = vld [vmem:[%s4983_s28 + $0x518] sm:$0xf] }
  0x78   : > { %382 = vst [vmem:[%s4987_s29 + $0x190] sm:$0xf] %v381_v36  ;;  %v509_v36 = vld [vmem:[%s4983_s28 + $0x520] sm:$0xf] }
  0x79   : > { %384 = vst [vmem:[%s4987_s29 + $0x194] sm:$0xf] %v383_v37  ;;  %v511_v37 = vld [vmem:[%s4983_s28 + $0x528] sm:$0xf] }
  0x7a   : > { %386 = vst [vmem:[%s4987_s29 + $0x198] sm:$0xf] %v385_v38  ;;  %v513_v38 = vld [vmem:[%s4983_s28 + $0x530] sm:$0xf] }
  0x7b   : > { %388 = vst [vmem:[%s4987_s29 + $0x19c] sm:$0xf] %v387_v39  ;;  %v515_v39 = vld [vmem:[%s4983_s28 + $0x538] sm:$0xf] }
  0x7c   : > { %390 = vst [vmem:[%s4987_s29 + $0x1a0] sm:$0xf] %v389_v40  ;;  %v517_v40 = vld [vmem:[%s4983_s28 + $0x540] sm:$0xf] }
  0x7d   : > { %392 = vst [vmem:[%s4987_s29 + $0x1a4] sm:$0xf] %v391_v41  ;;  %v519_v41 = vld [vmem:[%s4983_s28 + $0x548] sm:$0xf] }
  0x7e   : > { %394 = vst [vmem:[%s4987_s29 + $0x1a8] sm:$0xf] %v393_v42  ;;  %v521_v42 = vld [vmem:[%s4983_s28 + $0x550] sm:$0xf] }
  0x7f   : > { %396 = vst [vmem:[%s4987_s29 + $0x1ac] sm:$0xf] %v395_v43  ;;  %v523_v43 = vld [vmem:[%s4983_s28 + $0x558] sm:$0xf] }
  0x80   : > { %398 = vst [vmem:[%s4987_s29 + $0x1b0] sm:$0xf] %v397_v44  ;;  %v525_v44 = vld [vmem:[%s4983_s28 + $0x560] sm:$0xf] }
  0x81   : > { %400 = vst [vmem:[%s4987_s29 + $0x1b4] sm:$0xf] %v399_v45  ;;  %v527_v45 = vld [vmem:[%s4983_s28 + $0x568] sm:$0xf] }
  0x82   : > { %402 = vst [vmem:[%s4987_s29 + $0x1b8] sm:$0xf] %v401_v46  ;;  %v529_v46 = vld [vmem:[%s4983_s28 + $0x570] sm:$0xf] }
  0x83   : > { %404 = vst [vmem:[%s4987_s29 + $0x1bc] sm:$0xf] %v403_v47  ;;  %v531_v47 = vld [vmem:[%s4983_s28 + $0x578] sm:$0xf] }
  0x84   : > { %406 = vst [vmem:[%s4987_s29 + $0x1c0] sm:$0xf] %v405_v48  ;;  %v533_v48 = vld [vmem:[%s4983_s28 + $0x580] sm:$0xf] }
  0x85   : > { %408 = vst [vmem:[%s4987_s29 + $0x1c4] sm:$0xf] %v407_v49  ;;  %v535_v49 = vld [vmem:[%s4983_s28 + $0x588] sm:$0xf] }
  0x86   : > { %410 = vst [vmem:[%s4987_s29 + $0x1c8] sm:$0xf] %v409_v50  ;;  %v537_v50 = vld [vmem:[%s4983_s28 + $0x590] sm:$0xf] }
  0x87   : > { %412 = vst [vmem:[%s4987_s29 + $0x1cc] sm:$0xf] %v411_v51  ;;  %v539_v51 = vld [vmem:[%s4983_s28 + $0x598] sm:$0xf] }
  0x88   : > { %414 = vst [vmem:[%s4987_s29 + $0x1d0] sm:$0xf] %v413_v52  ;;  %v541_v52 = vld [vmem:[%s4983_s28 + $0x5a0] sm:$0xf] }
  0x89   : > { %416 = vst [vmem:[%s4987_s29 + $0x1d4] sm:$0xf] %v415_v53  ;;  %v543_v53 = vld [vmem:[%s4983_s28 + $0x5a8] sm:$0xf] }
  0x8a   : > { %418 = vst [vmem:[%s4987_s29 + $0x1d8] sm:$0xf] %v417_v54  ;;  %v545_v54 = vld [vmem:[%s4983_s28 + $0x5b0] sm:$0xf] }
  0x8b   : > { %420 = vst [vmem:[%s4987_s29 + $0x1dc] sm:$0xf] %v419_v55  ;;  %v547_v55 = vld [vmem:[%s4983_s28 + $0x5b8] sm:$0xf] }
  0x8c   : > { %422 = vst [vmem:[%s4987_s29 + $0x1e0] sm:$0xf] %v421_v56  ;;  %v549_v56 = vld [vmem:[%s4983_s28 + $0x5c0] sm:$0xf] }
  0x8d   : > { %424 = vst [vmem:[%s4987_s29 + $0x1e4] sm:$0xf] %v423_v57  ;;  %v551_v57 = vld [vmem:[%s4983_s28 + $0x5c8] sm:$0xf] }
  0x8e   : > { %426 = vst [vmem:[%s4987_s29 + $0x1e8] sm:$0xf] %v425_v58  ;;  %v553_v58 = vld [vmem:[%s4983_s28 + $0x5d0] sm:$0xf] }
  0x8f   : > { %428 = vst [vmem:[%s4987_s29 + $0x1ec] sm:$0xf] %v427_v59  ;;  %v555_v59 = vld [vmem:[%s4983_s28 + $0x5d8] sm:$0xf] }
  0x90   : > { %430 = vst [vmem:[%s4987_s29 + $0x1f0] sm:$0xf] %v429_v60  ;;  %v557_v60 = vld [vmem:[%s4983_s28 + $0x5e0] sm:$0xf] }
  0x91   : > { %432 = vst [vmem:[%s4987_s29 + $0x1f4] sm:$0xf] %v431_v61  ;;  %v559_v61 = vld [vmem:[%s4983_s28 + $0x5e8] sm:$0xf] }
  0x92   : > { %434 = vst [vmem:[%s4987_s29 + $0x1f8] sm:$0xf] %v433_v62  ;;  %v561_v62 = vld [vmem:[%s4983_s28 + $0x5f0] sm:$0xf] }
  0x93   : > { %436 = vst [vmem:[%s4987_s29 + $0x1fc] sm:$0xf] %v435_v63  ;;  %v563_v63 = vld [vmem:[%s4983_s28 + $0x5f8] sm:$0xf] }
  0x94   : > { %438 = vst [vmem:[%s4987_s29 + $0x200] sm:$0xf] %v437_v0  ;;  %v565_v0 = vld [vmem:[%s4983_s28 + $0x600] sm:$0xf] }
  0x95   : > { %440 = vst [vmem:[%s4987_s29 + $0x204] sm:$0xf] %v439_v1  ;;  %v567_v1 = vld [vmem:[%s4983_s28 + $0x608] sm:$0xf] }
  0x96   : > { %442 = vst [vmem:[%s4987_s29 + $0x208] sm:$0xf] %v441_v2  ;;  %v569_v2 = vld [vmem:[%s4983_s28 + $0x610] sm:$0xf] }
  0x97   : > { %444 = vst [vmem:[%s4987_s29 + $0x20c] sm:$0xf] %v443_v3  ;;  %v571_v3 = vld [vmem:[%s4983_s28 + $0x618] sm:$0xf] }
  0x98   : > { %446 = vst [vmem:[%s4987_s29 + $0x210] sm:$0xf] %v445_v4  ;;  %v573_v4 = vld [vmem:[%s4983_s28 + $0x620] sm:$0xf] }
  0x99   : > { %448 = vst [vmem:[%s4987_s29 + $0x214] sm:$0xf] %v447_v5  ;;  %v575_v5 = vld [vmem:[%s4983_s28 + $0x628] sm:$0xf] }
  0x9a   : > { %450 = vst [vmem:[%s4987_s29 + $0x218] sm:$0xf] %v449_v6  ;;  %v577_v6 = vld [vmem:[%s4983_s28 + $0x630] sm:$0xf] }
  0x9b   : > { %452 = vst [vmem:[%s4987_s29 + $0x21c] sm:$0xf] %v451_v7  ;;  %v579_v7 = vld [vmem:[%s4983_s28 + $0x638] sm:$0xf] }
  0x9c   : > { %454 = vst [vmem:[%s4987_s29 + $0x220] sm:$0xf] %v453_v8  ;;  %v581_v8 = vld [vmem:[%s4983_s28 + $0x640] sm:$0xf] }
  0x9d   : > { %456 = vst [vmem:[%s4987_s29 + $0x224] sm:$0xf] %v455_v9  ;;  %v583_v9 = vld [vmem:[%s4983_s28 + $0x648] sm:$0xf] }
  0x9e   : > { %458 = vst [vmem:[%s4987_s29 + $0x228] sm:$0xf] %v457_v10  ;;  %v585_v10 = vld [vmem:[%s4983_s28 + $0x650] sm:$0xf] }
  0x9f   : > { %460 = vst [vmem:[%s4987_s29 + $0x22c] sm:$0xf] %v459_v11  ;;  %v587_v11 = vld [vmem:[%s4983_s28 + $0x658] sm:$0xf] }
  0xa0   : > { %462 = vst [vmem:[%s4987_s29 + $0x230] sm:$0xf] %v461_v12  ;;  %v589_v12 = vld [vmem:[%s4983_s28 + $0x660] sm:$0xf] }
  0xa1   : > { %464 = vst [vmem:[%s4987_s29 + $0x234] sm:$0xf] %v463_v13  ;;  %v591_v13 = vld [vmem:[%s4983_s28 + $0x668] sm:$0xf] }
  0xa2   : > { %466 = vst [vmem:[%s4987_s29 + $0x238] sm:$0xf] %v465_v14  ;;  %v593_v14 = vld [vmem:[%s4983_s28 + $0x670] sm:$0xf] }
  0xa3   : > { %468 = vst [vmem:[%s4987_s29 + $0x23c] sm:$0xf] %v467_v15  ;;  %v595_v15 = vld [vmem:[%s4983_s28 + $0x678] sm:$0xf] }
  0xa4   : > { %470 = vst [vmem:[%s4987_s29 + $0x240] sm:$0xf] %v469_v16  ;;  %v597_v16 = vld [vmem:[%s4983_s28 + $0x680] sm:$0xf] }
  0xa5   : > { %472 = vst [vmem:[%s4987_s29 + $0x244] sm:$0xf] %v471_v17  ;;  %v599_v17 = vld [vmem:[%s4983_s28 + $0x688] sm:$0xf] }
  0xa6   : > { %474 = vst [vmem:[%s4987_s29 + $0x248] sm:$0xf] %v473_v18  ;;  %v601_v18 = vld [vmem:[%s4983_s28 + $0x690] sm:$0xf] }
  0xa7   : > { %476 = vst [vmem:[%s4987_s29 + $0x24c] sm:$0xf] %v475_v19  ;;  %v603_v19 = vld [vmem:[%s4983_s28 + $0x698] sm:$0xf] }
  0xa8   : > { %478 = vst [vmem:[%s4987_s29 + $0x250] sm:$0xf] %v477_v20  ;;  %v605_v20 = vld [vmem:[%s4983_s28 + $0x6a0] sm:$0xf] }
  0xa9   : > { %480 = vst [vmem:[%s4987_s29 + $0x254] sm:$0xf] %v479_v21  ;;  %v607_v21 = vld [vmem:[%s4983_s28 + $0x6a8] sm:$0xf] }
  0xaa   : > { %482 = vst [vmem:[%s4987_s29 + $0x258] sm:$0xf] %v481_v22  ;;  %v609_v22 = vld [vmem:[%s4983_s28 + $0x6b0] sm:$0xf] }
  0xab   : > { %484 = vst [vmem:[%s4987_s29 + $0x25c] sm:$0xf] %v483_v23  ;;  %v611_v23 = vld [vmem:[%s4983_s28 + $0x6b8] sm:$0xf] }
  0xac   : > { %486 = vst [vmem:[%s4987_s29 + $0x260] sm:$0xf] %v485_v24  ;;  %v613_v24 = vld [vmem:[%s4983_s28 + $0x6c0] sm:$0xf] }
  0xad   : > { %488 = vst [vmem:[%s4987_s29 + $0x264] sm:$0xf] %v487_v25  ;;  %v615_v25 = vld [vmem:[%s4983_s28 + $0x6c8] sm:$0xf] }
  0xae   : > { %490 = vst [vmem:[%s4987_s29 + $0x268] sm:$0xf] %v489_v26  ;;  %v617_v26 = vld [vmem:[%s4983_s28 + $0x6d0] sm:$0xf] }
  0xaf   : > { %492 = vst [vmem:[%s4987_s29 + $0x26c] sm:$0xf] %v491_v27  ;;  %v619_v27 = vld [vmem:[%s4983_s28 + $0x6d8] sm:$0xf] }
  0xb0   : > { %494 = vst [vmem:[%s4987_s29 + $0x270] sm:$0xf] %v493_v28  ;;  %v621_v28 = vld [vmem:[%s4983_s28 + $0x6e0] sm:$0xf] }
  0xb1   : > { %496 = vst [vmem:[%s4987_s29 + $0x274] sm:$0xf] %v495_v29  ;;  %v623_v29 = vld [vmem:[%s4983_s28 + $0x6e8] sm:$0xf] }
  0xb2   : > { %498 = vst [vmem:[%s4987_s29 + $0x278] sm:$0xf] %v497_v30  ;;  %v625_v30 = vld [vmem:[%s4983_s28 + $0x6f0] sm:$0xf] }
  0xb3   : > { %500 = vst [vmem:[%s4987_s29 + $0x27c] sm:$0xf] %v499_v31  ;;  %v627_v31 = vld [vmem:[%s4983_s28 + $0x6f8] sm:$0xf] }
  0xb4   : > { %502 = vst [vmem:[%s4987_s29 + $0x280] sm:$0xf] %v501_v32  ;;  %v629_v32 = vld [vmem:[%s4983_s28 + $0x700] sm:$0xf] }
  0xb5   : > { %504 = vst [vmem:[%s4987_s29 + $0x284] sm:$0xf] %v503_v33  ;;  %v631_v33 = vld [vmem:[%s4983_s28 + $0x708] sm:$0xf] }
  0xb6   : > { %506 = vst [vmem:[%s4987_s29 + $0x288] sm:$0xf] %v505_v34  ;;  %v633_v34 = vld [vmem:[%s4983_s28 + $0x710] sm:$0xf] }
  0xb7   : > { %508 = vst [vmem:[%s4987_s29 + $0x28c] sm:$0xf] %v507_v35  ;;  %v635_v35 = vld [vmem:[%s4983_s28 + $0x718] sm:$0xf] }
  0xb8   : > { %510 = vst [vmem:[%s4987_s29 + $0x290] sm:$0xf] %v509_v36  ;;  %v637_v36 = vld [vmem:[%s4983_s28 + $0x720] sm:$0xf] }
  0xb9   : > { %512 = vst [vmem:[%s4987_s29 + $0x294] sm:$0xf] %v511_v37  ;;  %v639_v37 = vld [vmem:[%s4983_s28 + $0x728] sm:$0xf] }
  0xba   : > { %514 = vst [vmem:[%s4987_s29 + $0x298] sm:$0xf] %v513_v38  ;;  %v641_v38 = vld [vmem:[%s4983_s28 + $0x730] sm:$0xf] }
  0xbb   : > { %516 = vst [vmem:[%s4987_s29 + $0x29c] sm:$0xf] %v515_v39  ;;  %v643_v39 = vld [vmem:[%s4983_s28 + $0x738] sm:$0xf] }
  0xbc   : > { %518 = vst [vmem:[%s4987_s29 + $0x2a0] sm:$0xf] %v517_v40  ;;  %v645_v40 = vld [vmem:[%s4983_s28 + $0x740] sm:$0xf] }
  0xbd   : > { %520 = vst [vmem:[%s4987_s29 + $0x2a4] sm:$0xf] %v519_v41  ;;  %v647_v41 = vld [vmem:[%s4983_s28 + $0x748] sm:$0xf] }
  0xbe   : > { %522 = vst [vmem:[%s4987_s29 + $0x2a8] sm:$0xf] %v521_v42  ;;  %v649_v42 = vld [vmem:[%s4983_s28 + $0x750] sm:$0xf] }
  0xbf   : > { %524 = vst [vmem:[%s4987_s29 + $0x2ac] sm:$0xf] %v523_v43  ;;  %v651_v43 = vld [vmem:[%s4983_s28 + $0x758] sm:$0xf] }
  0xc0   : > { %526 = vst [vmem:[%s4987_s29 + $0x2b0] sm:$0xf] %v525_v44  ;;  %v653_v44 = vld [vmem:[%s4983_s28 + $0x760] sm:$0xf] }
  0xc1   : > { %528 = vst [vmem:[%s4987_s29 + $0x2b4] sm:$0xf] %v527_v45  ;;  %v655_v45 = vld [vmem:[%s4983_s28 + $0x768] sm:$0xf] }
  0xc2   : > { %530 = vst [vmem:[%s4987_s29 + $0x2b8] sm:$0xf] %v529_v46  ;;  %v657_v46 = vld [vmem:[%s4983_s28 + $0x770] sm:$0xf] }
  0xc3   : > { %532 = vst [vmem:[%s4987_s29 + $0x2bc] sm:$0xf] %v531_v47  ;;  %v659_v47 = vld [vmem:[%s4983_s28 + $0x778] sm:$0xf] }
  0xc4   : > { %534 = vst [vmem:[%s4987_s29 + $0x2c0] sm:$0xf] %v533_v48  ;;  %v661_v48 = vld [vmem:[%s4983_s28 + $0x780] sm:$0xf] }
  0xc5   : > { %536 = vst [vmem:[%s4987_s29 + $0x2c4] sm:$0xf] %v535_v49  ;;  %v663_v49 = vld [vmem:[%s4983_s28 + $0x788] sm:$0xf] }
  0xc6   : > { %538 = vst [vmem:[%s4987_s29 + $0x2c8] sm:$0xf] %v537_v50  ;;  %v665_v50 = vld [vmem:[%s4983_s28 + $0x790] sm:$0xf] }
  0xc7   : > { %540 = vst [vmem:[%s4987_s29 + $0x2cc] sm:$0xf] %v539_v51  ;;  %v667_v51 = vld [vmem:[%s4983_s28 + $0x798] sm:$0xf] }
  0xc8   : > { %542 = vst [vmem:[%s4987_s29 + $0x2d0] sm:$0xf] %v541_v52  ;;  %v669_v52 = vld [vmem:[%s4983_s28 + $0x7a0] sm:$0xf] }
  0xc9   : > { %544 = vst [vmem:[%s4987_s29 + $0x2d4] sm:$0xf] %v543_v53  ;;  %v671_v53 = vld [vmem:[%s4983_s28 + $0x7a8] sm:$0xf] }
  0xca   : > { %546 = vst [vmem:[%s4987_s29 + $0x2d8] sm:$0xf] %v545_v54  ;;  %v673_v54 = vld [vmem:[%s4983_s28 + $0x7b0] sm:$0xf] }
  0xcb   : > { %548 = vst [vmem:[%s4987_s29 + $0x2dc] sm:$0xf] %v547_v55  ;;  %v675_v55 = vld [vmem:[%s4983_s28 + $0x7b8] sm:$0xf] }
  0xcc   : > { %550 = vst [vmem:[%s4987_s29 + $0x2e0] sm:$0xf] %v549_v56  ;;  %v677_v56 = vld [vmem:[%s4983_s28 + $0x7c0] sm:$0xf] }
  0xcd   : > { %552 = vst [vmem:[%s4987_s29 + $0x2e4] sm:$0xf] %v551_v57  ;;  %v679_v57 = vld [vmem:[%s4983_s28 + $0x7c8] sm:$0xf] }
  0xce   : > { %554 = vst [vmem:[%s4987_s29 + $0x2e8] sm:$0xf] %v553_v58  ;;  %v681_v58 = vld [vmem:[%s4983_s28 + $0x7d0] sm:$0xf] }
  0xcf   : > { %556 = vst [vmem:[%s4987_s29 + $0x2ec] sm:$0xf] %v555_v59  ;;  %v683_v59 = vld [vmem:[%s4983_s28 + $0x7d8] sm:$0xf] }
  0xd0   : > { %558 = vst [vmem:[%s4987_s29 + $0x2f0] sm:$0xf] %v557_v60  ;;  %v685_v60 = vld [vmem:[%s4983_s28 + $0x7e0] sm:$0xf] }
  0xd1   : > { %560 = vst [vmem:[%s4987_s29 + $0x2f4] sm:$0xf] %v559_v61  ;;  %v687_v61 = vld [vmem:[%s4983_s28 + $0x7e8] sm:$0xf] }
  0xd2   : > { %562 = vst [vmem:[%s4987_s29 + $0x2f8] sm:$0xf] %v561_v62  ;;  %v689_v62 = vld [vmem:[%s4983_s28 + $0x7f0] sm:$0xf] }
  0xd3   : > { %564 = vst [vmem:[%s4987_s29 + $0x2fc] sm:$0xf] %v563_v63  ;;  %v691_v63 = vld [vmem:[%s4983_s28 + $0x7f8] sm:$0xf] }
  0xd4   : > { %566 = vst [vmem:[%s4987_s29 + $0x300] sm:$0xf] %v565_v0 }
  0xd5   : > { %568 = vst [vmem:[%s4987_s29 + $0x304] sm:$0xf] %v567_v1 }
  0xd6   : > { %570 = vst [vmem:[%s4987_s29 + $0x308] sm:$0xf] %v569_v2 }
  0xd7   : > { %572 = vst [vmem:[%s4987_s29 + $0x30c] sm:$0xf] %v571_v3 }
  0xd8   : > { %574 = vst [vmem:[%s4987_s29 + $0x310] sm:$0xf] %v573_v4 }
  0xd9   : > { %576 = vst [vmem:[%s4987_s29 + $0x314] sm:$0xf] %v575_v5 }
  0xda   : > { %578 = vst [vmem:[%s4987_s29 + $0x318] sm:$0xf] %v577_v6 }
  0xdb   : > { %580 = vst [vmem:[%s4987_s29 + $0x31c] sm:$0xf] %v579_v7 }
  0xdc   : > { %582 = vst [vmem:[%s4987_s29 + $0x320] sm:$0xf] %v581_v8 }
  0xdd   : > { %584 = vst [vmem:[%s4987_s29 + $0x324] sm:$0xf] %v583_v9 }
  0xde   : > { %586 = vst [vmem:[%s4987_s29 + $0x328] sm:$0xf] %v585_v10 }
  0xdf   : > { %588 = vst [vmem:[%s4987_s29 + $0x32c] sm:$0xf] %v587_v11 }
  0xe0   : > { %590 = vst [vmem:[%s4987_s29 + $0x330] sm:$0xf] %v589_v12 }
  0xe1   : > { %592 = vst [vmem:[%s4987_s29 + $0x334] sm:$0xf] %v591_v13 }
  0xe2   : > { %594 = vst [vmem:[%s4987_s29 + $0x338] sm:$0xf] %v593_v14 }
  0xe3   : > { %596 = vst [vmem:[%s4987_s29 + $0x33c] sm:$0xf] %v595_v15 }
  0xe4   : > { %598 = vst [vmem:[%s4987_s29 + $0x340] sm:$0xf] %v597_v16 }
  0xe5   : > { %600 = vst [vmem:[%s4987_s29 + $0x344] sm:$0xf] %v599_v17 }
  0xe6   : > { %602 = vst [vmem:[%s4987_s29 + $0x348] sm:$0xf] %v601_v18 }
  0xe7   : > { %604 = vst [vmem:[%s4987_s29 + $0x34c] sm:$0xf] %v603_v19 }
  0xe8   : > { %606 = vst [vmem:[%s4987_s29 + $0x350] sm:$0xf] %v605_v20 }
  0xe9   : > { %608 = vst [vmem:[%s4987_s29 + $0x354] sm:$0xf] %v607_v21 }
  0xea   : > { %610 = vst [vmem:[%s4987_s29 + $0x358] sm:$0xf] %v609_v22 }
  0xeb   : > { %612 = vst [vmem:[%s4987_s29 + $0x35c] sm:$0xf] %v611_v23 }
  0xec   : > { %614 = vst [vmem:[%s4987_s29 + $0x360] sm:$0xf] %v613_v24 }
  0xed   : > { %616 = vst [vmem:[%s4987_s29 + $0x364] sm:$0xf] %v615_v25 }
  0xee   : > { %618 = vst [vmem:[%s4987_s29 + $0x368] sm:$0xf] %v617_v26 }
  0xef   : > { %620 = vst [vmem:[%s4987_s29 + $0x36c] sm:$0xf] %v619_v27 }
  0xf0   : > { %622 = vst [vmem:[%s4987_s29 + $0x370] sm:$0xf] %v621_v28 }
  0xf1   : > { %624 = vst [vmem:[%s4987_s29 + $0x374] sm:$0xf] %v623_v29 }
  0xf2   : > { %626 = vst [vmem:[%s4987_s29 + $0x378] sm:$0xf] %v625_v30 }
  0xf3   : > { %628 = vst [vmem:[%s4987_s29 + $0x37c] sm:$0xf] %v627_v31 }
  0xf4   : > { %630 = vst [vmem:[%s4987_s29 + $0x380] sm:$0xf] %v629_v32 }
  0xf5   : > { %632 = vst [vmem:[%s4987_s29 + $0x384] sm:$0xf] %v631_v33 }
  0xf6   : > { %634 = vst [vmem:[%s4987_s29 + $0x388] sm:$0xf] %v633_v34 }
  0xf7   : > { %636 = vst [vmem:[%s4987_s29 + $0x38c] sm:$0xf] %v635_v35 }
  0xf8   : > { %638 = vst [vmem:[%s4987_s29 + $0x390] sm:$0xf] %v637_v36 }
  0xf9   : > { %640 = vst [vmem:[%s4987_s29 + $0x394] sm:$0xf] %v639_v37 }
  0xfa   : > { %642 = vst [vmem:[%s4987_s29 + $0x398] sm:$0xf] %v641_v38 }
  0xfb   : > { %644 = vst [vmem:[%s4987_s29 + $0x39c] sm:$0xf] %v643_v39 }
  0xfc   : > { %646 = vst [vmem:[%s4987_s29 + $0x3a0] sm:$0xf] %v645_v40 }
  0xfd   : > { %648 = vst [vmem:[%s4987_s29 + $0x3a4] sm:$0xf] %v647_v41 }
  0xfe   : > { %650 = vst [vmem:[%s4987_s29 + $0x3a8] sm:$0xf] %v649_v42 }
  0xff   : > { %652 = vst [vmem:[%s4987_s29 + $0x3ac] sm:$0xf] %v651_v43 }
 0x100   : > { %654 = vst [vmem:[%s4987_s29 + $0x3b0] sm:$0xf] %v653_v44 }
 0x101   : > { %656 = vst [vmem:[%s4987_s29 + $0x3b4] sm:$0xf] %v655_v45 }
 0x102   : > { %658 = vst [vmem:[%s4987_s29 + $0x3b8] sm:$0xf] %v657_v46 }
 0x103   : > { %660 = vst [vmem:[%s4987_s29 + $0x3bc] sm:$0xf] %v659_v47 }
 0x104   : > { %662 = vst [vmem:[%s4987_s29 + $0x3c0] sm:$0xf] %v661_v48 }
 0x105   : > { %664 = vst [vmem:[%s4987_s29 + $0x3c4] sm:$0xf] %v663_v49 }
 0x106   : > { %666 = vst [vmem:[%s4987_s29 + $0x3c8] sm:$0xf] %v665_v50 }
 0x107   : > { %668 = vst [vmem:[%s4987_s29 + $0x3cc] sm:$0xf] %v667_v51 }
 0x108   : > { %670 = vst [vmem:[%s4987_s29 + $0x3d0] sm:$0xf] %v669_v52 }
 0x109   : > { %672 = vst [vmem:[%s4987_s29 + $0x3d4] sm:$0xf] %v671_v53 }
 0x10a   : > { %674 = vst [vmem:[%s4987_s29 + $0x3d8] sm:$0xf] %v673_v54 }
 0x10b   : > { %676 = vst [vmem:[%s4987_s29 + $0x3dc] sm:$0xf] %v675_v55 }
 0x10c   : > { %678 = vst [vmem:[%s4987_s29 + $0x3e0] sm:$0xf] %v677_v56 }
 0x10d   : > { %680 = vst [vmem:[%s4987_s29 + $0x3e4] sm:$0xf] %v679_v57 }
 0x10e   : > { %682 = vst [vmem:[%s4987_s29 + $0x3e8] sm:$0xf] %v681_v58 }
 0x10f   : > { %684 = vst [vmem:[%s4987_s29 + $0x3ec] sm:$0xf] %v683_v59 }
 0x110   : > { %686 = vst [vmem:[%s4987_s29 + $0x3f0] sm:$0xf] %v685_v60 }
 0x111   : > { %688 = vst [vmem:[%s4987_s29 + $0x3f4] sm:$0xf] %v687_v61 }
 0x112   : > { %690 = vst [vmem:[%s4987_s29 + $0x3f8] sm:$0xf] %v689_v62 }
 0x113   : > { %692 = vst [vmem:[%s4987_s29 + $0x3fc] sm:$0xf] %v691_v63 }
 0x114 PF: > { %p4027_p8 = scmp.ge.s32.totalorder %s4913_s16, 1  ;;  %p2283_p9 = scmp.lt.s32.totalorder %s4913_s16, 3 }
 0x116   : > { %p2284_p10 = pnand %p4027_p8, %p2283_p9 }
 0x117   : > { %s2290_s30 = sand.u32 (!%p2284_p10), 1, %s4897_s12   ;;  %p2328_p11 = scmp.lt.s32.totalorder (!%p2284_p10), %s4905_s14, 1 }
 0x118   : > { %2287 = sbr.rel (%p2284_p10) target bundleno = 586 (0x24a), region = 80  ;;  %s4028_s4 = sshll.u32 (!%p2284_p10), %s2290_s30, 10 }
 0x119   : > { %s5504_s5 = scalar_lea.vmem (!%p2284_p10), [#allocation2], %s4028_s4 }
 0x11d   : > { %v4713_v0 = vld [vmem:[%s5504_s5 + $0x38] sm:$0xff]  ;;  %v4712_v4 = vld [vmem:[%s5504_s5 + $0x30] sm:$0xff]  ;;  %v4711_v8 = vld [vmem:[%s5504_s5 + $0x28] sm:$0xff]  ;;  %s5534_s6 = scalar_select %p2328_p11, %s4905_s14, 1 }
 0x11e   : > { %v4721_v1 = vld [vmem:[%s5504_s5 + $0x78] sm:$0xff]  ;;  %3552 = vmatpush.bf16.msra.mxu0 %v4713_v0  ;;  %v4720_v5 = vld [vmem:[%s5504_s5 + $0x70] sm:$0xff]  ;;  %v4719_v9 = vld [vmem:[%s5504_s5 + $0x68] sm:$0xff]  ;;  %s4671_s12 = sshll.u32 (%p4970_p6), %s4905_s14, 3 }
 0x11f   : > { %v4729_v2 = vld [vmem:[%s5504_s5 + $0xb8] sm:$0xff]  ;;  %3571 = vmatpush.bf16.msra.mxu1 %v4721_v1  ;;  %v4728_v6 = vld [vmem:[%s5504_s5 + $0xb0] sm:$0xff]  ;;  %v4727_v10 = vld [vmem:[%s5504_s5 + $0xa8] sm:$0xff]  ;;  %s2330_s19 = scalar_lea.vmem %s5874_s2, %s5534_s6  ;;  %s4029_s6 = sshll.u32 %s2290_s30, 5 }
 0x120   : > { %v4737_v3 = vld [vmem:[%s5504_s5 + $0xf8] sm:$0xff]  ;;  %3590 = vmatpush.bf16.msra.mxu2 %v4729_v2  ;;  %v4736_v7 = vld [vmem:[%s5504_s5 + $0xf0] sm:$0xff]  ;;  %v4735_v11 = vld [vmem:[%s5504_s5 + $0xe8] sm:$0xff]  ;;  %s3875_s27 = scalar_lea.vmem (%p4970_p6), %s5875_s3, %s4671_s12 }
 0x121   : > { %3609 = vmatpush.bf16.msra.mxu3 %v4737_v3  ;;  %v4710_v12 = vld [vmem:[%s5504_s5 + $0x20] sm:$0xff]  ;;  %v4709_v16 = vld [vmem:[%s5504_s5 + $0x18] sm:$0xff]  ;;  %v4708_v20 = vld [vmem:[%s5504_s5 + $0x10] sm:$0xff] }
 0x122   : > { %3553 = vmatpush.bf16.msra.mxu0 %v4712_v4  ;;  %v4718_v13 = vld [vmem:[%s5504_s5 + $0x60] sm:$0xff]  ;;  %v4717_v17 = vld [vmem:[%s5504_s5 + $0x58] sm:$0xff]  ;;  %v4716_v21 = vld [vmem:[%s5504_s5 + $0x50] sm:$0xff] }
 0x123   : > { %3572 = vmatpush.bf16.msra.mxu1 %v4720_v5  ;;  %v4726_v14 = vld [vmem:[%s5504_s5 + $0xa0] sm:$0xff]  ;;  %v4725_v18 = vld [vmem:[%s5504_s5 + $0x98] sm:$0xff]  ;;  %v4724_v22 = vld [vmem:[%s5504_s5 + $0x90] sm:$0xff] }
 0x124   : > { %3591 = vmatpush.bf16.msra.mxu2 %v4728_v6  ;;  %v4734_v15 = vld [vmem:[%s5504_s5 + $0xe0] sm:$0xff]  ;;  %v4733_v19 = vld [vmem:[%s5504_s5 + $0xd8] sm:$0xff]  ;;  %v4732_v23 = vld [vmem:[%s5504_s5 + $0xd0] sm:$0xff] }
 0x125   : > { %3610 = vmatpush.bf16.msra.mxu3 %v4736_v7  ;;  %v4707_v24 = vld [vmem:[%s5504_s5 + $0x8] sm:$0xff]  ;;  %v4706_v28 = vld [vmem:[%s5504_s5] sm:$0xff]  ;;  %v4761_v40 = vld [vmem:[%s5504_s5 + $0x1b8] sm:$0xff] }
 0x126   : > { %3554 = vmatpush.bf16.msra.mxu0 %v4711_v8  ;;  %v4715_v25 = vld [vmem:[%s5504_s5 + $0x48] sm:$0xff]  ;;  %v4714_v29 = vld [vmem:[%s5504_s5 + $0x40] sm:$0xff]  ;;  %v4745_v41 = vld [vmem:[%s5504_s5 + $0x138] sm:$0xff] }
 0x127   : > { %3573 = vmatpush.bf16.msra.mxu1 %v4719_v9  ;;  %v4723_v26 = vld [vmem:[%s5504_s5 + $0x88] sm:$0xff]  ;;  %v4032_v30 = vld [vmem:[%s5872_s0] sm:$0xf]  ;;  %v4674_v34 = vld [vmem:[%s5872_s0 + $0x4] sm:$0xf] }
 0x128   : > { %3592 = vmatpush.bf16.msra.mxu2 %v4727_v10  ;;  %v4731_v27 = vld [vmem:[%s5504_s5 + $0xc8] sm:$0xff]  ;;  %v4682_v31 = vld [vmem:[%s5872_s0 + $0x3c] sm:$0xf0]  ;;  %v4034_v35 = vld [vmem:[%s5872_s0 + $0x40] sm:$0xf0] }
 0x129   : > { %3611 = vmatpush.bf16.msra.mxu3 %v4735_v11  ;;  %v4722_v32 = vld [vmem:[%s5504_s5 + $0x80] sm:$0xff]  ;;  %v4040_v36 = vld [vmem:[%s5872_s0 + $0x8] sm:$0xf]  ;;  %v4675_v38 = vld [vmem:[%s5872_s0 + $0xc] sm:$0xf]  ;;  %v4033_v42 = vor.u32 %v4682_v31, %v4032_v30  ;;  %v4037_v43 = vor.u32 %v4674_v34, %v4034_v35 }
 0x12a   : > { %3555 = vmatpush.bf16.msra.mxu0 %v4710_v12  ;;  %v4730_v33 = vld [vmem:[%s5504_s5 + $0xc0] sm:$0xff]  ;;  %v4683_v37 = vld [vmem:[%s5872_s0 + $0x44] sm:$0xf0]  ;;  %v4042_v39 = vld [vmem:[%s5872_s0 + $0x48] sm:$0xf0] }
 0x12b   : > { %3574 = vmatpush.bf16.msra.mxu1 %v4718_v13  ;;  %v4041_v44 = vor.u32 %v4683_v37, %v4040_v36  ;;  %v4045_v45 = vor.u32 %v4675_v38, %v4042_v39  ;;  %v4753_v46 = vld [vmem:[%s5504_s5 + $0x178] sm:$0xff]  ;;  %v4760_v48 = vld [vmem:[%s5504_s5 + $0x1b0] sm:$0xff]  ;;  %v4759_v52 = vld [vmem:[%s5504_s5 + $0x1a8] sm:$0xff] }
 0x12c   : > { %3593 = vmatpush.bf16.msra.mxu2 %v4726_v14  ;;  %v4769_v47 = vld [vmem:[%s5504_s5 + $0x1f8] sm:$0xff]  ;;  %v4744_v49 = vld [vmem:[%s5504_s5 + $0x130] sm:$0xff]  ;;  %v4743_v53 = vld [vmem:[%s5504_s5 + $0x128] sm:$0xff] }
 0x12d   : > { %3612 = vmatpush.bf16.msra.mxu3 %v4734_v15  ;;  %v4752_v50 = vld [vmem:[%s5504_s5 + $0x170] sm:$0xff]  ;;  %v4751_v54 = vld [vmem:[%s5504_s5 + $0x168] sm:$0xff]  ;;  %v4758_v56 = vld [vmem:[%s5504_s5 + $0x1a0] sm:$0xff] }
 0x12e   : > { %3556 = vmatpush.bf16.msra.mxu0 %v4709_v16  ;;  %v4768_v51 = vld [vmem:[%s5504_s5 + $0x1f0] sm:$0xff]  ;;  %v4767_v55 = vld [vmem:[%s5504_s5 + $0x1e8] sm:$0xff]  ;;  %v4742_v57 = vld [vmem:[%s5504_s5 + $0x120] sm:$0xff] }
 0x12f   : > { %3575 = vmatpush.bf16.msra.mxu1 %v4717_v17  ;;  %v4750_v58 = vld [vmem:[%s5504_s5 + $0x160] sm:$0xff]  ;;  %v4104_v0 = vld [vmem:[%s5872_s0 + $0x88] sm:$0xf]  ;;  %v4691_v2 = vld [vmem:[%s5872_s0 + $0x8c] sm:$0xf] }
 0x130   : > { %3594 = vmatpush.bf16.msra.mxu2 %v4725_v18  ;;  %v4766_v59 = vld [vmem:[%s5504_s5 + $0x1e0] sm:$0xff]  ;;  %v4699_v1 = vld [vmem:[%s5872_s0 + $0xc4] sm:$0xf0]  ;;  %v4106_v3 = vld [vmem:[%s5872_s0 + $0xc8] sm:$0xf0] }
 0x131   : > { %3613 = vmatpush.bf16.msra.mxu3 %v4733_v19  ;;  %v4096_v60 = vld [vmem:[%s5872_s0 + $0x80] sm:$0xf]  ;;  %v4690_v62 = vld [vmem:[%s5872_s0 + $0x84] sm:$0xf]  ;;  %v4757_v4 = vld [vmem:[%s5504_s5 + $0x198] sm:$0xff]  ;;  %v4105_v8 = vor.u32 %v4699_v1, %v4104_v0  ;;  %v4109_v9 = vor.u32 %v4691_v2, %v4106_v3 }
 0x132   : > { %3557 = vmatpush.bf16.msra.mxu0 %v4708_v20  ;;  %v4698_v61 = vld [vmem:[%s5872_s0 + $0xbc] sm:$0xf0]  ;;  %v4098_v63 = vld [vmem:[%s5872_s0 + $0xc0] sm:$0xf0]  ;;  %v4741_v5 = vld [vmem:[%s5504_s5 + $0x118] sm:$0xff] }
 0x133   : > { %3576 = vmatpush.bf16.msra.mxu1 %v4716_v21  ;;  %v4097_v6 = vor.u32 %v4698_v61, %v4096_v60  ;;  %v4101_v7 = vor.u32 %v4690_v62, %v4098_v63  ;;  %v4749_v10 = vld [vmem:[%s5504_s5 + $0x158] sm:$0xff]  ;;  %v4756_v12 = vld [vmem:[%s5504_s5 + $0x190] sm:$0xff]  ;;  %v4755_v16 = vld [vmem:[%s5504_s5 + $0x188] sm:$0xff] }
 0x134   : > { %3595 = vmatpush.bf16.msra.mxu2 %v4724_v22  ;;  %v4765_v11 = vld [vmem:[%s5504_s5 + $0x1d8] sm:$0xff]  ;;  %v4740_v13 = vld [vmem:[%s5504_s5 + $0x110] sm:$0xff]  ;;  %v4739_v17 = vld [vmem:[%s5504_s5 + $0x108] sm:$0xff] }
 0x135   : > { %3614 = vmatpush.bf16.msra.mxu3 %v4732_v23  ;;  %v4748_v14 = vld [vmem:[%s5504_s5 + $0x150] sm:$0xff]  ;;  %v4747_v18 = vld [vmem:[%s5504_s5 + $0x148] sm:$0xff]  ;;  %v4754_v20 = vld [vmem:[%s5504_s5 + $0x180] sm:$0xff] }
 0x136   : > { %3558 = vmatpush.bf16.msra.mxu0 %v4707_v24  ;;  %v4764_v15 = vld [vmem:[%s5504_s5 + $0x1d0] sm:$0xff]  ;;  %v4763_v19 = vld [vmem:[%s5504_s5 + $0x1c8] sm:$0xff]  ;;  %v4738_v21 = vld [vmem:[%s5504_s5 + $0x100] sm:$0xff] }
 0x137   : > { %3577 = vmatpush.bf16.msra.mxu1 %v4715_v25  ;;  %v4746_v22 = vld [vmem:[%s5504_s5 + $0x140] sm:$0xff]  ;;  %v4048_v24 = vld [vmem:[%s5872_s0 + $0x10] sm:$0xf]  ;;  %v4793_v25 = vld [vmem:[%s5504_s5 + $0x2b8] sm:$0xff] }
 0x138   : > { %3596 = vmatpush.bf16.msra.mxu2 %v4723_v26  ;;  %v4762_v23 = vld [vmem:[%s5504_s5 + $0x1c0] sm:$0xff]  ;;  %v4777_v26 = vld [vmem:[%s5504_s5 + $0x238] sm:$0xff]  ;;  %v4792_v37 = vld [vmem:[%s5504_s5 + $0x2b0] sm:$0xff] }
 0x139   : > { %3615 = vmatpush.bf16.msra.mxu3 %v4731_v27  ;;  %v4684_v27 = vld [vmem:[%s5872_s0 + $0x4c] sm:$0xf0]  ;;  %v4056_v30 = vld [vmem:[%s5872_s0 + $0x18] sm:$0xf]  ;;  %v4122_v61 = vld [vmem:[%s5872_s0 + $0xd8] sm:$0xf0] }
 0x13a   : > { %3559 = vmatpush.bf16.msra.mxu0 %v4706_v28  ;;  %v4676_v28 = vld [vmem:[%s5872_s0 + $0x14] sm:$0xf]  ;;  %v4685_v31 = vld [vmem:[%s5872_s0 + $0x54] sm:$0xf0]  ;;  %v4049_v36 = vor.u32 %v4684_v27, %v4048_v24  ;;  %v4066_v24 = vld [vmem:[%s5872_s0 + $0x60] sm:$0xf0] }
 0x13b   : > { %3578 = vmatpush.bf16.msra.mxu1 %v4714_v29  ;;  %v4050_v29 = vld [vmem:[%s5872_s0 + $0x50] sm:$0xf0]  ;;  %v4785_v34 = vld [vmem:[%s5504_s5 + $0x278] sm:$0xff]  ;;  %v4057_v39 = vor.u32 %v4685_v31, %v4056_v30  ;;  %v4679_v27 = vld [vmem:[%s5872_s0 + $0x2c] sm:$0xf] }
 0x13c   : > { %3597 = vmatpush.bf16.msra.mxu2 %v4722_v32  ;;  %v4677_v32 = vld [vmem:[%s5872_s0 + $0x1c] sm:$0xf]  ;;  %v4053_v38 = vor.u32 %v4676_v28, %v4050_v29  ;;  %v4788_v1 = vld [vmem:[%s5504_s5 + $0x290] sm:$0xff]  ;;  %v4074_v28 = vld [vmem:[%s5872_s0 + $0x68] sm:$0xf0] }
 0x13d   : > { %3616 = vmatpush.bf16.msra.mxu3 %v4730_v33  ;;  %3560 = vmatmul.bf16.vlgmr.msra.gmra.mxu0 %v4033_v42  ;;  %v4058_v33 = vld [vmem:[%s5872_s0 + $0x58] sm:$0xf0]  ;;  %v4784_v42 = vld [vmem:[%s5504_s5 + $0x270] sm:$0xff] }
 0x13e   : > { %3628 = vmatpush.bf16.msrb.mxu0 %v4745_v41  ;;  %3579 = vmatmul.bf16.vlgmr.msra.gmra.mxu1 %v4037_v43  ;;  %v4801_v35 = vld [vmem:[%s5504_s5 + $0x2f8] sm:$0xff]  ;;  %v4776_v41 = vld [vmem:[%s5504_s5 + $0x230] sm:$0xff] }
 0x13f   : > { %3598 = vmatmul.bf16.vlgmr.msra.gmra.mxu2 %v4041_v44  ;;  %3647 = vmatpush.bf16.msrb.mxu1 %v4753_v46  ;;  %v4800_v43 = vld [vmem:[%s5504_s5 + $0x2f0] sm:$0xff]  ;;  %v4791_v44 = vld [vmem:[%s5504_s5 + $0x2a8] sm:$0xff]  ;;  %v4773_v60 = vld [vmem:[%s5504_s5 + $0x218] sm:$0xff] }
 0x140   : > { %3666 = vmatpush.bf16.msrb.mxu2 %v4761_v40  ;;  %3617 = vmatmul.bf16.vlgmr.msra.gmra.mxu3 %v4045_v45  ;;  %v4061_v40 = vor.u32 %v4677_v32, %v4058_v33  ;;  %v4775_v45 = vld [vmem:[%s5504_s5 + $0x228] sm:$0xff]  ;;  %v4781_v62 = vld [vmem:[%s5504_s5 + $0x258] sm:$0xff]  ;;  %v4816_v30 = vld [vmem:[%s5504_s5 + $0x370] sm:$0xff]  ;;  %v4077_v33 = vor.u32 %v4679_v27, %v4074_v28 }
 0x141   : > { %3685 = vmatpush.bf16.msrb.mxu3 %v4769_v47  ;;  %v4783_v46 = vld [vmem:[%s5504_s5 + $0x268] sm:$0xff]  ;;  %v4797_v63 = vld [vmem:[%s5504_s5 + $0x2d8] sm:$0xff] }
 0x142   : > { %3629 = vmatpush.bf16.msrb.mxu0 %v4744_v49  ;;  %v4799_v47 = vld [vmem:[%s5504_s5 + $0x2e8] sm:$0xff]  ;;  %v4774_v49 = vld [vmem:[%s5504_s5 + $0x220] sm:$0xff]  ;;  %v4154_v27 = vld [vmem:[%s5872_s0 + $0xf8] sm:$0xf0] }
 0x143   : > { %3648 = vmatpush.bf16.msrb.mxu1 %v4752_v50  ;;  %v4782_v50 = vld [vmem:[%s5504_s5 + $0x260] sm:$0xff] }
 0x144   : > { %3667 = vmatpush.bf16.msrb.mxu2 %v4760_v48  ;;  %v4790_v48 = vld [vmem:[%s5504_s5 + $0x2a0] sm:$0xff] }
 0x145   : > { %3686 = vmatpush.bf16.msrb.mxu3 %v4768_v51  ;;  %v4798_v51 = vld [vmem:[%s5504_s5 + $0x2e0] sm:$0xff] }
 0x146   : > { %3630 = vmatpush.bf16.msrb.mxu0 %v4743_v53  ;;  %v4700_v53 = vld [vmem:[%s5872_s0 + $0xcc] sm:$0xf0] }
 0x147   : > { %3649 = vmatpush.bf16.msrb.mxu1 %v4751_v54  ;;  %v4789_v54 = vld [vmem:[%s5504_s5 + $0x298] sm:$0xff] }
 0x148   : > { %3668 = vmatpush.bf16.msrb.mxu2 %v4759_v52  ;;  %v4112_v52 = vld [vmem:[%s5872_s0 + $0x90] sm:$0xf] }
 0x149   : > { %3687 = vmatpush.bf16.msrb.mxu3 %v4767_v55  ;;  %v4692_v55 = vld [vmem:[%s5872_s0 + $0x94] sm:$0xf]  ;;  %v4113_v0 = vor.u32 %v4700_v53, %v4112_v52  ;;  %v4695_v52 = vld [vmem:[%s5872_s0 + $0xac] sm:$0xf]  ;;  %v4805_v53 = vld [vmem:[%s5504_s5 + $0x318] sm:$0xff] }
 0x14a   : > { %3631 = vmatpush.bf16.msrb.mxu0 %v4742_v57  ;;  %v4120_v57 = vld [vmem:[%s5872_s0 + $0x98] sm:$0xf] }
 0x14b   : > { %3650 = vmatpush.bf16.msrb.mxu1 %v4750_v58  ;;  %v4701_v58 = vld [vmem:[%s5872_s0 + $0xd4] sm:$0xf0] }
 0x14c   : > { %3669 = vmatpush.bf16.msrb.mxu2 %v4758_v56  ;;  %v4114_v56 = vld [vmem:[%s5872_s0 + $0xd0] sm:$0xf0]  ;;  %v4121_v3 = vor.u32 %v4701_v58, %v4120_v57 }
 0x14d   : > { %3688 = vmatpush.bf16.msrb.mxu3 %v4766_v59  ;;  %3565 = vmatmul.bf16.gmra.mxu0 %v4097_v6  ;;  %v4693_v59 = vld [vmem:[%s5872_s0 + $0x9c] sm:$0xf]  ;;  %v4117_v2 = vor.u32 %v4692_v55, %v4114_v56  ;;  %v4780_v6 = vld [vmem:[%s5504_s5 + $0x250] sm:$0xff] }
 0x14e   : > { %3632 = vmatpush.bf16.msrb.mxu0 %v4741_v5  ;;  %3584 = vmatmul.bf16.gmra.mxu1 %v4101_v7  ;;  %v4772_v5 = vld [vmem:[%s5504_s5 + $0x210] sm:$0xff]  ;;  %v4829_v55 = vld [vmem:[%s5504_s5 + $0x3d8] sm:$0xff] }
 0x14f   : > { %3603 = vmatmul.bf16.gmra.mxu2 %v4105_v8  ;;  %3651 = vmatpush.bf16.msrb.mxu1 %v4749_v10  ;;  %v4796_v7 = vld [vmem:[%s5504_s5 + $0x2d0] sm:$0xff]  ;;  %v4787_v8 = vld [vmem:[%s5504_s5 + $0x288] sm:$0xff] }
 0x150   : > { %3670 = vmatpush.bf16.msrb.mxu2 %v4757_v4  ;;  %3622 = vmatmul.bf16.gmra.mxu3 %v4109_v9  ;;  %v4125_v4 = vor.u32 %v4693_v59, %v4122_v61  ;;  %v4771_v9 = vld [vmem:[%s5504_s5 + $0x208] sm:$0xff]  ;;  %v4820_v56 = vld [vmem:[%s5504_s5 + $0x390] sm:$0xff] }
 0x151   : > { %3689 = vmatpush.bf16.msrb.mxu3 %v4765_v11  ;;  %v4779_v10 = vld [vmem:[%s5504_s5 + $0x248] sm:$0xff]  ;;  %v4812_v58 = vld [vmem:[%s5504_s5 + $0x350] sm:$0xff] }
 0x152   : > { %3633 = vmatpush.bf16.msrb.mxu0 %v4740_v13  ;;  %v4795_v11 = vld [vmem:[%s5504_s5 + $0x2c8] sm:$0xff]  ;;  %v4825_v13 = vld [vmem:[%s5504_s5 + $0x3b8] sm:$0xff] }
 0x153   : > { %3652 = vmatpush.bf16.msrb.mxu1 %v4748_v14  ;;  %v4770_v14 = vld [vmem:[%s5504_s5 + $0x200] sm:$0xff] }
 0x154   : > { %3671 = vmatpush.bf16.msrb.mxu2 %v4756_v12  ;;  %v4786_v12 = vld [vmem:[%s5504_s5 + $0x280] sm:$0xff] }
 0x155   : > { %3690 = vmatpush.bf16.msrb.mxu3 %v4764_v15  ;;  %v4778_v15 = vld [vmem:[%s5504_s5 + $0x240] sm:$0xff] }
 0x156   : > { %3634 = vmatpush.bf16.msrb.mxu0 %v4739_v17  ;;  %v4064_v17 = vld [vmem:[%s5872_s0 + $0x20] sm:$0xf] }
 0x157   : > { %3653 = vmatpush.bf16.msrb.mxu1 %v4747_v18  ;;  %v4686_v18 = vld [vmem:[%s5872_s0 + $0x5c] sm:$0xf0] }
 0x158   : > { %3672 = vmatpush.bf16.msrb.mxu2 %v4755_v16  ;;  %v4794_v16 = vld [vmem:[%s5504_s5 + $0x2c0] sm:$0xff]  ;;  %v4065_v29 = vor.u32 %v4686_v18, %v4064_v17 }
 0x159   : > { %3691 = vmatpush.bf16.msrb.mxu3 %v4763_v19  ;;  %v4809_v19 = vld [vmem:[%s5504_s5 + $0x338] sm:$0xff] }
 0x15a   : > { %3635 = vmatpush.bf16.msrb.mxu0 %v4738_v21  ;;  %v4678_v21 = vld [vmem:[%s5872_s0 + $0x24] sm:$0xf] }
 0x15b   : > { %3654 = vmatpush.bf16.msrb.mxu1 %v4746_v22  ;;  %v4833_v22 = vld [vmem:[%s5504_s5 + $0x3f8] sm:$0xff]  ;;  %v4069_v31 = vor.u32 %v4678_v21, %v4066_v24  ;;  %v4704_v21 = vld [vmem:[%s5872_s0 + $0xec] sm:$0xf0] }
 0x15c   : > { %3673 = vmatpush.bf16.msrb.mxu2 %v4754_v20  ;;  %v4817_v20 = vld [vmem:[%s5504_s5 + $0x378] sm:$0xff] }
 0x15d   : > { %3692 = vmatpush.bf16.msrb.mxu3 %v4762_v23  ;;  %3636 = vmatmul.bf16.vlgmr.msrb.gmra.mxu0 %v4049_v36  ;;  %v4824_v23 = vld [vmem:[%s5504_s5 + $0x3b0] sm:$0xff]  ;;  %v4823_v36 = vld [vmem:[%s5504_s5 + $0x3a8] sm:$0xff]  ;;  %v4152_v24 = vld [vmem:[%s5872_s0 + $0xb8] sm:$0xf] }
 0x15e   : > { %3704 = vmatpush.bf16.msra.mxu0 %v4777_v26  ;;  %3655 = vmatmul.bf16.vlgmr.msrb.gmra.mxu1 %v4053_v38  ;;  %v4687_v26 = vld [vmem:[%s5872_s0 + $0x64] sm:$0xf0] }
 0x15f   : > { %3723 = vmatpush.bf16.msra.mxu1 %v4785_v34  ;;  %3674 = vmatmul.bf16.vlgmr.msrb.gmra.mxu2 %v4057_v39  ;;  %v4808_v34 = vld [vmem:[%s5504_s5 + $0x330] sm:$0xff]  ;;  %v4807_v38 = vld [vmem:[%s5504_s5 + $0x328] sm:$0xff] }
 0x160   : > { %3742 = vmatpush.bf16.msra.mxu2 %v4793_v25  ;;  %3693 = vmatmul.bf16.vlgmr.msrb.gmra.mxu3 %v4061_v40  ;;  %v4072_v25 = vld [vmem:[%s5872_s0 + $0x28] sm:$0xf]  ;;  %v4822_v40 = vld [vmem:[%s5504_s5 + $0x3a0] sm:$0xff] }
 0x161   : > { %3761 = vmatpush.bf16.msra.mxu3 %v4801_v35  ;;  %v4073_v32 = vor.u32 %v4687_v26, %v4072_v25  ;;  %v4832_v35 = vld [vmem:[%s5504_s5 + $0x3f0] sm:$0xff]  ;;  %v4831_v39 = vld [vmem:[%s5504_s5 + $0x3e8] sm:$0xff]  ;;  %v4705_v25 = vld [vmem:[%s5872_s0 + $0xf4] sm:$0xf0] }
 0x162   : > { %3705 = vmatpush.bf16.msra.mxu0 %v4776_v41  ;;  %v4814_v41 = vld [vmem:[%s5504_s5 + $0x360] sm:$0xff]  ;;  %v4697_v26 = vld [vmem:[%s5872_s0 + $0xbc] sm:$0xf] }
 0x163   : > { %3724 = vmatpush.bf16.msra.mxu1 %v4784_v42  ;;  %v4806_v42 = vld [vmem:[%s5504_s5 + $0x320] sm:$0xff] }
 0x164   : > { %3743 = vmatpush.bf16.msra.mxu2 %v4792_v37  ;;  %v4815_v37 = vld [vmem:[%s5504_s5 + $0x368] sm:$0xff] }
 0x165   : > { %3762 = vmatpush.bf16.msra.mxu3 %v4800_v43  ;;  %v4830_v43 = vld [vmem:[%s5504_s5 + $0x3e0] sm:$0xff] }
 0x166   : > { %3706 = vmatpush.bf16.msra.mxu0 %v4775_v45  ;;  %v4128_v45 = vld [vmem:[%s5872_s0 + $0xa0] sm:$0xf] }
 0x167   : > { %3725 = vmatpush.bf16.msra.mxu1 %v4783_v46  ;;  %v4702_v46 = vld [vmem:[%s5872_s0 + $0xdc] sm:$0xf0] }
 0x168   : > { %3744 = vmatpush.bf16.msra.mxu2 %v4791_v44  ;;  %v4821_v44 = vld [vmem:[%s5504_s5 + $0x398] sm:$0xff]  ;;  %v4129_v57 = vor.u32 %v4702_v46, %v4128_v45 }
 0x169   : > { %3763 = vmatpush.bf16.msra.mxu3 %v4799_v47  ;;  %v4813_v47 = vld [vmem:[%s5504_s5 + $0x358] sm:$0xff] }
 0x16a   : > { %3707 = vmatpush.bf16.msra.mxu0 %v4774_v49  ;;  %v4130_v49 = vld [vmem:[%s5872_s0 + $0xe0] sm:$0xf0] }
 0x16b   : > { %3726 = vmatpush.bf16.msra.mxu1 %v4782_v50  ;;  %v4136_v50 = vld [vmem:[%s5872_s0 + $0xa8] sm:$0xf] }
 0x16c   : > { %3745 = vmatpush.bf16.msra.mxu2 %v4790_v48  ;;  %v4694_v48 = vld [vmem:[%s5872_s0 + $0xa4] sm:$0xf] }
 0x16d   : > { %3764 = vmatpush.bf16.msra.mxu3 %v4798_v51  ;;  %3641 = vmatmul.bf16.gmra.mxu0 %v4113_v0  ;;  %v4703_v51 = vld [vmem:[%s5872_s0 + $0xe4] sm:$0xf0]  ;;  %v4133_v59 = vor.u32 %v4694_v48, %v4130_v49 }
 0x16e   : > { %3708 = vmatpush.bf16.msra.mxu0 %v4773_v60  ;;  %3660 = vmatmul.bf16.gmra.mxu1 %v4117_v2  ;;  %v4137_v60 = vor.u32 %v4703_v51, %v4136_v50  ;;  %v4819_v0 = vld [vmem:[%s5504_s5 + $0x388] sm:$0xff] }
 0x16f   : > { %3727 = vmatpush.bf16.msra.mxu1 %v4781_v62  ;;  %3679 = vmatmul.bf16.gmra.mxu2 %v4121_v3  ;;  %v4804_v62 = vld [vmem:[%s5504_s5 + $0x310] sm:$0xff]  ;;  %v4803_v2 = vld [vmem:[%s5504_s5 + $0x308] sm:$0xff] }
 0x170   : > { %3746 = vmatpush.bf16.msra.mxu2 %v4789_v54  ;;  %3698 = vmatmul.bf16.gmra.mxu3 %v4125_v4  ;;  %v4138_v54 = vld [vmem:[%s5872_s0 + $0xe8] sm:$0xf0]  ;;  %v4818_v4 = vld [vmem:[%s5504_s5 + $0x380] sm:$0xff] }
 0x171   : > { %3765 = vmatpush.bf16.msra.mxu3 %v4797_v63  ;;  %v4141_v61 = vor.u32 %v4695_v52, %v4138_v54  ;;  %v4828_v63 = vld [vmem:[%s5504_s5 + $0x3d0] sm:$0xff]  ;;  %v4827_v3 = vld [vmem:[%s5504_s5 + $0x3c8] sm:$0xff] }
 0x172   : > { %3709 = vmatpush.bf16.msra.mxu0 %v4772_v5  ;;  %v4810_v5 = vld [vmem:[%s5504_s5 + $0x340] sm:$0xff] }
 0x173   : > { %3728 = vmatpush.bf16.msra.mxu1 %v4780_v6  ;;  %v4802_v6 = vld [vmem:[%s5504_s5 + $0x300] sm:$0xff] }
 0x174   : > { %3747 = vmatpush.bf16.msra.mxu2 %v4788_v1  ;;  %v4811_v1 = vld [vmem:[%s5504_s5 + $0x348] sm:$0xff] }
 0x175   : > { %3766 = vmatpush.bf16.msra.mxu3 %v4796_v7  ;;  %v4826_v7 = vld [vmem:[%s5504_s5 + $0x3c0] sm:$0xff] }
 0x176   : > { %3710 = vmatpush.bf16.msra.mxu0 %v4771_v9  ;;  %v4688_v9 = vld [vmem:[%s5872_s0 + $0x6c] sm:$0xf0] }
 0x177   : > { %3729 = vmatpush.bf16.msra.mxu1 %v4779_v10  ;;  %v4680_v10 = vld [vmem:[%s5872_s0 + $0x34] sm:$0xf] }
 0x178   : > { %3748 = vmatpush.bf16.msra.mxu2 %v4787_v8  ;;  %v4080_v8 = vld [vmem:[%s5872_s0 + $0x30] sm:$0xf] }
 0x179   : > { %3767 = vmatpush.bf16.msra.mxu3 %v4795_v11  ;;  %v4082_v11 = vld [vmem:[%s5872_s0 + $0x70] sm:$0xf0] }
 0x17a   : > { %3711 = vmatpush.bf16.msra.mxu0 %v4770_v14  ;;  %v4681_v14 = vld [vmem:[%s5872_s0 + $0x3c] sm:$0xf]  ;;  %v4085_v17 = vor.u32 %v4680_v10, %v4082_v11 }
 0x17b   : > { %3730 = vmatpush.bf16.msra.mxu1 %v4778_v15  ;;  %v4090_v15 = vld [vmem:[%s5872_s0 + $0x78] sm:$0xf0] }
 0x17c   : > { %3749 = vmatpush.bf16.msra.mxu2 %v4786_v12  ;;  %v4088_v12 = vld [vmem:[%s5872_s0 + $0x38] sm:$0xf] }
 0x17d   : > { %3768 = vmatpush.bf16.msra.mxu3 %v4794_v16  ;;  %3712 = vmatmul.bf16.vlgmr.msra.gmra.mxu0 %v4065_v29  ;;  %v4081_v16 = vor.u32 %v4688_v9, %v4080_v8 }
 0x17e   : > { %3780 = vmatpush.bf16.msrb.mxu0 %v4809_v19  ;;  %3731 = vmatmul.bf16.vlgmr.msra.gmra.mxu1 %v4069_v31  ;;  %v4093_v19 = vor.u32 %v4681_v14, %v4090_v15  ;;  %v4157_v31 = vor.u32 %v4697_v26, %v4154_v27 }
 0x17f   : > { %3799 = vmatpush.bf16.msrb.mxu1 %v4817_v20  ;;  %3750 = vmatmul.bf16.vlgmr.msra.gmra.mxu2 %v4073_v32  ;;  %v4144_v20 = vld [vmem:[%s5872_s0 + $0xb0] sm:$0xf]  ;;  %v4874_v32 = vld [vmem:[%s2330_s19] ss:$0 sm:$0xff]  ;;  %s5841_s19 = scalar_lea.vmem [#allocation3], %s4029_s6 }
 0x180   : > { %3818 = vmatpush.bf16.msrb.mxu2 %v4825_v13  ;;  %3769 = vmatmul.bf16.vlgmr.msra.gmra.mxu3 %v4077_v33  ;;  %v4689_v13 = vld [vmem:[%s5872_s0 + $0x74] sm:$0xf0]  ;;  %v4145_v28 = vor.u32 %v4704_v21, %v4144_v20 }
 0x181   : > { %3837 = vmatpush.bf16.msrb.mxu3 %v4833_v22  ;;  %v4089_v18 = vor.u32 %v4689_v13, %v4088_v12  ;;  %v4696_v22 = vld [vmem:[%s5872_s0 + $0xb4] sm:$0xf] }
 0x182   : > { %3781 = vmatpush.bf16.msrb.mxu0 %v4808_v34 }
 0x183   : > { %3800 = vmatpush.bf16.msrb.mxu1 %v4816_v30  ;;  %v4153_v30 = vor.u32 %v4705_v25, %v4152_v24 }
 0x184   : > { %3819 = vmatpush.bf16.msrb.mxu2 %v4824_v23  ;;  %v4146_v23 = vld [vmem:[%s5872_s0 + $0xf0] sm:$0xf0] }
 0x185   : > { %3838 = vmatpush.bf16.msrb.mxu3 %v4832_v35  ;;  %v4149_v29 = vor.u32 %v4696_v22, %v4146_v23 }
 0x186   : > { %3782 = vmatpush.bf16.msrb.mxu0 %v4807_v38 }
 0x187   : > { %3801 = vmatpush.bf16.msrb.mxu1 %v4815_v37 }
 0x188   : > { %3820 = vmatpush.bf16.msrb.mxu2 %v4823_v36 }
 0x189   : > { %3839 = vmatpush.bf16.msrb.mxu3 %v4831_v39 }
 0x18a   : > { %3783 = vmatpush.bf16.msrb.mxu0 %v4806_v42 }
 0x18b   : > { %3802 = vmatpush.bf16.msrb.mxu1 %v4814_v41 }
 0x18c   : > { %3821 = vmatpush.bf16.msrb.mxu2 %v4822_v40 }
 0x18d   : > { %3840 = vmatpush.bf16.msrb.mxu3 %v4830_v43  ;;  %3717 = vmatmul.bf16.gmra.mxu0 %v4129_v57 }
 0x18e   : > { %3784 = vmatpush.bf16.msrb.mxu0 %v4805_v53  ;;  %3736 = vmatmul.bf16.gmra.mxu1 %v4133_v59 }
 0x18f   : > { %3803 = vmatpush.bf16.msrb.mxu1 %v4813_v47  ;;  %3755 = vmatmul.bf16.gmra.mxu2 %v4137_v60 }
 0x190   : > { %3822 = vmatpush.bf16.msrb.mxu2 %v4821_v44  ;;  %3774 = vmatmul.bf16.gmra.mxu3 %v4141_v61 }
 0x191   : > { %3841 = vmatpush.bf16.msrb.mxu3 %v4829_v55 }
 0x192   : > { %3785 = vmatpush.bf16.msrb.mxu0 %v4804_v62 }
 0x193   : > { %3804 = vmatpush.bf16.msrb.mxu1 %v4812_v58 }
 0x194   : > { %3823 = vmatpush.bf16.msrb.mxu2 %v4820_v56 }
 0x195   : > { %3842 = vmatpush.bf16.msrb.mxu3 %v4828_v63 }
 0x196   : > { %3786 = vmatpush.bf16.msrb.mxu0 %v4803_v2 }
 0x197   : > { %3805 = vmatpush.bf16.msrb.mxu1 %v4811_v1 }
 0x198   : > { %3824 = vmatpush.bf16.msrb.mxu2 %v4819_v0 }
 0x199   : > { %3843 = vmatpush.bf16.msrb.mxu3 %v4827_v3 }
 0x19a   : > { %3787 = vmatpush.bf16.msrb.mxu0 %v4802_v6 }
 0x19b   : > { %3806 = vmatpush.bf16.msrb.mxu1 %v4810_v5 }
 0x19c   : > { %3825 = vmatpush.bf16.msrb.mxu2 %v4818_v4 }
 0x19d   : > { %3844 = vmatpush.bf16.msrb.mxu3 %v4826_v7  ;;  %3788 = vmatmul.bf16.vlgmr.msrb.gmra.mxu0 %v4081_v16 }
 0x19e   : > { %3807 = vmatmul.bf16.vlgmr.msrb.gmra.mxu1 %v4085_v17 }
 0x19f   : > { %3826 = vmatmul.bf16.vlgmr.msrb.gmra.mxu2 %v4089_v18 }
 0x1a0   : > { %3845 = vmatmul.bf16.vlgmr.msrb.gmra.mxu3 %v4093_v19 }
 0x1ad   : > { %3793 = vmatmul.bf16.gmra.mxu0 %v4145_v28 }
 0x1ae   : > { %3812 = vmatmul.bf16.gmra.mxu1 %v4149_v29 }
 0x1af   : > { %3831 = vmatmul.bf16.gmra.mxu2 %v4153_v30 }
 0x1b0   : > { %3850 = vmatmul.bf16.gmra.mxu3 %v4157_v31 }
 0x1ba   : > { %v3561_v33 = vpop.f32.mrf.mxu0 }
 0x1bb   : > { %v3580_v34 = vpop.f32.mrf.mxu1  ;;  %v3562_v35 = vadd.f32 %v4874_v32, %v3561_v33 }
 0x1bd   : > { %v3581_v36 = vadd.f32 %v3580_v34, %v3562_v35 }
 0x1c2   : > { %v3599_v37 = vpop.f32.mrf.mxu2  ;;  %v3563_v40 = vpop.f32.mrf.mxu0 }
 0x1c3   : > { %v3618_v38 = vpop.f32.mrf.mxu3  ;;  %v3600_v39 = vadd.f32 %v3599_v37, %v3581_v36  ;;  %v3582_v41 = vpop.f32.mrf.mxu1  ;;  %v3564_v42 = vadd.f32 %v4874_v32, %v3563_v40 }
 0x1c5   : > { %v3619_v43 = vadd.f32 %v3618_v38, %v3600_v39  ;;  %v3583_v44 = vadd.f32 %v3582_v41, %v3564_v42 }
 0x1ca   : > { %v3601_v45 = vpop.f32.mrf.mxu2  ;;  %v3566_v48 = vpop.f32.mrf.mxu0 }
 0x1cb   : > { %v3620_v46 = vpop.f32.mrf.mxu3  ;;  %v3602_v47 = vadd.f32 %v3601_v45, %v3583_v44  ;;  %v3585_v49 = vpop.f32.mrf.mxu1  ;;  %v3567_v50 = vadd.f32 %v4874_v32, %v3566_v48 }
 0x1cd   : > { %v3621_v51 = vadd.f32 %v3620_v46, %v3602_v47  ;;  %v3586_v52 = vadd.f32 %v3585_v49, %v3567_v50 }
 0x1d2   : > { %v3604_v53 = vpop.f32.mrf.mxu2  ;;  %v3568_v56 = vpop.f32.mrf.mxu0 }
 0x1d3   : > { %v3623_v54 = vpop.f32.mrf.mxu3  ;;  %v3605_v55 = vadd.f32 %v3604_v53, %v3586_v52  ;;  %v3587_v57 = vpop.f32.mrf.mxu1  ;;  %v3569_v58 = vadd.f32 %v4874_v32, %v3568_v56 }
 0x1d5   : > { %v3624_v59 = vadd.f32 %v3623_v54, %v3605_v55  ;;  %v3588_v60 = vadd.f32 %v3587_v57, %v3569_v58 }
 0x1da   : > { %v3606_v61 = vpop.f32.mrf.mxu2  ;;  %v3637_v0 = vpop.f32.mrf.mxu0 }
 0x1db   : > { %v3625_v62 = vpop.f32.mrf.mxu3  ;;  %v3607_v63 = vadd.f32 %v3606_v61, %v3588_v60  ;;  %v3656_v1 = vpop.f32.mrf.mxu1  ;;  %v3638_v23 = vadd.f32 %v3637_v0, %v3619_v43 }
 0x1dd   : > { %v3626_v2 = vadd.f32 %v3625_v62, %v3607_v63  ;;  %v3657_v24 = vadd.f32 %v3656_v1, %v3638_v23 }
 0x1e2   : > { %v3675_v3 = vpop.f32.mrf.mxu2  ;;  %v3639_v5 = vpop.f32.mrf.mxu0 }
 0x1e3   : > { %v3694_v4 = vpop.f32.mrf.mxu3  ;;  %v3658_v6 = vpop.f32.mrf.mxu1  ;;  %v3676_v26 = vadd.f32 %v3675_v3, %v3657_v24  ;;  %v3640_v30 = vadd.f32 %v3639_v5, %v3621_v51 }
 0x1e5   : > { %v3695_v31 = vadd.f32 %v3694_v4, %v3676_v26  ;;  %v3659_v32 = vadd.f32 %v3658_v6, %v3640_v30 }
 0x1ea   : > { %v3677_v7 = vpop.f32.mrf.mxu2  ;;  %v3642_v9 = vpop.f32.mrf.mxu0 }
 0x1eb   : > { %v3696_v8 = vpop.f32.mrf.mxu3  ;;  %v3661_v10 = vpop.f32.mrf.mxu1  ;;  %v3678_v35 = vadd.f32 %v3677_v7, %v3659_v32  ;;  %v3643_v39 = vadd.f32 %v3642_v9, %v3624_v59 }
 0x1ed   : > { %v3697_v41 = vadd.f32 %v3696_v8, %v3678_v35  ;;  %v3662_v43 = vadd.f32 %v3661_v10, %v3643_v39 }
 0x1f2   : > { %v3680_v11 = vpop.f32.mrf.mxu2  ;;  %v3644_v13 = vpop.f32.mrf.mxu0 }
 0x1f3   : > { %v3699_v12 = vpop.f32.mrf.mxu3  ;;  %v3663_v14 = vpop.f32.mrf.mxu1  ;;  %v3681_v46 = vadd.f32 %v3680_v11, %v3662_v43  ;;  %v3645_v51 = vadd.f32 %v3644_v13, %v3626_v2 }
 0x1f5   : > { %v3700_v54 = vadd.f32 %v3699_v12, %v3681_v46  ;;  %v3664_v56 = vadd.f32 %v3663_v14, %v3645_v51 }
 0x1fa   : > { %v3682_v15 = vpop.f32.mrf.mxu2  ;;  %v3713_v17 = vpop.f32.mrf.mxu0 }
 0x1fb   : > { %v3701_v16 = vpop.f32.mrf.mxu3  ;;  %v3732_v18 = vpop.f32.mrf.mxu1  ;;  %v3714_v33 = vadd.f32 %v3713_v17, %v3695_v31  ;;  %v3683_v60 = vadd.f32 %v3682_v15, %v3664_v56 }
 0x1fd   : > { %v3733_v40 = vadd.f32 %v3732_v18, %v3714_v33  ;;  %v3702_v2 = vadd.f32 %v3701_v16, %v3683_v60 }
 0x202   : > { %v3751_v19 = vpop.f32.mrf.mxu2  ;;  %v3715_v21 = vpop.f32.mrf.mxu0 }
 0x203   : > { %v3770_v20 = vpop.f32.mrf.mxu3  ;;  %v3734_v22 = vpop.f32.mrf.mxu1  ;;  %v3752_v42 = vadd.f32 %v3751_v19, %v3733_v40  ;;  %v3716_v44 = vadd.f32 %v3715_v21, %v3697_v41 }
 0x205   : > { %v3771_v47 = vadd.f32 %v3770_v20, %v3752_v42  ;;  %v3735_v52 = vadd.f32 %v3734_v22, %v3716_v44 }
 0x20a   : > { %v3753_v25 = vpop.f32.mrf.mxu2  ;;  %v3718_v28 = vpop.f32.mrf.mxu0 }
 0x20b   : > { %v3772_v27 = vpop.f32.mrf.mxu3  ;;  %v3737_v29 = vpop.f32.mrf.mxu1  ;;  %v3754_v55 = vadd.f32 %v3753_v25, %v3735_v52  ;;  %v3719_v57 = vadd.f32 %v3718_v28, %v3700_v54 }
 0x20d   : > { %v3773_v61 = vadd.f32 %v3772_v27, %v3754_v55  ;;  %v3738_v3 = vadd.f32 %v3737_v29, %v3719_v57 }
 0x212   : > { %v3756_v34 = vpop.f32.mrf.mxu2  ;;  %v3720_v37 = vpop.f32.mrf.mxu0 }
 0x213   : > { %v3775_v36 = vpop.f32.mrf.mxu3  ;;  %v3739_v38 = vpop.f32.mrf.mxu1  ;;  %v3757_v6 = vadd.f32 %v3756_v34, %v3738_v3  ;;  %v3721_v8 = vadd.f32 %v3720_v37, %v3702_v2 }
 0x215   : > { %v3776_v11 = vadd.f32 %v3775_v36, %v3757_v6  ;;  %v3740_v15 = vadd.f32 %v3739_v38, %v3721_v8 }
 0x21a   : > { %v3758_v45 = vpop.f32.mrf.mxu2  ;;  %v3789_v49 = vpop.f32.mrf.mxu0 }
 0x21b   : > { %v3777_v48 = vpop.f32.mrf.mxu3  ;;  %v3808_v50 = vpop.f32.mrf.mxu1  ;;  %v3790_v53 = vadd.f32 %v3789_v49, %v3771_v47  ;;  %v3759_v16 = vadd.f32 %v3758_v45, %v3740_v15 }
 0x21d   : > { %v3809_v58 = vadd.f32 %v3808_v50, %v3790_v53  ;;  %v3778_v23 = vadd.f32 %v3777_v48, %v3759_v16 }
 0x222   : > { %v3827_v59 = vpop.f32.mrf.mxu2  ;;  %v3791_v0 = vpop.f32.mrf.mxu0 }
 0x223   : > { %v3828_v62 = vadd.f32 %v3827_v59, %v3809_v58  ;;  %v3846_v63 = vpop.f32.mrf.mxu3  ;;  %v3810_v1 = vpop.f32.mrf.mxu1  ;;  %v3792_v5 = vadd.f32 %v3791_v0, %v3773_v61 }
 0x225   : > { %v3847_v4 = vadd.f32 %v3846_v63, %v3828_v62  ;;  %v3811_v9 = vadd.f32 %v3810_v1, %v3792_v5 }
 0x227   : > { %v3856_v7 = vmax.f32 %v3847_v4, 0.0 }
 0x229   : > { %3860 = vst [vmem:[%s5841_s19] sm:$0xff] %v3856_v7 }
 0x22a   : > { %v3829_v10 = vpop.f32.mrf.mxu2  ;;  %v3794_v14 = vpop.f32.mrf.mxu0 }
 0x22b   : > { %v3830_v12 = vadd.f32 %v3829_v10, %v3811_v9  ;;  %v3848_v13 = vpop.f32.mrf.mxu3  ;;  %v3795_v18 = vadd.f32 %v3794_v14, %v3776_v11  ;;  %v3813_v19 = vpop.f32.mrf.mxu1 }
 0x22d   : > { %v3849_v17 = vadd.f32 %v3848_v13, %v3830_v12  ;;  %v3814_v21 = vadd.f32 %v3813_v19, %v3795_v18 }
 0x22f   : > { %v3857_v20 = vmax.f32 %v3849_v17, 0.0 }
 0x230   : > { %v3910_v37 = vld [vmem:[%s5841_s19] sm:$0xff] (%p4970_p6) }
 0x231   : > { %3861 = vst [vmem:[%s5841_s19 + $0x8] sm:$0xff] %v3857_v20 }
 0x232   : > { %v3832_v22 = vpop.f32.mrf.mxu2  ;;  %v3796_v26 = vpop.f32.mrf.mxu0  ;;  %3911 = vst [vmem:[%s3875_s27] sm:$0xff] (%p4970_p6), %v3910_v37 }
 0x233   : > { %v3833_v24 = vadd.f32 %v3832_v22, %v3814_v21  ;;  %v3851_v25 = vpop.f32.mrf.mxu3  ;;  %v3797_v28 = vadd.f32 %v3796_v26, %v3778_v23  ;;  %v3815_v30 = vpop.f32.mrf.mxu1 }
 0x235   : > { %v3852_v27 = vadd.f32 %v3851_v25, %v3833_v24  ;;  %v3816_v31 = vadd.f32 %v3815_v30, %v3797_v28 }
 0x237   : > { %v3858_v29 = vmax.f32 %v3852_v27, 0.0 }
 0x238   : > { %v3912_v38 = vld [vmem:[%s5841_s19 + $0x8] sm:$0xff] (%p4970_p6) }
 0x239   : > { %3862 = vst [vmem:[%s5841_s19 + $0x10] sm:$0xff] %v3858_v29 }
 0x23a   : > { %v3834_v32 = vpop.f32.mrf.mxu2  ;;  %3913 = vst [vmem:[%s3875_s27 + $0x10] sm:$0xff] (%p4970_p6), %v3912_v38 }
 0x23b   : > { %v3835_v33 = vadd.f32 %v3834_v32, %v3816_v31  ;;  %v3853_v34 = vpop.f32.mrf.mxu3 }
 0x23d   : > { %v3854_v35 = vadd.f32 %v3853_v34, %v3835_v33  ;;  %3870 = sbr.rel (!%p4970_p6) target bundleno = 586 (0x24a), region = 88 }
 0x23f   : > { %v3859_v36 = vmax.f32 %v3854_v35, 0.0 }
 0x240   : > { %v3914_v39 = vld [vmem:[%s5841_s19 + $0x10] sm:$0xff] (%p4970_p6) }
 0x241   : > { %3863 = vst [vmem:[%s5841_s19 + $0x18] sm:$0xff] %v3859_v36 }
 0x242   : > { %3915 = vst [vmem:[%s3875_s27 + $0x20] sm:$0xff] %v3914_v39 }
 0x248   : > { %v3916_v40 = vld [vmem:[%s5841_s19 + $0x18] sm:$0xff] }
 0x249   : > { %3917 = vst [vmem:[%s3875_s27 + $0x30] sm:$0xff] %v3916_v40 }
 0x24a PF: > { %s13_s16 = sadd.s32 1, %s4913_s16   ;;  %s5877_s12 = smov %s4901_s13 }
 0x24b   : > { %p10_p12 = scmp.ge.s32.totalorder %s13_s16, 4   ;;  %s5878_s13 = smov %s4975_s22 }
 0x24c   : > { %s5879_s14 = smov %s4909_s15  ;;  %s5880_s15 = smov %s5882_s17 }
 0x24d   :  { %12 = sbr.rel (!%p10_p12) target bundleno = 3 (0x3), region = 167 }

// kernel: tile.24
= control target key start
LH: loop header
LB: loop body
LE: loop exit
PB: predicated region body
PF: predicated region fallthrough
CT: control target
= control target key end

     0   :  { %s22_s0 = inlined_call_operand.vmem [shape: f32[2], index: 0, kind: input, shape index: {}]   ;;  %s23_s1 = inlined_call_operand.vmem [shape: f32[4,2], index: 1, kind: output, shape index: {}]  }
   0x1   :  { %v4_v0 = vld [vmem:[%s22_s0] ss:$0 sm:$0xff] }
   0x2   :  { %5 = vst [vmem:[%s23_s1] sm:$0xf] %v4_v0 }

// kernel: tile.25
= control target key start
LH: loop header
LB: loop body
LE: loop exit
PB: predicated region body
PF: predicated region fallthrough
CT: control target
= control target key end

     0   :  { %s37_s8 = smov 2   ;;  %s38_s9 = smov 4   ;;  %vm7_vm0 = vcmask 15360   ;;  %vm13_vm1 = vcmask 64560   ;;  %vm19_vm2 = vcmask 48160   ;;  %vm25_vm3 = vcmask 31760   ;;  %s55_s0 = inlined_call_operand.vmem [shape: f32[4,2], index: 0, kind: input, shape index: {}]   ;;  %s56_s1 = inlined_call_operand.vmem [shape: f32[1,8], index: 1, kind: output, shape index: {}]  }
   0x1   :  { %v4_v0 = vld [vmem:[%s55_s0] sm:$0xf]  ;;  %s36_s0 = smov 6  }
   0x2   :  { %5 = vst [vmem:[#allocation1] sm:$0xf] %v4_v0 }
   0x9   :  { %v10_v1 = vld [vmem:[#allocation1 + $0x3] sm:$0x1]   ;;  %v22_v2 = vld [vmem:[#allocation1 + $0x1] sm:$0x1]   ;;  %v16_v3 = vld [vmem:[#allocation1 + $0x2] sm:$0x1]  }
   0xa   :  { %11 = vrot.lane.b32.xlu0 %v10_v1, %s36_s0  ;;  %23 = vrot.lane.b32.xlu1 %v22_v2, %s37_s8  ;;  %v6_v4 = vld [vmem:[#allocation1] sm:$0x1]  }
   0xb   :  { %8 = vst.msk [vmem:[#allocation0] sm:$0x1] %vm7_vm0, %v6_v4  }
  0x12   :  { %17 = vrot.lane.b32.xlu0 %v16_v3, %s38_s9 }
  0x7c   :  { %v12_v5 = vpop.permute.xlu0 %11   ;;  %v24_v6 = vpop.permute.xlu1 %23  }
  0x7d   :  { %14 = vst.msk [vmem:[#allocation0] sm:$0x1] %vm13_vm1, %v12_v5  }
  0x84   :  { %v18_v7 = vpop.permute.xlu0 %17  }
  0x85   :  { %20 = vst.msk [vmem:[#allocation0] sm:$0x1] %vm19_vm2, %v18_v7  }
  0x86   :  { %26 = vst.msk [vmem:[#allocation0] sm:$0x1] %vm25_vm3, %v24_v6  }
  0x8d   :  { %v29_v8 = vld [vmem:[#allocation0] sm:$0x1] }
  0x8e   :  { %32 = vst [vmem:[%s56_s1] sm:$0x1] %v29_v8 }

// kernel: refine_forward.13
= control target key start
LH: loop header
LB: loop body
LE: loop exit
PB: predicated region body
PF: predicated region fallthrough
CT: control target
= control target key end

     0   :  { %vm486_vm0 = vcmask 64512   ;;  %s997_s1 = inlined_call_operand.vmem [shape: bf16[512,8], index: 1, kind: input, shape index: {}]   ;;  %s998_s2 = inlined_call_operand.vmem [shape: f32[1,8], index: 2, kind: input, shape index: {}]   ;;  %s999_s0 = inlined_call_operand.vmem [shape: bf16[64,512], index: 0, kind: input, shape index: {}]   ;;  %s1000_s3 = inlined_call_operand.vmem [shape: f32[64,8], index: 3, kind: output, shape index: {}]  }
   0x1   :  { %v714_v0 = vld [vmem:[%s997_s1 + $0x38] sm:$0xff]  ;;  %v713_v4 = vld [vmem:[%s997_s1 + $0x30] sm:$0xff]  ;;  %v712_v8 = vld [vmem:[%s997_s1 + $0x28] sm:$0xff] }
   0x2   :  { %v722_v1 = vld [vmem:[%s997_s1 + $0x78] sm:$0xff]  ;;  %370 = vmatpush.bf16.msra.mxu0 %v714_v0  ;;  %v721_v5 = vld [vmem:[%s997_s1 + $0x70] sm:$0xff]  ;;  %v720_v9 = vld [vmem:[%s997_s1 + $0x68] sm:$0xff] }
   0x3   :  { %v730_v2 = vld [vmem:[%s997_s1 + $0xb8] sm:$0xff]  ;;  %399 = vmatpush.bf16.msra.mxu1 %v722_v1  ;;  %v729_v6 = vld [vmem:[%s997_s1 + $0xb0] sm:$0xff]  ;;  %v728_v10 = vld [vmem:[%s997_s1 + $0xa8] sm:$0xff] }
   0x4   :  { %v738_v3 = vld [vmem:[%s997_s1 + $0xf8] sm:$0xff]  ;;  %428 = vmatpush.bf16.msra.mxu2 %v730_v2  ;;  %v737_v7 = vld [vmem:[%s997_s1 + $0xf0] sm:$0xff]  ;;  %v736_v11 = vld [vmem:[%s997_s1 + $0xe8] sm:$0xff] }
   0x5   :  { %457 = vmatpush.bf16.msra.mxu3 %v738_v3  ;;  %v711_v12 = vld [vmem:[%s997_s1 + $0x20] sm:$0xff]  ;;  %v710_v16 = vld [vmem:[%s997_s1 + $0x18] sm:$0xff]  ;;  %v709_v20 = vld [vmem:[%s997_s1 + $0x10] sm:$0xff] }
   0x6   :  { %371 = vmatpush.bf16.msra.mxu0 %v713_v4  ;;  %v719_v13 = vld [vmem:[%s997_s1 + $0x60] sm:$0xff]  ;;  %v718_v17 = vld [vmem:[%s997_s1 + $0x58] sm:$0xff]  ;;  %v717_v21 = vld [vmem:[%s997_s1 + $0x50] sm:$0xff] }
   0x7   :  { %400 = vmatpush.bf16.msra.mxu1 %v721_v5  ;;  %v727_v14 = vld [vmem:[%s997_s1 + $0xa0] sm:$0xff]  ;;  %v726_v18 = vld [vmem:[%s997_s1 + $0x98] sm:$0xff]  ;;  %v725_v22 = vld [vmem:[%s997_s1 + $0x90] sm:$0xff] }
   0x8   :  { %429 = vmatpush.bf16.msra.mxu2 %v729_v6  ;;  %v735_v15 = vld [vmem:[%s997_s1 + $0xe0] sm:$0xff]  ;;  %v734_v19 = vld [vmem:[%s997_s1 + $0xd8] sm:$0xff]  ;;  %v733_v23 = vld [vmem:[%s997_s1 + $0xd0] sm:$0xff] }
   0x9   :  { %458 = vmatpush.bf16.msra.mxu3 %v737_v7  ;;  %v708_v24 = vld [vmem:[%s997_s1 + $0x8] sm:$0xff]  ;;  %v707_v28 = vld [vmem:[%s997_s1] sm:$0xff]  ;;  %v693_v33 = vld [vmem:[%s999_s0 + $0xc] sm:$0xf0] }
   0xa   :  { %372 = vmatpush.bf16.msra.mxu0 %v712_v8  ;;  %v716_v25 = vld [vmem:[%s997_s1 + $0x48] sm:$0xff]  ;;  %v715_v29 = vld [vmem:[%s997_s1 + $0x40] sm:$0xff]  ;;  %v503_v35 = vld [vmem:[%s999_s0 + $0x10] sm:$0xf0] }
   0xb   :  { %401 = vmatpush.bf16.msra.mxu1 %v720_v9  ;;  %v724_v26 = vld [vmem:[%s997_s1 + $0x88] sm:$0xff]  ;;  %v723_v30 = vld [vmem:[%s997_s1 + $0x80] sm:$0xff]  ;;  %v694_v37 = vld [vmem:[%s999_s0 + $0x14] sm:$0xf0] }
   0xc   :  { %430 = vmatpush.bf16.msra.mxu2 %v728_v10  ;;  %v732_v27 = vld [vmem:[%s997_s1 + $0xc8] sm:$0xff]  ;;  %v731_v31 = vld [vmem:[%s997_s1 + $0xc0] sm:$0xff]  ;;  %v511_v39 = vld [vmem:[%s999_s0 + $0x18] sm:$0xf0] }
   0xd   :  { %459 = vmatpush.bf16.msra.mxu3 %v736_v11  ;;  %v501_v32 = vld [vmem:[%s999_s0] sm:$0xf]  ;;  %v691_v34 = vld [vmem:[%s999_s0 + $0x4] sm:$0xf]  ;;  %v509_v36 = vld [vmem:[%s999_s0 + $0x8] sm:$0xf] }
   0xe   :  { %373 = vmatpush.bf16.msra.mxu0 %v711_v12  ;;  %v692_v38 = vld [vmem:[%s999_s0 + $0xc] sm:$0xf]  ;;  %v502_v40 = vor.u32 %v693_v33, %v501_v32  ;;  %v506_v41 = vor.u32 %v691_v34, %v503_v35  ;;  %v510_v42 = vor.u32 %v694_v37, %v509_v36  ;;  %v517_v44 = vld [vmem:[%s999_s0 + $0x20] sm:$0xf]  ;;  %v697_v45 = vld [vmem:[%s999_s0 + $0x2c] sm:$0xf0] }
   0xf   :  { %402 = vmatpush.bf16.msra.mxu1 %v719_v13  ;;  %v514_v43 = vor.u32 %v692_v38, %v511_v39  ;;  %v695_v46 = vld [vmem:[%s999_s0 + $0x24] sm:$0xf]  ;;  %v519_v47 = vld [vmem:[%s999_s0 + $0x30] sm:$0xf0]  ;;  %v525_v48 = vld [vmem:[%s999_s0 + $0x28] sm:$0xf]  ;;  %v518_v52 = vor.u32 %v697_v45, %v517_v44 }
  0x10   :  { %431 = vmatpush.bf16.msra.mxu2 %v727_v14  ;;  %v698_v49 = vld [vmem:[%s999_s0 + $0x34] sm:$0xf0]  ;;  %v696_v50 = vld [vmem:[%s999_s0 + $0x2c] sm:$0xf]  ;;  %v527_v51 = vld [vmem:[%s999_s0 + $0x38] sm:$0xf0]  ;;  %v522_v53 = vor.u32 %v695_v46, %v519_v47 }
  0x11   :  { %460 = vmatpush.bf16.msra.mxu3 %v735_v15  ;;  %v526_v54 = vor.u32 %v698_v49, %v525_v48  ;;  %v530_v55 = vor.u32 %v696_v50, %v527_v51  ;;  %v533_v56 = vld [vmem:[%s999_s0 + $0x40] sm:$0xf]  ;;  %v701_v57 = vld [vmem:[%s999_s0 + $0x4c] sm:$0xf0]  ;;  %v699_v58 = vld [vmem:[%s999_s0 + $0x44] sm:$0xf] }
  0x12   :  { %374 = vmatpush.bf16.msra.mxu0 %v710_v16  ;;  %v535_v59 = vld [vmem:[%s999_s0 + $0x50] sm:$0xf0]  ;;  %v541_v60 = vld [vmem:[%s999_s0 + $0x48] sm:$0xf]  ;;  %v702_v61 = vld [vmem:[%s999_s0 + $0x54] sm:$0xf0]  ;;  %v534_v0 = vor.u32 %v701_v57, %v533_v56 }
  0x13   :  { %403 = vmatpush.bf16.msra.mxu1 %v718_v17  ;;  %v700_v62 = vld [vmem:[%s999_s0 + $0x4c] sm:$0xf]  ;;  %v543_v63 = vld [vmem:[%s999_s0 + $0x58] sm:$0xf0]  ;;  %v538_v1 = vor.u32 %v699_v58, %v535_v59  ;;  %v542_v2 = vor.u32 %v702_v61, %v541_v60  ;;  %v549_v4 = vld [vmem:[%s999_s0 + $0x60] sm:$0xf] }
  0x14   :  { %432 = vmatpush.bf16.msra.mxu2 %v726_v18  ;;  %v546_v3 = vor.u32 %v700_v62, %v543_v63  ;;  %v705_v5 = vld [vmem:[%s999_s0 + $0x6c] sm:$0xf0]  ;;  %v703_v6 = vld [vmem:[%s999_s0 + $0x64] sm:$0xf]  ;;  %v551_v7 = vld [vmem:[%s999_s0 + $0x70] sm:$0xf0] }
  0x15   :  { %461 = vmatpush.bf16.msra.mxu3 %v734_v19  ;;  %v557_v8 = vld [vmem:[%s999_s0 + $0x68] sm:$0xf]  ;;  %v706_v9 = vld [vmem:[%s999_s0 + $0x74] sm:$0xf0]  ;;  %v704_v10 = vld [vmem:[%s999_s0 + $0x6c] sm:$0xf]  ;;  %v550_v12 = vor.u32 %v705_v5, %v549_v4  ;;  %v554_v13 = vor.u32 %v703_v6, %v551_v7 }
  0x16   :  { %375 = vmatpush.bf16.msra.mxu0 %v709_v20  ;;  %v559_v11 = vld [vmem:[%s999_s0 + $0x78] sm:$0xf0]  ;;  %v558_v14 = vor.u32 %v706_v9, %v557_v8  ;;  %v955_v16 = vld [vmem:[%s998_s2] ss:$0 sm:$0xff] }
  0x17   :  { %404 = vmatpush.bf16.msra.mxu1 %v717_v21  ;;  %v562_v15 = vor.u32 %v704_v10, %v559_v11 }
  0x18   :  { %433 = vmatpush.bf16.msra.mxu2 %v725_v22 }
  0x19   :  { %462 = vmatpush.bf16.msra.mxu3 %v733_v23 }
  0x1a   :  { %376 = vmatpush.bf16.msra.mxu0 %v708_v24 }
  0x1b   :  { %405 = vmatpush.bf16.msra.mxu1 %v716_v25 }
  0x1c   :  { %434 = vmatpush.bf16.msra.mxu2 %v724_v26 }
  0x1d   :  { %463 = vmatpush.bf16.msra.mxu3 %v732_v27 }
  0x1e   :  { %377 = vmatpush.bf16.msra.mxu0 %v707_v28 }
  0x1f   :  { %406 = vmatpush.bf16.msra.mxu1 %v715_v29 }
  0x20   :  { %435 = vmatpush.bf16.msra.mxu2 %v723_v30 }
  0x21   :  { %464 = vmatpush.bf16.msra.mxu3 %v731_v31  ;;  %378 = vmatmul.bf16.vlgmr.msra.gmra.mxu0 %v502_v40 }
  0x22   :  { %407 = vmatmul.bf16.vlgmr.msra.gmra.mxu1 %v506_v41 }
  0x23   :  { %436 = vmatmul.bf16.vlgmr.msra.gmra.mxu2 %v510_v42 }
  0x24   :  { %465 = vmatmul.bf16.vlgmr.msra.gmra.mxu3 %v514_v43 }
  0x31   :  { %383 = vmatmul.bf16.gmra.mxu0 %v518_v52 }
  0x32   :  { %412 = vmatmul.bf16.gmra.mxu1 %v522_v53 }
  0x33   :  { %441 = vmatmul.bf16.gmra.mxu2 %v526_v54 }
  0x34   :  { %470 = vmatmul.bf16.gmra.mxu3 %v530_v55 }
  0x41   :  { %388 = vmatmul.bf16.gmra.mxu0 %v534_v0 }
  0x42   :  { %417 = vmatmul.bf16.gmra.mxu1 %v538_v1 }
  0x43   :  { %446 = vmatmul.bf16.gmra.mxu2 %v542_v2 }
  0x44   :  { %475 = vmatmul.bf16.gmra.mxu3 %v546_v3 }
  0x51   :  { %393 = vmatmul.bf16.gmra.mxu0 %v550_v12 }
  0x52   :  { %422 = vmatmul.bf16.gmra.mxu1 %v554_v13 }
  0x53   :  { %451 = vmatmul.bf16.gmra.mxu2 %v558_v14 }
  0x54   :  { %480 = vmatmul.bf16.gmra.mxu3 %v562_v15 }
  0x9e   :  { %v379_v17 = vpop.f32.mrf.mxu0 }
  0x9f   :  { %v408_v18 = vpop.f32.mrf.mxu1  ;;  %v380_v19 = vadd.f32 %v955_v16, %v379_v17 }
  0xa1   :  { %v409_v20 = vadd.f32 %v408_v18, %v380_v19 }
  0xa6   :  { %v437_v21 = vpop.f32.mrf.mxu2  ;;  %v381_v24 = vpop.f32.mrf.mxu0 }
  0xa7   :  { %v466_v22 = vpop.f32.mrf.mxu3  ;;  %v438_v23 = vadd.f32 %v437_v21, %v409_v20  ;;  %v410_v25 = vpop.f32.mrf.mxu1  ;;  %v382_v27 = vadd.f32 %v955_v16, %v381_v24 }
  0xa9   :  { %v467_v26 = vadd.f32 %v466_v22, %v438_v23  ;;  %v411_v28 = vadd.f32 %v410_v25, %v382_v27 }
  0xab   :  { %487 = vst.msk [vmem:[%s1000_s3] sm:$0xff] %vm486_vm0, %v467_v26 }
  0xae   :  { %v439_v29 = vpop.f32.mrf.mxu2  ;;  %v384_v32 = vpop.f32.mrf.mxu0 }
  0xaf   :  { %v468_v30 = vpop.f32.mrf.mxu3  ;;  %v440_v31 = vadd.f32 %v439_v29, %v411_v28  ;;  %v413_v33 = vpop.f32.mrf.mxu1  ;;  %v385_v34 = vadd.f32 %v955_v16, %v384_v32 }
  0xb1   :  { %v469_v35 = vadd.f32 %v468_v30, %v440_v31  ;;  %v414_v36 = vadd.f32 %v413_v33, %v385_v34 }
  0xb3   :  { %488 = vst.msk [vmem:[%s1000_s3 + $0x8] sm:$0xff] %vm486_vm0, %v469_v35 }
  0xb6   :  { %v442_v37 = vpop.f32.mrf.mxu2  ;;  %v386_v40 = vpop.f32.mrf.mxu0 }
  0xb7   :  { %v471_v38 = vpop.f32.mrf.mxu3  ;;  %v443_v39 = vadd.f32 %v442_v37, %v414_v36  ;;  %v415_v41 = vpop.f32.mrf.mxu1  ;;  %v387_v43 = vadd.f32 %v955_v16, %v386_v40 }
  0xb9   :  { %v472_v42 = vadd.f32 %v471_v38, %v443_v39  ;;  %v416_v44 = vadd.f32 %v415_v41, %v387_v43 }
  0xbb   :  { %489 = vst.msk [vmem:[%s1000_s3 + $0x10] sm:$0xff] %vm486_vm0, %v472_v42 }
  0xbe   :  { %v444_v45 = vpop.f32.mrf.mxu2  ;;  %v389_v48 = vpop.f32.mrf.mxu0 }
  0xbf   :  { %v473_v46 = vpop.f32.mrf.mxu3  ;;  %v445_v47 = vadd.f32 %v444_v45, %v416_v44  ;;  %v418_v49 = vpop.f32.mrf.mxu1  ;;  %v390_v50 = vadd.f32 %v955_v16, %v389_v48 }
  0xc1   :  { %v474_v51 = vadd.f32 %v473_v46, %v445_v47  ;;  %v419_v52 = vadd.f32 %v418_v49, %v390_v50 }
  0xc3   :  { %490 = vst.msk [vmem:[%s1000_s3 + $0x18] sm:$0xff] %vm486_vm0, %v474_v51 }
  0xc6   :  { %v447_v53 = vpop.f32.mrf.mxu2  ;;  %v391_v56 = vpop.f32.mrf.mxu0 }
  0xc7   :  { %v476_v54 = vpop.f32.mrf.mxu3  ;;  %v448_v55 = vadd.f32 %v447_v53, %v419_v52  ;;  %v420_v57 = vpop.f32.mrf.mxu1  ;;  %v392_v59 = vadd.f32 %v955_v16, %v391_v56 }
  0xc9   :  { %v477_v58 = vadd.f32 %v476_v54, %v448_v55  ;;  %v421_v60 = vadd.f32 %v420_v57, %v392_v59 }
  0xcb   :  { %491 = vst.msk [vmem:[%s1000_s3 + $0x20] sm:$0xff] %vm486_vm0, %v477_v58 }
  0xce   :  { %v449_v61 = vpop.f32.mrf.mxu2  ;;  %v394_v0 = vpop.f32.mrf.mxu0 }
  0xcf   :  { %v478_v62 = vpop.f32.mrf.mxu3  ;;  %v450_v63 = vadd.f32 %v449_v61, %v421_v60  ;;  %v395_v1 = vadd.f32 %v955_v16, %v394_v0  ;;  %v423_v3 = vpop.f32.mrf.mxu1 }
  0xd1   :  { %v479_v2 = vadd.f32 %v478_v62, %v450_v63  ;;  %v424_v4 = vadd.f32 %v423_v3, %v395_v1 }
  0xd3   :  { %492 = vst.msk [vmem:[%s1000_s3 + $0x28] sm:$0xff] %vm486_vm0, %v479_v2 }
  0xd6   :  { %v452_v5 = vpop.f32.mrf.mxu2  ;;  %v396_v8 = vpop.f32.mrf.mxu0 }
  0xd7   :  { %v481_v6 = vpop.f32.mrf.mxu3  ;;  %v453_v7 = vadd.f32 %v452_v5, %v424_v4  ;;  %v397_v10 = vadd.f32 %v955_v16, %v396_v8  ;;  %v425_v11 = vpop.f32.mrf.mxu1 }
  0xd9   :  { %v482_v9 = vadd.f32 %v481_v6, %v453_v7  ;;  %v426_v12 = vadd.f32 %v425_v11, %v397_v10 }
  0xdb   :  { %493 = vst.msk [vmem:[%s1000_s3 + $0x30] sm:$0xff] %vm486_vm0, %v482_v9 }
  0xde   :  { %v454_v13 = vpop.f32.mrf.mxu2 }
  0xdf   :  { %v455_v14 = vadd.f32 %v454_v13, %v426_v12  ;;  %v483_v15 = vpop.f32.mrf.mxu3 }
  0xe1   :  { %v484_v17 = vadd.f32 %v483_v15, %v455_v14 }
  0xe3   :  { %494 = vst.msk [vmem:[%s1000_s3 + $0x38] sm:$0xff] %vm486_vm0, %v484_v17 }

// kernel: refine_forward.12
= control target key start
LH: loop header
LB: loop body
LE: loop exit
PB: predicated region body
PF: predicated region fallthrough
CT: control target
= control target key end

     0   :  { %s3517_s1 = inlined_call_operand.vmem [shape: bf16[2432,128], index: 1, kind: input, shape index: {}]   ;;  %s3518_s0 = inlined_call_operand.vmem [shape: bf16[32,2432], index: 0, kind: input, shape index: {}]   ;;  %s3519_s2 = inlined_call_operand.vmem [shape: f32[1,128], index: 2, kind: input, shape index: {}]   ;;  %s3520_s3 = inlined_call_operand.vmem [shape: f32[32,128], index: 3, kind: output, shape index: {}]  }
   0x1   :  { %v2644_v0 = vld [vmem:[%s3517_s1 + $0x38] sm:$0xff]  ;;  %v2643_v4 = vld [vmem:[%s3517_s1 + $0x30] sm:$0xff]  ;;  %v2642_v8 = vld [vmem:[%s3517_s1 + $0x28] sm:$0xff] }
   0x2   :  { %v2652_v1 = vld [vmem:[%s3517_s1 + $0x78] sm:$0xff]  ;;  %1466 = vmatpush.bf16.msra.mxu0 %v2644_v0  ;;  %v2651_v5 = vld [vmem:[%s3517_s1 + $0x70] sm:$0xff]  ;;  %v2650_v9 = vld [vmem:[%s3517_s1 + $0x68] sm:$0xff] }
   0x3   :  { %v2660_v2 = vld [vmem:[%s3517_s1 + $0xb8] sm:$0xff]  ;;  %1485 = vmatpush.bf16.msra.mxu1 %v2652_v1  ;;  %v2659_v6 = vld [vmem:[%s3517_s1 + $0xb0] sm:$0xff]  ;;  %v2658_v10 = vld [vmem:[%s3517_s1 + $0xa8] sm:$0xff] }
   0x4   :  { %v2668_v3 = vld [vmem:[%s3517_s1 + $0xf8] sm:$0xff]  ;;  %1504 = vmatpush.bf16.msra.mxu2 %v2660_v2  ;;  %v2667_v7 = vld [vmem:[%s3517_s1 + $0xf0] sm:$0xff]  ;;  %v2666_v11 = vld [vmem:[%s3517_s1 + $0xe8] sm:$0xff] }
   0x5   :  { %1523 = vmatpush.bf16.msra.mxu3 %v2668_v3  ;;  %v2641_v12 = vld [vmem:[%s3517_s1 + $0x20] sm:$0xff]  ;;  %v2640_v16 = vld [vmem:[%s3517_s1 + $0x18] sm:$0xff]  ;;  %v2639_v20 = vld [vmem:[%s3517_s1 + $0x10] sm:$0xff] }
   0x6   :  { %1467 = vmatpush.bf16.msra.mxu0 %v2643_v4  ;;  %v2649_v13 = vld [vmem:[%s3517_s1 + $0x60] sm:$0xff]  ;;  %v2648_v17 = vld [vmem:[%s3517_s1 + $0x58] sm:$0xff]  ;;  %v2647_v21 = vld [vmem:[%s3517_s1 + $0x50] sm:$0xff] }
   0x7   :  { %1486 = vmatpush.bf16.msra.mxu1 %v2651_v5  ;;  %v2657_v14 = vld [vmem:[%s3517_s1 + $0xa0] sm:$0xff]  ;;  %v2656_v18 = vld [vmem:[%s3517_s1 + $0x98] sm:$0xff]  ;;  %v2655_v22 = vld [vmem:[%s3517_s1 + $0x90] sm:$0xff] }
   0x8   :  { %1505 = vmatpush.bf16.msra.mxu2 %v2659_v6  ;;  %v2665_v15 = vld [vmem:[%s3517_s1 + $0xe0] sm:$0xff]  ;;  %v2664_v19 = vld [vmem:[%s3517_s1 + $0xd8] sm:$0xff]  ;;  %v2663_v23 = vld [vmem:[%s3517_s1 + $0xd0] sm:$0xff] }
   0x9   :  { %1524 = vmatpush.bf16.msra.mxu3 %v2667_v7  ;;  %v2638_v24 = vld [vmem:[%s3517_s1 + $0x8] sm:$0xff]  ;;  %v2637_v28 = vld [vmem:[%s3517_s1] sm:$0xff]  ;;  %v1843_v35 = vld [vmem:[%s3518_s0 + $0x4c] sm:$0xf0] }
   0xa   :  { %1468 = vmatpush.bf16.msra.mxu0 %v2642_v8  ;;  %v2646_v25 = vld [vmem:[%s3517_s1 + $0x48] sm:$0xff]  ;;  %v2645_v29 = vld [vmem:[%s3517_s1 + $0x40] sm:$0xff]  ;;  %v2609_v37 = vld [vmem:[%s3518_s0 + $0x50] sm:$0xf0] }
   0xb   :  { %1487 = vmatpush.bf16.msra.mxu1 %v2650_v9  ;;  %v2654_v26 = vld [vmem:[%s3517_s1 + $0x88] sm:$0xff]  ;;  %v2653_v30 = vld [vmem:[%s3517_s1 + $0x80] sm:$0xff]  ;;  %v1851_v39 = vld [vmem:[%s3518_s0 + $0x54] sm:$0xf0] }
   0xc   :  { %1506 = vmatpush.bf16.msra.mxu2 %v2658_v10  ;;  %v2662_v27 = vld [vmem:[%s3517_s1 + $0xc8] sm:$0xff]  ;;  %v2661_v31 = vld [vmem:[%s3517_s1 + $0xc0] sm:$0xff]  ;;  %v2692_v40 = vld [vmem:[%s3517_s1 + $0x1b8] sm:$0xff] }
   0xd   :  { %1525 = vmatpush.bf16.msra.mxu3 %v2666_v11  ;;  %v1841_v32 = vld [vmem:[%s3518_s0] sm:$0xf]  ;;  %v2608_v33 = vld [vmem:[%s3518_s0 + $0x48] sm:$0xf0]  ;;  %v2599_v34 = vld [vmem:[%s3518_s0 + $0x4] sm:$0xf] }
   0xe   :  { %1469 = vmatpush.bf16.msra.mxu0 %v2641_v12  ;;  %v1849_v36 = vld [vmem:[%s3518_s0 + $0x8] sm:$0xf]  ;;  %v2600_v38 = vld [vmem:[%s3518_s0 + $0xc] sm:$0xf]  ;;  %v2676_v41 = vld [vmem:[%s3517_s1 + $0x138] sm:$0xff]  ;;  %v1842_v42 = vor.u32 %v2608_v33, %v1841_v32  ;;  %v1846_v43 = vor.u32 %v2599_v34, %v1843_v35 }
   0xf   :  { %1488 = vmatpush.bf16.msra.mxu1 %v2649_v13  ;;  %v1850_v44 = vor.u32 %v2609_v37, %v1849_v36  ;;  %v1854_v45 = vor.u32 %v2600_v38, %v1851_v39  ;;  %v2684_v46 = vld [vmem:[%s3517_s1 + $0x178] sm:$0xff]  ;;  %v2691_v48 = vld [vmem:[%s3517_s1 + $0x1b0] sm:$0xff]  ;;  %v2690_v52 = vld [vmem:[%s3517_s1 + $0x1a8] sm:$0xff] }
  0x10   :  { %1507 = vmatpush.bf16.msra.mxu2 %v2657_v14  ;;  %v2700_v47 = vld [vmem:[%s3517_s1 + $0x1f8] sm:$0xff]  ;;  %v2675_v49 = vld [vmem:[%s3517_s1 + $0x130] sm:$0xff]  ;;  %v2674_v53 = vld [vmem:[%s3517_s1 + $0x128] sm:$0xff] }
  0x11   :  { %1526 = vmatpush.bf16.msra.mxu3 %v2665_v15  ;;  %v2683_v50 = vld [vmem:[%s3517_s1 + $0x170] sm:$0xff]  ;;  %v2682_v54 = vld [vmem:[%s3517_s1 + $0x168] sm:$0xff]  ;;  %v2689_v56 = vld [vmem:[%s3517_s1 + $0x1a0] sm:$0xff] }
  0x12   :  { %1470 = vmatpush.bf16.msra.mxu0 %v2640_v16  ;;  %v2699_v51 = vld [vmem:[%s3517_s1 + $0x1f0] sm:$0xff]  ;;  %v2698_v55 = vld [vmem:[%s3517_s1 + $0x1e8] sm:$0xff]  ;;  %v2673_v57 = vld [vmem:[%s3517_s1 + $0x120] sm:$0xff] }
  0x13   :  { %1489 = vmatpush.bf16.msra.mxu1 %v2648_v17  ;;  %v2681_v58 = vld [vmem:[%s3517_s1 + $0x160] sm:$0xff]  ;;  %v1917_v60 = vld [vmem:[%s3518_s0 + $0x98] sm:$0xf]  ;;  %v2618_v62 = vld [vmem:[%s3518_s0 + $0x9c] sm:$0xf] }
  0x14   :  { %1508 = vmatpush.bf16.msra.mxu2 %v2656_v18  ;;  %v2697_v59 = vld [vmem:[%s3517_s1 + $0x1e0] sm:$0xff]  ;;  %v1919_v63 = vld [vmem:[%s3518_s0 + $0xe4] sm:$0xf0]  ;;  %v2628_v1 = vld [vmem:[%s3518_s0 + $0xe8] sm:$0xf0] }
  0x15   :  { %1527 = vmatpush.bf16.msra.mxu3 %v2664_v19  ;;  %v2627_v61 = vld [vmem:[%s3518_s0 + $0xe0] sm:$0xf0]  ;;  %v1925_v0 = vld [vmem:[%s3518_s0 + $0xa0] sm:$0xf]  ;;  %v1927_v3 = vld [vmem:[%s3518_s0 + $0xec] sm:$0xf0]  ;;  %v1922_v7 = vor.u32 %v2618_v62, %v1919_v63 }
  0x16   :  { %1471 = vmatpush.bf16.msra.mxu0 %v2639_v20  ;;  %v2619_v2 = vld [vmem:[%s3518_s0 + $0xa4] sm:$0xf]  ;;  %v2688_v4 = vld [vmem:[%s3517_s1 + $0x198] sm:$0xff]  ;;  %v1918_v6 = vor.u32 %v2627_v61, %v1917_v60  ;;  %v1926_v8 = vor.u32 %v2628_v1, %v1925_v0  ;;  %v2687_v12 = vld [vmem:[%s3517_s1 + $0x190] sm:$0xff] }
  0x17   :  { %1490 = vmatpush.bf16.msra.mxu1 %v2647_v21  ;;  %v2672_v5 = vld [vmem:[%s3517_s1 + $0x118] sm:$0xff]  ;;  %v1930_v9 = vor.u32 %v2619_v2, %v1927_v3  ;;  %v2671_v13 = vld [vmem:[%s3517_s1 + $0x110] sm:$0xff]  ;;  %v2686_v16 = vld [vmem:[%s3517_s1 + $0x188] sm:$0xff] }
  0x18   :  { %1509 = vmatpush.bf16.msra.mxu2 %v2655_v22  ;;  %v2680_v10 = vld [vmem:[%s3517_s1 + $0x158] sm:$0xff]  ;;  %v2679_v14 = vld [vmem:[%s3517_s1 + $0x150] sm:$0xff]  ;;  %v2670_v17 = vld [vmem:[%s3517_s1 + $0x108] sm:$0xff] }
  0x19   :  { %1528 = vmatpush.bf16.msra.mxu3 %v2663_v23  ;;  %v2696_v11 = vld [vmem:[%s3517_s1 + $0x1d8] sm:$0xff]  ;;  %v2695_v15 = vld [vmem:[%s3517_s1 + $0x1d0] sm:$0xff]  ;;  %v2678_v18 = vld [vmem:[%s3517_s1 + $0x148] sm:$0xff] }
  0x1a   :  { %1472 = vmatpush.bf16.msra.mxu0 %v2638_v24  ;;  %v2694_v19 = vld [vmem:[%s3517_s1 + $0x1c8] sm:$0xff]  ;;  %v2685_v20 = vld [vmem:[%s3517_s1 + $0x180] sm:$0xff]  ;;  %v1857_v24 = vld [vmem:[%s3518_s0 + $0x10] sm:$0xf] }
  0x1b   :  { %1491 = vmatpush.bf16.msra.mxu1 %v2646_v25  ;;  %v2669_v21 = vld [vmem:[%s3517_s1 + $0x100] sm:$0xff]  ;;  %v2724_v25 = vld [vmem:[%s3517_s1 + $0x2b8] sm:$0xff]  ;;  %v1867_v33 = vld [vmem:[%s3518_s0 + $0x64] sm:$0xf0] }
  0x1c   :  { %1510 = vmatpush.bf16.msra.mxu2 %v2654_v26  ;;  %v2677_v22 = vld [vmem:[%s3517_s1 + $0x140] sm:$0xff]  ;;  %v2708_v26 = vld [vmem:[%s3517_s1 + $0x238] sm:$0xff]  ;;  %v2723_v37 = vld [vmem:[%s3517_s1 + $0x2b0] sm:$0xff] }
  0x1d   :  { %1529 = vmatpush.bf16.msra.mxu3 %v2662_v27  ;;  %v2693_v23 = vld [vmem:[%s3517_s1 + $0x1c0] sm:$0xff]  ;;  %v2610_v27 = vld [vmem:[%s3518_s0 + $0x58] sm:$0xf0]  ;;  %v2719_v1 = vld [vmem:[%s3517_s1 + $0x290] sm:$0xff] }
  0x1e   :  { %1473 = vmatpush.bf16.msra.mxu0 %v2637_v28  ;;  %v2601_v28 = vld [vmem:[%s3518_s0 + $0x14] sm:$0xf]  ;;  %v2602_v32 = vld [vmem:[%s3518_s0 + $0x1c] sm:$0xf]  ;;  %v1858_v36 = vor.u32 %v2610_v27, %v1857_v24  ;;  %v1943_v61 = vld [vmem:[%s3518_s0 + $0xfc] sm:$0xf0] }
  0x1f   :  { %1492 = vmatpush.bf16.msra.mxu1 %v2645_v29  ;;  %v1859_v29 = vld [vmem:[%s3518_s0 + $0x5c] sm:$0xf0]  ;;  %v2716_v34 = vld [vmem:[%s3517_s1 + $0x278] sm:$0xff]  ;;  %v1875_v24 = vld [vmem:[%s3518_s0 + $0x6c] sm:$0xf0] }
  0x20   :  { %1511 = vmatpush.bf16.msra.mxu2 %v2653_v30  ;;  %v1865_v30 = vld [vmem:[%s3518_s0 + $0x18] sm:$0xf]  ;;  %v1862_v38 = vor.u32 %v2601_v28, %v1859_v29  ;;  %v2604_v27 = vld [vmem:[%s3518_s0 + $0x2c] sm:$0xf] }
  0x21   :  { %1530 = vmatpush.bf16.msra.mxu3 %v2661_v31  ;;  %1474 = vmatmul.bf16.vlgmr.msra.gmra.mxu0 %v1842_v42  ;;  %v2611_v31 = vld [vmem:[%s3518_s0 + $0x60] sm:$0xf0]  ;;  %v2732_v35 = vld [vmem:[%s3517_s1 + $0x2f8] sm:$0xff]  ;;  %v2715_v42 = vld [vmem:[%s3517_s1 + $0x270] sm:$0xff] }
  0x22   :  { %1542 = vmatpush.bf16.msrb.mxu0 %v2676_v41  ;;  %1493 = vmatmul.bf16.vlgmr.msra.gmra.mxu1 %v1846_v43  ;;  %v1866_v39 = vor.u32 %v2611_v31, %v1865_v30  ;;  %v2707_v41 = vld [vmem:[%s3517_s1 + $0x230] sm:$0xff]  ;;  %v2704_v60 = vld [vmem:[%s3517_s1 + $0x218] sm:$0xff] }
  0x23   :  { %1512 = vmatmul.bf16.vlgmr.msra.gmra.mxu2 %v1850_v44  ;;  %1561 = vmatpush.bf16.msrb.mxu1 %v2684_v46  ;;  %v2731_v43 = vld [vmem:[%s3517_s1 + $0x2f0] sm:$0xff]  ;;  %v2722_v44 = vld [vmem:[%s3517_s1 + $0x2a8] sm:$0xff]  ;;  %v2712_v62 = vld [vmem:[%s3517_s1 + $0x258] sm:$0xff] }
  0x24   :  { %1580 = vmatpush.bf16.msrb.mxu2 %v2692_v40  ;;  %1531 = vmatmul.bf16.vlgmr.msra.gmra.mxu3 %v1854_v45  ;;  %v1870_v40 = vor.u32 %v2602_v32, %v1867_v33  ;;  %v2706_v45 = vld [vmem:[%s3517_s1 + $0x228] sm:$0xff]  ;;  %v2728_v63 = vld [vmem:[%s3517_s1 + $0x2d8] sm:$0xff]  ;;  %v2747_v30 = vld [vmem:[%s3517_s1 + $0x370] sm:$0xff] }
  0x25   :  { %1599 = vmatpush.bf16.msrb.mxu3 %v2700_v47  ;;  %v2714_v46 = vld [vmem:[%s3517_s1 + $0x268] sm:$0xff]  ;;  %v1883_v28 = vld [vmem:[%s3518_s0 + $0x74] sm:$0xf0] }
  0x26   :  { %1543 = vmatpush.bf16.msrb.mxu0 %v2675_v49  ;;  %v2730_v47 = vld [vmem:[%s3517_s1 + $0x2e8] sm:$0xff]  ;;  %v2705_v49 = vld [vmem:[%s3517_s1 + $0x220] sm:$0xff]  ;;  %v1886_v33 = vor.u32 %v2604_v27, %v1883_v28 }
  0x27   :  { %1562 = vmatpush.bf16.msrb.mxu1 %v2683_v50  ;;  %v2713_v50 = vld [vmem:[%s3517_s1 + $0x260] sm:$0xff]  ;;  %v2770_v27 = vld [vmem:[%s3517_s1 + $0x428] sm:$0xff] }
  0x28   :  { %1581 = vmatpush.bf16.msrb.mxu2 %v2691_v48  ;;  %v2721_v48 = vld [vmem:[%s3517_s1 + $0x2a0] sm:$0xff]  ;;  %v2778_v28 = vld [vmem:[%s3517_s1 + $0x468] sm:$0xff] }
  0x29   :  { %1600 = vmatpush.bf16.msrb.mxu3 %v2699_v51  ;;  %v2729_v51 = vld [vmem:[%s3517_s1 + $0x2e0] sm:$0xff] }
  0x2a   :  { %1544 = vmatpush.bf16.msrb.mxu0 %v2674_v53  ;;  %v2629_v53 = vld [vmem:[%s3518_s0 + $0xf0] sm:$0xf0] }
  0x2b   :  { %1563 = vmatpush.bf16.msrb.mxu1 %v2682_v54  ;;  %v2720_v54 = vld [vmem:[%s3517_s1 + $0x298] sm:$0xff] }
  0x2c   :  { %1582 = vmatpush.bf16.msrb.mxu2 %v2690_v52  ;;  %v1933_v52 = vld [vmem:[%s3518_s0 + $0xa8] sm:$0xf] }
  0x2d   :  { %1601 = vmatpush.bf16.msrb.mxu3 %v2698_v55  ;;  %v2620_v55 = vld [vmem:[%s3518_s0 + $0xac] sm:$0xf]  ;;  %v1934_v0 = vor.u32 %v2629_v53, %v1933_v52  ;;  %v2623_v52 = vld [vmem:[%s3518_s0 + $0xc4] sm:$0xf]  ;;  %v2736_v53 = vld [vmem:[%s3517_s1 + $0x318] sm:$0xff] }
  0x2e   :  { %1545 = vmatpush.bf16.msrb.mxu0 %v2673_v57  ;;  %v1941_v57 = vld [vmem:[%s3518_s0 + $0xb0] sm:$0xf] }
  0x2f   :  { %1564 = vmatpush.bf16.msrb.mxu1 %v2681_v58  ;;  %v2630_v58 = vld [vmem:[%s3518_s0 + $0xf8] sm:$0xf0] }
  0x30   :  { %1583 = vmatpush.bf16.msrb.mxu2 %v2689_v56  ;;  %v1935_v56 = vld [vmem:[%s3518_s0 + $0xf4] sm:$0xf0]  ;;  %v1942_v3 = vor.u32 %v2630_v58, %v1941_v57  ;;  %v2743_v58 = vld [vmem:[%s3517_s1 + $0x350] sm:$0xff] }
  0x31   :  { %1602 = vmatpush.bf16.msrb.mxu3 %v2697_v59  ;;  %1479 = vmatmul.bf16.gmra.mxu0 %v1918_v6  ;;  %v2621_v59 = vld [vmem:[%s3518_s0 + $0xb4] sm:$0xf]  ;;  %v1938_v2 = vor.u32 %v2620_v55, %v1935_v56  ;;  %v2760_v55 = vld [vmem:[%s3517_s1 + $0x3d8] sm:$0xff] }
  0x32   :  { %1546 = vmatpush.bf16.msrb.mxu0 %v2672_v5  ;;  %1498 = vmatmul.bf16.gmra.mxu1 %v1922_v7  ;;  %v2703_v5 = vld [vmem:[%s3517_s1 + $0x210] sm:$0xff] }
  0x33   :  { %1517 = vmatmul.bf16.gmra.mxu2 %v1926_v8  ;;  %1565 = vmatpush.bf16.msrb.mxu1 %v2680_v10  ;;  %v2711_v6 = vld [vmem:[%s3517_s1 + $0x250] sm:$0xff]  ;;  %v2718_v8 = vld [vmem:[%s3517_s1 + $0x288] sm:$0xff] }
  0x34   :  { %1584 = vmatpush.bf16.msrb.mxu2 %v2688_v4  ;;  %1536 = vmatmul.bf16.gmra.mxu3 %v1930_v9  ;;  %v1946_v4 = vor.u32 %v2621_v59, %v1943_v61  ;;  %v2727_v7 = vld [vmem:[%s3517_s1 + $0x2d0] sm:$0xff]  ;;  %v2702_v9 = vld [vmem:[%s3517_s1 + $0x208] sm:$0xff] }
  0x35   :  { %1603 = vmatpush.bf16.msrb.mxu3 %v2696_v11  ;;  %v2710_v10 = vld [vmem:[%s3517_s1 + $0x248] sm:$0xff]  ;;  %v2751_v56 = vld [vmem:[%s3517_s1 + $0x390] sm:$0xff] }
  0x36   :  { %1547 = vmatpush.bf16.msrb.mxu0 %v2671_v13  ;;  %v2726_v11 = vld [vmem:[%s3517_s1 + $0x2c8] sm:$0xff]  ;;  %v2756_v13 = vld [vmem:[%s3517_s1 + $0x3b8] sm:$0xff] }
  0x37   :  { %1566 = vmatpush.bf16.msrb.mxu1 %v2679_v14  ;;  %v2701_v14 = vld [vmem:[%s3517_s1 + $0x200] sm:$0xff] }
  0x38   :  { %1585 = vmatpush.bf16.msrb.mxu2 %v2687_v12  ;;  %v2717_v12 = vld [vmem:[%s3517_s1 + $0x280] sm:$0xff] }
  0x39   :  { %1604 = vmatpush.bf16.msrb.mxu3 %v2695_v15  ;;  %v2709_v15 = vld [vmem:[%s3517_s1 + $0x240] sm:$0xff] }
  0x3a   :  { %1548 = vmatpush.bf16.msrb.mxu0 %v2670_v17  ;;  %v1873_v17 = vld [vmem:[%s3518_s0 + $0x20] sm:$0xf] }
  0x3b   :  { %1567 = vmatpush.bf16.msrb.mxu1 %v2678_v18  ;;  %v2612_v18 = vld [vmem:[%s3518_s0 + $0x68] sm:$0xf0] }
  0x3c   :  { %1586 = vmatpush.bf16.msrb.mxu2 %v2686_v16  ;;  %v2725_v16 = vld [vmem:[%s3517_s1 + $0x2c0] sm:$0xff]  ;;  %v1874_v29 = vor.u32 %v2612_v18, %v1873_v17  ;;  %v1897_v17 = vld [vmem:[%s3518_s0 + $0x38] sm:$0xf] }
  0x3d   :  { %1605 = vmatpush.bf16.msrb.mxu3 %v2694_v19  ;;  %v2740_v19 = vld [vmem:[%s3517_s1 + $0x338] sm:$0xff]  ;;  %v2615_v18 = vld [vmem:[%s3518_s0 + $0x80] sm:$0xf0] }
  0x3e   :  { %1549 = vmatpush.bf16.msrb.mxu0 %v2669_v21  ;;  %v2603_v21 = vld [vmem:[%s3518_s0 + $0x24] sm:$0xf] }
  0x3f   :  { %1568 = vmatpush.bf16.msrb.mxu1 %v2677_v22  ;;  %v2764_v22 = vld [vmem:[%s3517_s1 + $0x3f8] sm:$0xff]  ;;  %v1878_v31 = vor.u32 %v2603_v21, %v1875_v24  ;;  %v2771_v21 = vld [vmem:[%s3517_s1 + $0x430] sm:$0xff]  ;;  %v1898_v24 = vor.u32 %v2615_v18, %v1897_v17  ;;  %v1983_v18 = vld [vmem:[%s3518_s0 + $0x124] sm:$0xf0] }
  0x40   :  { %1587 = vmatpush.bf16.msrb.mxu2 %v2685_v20  ;;  %v2748_v20 = vld [vmem:[%s3517_s1 + $0x378] sm:$0xff] }
  0x41   :  { %1606 = vmatpush.bf16.msrb.mxu3 %v2693_v23  ;;  %1550 = vmatmul.bf16.vlgmr.msrb.gmra.mxu0 %v1858_v36  ;;  %v2755_v23 = vld [vmem:[%s3517_s1 + $0x3b0] sm:$0xff]  ;;  %v2754_v36 = vld [vmem:[%s3517_s1 + $0x3a8] sm:$0xff]  ;;  %v2626_v17 = vld [vmem:[%s3518_s0 + $0xdc] sm:$0xf] }
  0x42   :  { %1618 = vmatpush.bf16.msra.mxu0 %v2708_v26  ;;  %1569 = vmatmul.bf16.vlgmr.msrb.gmra.mxu1 %v1862_v38  ;;  %v2613_v26 = vld [vmem:[%s3518_s0 + $0x70] sm:$0xf0]  ;;  %v2738_v38 = vld [vmem:[%s3517_s1 + $0x328] sm:$0xff] }
  0x43   :  { %1637 = vmatpush.bf16.msra.mxu1 %v2716_v34  ;;  %1588 = vmatmul.bf16.vlgmr.msrb.gmra.mxu2 %v1866_v39  ;;  %v2739_v34 = vld [vmem:[%s3517_s1 + $0x330] sm:$0xff]  ;;  %v2762_v39 = vld [vmem:[%s3517_s1 + $0x3e8] sm:$0xff] }
  0x44   :  { %1656 = vmatpush.bf16.msra.mxu2 %v2724_v25  ;;  %1607 = vmatmul.bf16.vlgmr.msrb.gmra.mxu3 %v1870_v40  ;;  %v1881_v25 = vld [vmem:[%s3518_s0 + $0x28] sm:$0xf]  ;;  %v2753_v40 = vld [vmem:[%s3517_s1 + $0x3a0] sm:$0xff] }
  0x45   :  { %1675 = vmatpush.bf16.msra.mxu3 %v2732_v35  ;;  %v1882_v32 = vor.u32 %v2613_v26, %v1881_v25  ;;  %v2763_v35 = vld [vmem:[%s3517_s1 + $0x3f0] sm:$0xff]  ;;  %v2786_v26 = vld [vmem:[%s3517_s1 + $0x4a8] sm:$0xff] }
  0x46   :  { %1619 = vmatpush.bf16.msra.mxu0 %v2707_v41  ;;  %v2745_v41 = vld [vmem:[%s3517_s1 + $0x360] sm:$0xff] }
  0x47   :  { %1638 = vmatpush.bf16.msra.mxu1 %v2715_v42  ;;  %v2737_v42 = vld [vmem:[%s3517_s1 + $0x320] sm:$0xff] }
  0x48   :  { %1657 = vmatpush.bf16.msra.mxu2 %v2723_v37  ;;  %v2746_v37 = vld [vmem:[%s3517_s1 + $0x368] sm:$0xff] }
  0x49   :  { %1676 = vmatpush.bf16.msra.mxu3 %v2731_v43  ;;  %v2761_v43 = vld [vmem:[%s3517_s1 + $0x3e0] sm:$0xff] }
  0x4a   :  { %1620 = vmatpush.bf16.msra.mxu0 %v2706_v45  ;;  %v1949_v45 = vld [vmem:[%s3518_s0 + $0xb8] sm:$0xf] }
  0x4b   :  { %1639 = vmatpush.bf16.msra.mxu1 %v2714_v46  ;;  %v2631_v46 = vld [vmem:[%s3518_s0 + $0x100] sm:$0xf0] }
  0x4c   :  { %1658 = vmatpush.bf16.msra.mxu2 %v2722_v44  ;;  %v2752_v44 = vld [vmem:[%s3517_s1 + $0x398] sm:$0xff]  ;;  %v1950_v57 = vor.u32 %v2631_v46, %v1949_v45  ;;  %v2775_v45 = vld [vmem:[%s3517_s1 + $0x450] sm:$0xff] }
  0x4d   :  { %1677 = vmatpush.bf16.msra.mxu3 %v2730_v47  ;;  %v2744_v47 = vld [vmem:[%s3517_s1 + $0x358] sm:$0xff] }
  0x4e   :  { %1621 = vmatpush.bf16.msra.mxu0 %v2705_v49  ;;  %v1951_v49 = vld [vmem:[%s3518_s0 + $0x104] sm:$0xf0] }
  0x4f   :  { %1640 = vmatpush.bf16.msra.mxu1 %v2713_v50  ;;  %v1957_v50 = vld [vmem:[%s3518_s0 + $0xc0] sm:$0xf] }
  0x50   :  { %1659 = vmatpush.bf16.msra.mxu2 %v2721_v48  ;;  %v2622_v48 = vld [vmem:[%s3518_s0 + $0xbc] sm:$0xf] }
  0x51   :  { %1678 = vmatpush.bf16.msra.mxu3 %v2729_v51  ;;  %1555 = vmatmul.bf16.gmra.mxu0 %v1934_v0  ;;  %v2632_v51 = vld [vmem:[%s3518_s0 + $0x108] sm:$0xf0]  ;;  %v1954_v59 = vor.u32 %v2622_v48, %v1951_v49 }
  0x52   :  { %1622 = vmatpush.bf16.msra.mxu0 %v2704_v60  ;;  %1574 = vmatmul.bf16.gmra.mxu1 %v1938_v2  ;;  %v1958_v60 = vor.u32 %v2632_v51, %v1957_v50  ;;  %v2750_v0 = vld [vmem:[%s3517_s1 + $0x388] sm:$0xff] }
  0x53   :  { %1641 = vmatpush.bf16.msra.mxu1 %v2712_v62  ;;  %1593 = vmatmul.bf16.gmra.mxu2 %v1942_v3  ;;  %v2735_v62 = vld [vmem:[%s3517_s1 + $0x310] sm:$0xff]  ;;  %v2734_v2 = vld [vmem:[%s3517_s1 + $0x308] sm:$0xff] }
  0x54   :  { %1660 = vmatpush.bf16.msra.mxu2 %v2720_v54  ;;  %1612 = vmatmul.bf16.gmra.mxu3 %v1946_v4  ;;  %v1959_v54 = vld [vmem:[%s3518_s0 + $0x10c] sm:$0xf0]  ;;  %v2758_v3 = vld [vmem:[%s3517_s1 + $0x3c8] sm:$0xff]  ;;  %v2749_v4 = vld [vmem:[%s3517_s1 + $0x380] sm:$0xff] }
  0x55   :  { %1679 = vmatpush.bf16.msra.mxu3 %v2728_v63  ;;  %v1962_v61 = vor.u32 %v2623_v52, %v1959_v54  ;;  %v2759_v63 = vld [vmem:[%s3517_s1 + $0x3d0] sm:$0xff]  ;;  %v2782_v50 = vld [vmem:[%s3517_s1 + $0x488] sm:$0xff]  ;;  %v2765_v54 = vld [vmem:[%s3517_s1 + $0x400] sm:$0xff] }
  0x56   :  { %1623 = vmatpush.bf16.msra.mxu0 %v2703_v5  ;;  %v2741_v5 = vld [vmem:[%s3517_s1 + $0x340] sm:$0xff]  ;;  %v2766_v51 = vld [vmem:[%s3517_s1 + $0x408] sm:$0xff] }
  0x57   :  { %1642 = vmatpush.bf16.msra.mxu1 %v2711_v6  ;;  %v2788_v6 = vld [vmem:[%s3517_s1 + $0x4b8] sm:$0xff]  ;;  %v2774_v52 = vld [vmem:[%s3517_s1 + $0x448] sm:$0xff] }
  0x58   :  { %1661 = vmatpush.bf16.msra.mxu2 %v2719_v1  ;;  %v2742_v1 = vld [vmem:[%s3517_s1 + $0x348] sm:$0xff] }
  0x59   :  { %1680 = vmatpush.bf16.msra.mxu3 %v2727_v7  ;;  %v2780_v7 = vld [vmem:[%s3517_s1 + $0x478] sm:$0xff] }
  0x5a   :  { %1624 = vmatpush.bf16.msra.mxu0 %v2702_v9  ;;  %v2757_v9 = vld [vmem:[%s3517_s1 + $0x3c0] sm:$0xff] }
  0x5b   :  { %1643 = vmatpush.bf16.msra.mxu1 %v2710_v10  ;;  %v2772_v10 = vld [vmem:[%s3517_s1 + $0x438] sm:$0xff] }
  0x5c   :  { %1662 = vmatpush.bf16.msra.mxu2 %v2718_v8  ;;  %v2733_v8 = vld [vmem:[%s3517_s1 + $0x300] sm:$0xff] }
  0x5d   :  { %1681 = vmatpush.bf16.msra.mxu3 %v2726_v11  ;;  %v1889_v11 = vld [vmem:[%s3518_s0 + $0x30] sm:$0xf] }
  0x5e   :  { %1625 = vmatpush.bf16.msra.mxu0 %v2701_v14  ;;  %v2605_v14 = vld [vmem:[%s3518_s0 + $0x34] sm:$0xf] }
  0x5f   :  { %1644 = vmatpush.bf16.msra.mxu1 %v2709_v15  ;;  %v2779_v15 = vld [vmem:[%s3517_s1 + $0x470] sm:$0xff] }
  0x60   :  { %1663 = vmatpush.bf16.msra.mxu2 %v2717_v12  ;;  %v2787_v12 = vld [vmem:[%s3517_s1 + $0x4b0] sm:$0xff] }
  0x61   :  { %1682 = vmatpush.bf16.msra.mxu3 %v2725_v16  ;;  %1626 = vmatmul.bf16.vlgmr.msra.gmra.mxu0 %v1874_v29  ;;  %v1891_v16 = vld [vmem:[%s3518_s0 + $0x7c] sm:$0xf0] }
  0x62   :  { %1694 = vmatpush.bf16.msrb.mxu0 %v2740_v19  ;;  %1645 = vmatmul.bf16.vlgmr.msra.gmra.mxu1 %v1878_v31  ;;  %v2606_v19 = vld [vmem:[%s3518_s0 + $0x3c] sm:$0xf]  ;;  %v2785_v29 = vld [vmem:[%s3517_s1 + $0x4a0] sm:$0xff] }
  0x63   :  { %1713 = vmatpush.bf16.msrb.mxu1 %v2748_v20  ;;  %1664 = vmatmul.bf16.vlgmr.msra.gmra.mxu2 %v1882_v32  ;;  %v1899_v20 = vld [vmem:[%s3518_s0 + $0x84] sm:$0xf0]  ;;  %v2777_v31 = vld [vmem:[%s3517_s1 + $0x460] sm:$0xff]  ;;  %v2784_v32 = vld [vmem:[%s3517_s1 + $0x498] sm:$0xff] }
  0x64   :  { %1732 = vmatpush.bf16.msrb.mxu2 %v2756_v13  ;;  %1683 = vmatmul.bf16.vlgmr.msra.gmra.mxu3 %v1886_v33  ;;  %v2614_v13 = vld [vmem:[%s3518_s0 + $0x78] sm:$0xf0]  ;;  %v1902_v25 = vor.u32 %v2606_v19, %v1899_v20  ;;  %v1989_v19 = vld [vmem:[%s3518_s0 + $0xe0] sm:$0xf]  ;;  %v2636_v20 = vld [vmem:[%s3518_s0 + $0x128] sm:$0xf0] }
  0x65   :  { %1751 = vmatpush.bf16.msrb.mxu3 %v2764_v22  ;;  %v1890_v22 = vor.u32 %v2614_v13, %v1889_v11  ;;  %v2768_v33 = vld [vmem:[%s3517_s1 + $0x418] sm:$0xff] }
  0x66   :  { %1695 = vmatpush.bf16.msrb.mxu0 %v2739_v34  ;;  %v2776_v34 = vld [vmem:[%s3517_s1 + $0x458] sm:$0xff] }
  0x67   :  { %1714 = vmatpush.bf16.msrb.mxu1 %v2747_v30  ;;  %v2769_v30 = vld [vmem:[%s3517_s1 + $0x420] sm:$0xff] }
  0x68   :  { %1733 = vmatpush.bf16.msrb.mxu2 %v2755_v23  ;;  %v1894_v23 = vor.u32 %v2605_v14, %v1891_v16 }
  0x69   :  { %1752 = vmatpush.bf16.msrb.mxu3 %v2763_v35  ;;  %v1965_v35 = vld [vmem:[%s3518_s0 + $0xc8] sm:$0xf] }
  0x6a   :  { %1696 = vmatpush.bf16.msrb.mxu0 %v2738_v38  ;;  %v1967_v38 = vld [vmem:[%s3518_s0 + $0x114] sm:$0xf0] }
  0x6b   :  { %1715 = vmatpush.bf16.msrb.mxu1 %v2746_v37  ;;  %v2624_v37 = vld [vmem:[%s3518_s0 + $0xcc] sm:$0xf] }
  0x6c   :  { %1734 = vmatpush.bf16.msrb.mxu2 %v2754_v36  ;;  %v2633_v36 = vld [vmem:[%s3518_s0 + $0x110] sm:$0xf0] }
  0x6d   :  { %1753 = vmatpush.bf16.msrb.mxu3 %v2762_v39  ;;  %v1973_v39 = vld [vmem:[%s3518_s0 + $0xd0] sm:$0xf]  ;;  %v1966_v46 = vor.u32 %v2633_v36, %v1965_v35 }
  0x6e   :  { %1697 = vmatpush.bf16.msrb.mxu0 %v2737_v42  ;;  %v2783_v42 = vld [vmem:[%s3517_s1 + $0x490] sm:$0xff] }
  0x6f   :  { %1716 = vmatpush.bf16.msrb.mxu1 %v2745_v41  ;;  %v2625_v41 = vld [vmem:[%s3518_s0 + $0xd4] sm:$0xf] }
  0x70   :  { %1735 = vmatpush.bf16.msrb.mxu2 %v2753_v40  ;;  %v2634_v40 = vld [vmem:[%s3518_s0 + $0x118] sm:$0xf0] }
  0x71   :  { %1754 = vmatpush.bf16.msrb.mxu3 %v2761_v43  ;;  %1631 = vmatmul.bf16.gmra.mxu0 %v1950_v57  ;;  %v1975_v43 = vld [vmem:[%s3518_s0 + $0x11c] sm:$0xf0]  ;;  %v1974_v48 = vor.u32 %v2634_v40, %v1973_v39 }
  0x72   :  { %1698 = vmatpush.bf16.msrb.mxu0 %v2736_v53  ;;  %1650 = vmatmul.bf16.gmra.mxu1 %v1954_v59  ;;  %v1978_v49 = vor.u32 %v2625_v41, %v1975_v43  ;;  %v2781_v53 = vld [vmem:[%s3517_s1 + $0x480] sm:$0xff] }
  0x73   :  { %1717 = vmatpush.bf16.msrb.mxu1 %v2744_v47  ;;  %1669 = vmatmul.bf16.gmra.mxu2 %v1958_v60  ;;  %v1970_v47 = vor.u32 %v2624_v37, %v1967_v38  ;;  %v1905_v57 = vld [vmem:[%s3518_s0 + $0x40] sm:$0xf]  ;;  %v2607_v59 = vld [vmem:[%s3518_s0 + $0x44] sm:$0xf]  ;;  %v1907_v60 = vld [vmem:[%s3518_s0 + $0x8c] sm:$0xf0] }
  0x74   :  { %1736 = vmatpush.bf16.msrb.mxu2 %v2752_v44  ;;  %1688 = vmatmul.bf16.gmra.mxu3 %v1962_v61  ;;  %v2767_v44 = vld [vmem:[%s3517_s1 + $0x410] sm:$0xff]  ;;  %v1913_v61 = vld [vmem:[%s3518_s0 + $0x48] sm:$0xf] }
  0x75   :  { %1755 = vmatpush.bf16.msrb.mxu3 %v2760_v55  ;;  %v2773_v55 = vld [vmem:[%s3517_s1 + $0x440] sm:$0xff] }
  0x76   :  { %1699 = vmatpush.bf16.msrb.mxu0 %v2735_v62  ;;  %v2617_v62 = vld [vmem:[%s3518_s0 + $0x90] sm:$0xf0] }
  0x77   :  { %1718 = vmatpush.bf16.msrb.mxu1 %v2743_v58  ;;  %v2616_v58 = vld [vmem:[%s3518_s0 + $0x88] sm:$0xf0] }
  0x78   :  { %1737 = vmatpush.bf16.msrb.mxu2 %v2751_v56  ;;  %v2797_v56 = vld [vmem:[%s3519_s2] ss:$0 sm:$0xff] }
  0x79   :  { %1756 = vmatpush.bf16.msrb.mxu3 %v2759_v63  ;;  %v1981_v63 = vld [vmem:[%s3518_s0 + $0xd8] sm:$0xf] }
  0x7a   :  { %1700 = vmatpush.bf16.msrb.mxu0 %v2734_v2 }
  0x7b   :  { %1719 = vmatpush.bf16.msrb.mxu1 %v2742_v1  ;;  %v1906_v1 = vor.u32 %v2616_v58, %v1905_v57 }
  0x7c   :  { %1738 = vmatpush.bf16.msrb.mxu2 %v2750_v0  ;;  %v2635_v0 = vld [vmem:[%s3518_s0 + $0x120] sm:$0xf0] }
  0x7d   :  { %1757 = vmatpush.bf16.msrb.mxu3 %v2758_v3 }
  0x7e   :  { %1701 = vmatpush.bf16.msrb.mxu0 %v2733_v8 }
  0x7f   :  { %1720 = vmatpush.bf16.msrb.mxu1 %v2741_v5  ;;  %v1914_v5 = vor.u32 %v2617_v62, %v1913_v61 }
  0x80   :  { %1739 = vmatpush.bf16.msrb.mxu2 %v2749_v4  ;;  %v1910_v4 = vor.u32 %v2607_v59, %v1907_v60 }
  0x81   :  { %1758 = vmatpush.bf16.msrb.mxu3 %v2757_v9  ;;  %1702 = vmatmul.bf16.vlgmr.msrb.gmra.mxu0 %v1890_v22 }
  0x82   :  { %1770 = vmatpush.bf16.msra.mxu0 %v2772_v10  ;;  %1721 = vmatmul.bf16.vlgmr.msrb.gmra.mxu1 %v1894_v23 }
  0x83   :  { %1789 = vmatpush.bf16.msra.mxu1 %v2780_v7  ;;  %1740 = vmatmul.bf16.vlgmr.msrb.gmra.mxu2 %v1898_v24  ;;  %v1982_v7 = vor.u32 %v2635_v0, %v1981_v63 }
  0x84   :  { %1808 = vmatpush.bf16.msra.mxu2 %v2788_v6  ;;  %1759 = vmatmul.bf16.vlgmr.msrb.gmra.mxu3 %v1902_v25 }
  0x85   :  { %2789 = vmatpush.bf16.msra.mxu3 %v2772_v10 }
  0x86   :  { %1771 = vmatpush.bf16.msra.mxu0 %v2771_v21 }
  0x87   :  { %1790 = vmatpush.bf16.msra.mxu1 %v2779_v15 }
  0x88   :  { %1809 = vmatpush.bf16.msra.mxu2 %v2787_v12 }
  0x89   :  { %2790 = vmatpush.bf16.msra.mxu3 %v2771_v21 }
  0x8a   :  { %1772 = vmatpush.bf16.msra.mxu0 %v2770_v27 }
  0x8b   :  { %1791 = vmatpush.bf16.msra.mxu1 %v2778_v28 }
  0x8c   :  { %1810 = vmatpush.bf16.msra.mxu2 %v2786_v26  ;;  %v1986_v26 = vor.u32 %v2626_v17, %v1983_v18 }
  0x8d   :  { %2791 = vmatpush.bf16.msra.mxu3 %v2770_v27  ;;  %v1990_v27 = vor.u32 %v2636_v20, %v1989_v19 }
  0x8e   :  { %1773 = vmatpush.bf16.msra.mxu0 %v2769_v30 }
  0x8f   :  { %1792 = vmatpush.bf16.msra.mxu1 %v2777_v31 }
  0x90   :  { %1811 = vmatpush.bf16.msra.mxu2 %v2785_v29 }
  0x91   :  { %2792 = vmatpush.bf16.msra.mxu3 %v2769_v30  ;;  %1707 = vmatmul.bf16.gmra.mxu0 %v1966_v46 }
  0x92   :  { %1774 = vmatpush.bf16.msra.mxu0 %v2768_v33  ;;  %1726 = vmatmul.bf16.gmra.mxu1 %v1970_v47 }
  0x93   :  { %1793 = vmatpush.bf16.msra.mxu1 %v2776_v34  ;;  %1745 = vmatmul.bf16.gmra.mxu2 %v1974_v48 }
  0x94   :  { %1812 = vmatpush.bf16.msra.mxu2 %v2784_v32  ;;  %1764 = vmatmul.bf16.gmra.mxu3 %v1978_v49 }
  0x95   :  { %2793 = vmatpush.bf16.msra.mxu3 %v2768_v33 }
  0x96   :  { %1775 = vmatpush.bf16.msra.mxu0 %v2767_v44 }
  0x97   :  { %1794 = vmatpush.bf16.msra.mxu1 %v2775_v45 }
  0x98   :  { %1813 = vmatpush.bf16.msra.mxu2 %v2783_v42 }
  0x99   :  { %2794 = vmatpush.bf16.msra.mxu3 %v2767_v44 }
  0x9a   :  { %1776 = vmatpush.bf16.msra.mxu0 %v2766_v51 }
  0x9b   :  { %1795 = vmatpush.bf16.msra.mxu1 %v2774_v52 }
  0x9c   :  { %1814 = vmatpush.bf16.msra.mxu2 %v2782_v50 }
  0x9d   :  { %2795 = vmatpush.bf16.msra.mxu3 %v2766_v51 }
  0x9e   :  { %1777 = vmatpush.bf16.msra.mxu0 %v2765_v54  ;;  %v1475_v2 = vpop.f32.mrf.mxu0 }
  0x9f   :  { %1796 = vmatpush.bf16.msra.mxu1 %v2773_v55  ;;  %v1494_v3 = vpop.f32.mrf.mxu1  ;;  %v1476_v6 = vadd.f32 %v2797_v56, %v1475_v2 }
  0xa0   :  { %1815 = vmatpush.bf16.msra.mxu2 %v2781_v53 }
  0xa1   :  { %2796 = vmatpush.bf16.msra.mxu3 %v2765_v54  ;;  %v1495_v8 = vadd.f32 %v1494_v3, %v1476_v6  ;;  %1778 = vmatmul.bf16.vlgmr.msra.gmra.mxu0 %v1906_v1 }
  0xa2   :  { %1797 = vmatmul.bf16.vlgmr.msra.gmra.mxu1 %v1910_v4 }
  0xa3   :  { %1816 = vmatmul.bf16.vlgmr.msra.gmra.mxu2 %v1914_v5 }
  0xa4   :  { %1783 = vmatmul.bf16.vlgmr.msra.gmra.mxu3 %v1982_v7 }
  0xa6   :  { %v1513_v9 = vpop.f32.mrf.mxu2  ;;  %v1477_v12 = vpop.f32.mrf.mxu0 }
  0xa7   :  { %v1532_v10 = vpop.f32.mrf.mxu3  ;;  %v1514_v11 = vadd.f32 %v1513_v9, %v1495_v8  ;;  %v1496_v13 = vpop.f32.mrf.mxu1  ;;  %v1478_v14 = vadd.f32 %v2797_v56, %v1477_v12 }
  0xa9   :  { %v1533_v15 = vadd.f32 %v1532_v10, %v1514_v11  ;;  %v1497_v16 = vadd.f32 %v1496_v13, %v1478_v14 }
  0xae   :  { %v1515_v21 = vpop.f32.mrf.mxu2  ;;  %v1480_v24 = vpop.f32.mrf.mxu0 }
  0xaf   :  { %v1534_v22 = vpop.f32.mrf.mxu3  ;;  %v1516_v23 = vadd.f32 %v1515_v21, %v1497_v16  ;;  %v1499_v25 = vpop.f32.mrf.mxu1  ;;  %v1481_v28 = vadd.f32 %v2797_v56, %v1480_v24 }
  0xb1   :  { %v1535_v29 = vadd.f32 %v1534_v22, %v1516_v23  ;;  %v1500_v30 = vadd.f32 %v1499_v25, %v1481_v28 }
  0xb2   :  { %1802 = vmatmul.bf16.gmra.mxu1 %v1986_v26 }
  0xb3   :  { %1821 = vmatmul.bf16.gmra.mxu2 %v1990_v27 }
  0xb6   :  { %v1518_v31 = vpop.f32.mrf.mxu2  ;;  %v1482_v34 = vpop.f32.mrf.mxu0 }
  0xb7   :  { %v1537_v32 = vpop.f32.mrf.mxu3  ;;  %v1519_v33 = vadd.f32 %v1518_v31, %v1500_v30  ;;  %v1501_v35 = vpop.f32.mrf.mxu1  ;;  %v1483_v36 = vadd.f32 %v2797_v56, %v1482_v34 }
  0xb9   :  { %v1538_v37 = vadd.f32 %v1537_v32, %v1519_v33  ;;  %v1502_v38 = vadd.f32 %v1501_v35, %v1483_v36 }
  0xbe   :  { %v1520_v39 = vpop.f32.mrf.mxu2  ;;  %v1551_v42 = vpop.f32.mrf.mxu0 }
  0xbf   :  { %v1539_v40 = vpop.f32.mrf.mxu3  ;;  %v1521_v41 = vadd.f32 %v1520_v39, %v1502_v38  ;;  %v1552_v43 = vadd.f32 %v1551_v42, %v1533_v15  ;;  %v1570_v44 = vpop.f32.mrf.mxu1 }
  0xc1   :  { %v1540_v45 = vadd.f32 %v1539_v40, %v1521_v41  ;;  %v1571_v46 = vadd.f32 %v1570_v44, %v1552_v43 }
  0xc6   :  { %v1589_v47 = vpop.f32.mrf.mxu2  ;;  %v1553_v50 = vpop.f32.mrf.mxu0 }
  0xc7   :  { %v1590_v48 = vadd.f32 %v1589_v47, %v1571_v46  ;;  %v1608_v49 = vpop.f32.mrf.mxu3  ;;  %v1554_v51 = vadd.f32 %v1553_v50, %v1535_v29  ;;  %v1572_v52 = vpop.f32.mrf.mxu1 }
  0xc9   :  { %v1573_v53 = vadd.f32 %v1572_v52, %v1554_v51  ;;  %v1609_v26 = vadd.f32 %v1608_v49, %v1590_v48 }
  0xce   :  { %v1591_v54 = vpop.f32.mrf.mxu2  ;;  %v1556_v57 = vpop.f32.mrf.mxu0 }
  0xcf   :  { %v1592_v55 = vadd.f32 %v1591_v54, %v1573_v53  ;;  %v1610_v56 = vpop.f32.mrf.mxu3  ;;  %v1557_v58 = vadd.f32 %v1556_v57, %v1538_v37  ;;  %v1575_v59 = vpop.f32.mrf.mxu1 }
  0xd1   :  { %v1576_v60 = vadd.f32 %v1575_v59, %v1557_v58  ;;  %v1611_v33 = vadd.f32 %v1610_v56, %v1592_v55 }
  0xd6   :  { %v1594_v61 = vpop.f32.mrf.mxu2  ;;  %v1558_v0 = vpop.f32.mrf.mxu0 }
  0xd7   :  { %v1595_v62 = vadd.f32 %v1594_v61, %v1576_v60  ;;  %v1613_v63 = vpop.f32.mrf.mxu3  ;;  %v1559_v1 = vadd.f32 %v1558_v0, %v1540_v45  ;;  %v1577_v2 = vpop.f32.mrf.mxu1 }
  0xd9   :  { %v1578_v3 = vadd.f32 %v1577_v2, %v1559_v1  ;;  %v1614_v46 = vadd.f32 %v1613_v63, %v1595_v62 }
  0xde   :  { %v1596_v4 = vpop.f32.mrf.mxu2  ;;  %v1627_v7 = vpop.f32.mrf.mxu0 }
  0xdf   :  { %v1597_v5 = vadd.f32 %v1596_v4, %v1578_v3  ;;  %v1615_v6 = vpop.f32.mrf.mxu3  ;;  %v1646_v8 = vpop.f32.mrf.mxu1  ;;  %v1628_v30 = vadd.f32 %v1627_v7, %v1609_v26 }
  0xe1   :  { %v1647_v31 = vadd.f32 %v1646_v8, %v1628_v30  ;;  %v1616_v58 = vadd.f32 %v1615_v6, %v1597_v5 }
  0xe6   :  { %v1665_v9 = vpop.f32.mrf.mxu2  ;;  %v1629_v11 = vpop.f32.mrf.mxu0 }
  0xe7   :  { %v1684_v10 = vpop.f32.mrf.mxu3  ;;  %v1648_v12 = vpop.f32.mrf.mxu1  ;;  %v1666_v34 = vadd.f32 %v1665_v9, %v1647_v31  ;;  %v1630_v38 = vadd.f32 %v1629_v11, %v1611_v33 }
  0xe9   :  { %v1685_v39 = vadd.f32 %v1684_v10, %v1666_v34  ;;  %v1649_v40 = vadd.f32 %v1648_v12, %v1630_v38 }
  0xee   :  { %v1667_v13 = vpop.f32.mrf.mxu2  ;;  %v1632_v15 = vpop.f32.mrf.mxu0 }
  0xef   :  { %v1686_v14 = vpop.f32.mrf.mxu3  ;;  %v1651_v16 = vpop.f32.mrf.mxu1  ;;  %v1668_v43 = vadd.f32 %v1667_v13, %v1649_v40  ;;  %v1633_v50 = vadd.f32 %v1632_v15, %v1614_v46 }
  0xf1   :  { %v1687_v49 = vadd.f32 %v1686_v14, %v1668_v43  ;;  %v1652_v54 = vadd.f32 %v1651_v16, %v1633_v50 }
  0xf6   :  { %v1670_v17 = vpop.f32.mrf.mxu2  ;;  %v1634_v19 = vpop.f32.mrf.mxu0 }
  0xf7   :  { %v1689_v18 = vpop.f32.mrf.mxu3  ;;  %v1653_v20 = vpop.f32.mrf.mxu1  ;;  %v1671_v59 = vadd.f32 %v1670_v17, %v1652_v54  ;;  %v1635_v0 = vadd.f32 %v1634_v19, %v1616_v58 }
  0xf9   :  { %v1690_v3 = vadd.f32 %v1689_v18, %v1671_v59  ;;  %v1654_v4 = vadd.f32 %v1653_v20, %v1635_v0 }
  0xfe   :  { %v1672_v21 = vpop.f32.mrf.mxu2  ;;  %v1703_v23 = vpop.f32.mrf.mxu0 }
  0xff   :  { %v1691_v22 = vpop.f32.mrf.mxu3  ;;  %v1722_v24 = vpop.f32.mrf.mxu1  ;;  %v1704_v41 = vadd.f32 %v1703_v23, %v1685_v39  ;;  %v1673_v12 = vadd.f32 %v1672_v21, %v1654_v4 }
 0x101   :  { %v1723_v47 = vadd.f32 %v1722_v24, %v1704_v41  ;;  %v1692_v5 = vadd.f32 %v1691_v22, %v1673_v12 }
 0x106   :  { %v1741_v25 = vpop.f32.mrf.mxu2  ;;  %v1705_v28 = vpop.f32.mrf.mxu0 }
 0x107   :  { %v1760_v27 = vpop.f32.mrf.mxu3  ;;  %v1724_v29 = vpop.f32.mrf.mxu1  ;;  %v1742_v51 = vadd.f32 %v1741_v25, %v1723_v47  ;;  %v1706_v52 = vadd.f32 %v1705_v28, %v1687_v49 }
 0x109   :  { %v1761_v55 = vadd.f32 %v1760_v27, %v1742_v51  ;;  %v1725_v60 = vadd.f32 %v1724_v29, %v1706_v52 }
 0x10e   :  { %v1743_v32 = vpop.f32.mrf.mxu2  ;;  %v1708_v35 = vpop.f32.mrf.mxu0 }
 0x10f   :  { %v1762_v36 = vpop.f32.mrf.mxu3  ;;  %v1727_v37 = vpop.f32.mrf.mxu1  ;;  %v1744_v1 = vadd.f32 %v1743_v32, %v1725_v60  ;;  %v1709_v8 = vadd.f32 %v1708_v35, %v1690_v3 }
 0x111   :  { %v1763_v7 = vadd.f32 %v1762_v36, %v1744_v1  ;;  %v1728_v15 = vadd.f32 %v1727_v37, %v1709_v8 }
 0x116   :  { %v1746_v42 = vpop.f32.mrf.mxu2  ;;  %v1710_v44 = vpop.f32.mrf.mxu0 }
 0x117   :  { %v1729_v45 = vpop.f32.mrf.mxu1  ;;  %v1765_v48 = vpop.f32.mrf.mxu3  ;;  %v1747_v6 = vadd.f32 %v1746_v42, %v1728_v15  ;;  %v1711_v19 = vadd.f32 %v1710_v44, %v1692_v5 }
 0x119   :  { %v1766_v24 = vadd.f32 %v1765_v48, %v1747_v6  ;;  %v1730_v26 = vadd.f32 %v1729_v45, %v1711_v19 }
 0x11e   :  { %v1748_v53 = vpop.f32.mrf.mxu2  ;;  %v1779_v56 = vpop.f32.mrf.mxu0 }
 0x11f   :  { %v1798_v57 = vpop.f32.mrf.mxu1  ;;  %v1780_v61 = vadd.f32 %v1779_v56, %v1761_v55  ;;  %v1767_v2 = vpop.f32.mrf.mxu3  ;;  %v1749_v21 = vadd.f32 %v1748_v53, %v1730_v26 }
 0x121   :  { %v1799_v62 = vadd.f32 %v1798_v57, %v1780_v61  ;;  %v1768_v31 = vadd.f32 %v1767_v2, %v1749_v21 }
 0x126   :  { %v1817_v63 = vpop.f32.mrf.mxu2  ;;  %v1781_v10 = vpop.f32.mrf.mxu0 }
 0x127   :  { %v1818_v9 = vadd.f32 %v1817_v63, %v1799_v62  ;;  %v1800_v11 = vpop.f32.mrf.mxu1  ;;  %v1782_v14 = vadd.f32 %v1781_v10, %v1763_v7  ;;  %v1784_v17 = vpop.f32.mrf.mxu3 }
 0x128   :  { %v1785_v27 = vadd.f32 %v1784_v17, %v1766_v24 }
 0x129   :  { %v1827_v13 = vmax.f32 %v1818_v9, 0.0  ;;  %v1801_v16 = vadd.f32 %v1800_v11, %v1782_v14 }
 0x12b   :  { %1831 = vst [vmem:[%s3520_s3] sm:$0xff] %v1827_v13 }
 0x12e   :  { %v1819_v18 = vpop.f32.mrf.mxu2 }
 0x12f   :  { %v1820_v20 = vadd.f32 %v1819_v18, %v1801_v16  ;;  %v1803_v23 = vpop.f32.mrf.mxu1  ;;  %v1786_v22 = vpop.f32.mrf.mxu3 }
 0x130   :  { %v1804_v28 = vadd.f32 %v1803_v23, %v1785_v27  ;;  %v1787_v34 = vadd.f32 %v1786_v22, %v1768_v31 }
 0x131   :  { %v1828_v25 = vmax.f32 %v1820_v20, 0.0 }
 0x133   :  { %1832 = vst [vmem:[%s3520_s3 + $0x8] sm:$0xff] %v1828_v25 }
 0x136   :  { %v1822_v29 = vpop.f32.mrf.mxu2 }
 0x137   :  { %v1823_v30 = vadd.f32 %v1822_v29, %v1804_v28  ;;  %v1805_v33 = vpop.f32.mrf.mxu1 }
 0x138   :  { %v1806_v35 = vadd.f32 %v1805_v33, %v1787_v34 }
 0x139   :  { %v1829_v32 = vmax.f32 %v1823_v30, 0.0 }
 0x13b   :  { %1833 = vst [vmem:[%s3520_s3 + $0x10] sm:$0xff] %v1829_v32 }
 0x13e   :  { %v1824_v36 = vpop.f32.mrf.mxu2 }
 0x13f   :  { %v1825_v37 = vadd.f32 %v1824_v36, %v1806_v35 }
 0x141   :  { %v1830_v38 = vmax.f32 %v1825_v37, 0.0 }
 0x143   :  { %1834 = vst [vmem:[%s3520_s3 + $0x18] sm:$0xff] %v1830_v38 }

// kernel: refine_forward.14
= control target key start
LH: loop header
LB: loop body
LE: loop exit
PB: predicated region body
PF: predicated region fallthrough
CT: control target
= control target key end

     0   :  { %s1396_s1 = inlined_call_operand.vmem [shape: bf16[512,128], index: 1, kind: input, shape index: {}]   ;;  %s1397_s2 = inlined_call_operand.vmem [shape: f32[1,128], index: 2, kind: input, shape index: {}]   ;;  %s1398_s0 = inlined_call_operand.vmem [shape: bf16[128,512], index: 0, kind: input, shape index: {}]   ;;  %s1399_s3 = inlined_call_operand.vmem [shape: f32[128,128], index: 3, kind: output, shape index: {}]  }
   0x1   :  { %v993_v0 = vld [vmem:[%s1396_s1 + $0x38] sm:$0xff]  ;;  %v992_v4 = vld [vmem:[%s1396_s1 + $0x30] sm:$0xff]  ;;  %v991_v8 = vld [vmem:[%s1396_s1 + $0x28] sm:$0xff] }
   0x2   :  { %v1001_v1 = vld [vmem:[%s1396_s1 + $0x78] sm:$0xff]  ;;  %466 = vmatpush.bf16.msra.mxu0 %v993_v0  ;;  %v1000_v5 = vld [vmem:[%s1396_s1 + $0x70] sm:$0xff]  ;;  %v999_v9 = vld [vmem:[%s1396_s1 + $0x68] sm:$0xff] }
   0x3   :  { %v1009_v2 = vld [vmem:[%s1396_s1 + $0xb8] sm:$0xff]  ;;  %515 = vmatpush.bf16.msra.mxu1 %v1001_v1  ;;  %v1008_v6 = vld [vmem:[%s1396_s1 + $0xb0] sm:$0xff]  ;;  %v1007_v10 = vld [vmem:[%s1396_s1 + $0xa8] sm:$0xff] }
   0x4   :  { %v1017_v3 = vld [vmem:[%s1396_s1 + $0xf8] sm:$0xff]  ;;  %564 = vmatpush.bf16.msra.mxu2 %v1009_v2  ;;  %v1016_v7 = vld [vmem:[%s1396_s1 + $0xf0] sm:$0xff]  ;;  %v1015_v11 = vld [vmem:[%s1396_s1 + $0xe8] sm:$0xff] }
   0x5   :  { %613 = vmatpush.bf16.msra.mxu3 %v1017_v3  ;;  %v990_v12 = vld [vmem:[%s1396_s1 + $0x20] sm:$0xff]  ;;  %v989_v16 = vld [vmem:[%s1396_s1 + $0x18] sm:$0xff]  ;;  %v988_v20 = vld [vmem:[%s1396_s1 + $0x10] sm:$0xff] }
   0x6   :  { %467 = vmatpush.bf16.msra.mxu0 %v992_v4  ;;  %v998_v13 = vld [vmem:[%s1396_s1 + $0x60] sm:$0xff]  ;;  %v997_v17 = vld [vmem:[%s1396_s1 + $0x58] sm:$0xff]  ;;  %v996_v21 = vld [vmem:[%s1396_s1 + $0x50] sm:$0xff] }
   0x7   :  { %516 = vmatpush.bf16.msra.mxu1 %v1000_v5  ;;  %v1006_v14 = vld [vmem:[%s1396_s1 + $0xa0] sm:$0xff]  ;;  %v1005_v18 = vld [vmem:[%s1396_s1 + $0x98] sm:$0xff]  ;;  %v1004_v22 = vld [vmem:[%s1396_s1 + $0x90] sm:$0xff] }
   0x8   :  { %565 = vmatpush.bf16.msra.mxu2 %v1008_v6  ;;  %v1014_v15 = vld [vmem:[%s1396_s1 + $0xe0] sm:$0xff]  ;;  %v1013_v19 = vld [vmem:[%s1396_s1 + $0xd8] sm:$0xff]  ;;  %v1012_v23 = vld [vmem:[%s1396_s1 + $0xd0] sm:$0xff] }
   0x9   :  { %614 = vmatpush.bf16.msra.mxu3 %v1016_v7  ;;  %v987_v24 = vld [vmem:[%s1396_s1 + $0x8] sm:$0xff]  ;;  %v986_v28 = vld [vmem:[%s1396_s1] sm:$0xff]  ;;  %v956_v33 = vld [vmem:[%s1398_s0 + $0xc] sm:$0xf0] }
   0xa   :  { %468 = vmatpush.bf16.msra.mxu0 %v991_v8  ;;  %v995_v25 = vld [vmem:[%s1396_s1 + $0x48] sm:$0xff]  ;;  %v994_v29 = vld [vmem:[%s1396_s1 + $0x40] sm:$0xff]  ;;  %v702_v35 = vld [vmem:[%s1398_s0 + $0x10] sm:$0xf0] }
   0xb   :  { %517 = vmatpush.bf16.msra.mxu1 %v999_v9  ;;  %v1003_v26 = vld [vmem:[%s1396_s1 + $0x88] sm:$0xff]  ;;  %v1002_v30 = vld [vmem:[%s1396_s1 + $0x80] sm:$0xff]  ;;  %v957_v37 = vld [vmem:[%s1398_s0 + $0x14] sm:$0xf0] }
   0xc   :  { %566 = vmatpush.bf16.msra.mxu2 %v1007_v10  ;;  %v1011_v27 = vld [vmem:[%s1396_s1 + $0xc8] sm:$0xff]  ;;  %v1010_v31 = vld [vmem:[%s1396_s1 + $0xc0] sm:$0xff]  ;;  %v710_v39 = vld [vmem:[%s1398_s0 + $0x18] sm:$0xf0] }
   0xd   :  { %615 = vmatpush.bf16.msra.mxu3 %v1015_v11  ;;  %v700_v32 = vld [vmem:[%s1398_s0] sm:$0xf]  ;;  %v954_v34 = vld [vmem:[%s1398_s0 + $0x4] sm:$0xf]  ;;  %v708_v36 = vld [vmem:[%s1398_s0 + $0x8] sm:$0xf] }
   0xe   :  { %469 = vmatpush.bf16.msra.mxu0 %v990_v12  ;;  %v955_v38 = vld [vmem:[%s1398_s0 + $0xc] sm:$0xf]  ;;  %v701_v40 = vor.u32 %v956_v33, %v700_v32  ;;  %v705_v41 = vor.u32 %v954_v34, %v702_v35  ;;  %v709_v42 = vor.u32 %v957_v37, %v708_v36  ;;  %v716_v44 = vld [vmem:[%s1398_s0 + $0x20] sm:$0xf]  ;;  %v960_v45 = vld [vmem:[%s1398_s0 + $0x2c] sm:$0xf0] }
   0xf   :  { %518 = vmatpush.bf16.msra.mxu1 %v998_v13  ;;  %v713_v43 = vor.u32 %v955_v38, %v710_v39  ;;  %v958_v46 = vld [vmem:[%s1398_s0 + $0x24] sm:$0xf]  ;;  %v718_v47 = vld [vmem:[%s1398_s0 + $0x30] sm:$0xf0]  ;;  %v724_v48 = vld [vmem:[%s1398_s0 + $0x28] sm:$0xf]  ;;  %v717_v52 = vor.u32 %v960_v45, %v716_v44 }
  0x10   :  { %567 = vmatpush.bf16.msra.mxu2 %v1006_v14  ;;  %v961_v49 = vld [vmem:[%s1398_s0 + $0x34] sm:$0xf0]  ;;  %v959_v50 = vld [vmem:[%s1398_s0 + $0x2c] sm:$0xf]  ;;  %v726_v51 = vld [vmem:[%s1398_s0 + $0x38] sm:$0xf0]  ;;  %v721_v53 = vor.u32 %v958_v46, %v718_v47 }
  0x11   :  { %616 = vmatpush.bf16.msra.mxu3 %v1014_v15  ;;  %v725_v54 = vor.u32 %v961_v49, %v724_v48  ;;  %v729_v55 = vor.u32 %v959_v50, %v726_v51  ;;  %v732_v56 = vld [vmem:[%s1398_s0 + $0x40] sm:$0xf]  ;;  %v964_v57 = vld [vmem:[%s1398_s0 + $0x4c] sm:$0xf0]  ;;  %v962_v58 = vld [vmem:[%s1398_s0 + $0x44] sm:$0xf] }
  0x12   :  { %470 = vmatpush.bf16.msra.mxu0 %v989_v16  ;;  %v734_v59 = vld [vmem:[%s1398_s0 + $0x50] sm:$0xf0]  ;;  %v740_v60 = vld [vmem:[%s1398_s0 + $0x48] sm:$0xf]  ;;  %v965_v61 = vld [vmem:[%s1398_s0 + $0x54] sm:$0xf0]  ;;  %v733_v0 = vor.u32 %v964_v57, %v732_v56 }
  0x13   :  { %519 = vmatpush.bf16.msra.mxu1 %v997_v17  ;;  %v963_v62 = vld [vmem:[%s1398_s0 + $0x4c] sm:$0xf]  ;;  %v742_v63 = vld [vmem:[%s1398_s0 + $0x58] sm:$0xf0]  ;;  %v737_v1 = vor.u32 %v962_v58, %v734_v59  ;;  %v741_v2 = vor.u32 %v965_v61, %v740_v60  ;;  %v748_v4 = vld [vmem:[%s1398_s0 + $0x60] sm:$0xf] }
  0x14   :  { %568 = vmatpush.bf16.msra.mxu2 %v1005_v18  ;;  %v745_v3 = vor.u32 %v963_v62, %v742_v63  ;;  %v968_v5 = vld [vmem:[%s1398_s0 + $0x6c] sm:$0xf0]  ;;  %v966_v6 = vld [vmem:[%s1398_s0 + $0x64] sm:$0xf]  ;;  %v750_v7 = vld [vmem:[%s1398_s0 + $0x70] sm:$0xf0] }
  0x15   :  { %617 = vmatpush.bf16.msra.mxu3 %v1013_v19  ;;  %v756_v8 = vld [vmem:[%s1398_s0 + $0x68] sm:$0xf]  ;;  %v969_v9 = vld [vmem:[%s1398_s0 + $0x74] sm:$0xf0]  ;;  %v967_v10 = vld [vmem:[%s1398_s0 + $0x6c] sm:$0xf]  ;;  %v749_v12 = vor.u32 %v968_v5, %v748_v4  ;;  %v753_v13 = vor.u32 %v966_v6, %v750_v7 }
  0x16   :  { %471 = vmatpush.bf16.msra.mxu0 %v988_v20  ;;  %v758_v11 = vld [vmem:[%s1398_s0 + $0x78] sm:$0xf0]  ;;  %v757_v14 = vor.u32 %v969_v9, %v756_v8  ;;  %v764_v16 = vld [vmem:[%s1398_s0 + $0x80] sm:$0xf]  ;;  %v972_v17 = vld [vmem:[%s1398_s0 + $0x8c] sm:$0xf0] }
  0x17   :  { %520 = vmatpush.bf16.msra.mxu1 %v996_v21  ;;  %v761_v15 = vor.u32 %v967_v10, %v758_v11  ;;  %v970_v18 = vld [vmem:[%s1398_s0 + $0x84] sm:$0xf]  ;;  %v766_v19 = vld [vmem:[%s1398_s0 + $0x90] sm:$0xf0]  ;;  %v772_v20 = vld [vmem:[%s1398_s0 + $0x88] sm:$0xf] }
  0x18   :  { %569 = vmatpush.bf16.msra.mxu2 %v1004_v22  ;;  %v973_v21 = vld [vmem:[%s1398_s0 + $0x94] sm:$0xf0]  ;;  %v971_v22 = vld [vmem:[%s1398_s0 + $0x8c] sm:$0xf]  ;;  %v788_v32 = vld [vmem:[%s1398_s0 + $0xa8] sm:$0xf] }
  0x19   :  { %618 = vmatpush.bf16.msra.mxu3 %v1012_v23  ;;  %v774_v23 = vld [vmem:[%s1398_s0 + $0x98] sm:$0xf0]  ;;  %v977_v33 = vld [vmem:[%s1398_s0 + $0xb4] sm:$0xf0]  ;;  %v975_v34 = vld [vmem:[%s1398_s0 + $0xac] sm:$0xf] }
  0x1a   :  { %472 = vmatpush.bf16.msra.mxu0 %v987_v24  ;;  %v765_v24 = vor.u32 %v972_v17, %v764_v16  ;;  %v790_v35 = vld [vmem:[%s1398_s0 + $0xb8] sm:$0xf0]  ;;  %v789_v38 = vor.u32 %v977_v33, %v788_v32  ;;  %v804_v44 = vld [vmem:[%s1398_s0 + $0xc8] sm:$0xf]  ;;  %v981_v45 = vld [vmem:[%s1398_s0 + $0xd4] sm:$0xf0] }
  0x1b   :  { %521 = vmatpush.bf16.msra.mxu1 %v995_v25  ;;  %v769_v25 = vor.u32 %v970_v18, %v766_v19  ;;  %v793_v39 = vor.u32 %v975_v34, %v790_v35  ;;  %v979_v46 = vld [vmem:[%s1398_s0 + $0xcc] sm:$0xf]  ;;  %v806_v47 = vld [vmem:[%s1398_s0 + $0xd8] sm:$0xf0]  ;;  %v805_v50 = vor.u32 %v981_v45, %v804_v44  ;;  %v820_v56 = vld [vmem:[%s1398_s0 + $0xe8] sm:$0xf] }
  0x1c   :  { %570 = vmatpush.bf16.msra.mxu2 %v1003_v26  ;;  %v773_v26 = vor.u32 %v973_v21, %v772_v20  ;;  %v809_v51 = vor.u32 %v979_v46, %v806_v47  ;;  %v985_v57 = vld [vmem:[%s1398_s0 + $0xf4] sm:$0xf0]  ;;  %v983_v58 = vld [vmem:[%s1398_s0 + $0xec] sm:$0xf]  ;;  %v822_v59 = vld [vmem:[%s1398_s0 + $0xf8] sm:$0xf0] }
  0x1d   :  { %619 = vmatpush.bf16.msra.mxu3 %v1011_v27  ;;  %v777_v27 = vor.u32 %v971_v22, %v774_v23  ;;  %v821_v62 = vor.u32 %v985_v57, %v820_v56  ;;  %v825_v63 = vor.u32 %v983_v58, %v822_v59 }
  0x1e   :  { %473 = vmatpush.bf16.msra.mxu0 %v986_v28  ;;  %v780_v28 = vld [vmem:[%s1398_s0 + $0xa0] sm:$0xf] }
  0x1f   :  { %522 = vmatpush.bf16.msra.mxu1 %v994_v29  ;;  %v976_v29 = vld [vmem:[%s1398_s0 + $0xac] sm:$0xf0] }
  0x20   :  { %571 = vmatpush.bf16.msra.mxu2 %v1002_v30  ;;  %v974_v30 = vld [vmem:[%s1398_s0 + $0xa4] sm:$0xf]  ;;  %v781_v36 = vor.u32 %v976_v29, %v780_v28 }
  0x21   :  { %620 = vmatpush.bf16.msra.mxu3 %v1010_v31  ;;  %474 = vmatmul.bf16.vlgmr.msra.gmra.mxu0 %v701_v40  ;;  %v782_v31 = vld [vmem:[%s1398_s0 + $0xb0] sm:$0xf0]  ;;  %v796_v40 = vld [vmem:[%s1398_s0 + $0xc0] sm:$0xf] }
  0x22   :  { %523 = vmatmul.bf16.vlgmr.msra.gmra.mxu1 %v705_v41  ;;  %v785_v37 = vor.u32 %v974_v30, %v782_v31  ;;  %v980_v41 = vld [vmem:[%s1398_s0 + $0xcc] sm:$0xf0] }
  0x23   :  { %572 = vmatmul.bf16.vlgmr.msra.gmra.mxu2 %v709_v42  ;;  %v978_v42 = vld [vmem:[%s1398_s0 + $0xc4] sm:$0xf]  ;;  %v797_v48 = vor.u32 %v980_v41, %v796_v40 }
  0x24   :  { %621 = vmatmul.bf16.vlgmr.msra.gmra.mxu3 %v713_v43  ;;  %v798_v43 = vld [vmem:[%s1398_s0 + $0xd0] sm:$0xf0] }
  0x25   :  { %v801_v49 = vor.u32 %v978_v42, %v798_v43 }
  0x31   :  { %479 = vmatmul.bf16.gmra.mxu0 %v717_v52  ;;  %v812_v52 = vld [vmem:[%s1398_s0 + $0xe0] sm:$0xf] }
  0x32   :  { %528 = vmatmul.bf16.gmra.mxu1 %v721_v53  ;;  %v984_v53 = vld [vmem:[%s1398_s0 + $0xec] sm:$0xf0] }
  0x33   :  { %577 = vmatmul.bf16.gmra.mxu2 %v725_v54  ;;  %v982_v54 = vld [vmem:[%s1398_s0 + $0xe4] sm:$0xf]  ;;  %v813_v60 = vor.u32 %v984_v53, %v812_v52 }
  0x34   :  { %626 = vmatmul.bf16.gmra.mxu3 %v729_v55  ;;  %v814_v55 = vld [vmem:[%s1398_s0 + $0xf0] sm:$0xf0] }
  0x35   :  { %v817_v61 = vor.u32 %v982_v54, %v814_v55 }
  0x41   :  { %484 = vmatmul.bf16.gmra.mxu0 %v733_v0  ;;  %v1330_v0 = vld [vmem:[%s1397_s2] ss:$0 sm:$0xff] }
  0x42   :  { %533 = vmatmul.bf16.gmra.mxu1 %v737_v1 }
  0x43   :  { %582 = vmatmul.bf16.gmra.mxu2 %v741_v2 }
  0x44   :  { %631 = vmatmul.bf16.gmra.mxu3 %v745_v3 }
  0x51   :  { %489 = vmatmul.bf16.gmra.mxu0 %v749_v12 }
  0x52   :  { %538 = vmatmul.bf16.gmra.mxu1 %v753_v13 }
  0x53   :  { %587 = vmatmul.bf16.gmra.mxu2 %v757_v14 }
  0x54   :  { %636 = vmatmul.bf16.gmra.mxu3 %v761_v15 }
  0x61   :  { %494 = vmatmul.bf16.gmra.mxu0 %v765_v24 }
  0x62   :  { %543 = vmatmul.bf16.gmra.mxu1 %v769_v25 }
  0x63   :  { %592 = vmatmul.bf16.gmra.mxu2 %v773_v26 }
  0x64   :  { %641 = vmatmul.bf16.gmra.mxu3 %v777_v27 }
  0x71   :  { %499 = vmatmul.bf16.gmra.mxu0 %v781_v36 }
  0x72   :  { %548 = vmatmul.bf16.gmra.mxu1 %v785_v37 }
  0x73   :  { %597 = vmatmul.bf16.gmra.mxu2 %v789_v38 }
  0x74   :  { %646 = vmatmul.bf16.gmra.mxu3 %v793_v39 }
  0x81   :  { %504 = vmatmul.bf16.gmra.mxu0 %v797_v48 }
  0x82   :  { %553 = vmatmul.bf16.gmra.mxu1 %v801_v49 }
  0x83   :  { %602 = vmatmul.bf16.gmra.mxu2 %v805_v50 }
  0x84   :  { %651 = vmatmul.bf16.gmra.mxu3 %v809_v51 }
  0x91   :  { %509 = vmatmul.bf16.gmra.mxu0 %v813_v60 }
  0x92   :  { %558 = vmatmul.bf16.gmra.mxu1 %v817_v61 }
  0x93   :  { %607 = vmatmul.bf16.gmra.mxu2 %v821_v62 }
  0x94   :  { %656 = vmatmul.bf16.gmra.mxu3 %v825_v63 }
  0x9e   :  { %v475_v1 = vpop.f32.mrf.mxu0 }
  0x9f   :  { %v524_v2 = vpop.f32.mrf.mxu1  ;;  %v476_v3 = vadd.f32 %v1330_v0, %v475_v1 }
  0xa1   :  { %v525_v4 = vadd.f32 %v524_v2, %v476_v3 }
  0xa6   :  { %v573_v5 = vpop.f32.mrf.mxu2  ;;  %v477_v8 = vpop.f32.mrf.mxu0 }
  0xa7   :  { %v622_v6 = vpop.f32.mrf.mxu3  ;;  %v574_v7 = vadd.f32 %v573_v5, %v525_v4  ;;  %v526_v9 = vpop.f32.mrf.mxu1  ;;  %v478_v11 = vadd.f32 %v1330_v0, %v477_v8 }
  0xa9   :  { %v623_v10 = vadd.f32 %v622_v6, %v574_v7  ;;  %v527_v13 = vadd.f32 %v526_v9, %v478_v11 }
  0xab   :  { %v662_v12 = vmax.f32 %v623_v10, 0.0 }
  0xad   :  { %678 = vst [vmem:[%s1399_s3] sm:$0xff] %v662_v12 }
  0xae   :  { %v575_v14 = vpop.f32.mrf.mxu2  ;;  %v480_v17 = vpop.f32.mrf.mxu0 }
  0xaf   :  { %v624_v15 = vpop.f32.mrf.mxu3  ;;  %v576_v16 = vadd.f32 %v575_v14, %v527_v13  ;;  %v529_v18 = vpop.f32.mrf.mxu1  ;;  %v481_v19 = vadd.f32 %v1330_v0, %v480_v17 }
  0xb1   :  { %v625_v20 = vadd.f32 %v624_v15, %v576_v16  ;;  %v530_v22 = vadd.f32 %v529_v18, %v481_v19 }
  0xb3   :  { %v663_v21 = vmax.f32 %v625_v20, 0.0 }
  0xb5   :  { %679 = vst [vmem:[%s1399_s3 + $0x8] sm:$0xff] %v663_v21 }
  0xb6   :  { %v578_v23 = vpop.f32.mrf.mxu2  ;;  %v482_v26 = vpop.f32.mrf.mxu0 }
  0xb7   :  { %v627_v24 = vpop.f32.mrf.mxu3  ;;  %v579_v25 = vadd.f32 %v578_v23, %v530_v22  ;;  %v531_v27 = vpop.f32.mrf.mxu1  ;;  %v483_v29 = vadd.f32 %v1330_v0, %v482_v26 }
  0xb9   :  { %v628_v28 = vadd.f32 %v627_v24, %v579_v25  ;;  %v532_v31 = vadd.f32 %v531_v27, %v483_v29 }
  0xbb   :  { %v664_v30 = vmax.f32 %v628_v28, 0.0 }
  0xbd   :  { %680 = vst [vmem:[%s1399_s3 + $0x10] sm:$0xff] %v664_v30 }
  0xbe   :  { %v580_v32 = vpop.f32.mrf.mxu2  ;;  %v485_v35 = vpop.f32.mrf.mxu0 }
  0xbf   :  { %v629_v33 = vpop.f32.mrf.mxu3  ;;  %v581_v34 = vadd.f32 %v580_v32, %v532_v31  ;;  %v534_v36 = vpop.f32.mrf.mxu1  ;;  %v486_v37 = vadd.f32 %v1330_v0, %v485_v35 }
  0xc1   :  { %v630_v38 = vadd.f32 %v629_v33, %v581_v34  ;;  %v535_v40 = vadd.f32 %v534_v36, %v486_v37 }
  0xc3   :  { %v665_v39 = vmax.f32 %v630_v38, 0.0 }
  0xc5   :  { %681 = vst [vmem:[%s1399_s3 + $0x18] sm:$0xff] %v665_v39 }
  0xc6   :  { %v583_v41 = vpop.f32.mrf.mxu2  ;;  %v487_v44 = vpop.f32.mrf.mxu0 }
  0xc7   :  { %v632_v42 = vpop.f32.mrf.mxu3  ;;  %v584_v43 = vadd.f32 %v583_v41, %v535_v40  ;;  %v536_v45 = vpop.f32.mrf.mxu1  ;;  %v488_v47 = vadd.f32 %v1330_v0, %v487_v44 }
  0xc9   :  { %v633_v46 = vadd.f32 %v632_v42, %v584_v43  ;;  %v537_v49 = vadd.f32 %v536_v45, %v488_v47 }
  0xcb   :  { %v666_v48 = vmax.f32 %v633_v46, 0.0 }
  0xcd   :  { %682 = vst [vmem:[%s1399_s3 + $0x20] sm:$0xff] %v666_v48 }
  0xce   :  { %v585_v50 = vpop.f32.mrf.mxu2  ;;  %v490_v53 = vpop.f32.mrf.mxu0 }
  0xcf   :  { %v634_v51 = vpop.f32.mrf.mxu3  ;;  %v586_v52 = vadd.f32 %v585_v50, %v537_v49  ;;  %v539_v54 = vpop.f32.mrf.mxu1  ;;  %v491_v55 = vadd.f32 %v1330_v0, %v490_v53 }
  0xd1   :  { %v635_v56 = vadd.f32 %v634_v51, %v586_v52  ;;  %v540_v58 = vadd.f32 %v539_v54, %v491_v55 }
  0xd3   :  { %v667_v57 = vmax.f32 %v635_v56, 0.0 }
  0xd5   :  { %683 = vst [vmem:[%s1399_s3 + $0x28] sm:$0xff] %v667_v57 }
  0xd6   :  { %v588_v59 = vpop.f32.mrf.mxu2  ;;  %v492_v62 = vpop.f32.mrf.mxu0 }
  0xd7   :  { %v637_v60 = vpop.f32.mrf.mxu3  ;;  %v589_v61 = vadd.f32 %v588_v59, %v540_v58  ;;  %v541_v63 = vpop.f32.mrf.mxu1  ;;  %v493_v2 = vadd.f32 %v1330_v0, %v492_v62 }
  0xd9   :  { %v638_v1 = vadd.f32 %v637_v60, %v589_v61  ;;  %v542_v4 = vadd.f32 %v541_v63, %v493_v2 }
  0xdb   :  { %v668_v3 = vmax.f32 %v638_v1, 0.0 }
  0xdd   :  { %684 = vst [vmem:[%s1399_s3 + $0x30] sm:$0xff] %v668_v3 }
  0xde   :  { %v590_v5 = vpop.f32.mrf.mxu2  ;;  %v495_v8 = vpop.f32.mrf.mxu0 }
  0xdf   :  { %v639_v6 = vpop.f32.mrf.mxu3  ;;  %v591_v7 = vadd.f32 %v590_v5, %v542_v4  ;;  %v544_v9 = vpop.f32.mrf.mxu1  ;;  %v496_v10 = vadd.f32 %v1330_v0, %v495_v8 }
  0xe1   :  { %v640_v11 = vadd.f32 %v639_v6, %v591_v7  ;;  %v545_v13 = vadd.f32 %v544_v9, %v496_v10 }
  0xe3   :  { %v669_v12 = vmax.f32 %v640_v11, 0.0 }
  0xe5   :  { %685 = vst [vmem:[%s1399_s3 + $0x38] sm:$0xff] %v669_v12 }
  0xe6   :  { %v593_v14 = vpop.f32.mrf.mxu2  ;;  %v497_v17 = vpop.f32.mrf.mxu0 }
  0xe7   :  { %v642_v15 = vpop.f32.mrf.mxu3  ;;  %v594_v16 = vadd.f32 %v593_v14, %v545_v13  ;;  %v546_v18 = vpop.f32.mrf.mxu1  ;;  %v498_v20 = vadd.f32 %v1330_v0, %v497_v17 }
  0xe9   :  { %v643_v19 = vadd.f32 %v642_v15, %v594_v16  ;;  %v547_v22 = vadd.f32 %v546_v18, %v498_v20 }
  0xeb   :  { %v670_v21 = vmax.f32 %v643_v19, 0.0 }
  0xed   :  { %686 = vst [vmem:[%s1399_s3 + $0x40] sm:$0xff] %v670_v21 }
  0xee   :  { %v595_v23 = vpop.f32.mrf.mxu2  ;;  %v500_v26 = vpop.f32.mrf.mxu0 }
  0xef   :  { %v644_v24 = vpop.f32.mrf.mxu3  ;;  %v596_v25 = vadd.f32 %v595_v23, %v547_v22  ;;  %v549_v27 = vpop.f32.mrf.mxu1  ;;  %v501_v28 = vadd.f32 %v1330_v0, %v500_v26 }
  0xf1   :  { %v645_v29 = vadd.f32 %v644_v24, %v596_v25  ;;  %v550_v31 = vadd.f32 %v549_v27, %v501_v28 }
  0xf3   :  { %v671_v30 = vmax.f32 %v645_v29, 0.0 }
  0xf5   :  { %687 = vst [vmem:[%s1399_s3 + $0x48] sm:$0xff] %v671_v30 }
  0xf6   :  { %v598_v32 = vpop.f32.mrf.mxu2  ;;  %v502_v35 = vpop.f32.mrf.mxu0 }
  0xf7   :  { %v647_v33 = vpop.f32.mrf.mxu3  ;;  %v599_v34 = vadd.f32 %v598_v32, %v550_v31  ;;  %v551_v36 = vpop.f32.mrf.mxu1  ;;  %v503_v38 = vadd.f32 %v1330_v0, %v502_v35 }
  0xf9   :  { %v648_v37 = vadd.f32 %v647_v33, %v599_v34  ;;  %v552_v40 = vadd.f32 %v551_v36, %v503_v38 }
  0xfb   :  { %v672_v39 = vmax.f32 %v648_v37, 0.0 }
  0xfd   :  { %688 = vst [vmem:[%s1399_s3 + $0x50] sm:$0xff] %v672_v39 }
  0xfe   :  { %v600_v41 = vpop.f32.mrf.mxu2  ;;  %v505_v44 = vpop.f32.mrf.mxu0 }
  0xff   :  { %v649_v42 = vpop.f32.mrf.mxu3  ;;  %v601_v43 = vadd.f32 %v600_v41, %v552_v40  ;;  %v554_v45 = vpop.f32.mrf.mxu1  ;;  %v506_v46 = vadd.f32 %v1330_v0, %v505_v44 }
 0x101   :  { %v650_v47 = vadd.f32 %v649_v42, %v601_v43  ;;  %v555_v49 = vadd.f32 %v554_v45, %v506_v46 }
 0x103   :  { %v673_v48 = vmax.f32 %v650_v47, 0.0 }
 0x105   :  { %689 = vst [vmem:[%s1399_s3 + $0x58] sm:$0xff] %v673_v48 }
 0x106   :  { %v603_v50 = vpop.f32.mrf.mxu2  ;;  %v507_v53 = vpop.f32.mrf.mxu0 }
 0x107   :  { %v652_v51 = vpop.f32.mrf.mxu3  ;;  %v604_v52 = vadd.f32 %v603_v50, %v555_v49  ;;  %v556_v54 = vpop.f32.mrf.mxu1  ;;  %v508_v56 = vadd.f32 %v1330_v0, %v507_v53 }
 0x109   :  { %v653_v55 = vadd.f32 %v652_v51, %v604_v52  ;;  %v557_v58 = vadd.f32 %v556_v54, %v508_v56 }
 0x10b   :  { %v674_v57 = vmax.f32 %v653_v55, 0.0 }
 0x10d   :  { %690 = vst [vmem:[%s1399_s3 + $0x60] sm:$0xff] %v674_v57 }
 0x10e   :  { %v605_v59 = vpop.f32.mrf.mxu2  ;;  %v510_v62 = vpop.f32.mrf.mxu0 }
 0x10f   :  { %v654_v60 = vpop.f32.mrf.mxu3  ;;  %v606_v61 = vadd.f32 %v605_v59, %v557_v58  ;;  %v511_v63 = vadd.f32 %v1330_v0, %v510_v62  ;;  %v559_v2 = vpop.f32.mrf.mxu1 }
 0x111   :  { %v655_v1 = vadd.f32 %v654_v60, %v606_v61  ;;  %v560_v4 = vadd.f32 %v559_v2, %v511_v63 }
 0x113   :  { %v675_v3 = vmax.f32 %v655_v1, 0.0 }
 0x115   :  { %691 = vst [vmem:[%s1399_s3 + $0x68] sm:$0xff] %v675_v3 }
 0x116   :  { %v608_v5 = vpop.f32.mrf.mxu2  ;;  %v512_v8 = vpop.f32.mrf.mxu0 }
 0x117   :  { %v657_v6 = vpop.f32.mrf.mxu3  ;;  %v609_v7 = vadd.f32 %v608_v5, %v560_v4  ;;  %v513_v10 = vadd.f32 %v1330_v0, %v512_v8  ;;  %v561_v12 = vpop.f32.mrf.mxu1 }
 0x119   :  { %v658_v9 = vadd.f32 %v657_v6, %v609_v7  ;;  %v562_v13 = vadd.f32 %v561_v12, %v513_v10 }
 0x11b   :  { %v676_v11 = vmax.f32 %v658_v9, 0.0 }
 0x11d   :  { %692 = vst [vmem:[%s1399_s3 + $0x70] sm:$0xff] %v676_v11 }
 0x11e   :  { %v610_v14 = vpop.f32.mrf.mxu2 }
 0x11f   :  { %v611_v15 = vadd.f32 %v610_v14, %v562_v13  ;;  %v659_v16 = vpop.f32.mrf.mxu3 }
 0x121   :  { %v660_v17 = vadd.f32 %v659_v16, %v611_v15 }
 0x123   :  { %v677_v18 = vmax.f32 %v660_v17, 0.0 }
 0x125   :  { %693 = vst [vmem:[%s1399_s3 + $0x78] sm:$0xff] %v677_v18 }

// kernel: refine_forward.16
= control target key start
LH: loop header
LB: loop body
LE: loop exit
PB: predicated region body
PF: predicated region fallthrough
CT: control target
= control target key end

     0   :  { %s1265_s12 = smov 0   ;;  %s1267_s13 = smov 0   ;;  %s1494_s0 = inlined_call_operand.vmem [shape: bf16[192,512], index: 0, kind: input, shape index: {}]   ;;  %s1495_s1 = inlined_call_operand.vmem [shape: bf16[512,8], index: 1, kind: input, shape index: {}]   ;;  %s1496_s2 = inlined_call_operand.vmem [shape: f32[1,8], index: 2, kind: input, shape index: {}]   ;;  %s1497_s3 = inlined_call_operand.vmem [shape: f32[192,8], index: 3, kind: output, shape index: {}]  }
   0x1   :  { %s1269_s14 = smov 0  }
   0x2 LB: > { %s25_s15 = sadd.s32 1, %s1239_s13  ;;  %p909_p0 = scmp.ge.s32.totalorder %s1243_s14, 1  ;;  %s1243_s14 = sphi %s1269_s14, %s13_s14   ;;  %s1239_s13 = sphi %s1267_s13, %s1499_s13   ;;  %s1235_s12 = sphi %s1265_s12, %s1498_s12  }
   0x3   : > { %p27_p1 = scmp.ge.s32.totalorder %s25_s15, 2  ;;  %p170_p2 = scmp.lt.s32.totalorder %s1243_s14, 3 }
   0x5   : > { %s1501_s15 = smov (%p27_p1, %s25_s15), 0  ;;  %p171_p3 = pnand %p909_p0, %p170_p2 }
   0x6   : > { %s205_s17 = smul.u32 (!%p171_p3), 12, %s1235_s12 }
   0x7   : > { %174 = sbr.rel (%p171_p3) target bundleno = 271 (0x10f), region = 32 }
   0x8   : > { %p206_p4 = scmp.lt.s32.totalorder (!%p171_p3), %s205_s17, 23 }
   0xc   : > { %v1171_v0 = vld [vmem:[%s1495_s1 + $0x38] sm:$0xff]  ;;  %v1170_v4 = vld [vmem:[%s1495_s1 + $0x30] sm:$0xff]  ;;  %v1169_v8 = vld [vmem:[%s1495_s1 + $0x28] sm:$0xff]  ;;  %s1503_s17 = smov (!%p206_p4, %s205_s17), 23  ;;  %vm788_vm0 = vcmask 64512  }
   0xd   : > { %v1179_v1 = vld [vmem:[%s1495_s1 + $0x78] sm:$0xff]  ;;  %632 = vmatpush.bf16.msra.mxu0 %v1171_v0  ;;  %v1178_v5 = vld [vmem:[%s1495_s1 + $0x70] sm:$0xff]  ;;  %v1177_v9 = vld [vmem:[%s1495_s1 + $0x68] sm:$0xff]  ;;  %s1139_s19 = sshll.u32 %s1503_s17, 4  ;;  %s912_s18 = sshll.u32 %s1503_s17, 3 }
   0xe   : > { %v1187_v2 = vld [vmem:[%s1495_s1 + $0xb8] sm:$0xff]  ;;  %671 = vmatpush.bf16.msra.mxu1 %v1179_v1  ;;  %v1186_v6 = vld [vmem:[%s1495_s1 + $0xb0] sm:$0xff]  ;;  %v1185_v10 = vld [vmem:[%s1495_s1 + $0xa8] sm:$0xff]  ;;  %s1370_s12 = scalar_lea.vmem %s1494_s0, %s1139_s19  ;;  %s1448_s21 = scalar_lea.vmem %s1497_s3, %s912_s18 }
   0xf   : > { %v1195_v3 = vld [vmem:[%s1495_s1 + $0xf8] sm:$0xff]  ;;  %710 = vmatpush.bf16.msra.mxu2 %v1187_v2  ;;  %v1194_v7 = vld [vmem:[%s1495_s1 + $0xf0] sm:$0xff]  ;;  %v1193_v11 = vld [vmem:[%s1495_s1 + $0xe8] sm:$0xff] }
  0x10   : > { %749 = vmatpush.bf16.msra.mxu3 %v1195_v3  ;;  %v1168_v12 = vld [vmem:[%s1495_s1 + $0x20] sm:$0xff]  ;;  %v1167_v16 = vld [vmem:[%s1495_s1 + $0x18] sm:$0xff]  ;;  %v1166_v20 = vld [vmem:[%s1495_s1 + $0x10] sm:$0xff] }
  0x11   : > { %633 = vmatpush.bf16.msra.mxu0 %v1170_v4  ;;  %v1176_v13 = vld [vmem:[%s1495_s1 + $0x60] sm:$0xff]  ;;  %v1175_v17 = vld [vmem:[%s1495_s1 + $0x58] sm:$0xff]  ;;  %v1174_v21 = vld [vmem:[%s1495_s1 + $0x50] sm:$0xff] }
  0x12   : > { %672 = vmatpush.bf16.msra.mxu1 %v1178_v5  ;;  %v1184_v14 = vld [vmem:[%s1495_s1 + $0xa0] sm:$0xff]  ;;  %v1183_v18 = vld [vmem:[%s1495_s1 + $0x98] sm:$0xff]  ;;  %v1182_v22 = vld [vmem:[%s1495_s1 + $0x90] sm:$0xff] }
  0x13   : > { %711 = vmatpush.bf16.msra.mxu2 %v1186_v6  ;;  %v1192_v15 = vld [vmem:[%s1495_s1 + $0xe0] sm:$0xff]  ;;  %v1191_v19 = vld [vmem:[%s1495_s1 + $0xd8] sm:$0xff]  ;;  %v1190_v23 = vld [vmem:[%s1495_s1 + $0xd0] sm:$0xff] }
  0x14   : > { %750 = vmatpush.bf16.msra.mxu3 %v1194_v7  ;;  %v1165_v24 = vld [vmem:[%s1495_s1 + $0x8] sm:$0xff]  ;;  %v1164_v28 = vld [vmem:[%s1495_s1] sm:$0xff]  ;;  %v1142_v33 = vld [vmem:[%s1370_s12 + $0xc] sm:$0xf0] }
  0x15   : > { %634 = vmatpush.bf16.msra.mxu0 %v1169_v8  ;;  %v1173_v25 = vld [vmem:[%s1495_s1 + $0x48] sm:$0xff]  ;;  %v1172_v29 = vld [vmem:[%s1495_s1 + $0x40] sm:$0xff]  ;;  %v917_v35 = vld [vmem:[%s1370_s12 + $0x10] sm:$0xf0] }
  0x16   : > { %673 = vmatpush.bf16.msra.mxu1 %v1177_v9  ;;  %v1181_v26 = vld [vmem:[%s1495_s1 + $0x88] sm:$0xff]  ;;  %v1180_v30 = vld [vmem:[%s1495_s1 + $0x80] sm:$0xff]  ;;  %v1143_v37 = vld [vmem:[%s1370_s12 + $0x14] sm:$0xf0] }
  0x17   : > { %712 = vmatpush.bf16.msra.mxu2 %v1185_v10  ;;  %v1189_v27 = vld [vmem:[%s1495_s1 + $0xc8] sm:$0xff]  ;;  %v1188_v31 = vld [vmem:[%s1495_s1 + $0xc0] sm:$0xff]  ;;  %v925_v39 = vld [vmem:[%s1370_s12 + $0x18] sm:$0xf0] }
  0x18   : > { %751 = vmatpush.bf16.msra.mxu3 %v1193_v11  ;;  %v915_v32 = vld [vmem:[%s1370_s12] sm:$0xf]  ;;  %v1140_v34 = vld [vmem:[%s1370_s12 + $0x4] sm:$0xf]  ;;  %v923_v36 = vld [vmem:[%s1370_s12 + $0x8] sm:$0xf] }
  0x19   : > { %635 = vmatpush.bf16.msra.mxu0 %v1168_v12  ;;  %v1141_v38 = vld [vmem:[%s1370_s12 + $0xc] sm:$0xf]  ;;  %v916_v40 = vor.u32 %v1142_v33, %v915_v32  ;;  %v920_v41 = vor.u32 %v1140_v34, %v917_v35  ;;  %v924_v42 = vor.u32 %v1143_v37, %v923_v36  ;;  %v931_v44 = vld [vmem:[%s1370_s12 + $0x20] sm:$0xf]  ;;  %v1146_v45 = vld [vmem:[%s1370_s12 + $0x2c] sm:$0xf0] }
  0x1a   : > { %674 = vmatpush.bf16.msra.mxu1 %v1176_v13  ;;  %v928_v43 = vor.u32 %v1141_v38, %v925_v39  ;;  %v1144_v46 = vld [vmem:[%s1370_s12 + $0x24] sm:$0xf]  ;;  %v933_v47 = vld [vmem:[%s1370_s12 + $0x30] sm:$0xf0]  ;;  %v939_v48 = vld [vmem:[%s1370_s12 + $0x28] sm:$0xf]  ;;  %v932_v52 = vor.u32 %v1146_v45, %v931_v44 }
  0x1b   : > { %713 = vmatpush.bf16.msra.mxu2 %v1184_v14  ;;  %v1147_v49 = vld [vmem:[%s1370_s12 + $0x34] sm:$0xf0]  ;;  %v1145_v50 = vld [vmem:[%s1370_s12 + $0x2c] sm:$0xf]  ;;  %v941_v51 = vld [vmem:[%s1370_s12 + $0x38] sm:$0xf0]  ;;  %v936_v53 = vor.u32 %v1144_v46, %v933_v47 }
  0x1c   : > { %752 = vmatpush.bf16.msra.mxu3 %v1192_v15  ;;  %v940_v54 = vor.u32 %v1147_v49, %v939_v48  ;;  %v944_v55 = vor.u32 %v1145_v50, %v941_v51  ;;  %v947_v56 = vld [vmem:[%s1370_s12 + $0x40] sm:$0xf]  ;;  %v1150_v57 = vld [vmem:[%s1370_s12 + $0x4c] sm:$0xf0]  ;;  %v1148_v58 = vld [vmem:[%s1370_s12 + $0x44] sm:$0xf] }
  0x1d   : > { %636 = vmatpush.bf16.msra.mxu0 %v1167_v16  ;;  %v949_v59 = vld [vmem:[%s1370_s12 + $0x50] sm:$0xf0]  ;;  %v955_v60 = vld [vmem:[%s1370_s12 + $0x48] sm:$0xf]  ;;  %v1151_v61 = vld [vmem:[%s1370_s12 + $0x54] sm:$0xf0]  ;;  %v948_v0 = vor.u32 %v1150_v57, %v947_v56 }
  0x1e   : > { %675 = vmatpush.bf16.msra.mxu1 %v1175_v17  ;;  %v1149_v62 = vld [vmem:[%s1370_s12 + $0x4c] sm:$0xf]  ;;  %v957_v63 = vld [vmem:[%s1370_s12 + $0x58] sm:$0xf0]  ;;  %v952_v1 = vor.u32 %v1148_v58, %v949_v59  ;;  %v956_v2 = vor.u32 %v1151_v61, %v955_v60  ;;  %v963_v4 = vld [vmem:[%s1370_s12 + $0x60] sm:$0xf] }
  0x1f   : > { %714 = vmatpush.bf16.msra.mxu2 %v1183_v18  ;;  %v960_v3 = vor.u32 %v1149_v62, %v957_v63  ;;  %v1154_v5 = vld [vmem:[%s1370_s12 + $0x6c] sm:$0xf0]  ;;  %v1152_v6 = vld [vmem:[%s1370_s12 + $0x64] sm:$0xf]  ;;  %v965_v7 = vld [vmem:[%s1370_s12 + $0x70] sm:$0xf0] }
  0x20   : > { %753 = vmatpush.bf16.msra.mxu3 %v1191_v19  ;;  %v971_v8 = vld [vmem:[%s1370_s12 + $0x68] sm:$0xf]  ;;  %v1155_v9 = vld [vmem:[%s1370_s12 + $0x74] sm:$0xf0]  ;;  %v1153_v10 = vld [vmem:[%s1370_s12 + $0x6c] sm:$0xf]  ;;  %v964_v12 = vor.u32 %v1154_v5, %v963_v4  ;;  %v968_v13 = vor.u32 %v1152_v6, %v965_v7 }
  0x21   : > { %637 = vmatpush.bf16.msra.mxu0 %v1166_v20  ;;  %v973_v11 = vld [vmem:[%s1370_s12 + $0x78] sm:$0xf0]  ;;  %v972_v14 = vor.u32 %v1155_v9, %v971_v8  ;;  %v979_v16 = vld [vmem:[%s1370_s12 + $0x80] sm:$0xf]  ;;  %v1158_v17 = vld [vmem:[%s1370_s12 + $0x8c] sm:$0xf0] }
  0x22   : > { %676 = vmatpush.bf16.msra.mxu1 %v1174_v21  ;;  %v976_v15 = vor.u32 %v1153_v10, %v973_v11  ;;  %v1156_v18 = vld [vmem:[%s1370_s12 + $0x84] sm:$0xf]  ;;  %v981_v19 = vld [vmem:[%s1370_s12 + $0x90] sm:$0xf0]  ;;  %v987_v20 = vld [vmem:[%s1370_s12 + $0x88] sm:$0xf] }
  0x23   : > { %715 = vmatpush.bf16.msra.mxu2 %v1182_v22  ;;  %v1159_v21 = vld [vmem:[%s1370_s12 + $0x94] sm:$0xf0]  ;;  %v1157_v22 = vld [vmem:[%s1370_s12 + $0x8c] sm:$0xf]  ;;  %v1003_v32 = vld [vmem:[%s1370_s12 + $0xa8] sm:$0xf] }
  0x24   : > { %754 = vmatpush.bf16.msra.mxu3 %v1190_v23  ;;  %v989_v23 = vld [vmem:[%s1370_s12 + $0x98] sm:$0xf0]  ;;  %v1163_v33 = vld [vmem:[%s1370_s12 + $0xb4] sm:$0xf0]  ;;  %v1161_v34 = vld [vmem:[%s1370_s12 + $0xac] sm:$0xf] }
  0x25   : > { %638 = vmatpush.bf16.msra.mxu0 %v1165_v24  ;;  %v980_v24 = vor.u32 %v1158_v17, %v979_v16  ;;  %v1005_v35 = vld [vmem:[%s1370_s12 + $0xb8] sm:$0xf0]  ;;  %v1004_v38 = vor.u32 %v1163_v33, %v1003_v32 }
  0x26   : > { %677 = vmatpush.bf16.msra.mxu1 %v1173_v25  ;;  %v984_v25 = vor.u32 %v1156_v18, %v981_v19  ;;  %v1008_v39 = vor.u32 %v1161_v34, %v1005_v35 }
  0x27   : > { %716 = vmatpush.bf16.msra.mxu2 %v1181_v26  ;;  %v988_v26 = vor.u32 %v1159_v21, %v987_v20 }
  0x28   : > { %755 = vmatpush.bf16.msra.mxu3 %v1189_v27  ;;  %v992_v27 = vor.u32 %v1157_v22, %v989_v23 }
  0x29   : > { %639 = vmatpush.bf16.msra.mxu0 %v1164_v28  ;;  %v995_v28 = vld [vmem:[%s1370_s12 + $0xa0] sm:$0xf] }
  0x2a   : > { %678 = vmatpush.bf16.msra.mxu1 %v1172_v29  ;;  %v1162_v29 = vld [vmem:[%s1370_s12 + $0xac] sm:$0xf0] }
  0x2b   : > { %717 = vmatpush.bf16.msra.mxu2 %v1180_v30  ;;  %v1160_v30 = vld [vmem:[%s1370_s12 + $0xa4] sm:$0xf]  ;;  %v996_v36 = vor.u32 %v1162_v29, %v995_v28 }
  0x2c   : > { %756 = vmatpush.bf16.msra.mxu3 %v1188_v31  ;;  %640 = vmatmul.bf16.vlgmr.msra.gmra.mxu0 %v916_v40  ;;  %v997_v31 = vld [vmem:[%s1370_s12 + $0xb0] sm:$0xf0]  ;;  %v1441_v40 = vld [vmem:[%s1496_s2] ss:$0 sm:$0xff] }
  0x2d   : > { %679 = vmatmul.bf16.vlgmr.msra.gmra.mxu1 %v920_v41  ;;  %v1000_v37 = vor.u32 %v1160_v30, %v997_v31 }
  0x2e   : > { %718 = vmatmul.bf16.vlgmr.msra.gmra.mxu2 %v924_v42 }
  0x2f   : > { %757 = vmatmul.bf16.vlgmr.msra.gmra.mxu3 %v928_v43 }
  0x3c   : > { %645 = vmatmul.bf16.gmra.mxu0 %v932_v52 }
  0x3d   : > { %684 = vmatmul.bf16.gmra.mxu1 %v936_v53 }
  0x3e   : > { %723 = vmatmul.bf16.gmra.mxu2 %v940_v54 }
  0x3f   : > { %762 = vmatmul.bf16.gmra.mxu3 %v944_v55 }
  0x4c   : > { %650 = vmatmul.bf16.gmra.mxu0 %v948_v0 }
  0x4d   : > { %689 = vmatmul.bf16.gmra.mxu1 %v952_v1 }
  0x4e   : > { %728 = vmatmul.bf16.gmra.mxu2 %v956_v2 }
  0x4f   : > { %767 = vmatmul.bf16.gmra.mxu3 %v960_v3 }
  0x5c   : > { %655 = vmatmul.bf16.gmra.mxu0 %v964_v12 }
  0x5d   : > { %694 = vmatmul.bf16.gmra.mxu1 %v968_v13 }
  0x5e   : > { %733 = vmatmul.bf16.gmra.mxu2 %v972_v14 }
  0x5f   : > { %772 = vmatmul.bf16.gmra.mxu3 %v976_v15 }
  0x6c   : > { %660 = vmatmul.bf16.gmra.mxu0 %v980_v24 }
  0x6d   : > { %699 = vmatmul.bf16.gmra.mxu1 %v984_v25 }
  0x6e   : > { %738 = vmatmul.bf16.gmra.mxu2 %v988_v26 }
  0x6f   : > { %777 = vmatmul.bf16.gmra.mxu3 %v992_v27 }
  0x7c   : > { %665 = vmatmul.bf16.gmra.mxu0 %v996_v36 }
  0x7d   : > { %704 = vmatmul.bf16.gmra.mxu1 %v1000_v37 }
  0x7e   : > { %743 = vmatmul.bf16.gmra.mxu2 %v1004_v38 }
  0x7f   : > { %782 = vmatmul.bf16.gmra.mxu3 %v1008_v39 }
  0xa9   : > { %v641_v41 = vpop.f32.mrf.mxu0 }
  0xaa   : > { %v680_v42 = vpop.f32.mrf.mxu1  ;;  %v642_v43 = vadd.f32 %v1441_v40, %v641_v41 }
  0xac   : > { %v681_v44 = vadd.f32 %v680_v42, %v642_v43 }
  0xb1   : > { %v719_v45 = vpop.f32.mrf.mxu2  ;;  %v643_v48 = vpop.f32.mrf.mxu0 }
  0xb2   : > { %v758_v46 = vpop.f32.mrf.mxu3  ;;  %v720_v47 = vadd.f32 %v719_v45, %v681_v44  ;;  %v682_v49 = vpop.f32.mrf.mxu1  ;;  %v644_v51 = vadd.f32 %v1441_v40, %v643_v48 }
  0xb4   : > { %v759_v50 = vadd.f32 %v758_v46, %v720_v47  ;;  %v683_v52 = vadd.f32 %v682_v49, %v644_v51 }
  0xb6   : > { %789 = vst.msk [vmem:[%s1448_s21] sm:$0xff] %vm788_vm0, %v759_v50 }
  0xb9   : > { %v721_v53 = vpop.f32.mrf.mxu2  ;;  %v646_v56 = vpop.f32.mrf.mxu0 }
  0xba   : > { %v760_v54 = vpop.f32.mrf.mxu3  ;;  %v722_v55 = vadd.f32 %v721_v53, %v683_v52  ;;  %v685_v57 = vpop.f32.mrf.mxu1  ;;  %v647_v58 = vadd.f32 %v1441_v40, %v646_v56 }
  0xbc   : > { %v761_v59 = vadd.f32 %v760_v54, %v722_v55  ;;  %v686_v60 = vadd.f32 %v685_v57, %v647_v58 }
  0xbe   : > { %790 = vst.msk [vmem:[%s1448_s21 + $0x8] sm:$0xff] %vm788_vm0, %v761_v59 }
  0xc1   : > { %v724_v61 = vpop.f32.mrf.mxu2  ;;  %v648_v0 = vpop.f32.mrf.mxu0 }
  0xc2   : > { %v763_v62 = vpop.f32.mrf.mxu3  ;;  %v725_v63 = vadd.f32 %v724_v61, %v686_v60  ;;  %v687_v1 = vpop.f32.mrf.mxu1  ;;  %v649_v3 = vadd.f32 %v1441_v40, %v648_v0 }
  0xc4   : > { %v764_v2 = vadd.f32 %v763_v62, %v725_v63  ;;  %v688_v4 = vadd.f32 %v687_v1, %v649_v3 }
  0xc6   : > { %791 = vst.msk [vmem:[%s1448_s21 + $0x10] sm:$0xff] %vm788_vm0, %v764_v2 }
  0xc9   : > { %v726_v5 = vpop.f32.mrf.mxu2  ;;  %v651_v8 = vpop.f32.mrf.mxu0 }
  0xca   : > { %v765_v6 = vpop.f32.mrf.mxu3  ;;  %v727_v7 = vadd.f32 %v726_v5, %v688_v4  ;;  %v690_v9 = vpop.f32.mrf.mxu1  ;;  %v652_v10 = vadd.f32 %v1441_v40, %v651_v8 }
  0xcc   : > { %v766_v11 = vadd.f32 %v765_v6, %v727_v7  ;;  %v691_v12 = vadd.f32 %v690_v9, %v652_v10 }
  0xce   : > { %792 = vst.msk [vmem:[%s1448_s21 + $0x18] sm:$0xff] %vm788_vm0, %v766_v11 }
  0xd1   : > { %v729_v13 = vpop.f32.mrf.mxu2  ;;  %v653_v16 = vpop.f32.mrf.mxu0 }
  0xd2   : > { %v768_v14 = vpop.f32.mrf.mxu3  ;;  %v730_v15 = vadd.f32 %v729_v13, %v691_v12  ;;  %v692_v17 = vpop.f32.mrf.mxu1  ;;  %v654_v19 = vadd.f32 %v1441_v40, %v653_v16 }
  0xd4   : > { %v769_v18 = vadd.f32 %v768_v14, %v730_v15  ;;  %v693_v20 = vadd.f32 %v692_v17, %v654_v19 }
  0xd6   : > { %793 = vst.msk [vmem:[%s1448_s21 + $0x20] sm:$0xff] %vm788_vm0, %v769_v18 }
  0xd9   : > { %v731_v21 = vpop.f32.mrf.mxu2  ;;  %v656_v24 = vpop.f32.mrf.mxu0 }
  0xda   : > { %v770_v22 = vpop.f32.mrf.mxu3  ;;  %v732_v23 = vadd.f32 %v731_v21, %v693_v20  ;;  %v695_v25 = vpop.f32.mrf.mxu1  ;;  %v657_v26 = vadd.f32 %v1441_v40, %v656_v24 }
  0xdc   : > { %v771_v27 = vadd.f32 %v770_v22, %v732_v23  ;;  %v696_v28 = vadd.f32 %v695_v25, %v657_v26 }
  0xde   : > { %794 = vst.msk [vmem:[%s1448_s21 + $0x28] sm:$0xff] %vm788_vm0, %v771_v27 }
  0xe1   : > { %v734_v29 = vpop.f32.mrf.mxu2  ;;  %v658_v32 = vpop.f32.mrf.mxu0 }
  0xe2   : > { %v773_v30 = vpop.f32.mrf.mxu3  ;;  %v735_v31 = vadd.f32 %v734_v29, %v696_v28  ;;  %v697_v33 = vpop.f32.mrf.mxu1  ;;  %v659_v35 = vadd.f32 %v1441_v40, %v658_v32 }
  0xe4   : > { %v774_v34 = vadd.f32 %v773_v30, %v735_v31  ;;  %v698_v36 = vadd.f32 %v697_v33, %v659_v35 }
  0xe6   : > { %795 = vst.msk [vmem:[%s1448_s21 + $0x30] sm:$0xff] %vm788_vm0, %v774_v34 }
  0xe9   : > { %v736_v37 = vpop.f32.mrf.mxu2  ;;  %v661_v41 = vpop.f32.mrf.mxu0 }
  0xea   : > { %v775_v38 = vpop.f32.mrf.mxu3  ;;  %v737_v39 = vadd.f32 %v736_v37, %v698_v36  ;;  %v700_v42 = vpop.f32.mrf.mxu1  ;;  %v662_v43 = vadd.f32 %v1441_v40, %v661_v41 }
  0xec   : > { %v776_v44 = vadd.f32 %v775_v38, %v737_v39  ;;  %v701_v45 = vadd.f32 %v700_v42, %v662_v43 }
  0xee   : > { %796 = vst.msk [vmem:[%s1448_s21 + $0x38] sm:$0xff] %vm788_vm0, %v776_v44 }
  0xf1   : > { %v739_v46 = vpop.f32.mrf.mxu2  ;;  %v663_v49 = vpop.f32.mrf.mxu0 }
  0xf2   : > { %v778_v47 = vpop.f32.mrf.mxu3  ;;  %v740_v48 = vadd.f32 %v739_v46, %v701_v45  ;;  %v702_v50 = vpop.f32.mrf.mxu1  ;;  %v664_v52 = vadd.f32 %v1441_v40, %v663_v49 }
  0xf4   : > { %v779_v51 = vadd.f32 %v778_v47, %v740_v48  ;;  %v703_v53 = vadd.f32 %v702_v50, %v664_v52 }
  0xf6   : > { %797 = vst.msk [vmem:[%s1448_s21 + $0x40] sm:$0xff] %vm788_vm0, %v779_v51 }
  0xf9   : > { %v741_v54 = vpop.f32.mrf.mxu2  ;;  %v666_v57 = vpop.f32.mrf.mxu0 }
  0xfa   : > { %v780_v55 = vpop.f32.mrf.mxu3  ;;  %v742_v56 = vadd.f32 %v741_v54, %v703_v53  ;;  %v667_v58 = vadd.f32 %v1441_v40, %v666_v57  ;;  %v705_v60 = vpop.f32.mrf.mxu1 }
  0xfc   : > { %v781_v59 = vadd.f32 %v780_v55, %v742_v56  ;;  %v706_v61 = vadd.f32 %v705_v60, %v667_v58 }
  0xfe   : > { %798 = vst.msk [vmem:[%s1448_s21 + $0x48] sm:$0xff] %vm788_vm0, %v781_v59 }
 0x101   : > { %v744_v62 = vpop.f32.mrf.mxu2  ;;  %v668_v1 = vpop.f32.mrf.mxu0 }
 0x102   : > { %v783_v63 = vpop.f32.mrf.mxu3  ;;  %v745_v0 = vadd.f32 %v744_v62, %v706_v61  ;;  %v669_v3 = vadd.f32 %v1441_v40, %v668_v1  ;;  %v707_v4 = vpop.f32.mrf.mxu1 }
 0x104   : > { %v784_v2 = vadd.f32 %v783_v63, %v745_v0  ;;  %v708_v5 = vadd.f32 %v707_v4, %v669_v3 }
 0x106   : > { %799 = vst.msk [vmem:[%s1448_s21 + $0x50] sm:$0xff] %vm788_vm0, %v784_v2 }
 0x109   : > { %v746_v6 = vpop.f32.mrf.mxu2 }
 0x10a   : > { %v747_v7 = vadd.f32 %v746_v6, %v708_v5  ;;  %v785_v8 = vpop.f32.mrf.mxu3 }
 0x10c   : > { %v786_v9 = vadd.f32 %v785_v8, %v747_v7 }
 0x10e   : > { %800 = vst.msk [vmem:[%s1448_s21 + $0x58] sm:$0xff] %vm788_vm0, %v786_v9 }
 0x10f PF: > { %s13_s14 = sadd.s32 1, %s1243_s14   ;;  %s1498_s12 = smov %s1239_s13 }
 0x110   : > { %p10_p5 = scmp.ge.s32.totalorder %s13_s14, 4   ;;  %s1499_s13 = smov %s1501_s15 }
 0x112   :  { %12 = sbr.rel (!%p10_p5) target bundleno = 2 (0x2), region = 68 }

// kernel: refine_forward.15
= control target key start
LH: loop header
LB: loop body
LE: loop exit
PB: predicated region body
PF: predicated region fallthrough
CT: control target
= control target key end

     0   :  { %s3386_s1 = inlined_call_operand.vmem [shape: bf16[1280,128], index: 1, kind: input, shape index: {}]   ;;  %s3387_s2 = inlined_call_operand.vmem [shape: f32[1,128], index: 2, kind: input, shape index: {}]   ;;  %s3388_s0 = inlined_call_operand.vmem [shape: bf16[128,1280], index: 0, kind: input, shape index: {}]   ;;  %s3389_s3 = inlined_call_operand.vmem [shape: f32[128,128], index: 3, kind: output, shape index: {}]  }
   0x1   :  { %v2391_v0 = vld [vmem:[%s3386_s1 + $0x38] sm:$0xff]  ;;  %v2390_v2 = vld [vmem:[%s3386_s1 + $0x30] sm:$0xff]  ;;  %v2389_v4 = vld [vmem:[%s3386_s1 + $0x28] sm:$0xff] }
   0x2   :  { %v2399_v1 = vld [vmem:[%s3386_s1 + $0x78] sm:$0xff]  ;;  %2464 = vmatpush.bf16.msra.mxu2 %v2391_v0  ;;  %v2398_v3 = vld [vmem:[%s3386_s1 + $0x70] sm:$0xff]  ;;  %1138 = vmatpush.bf16.msra.mxu0 %v2391_v0  ;;  %v2397_v5 = vld [vmem:[%s3386_s1 + $0x68] sm:$0xff] }
   0x3   :  { %2472 = vmatpush.bf16.msra.mxu3 %v2399_v1  ;;  %1187 = vmatpush.bf16.msra.mxu1 %v2399_v1  ;;  %v2388_v6 = vld [vmem:[%s3386_s1 + $0x20] sm:$0xff]  ;;  %v2387_v8 = vld [vmem:[%s3386_s1 + $0x18] sm:$0xff]  ;;  %v2386_v10 = vld [vmem:[%s3386_s1 + $0x10] sm:$0xff] }
   0x4   :  { %v2396_v7 = vld [vmem:[%s3386_s1 + $0x60] sm:$0xff]  ;;  %v2395_v9 = vld [vmem:[%s3386_s1 + $0x58] sm:$0xff]  ;;  %v2394_v11 = vld [vmem:[%s3386_s1 + $0x50] sm:$0xff] }
   0x5   :  { %v2385_v12 = vld [vmem:[%s3386_s1 + $0x8] sm:$0xff]  ;;  %v2384_v14 = vld [vmem:[%s3386_s1] sm:$0xff]  ;;  %v2407_v20 = vld [vmem:[%s3386_s1 + $0xb8] sm:$0xff] }
   0x6   :  { %2465 = vmatpush.bf16.msra.mxu2 %v2390_v2  ;;  %1139 = vmatpush.bf16.msra.mxu0 %v2390_v2  ;;  %v2393_v13 = vld [vmem:[%s3386_s1 + $0x48] sm:$0xff]  ;;  %v2392_v15 = vld [vmem:[%s3386_s1 + $0x40] sm:$0xff]  ;;  %v2415_v23 = vld [vmem:[%s3386_s1 + $0xf8] sm:$0xff] }
   0x7   :  { %2473 = vmatpush.bf16.msra.mxu3 %v2398_v3  ;;  %1188 = vmatpush.bf16.msra.mxu1 %v2398_v3  ;;  %v1826_v16 = vld [vmem:[%s3388_s0 + $0x140] sm:$0xf]  ;;  %v2349_v17 = vld [vmem:[%s3388_s0 + $0x164] sm:$0xf0]  ;;  %v2344_v18 = vld [vmem:[%s3388_s0 + $0x144] sm:$0xf] }
   0x8   :  { %v1828_v19 = vld [vmem:[%s3388_s0 + $0x168] sm:$0xf0]  ;;  %v1666_v21 = vld [vmem:[%s3388_s0] sm:$0xf]  ;;  %v2309_v22 = vld [vmem:[%s3388_s0 + $0x24] sm:$0xf0]  ;;  %v1827_v26 = vor.u32 %v2349_v17, %v1826_v16 }
   0x9   :  { %v2304_v24 = vld [vmem:[%s3388_s0 + $0x4] sm:$0xf]  ;;  %v1668_v25 = vld [vmem:[%s3388_s0 + $0x28] sm:$0xf0]  ;;  %v1831_v27 = vor.u32 %v2344_v18, %v1828_v19  ;;  %v1667_v28 = vor.u32 %v2309_v22, %v1666_v21  ;;  %v2431_v29 = vld [vmem:[%s3386_s1 + $0x178] sm:$0xff] }
   0xa   :  { %2466 = vmatpush.bf16.msra.mxu2 %v2389_v4  ;;  %1140 = vmatpush.bf16.msra.mxu0 %v2389_v4  ;;  %v1671_v30 = vor.u32 %v2304_v24, %v1668_v25  ;;  %v2406_v31 = vld [vmem:[%s3386_s1 + $0xb0] sm:$0xff]  ;;  %v2423_v33 = vld [vmem:[%s3386_s1 + $0x138] sm:$0xff]  ;;  %v2405_v35 = vld [vmem:[%s3386_s1 + $0xa8] sm:$0xff] }
   0xb   :  { %2474 = vmatpush.bf16.msra.mxu3 %v2397_v5  ;;  %1189 = vmatpush.bf16.msra.mxu1 %v2397_v5  ;;  %v2414_v32 = vld [vmem:[%s3386_s1 + $0xf0] sm:$0xff]  ;;  %v2413_v36 = vld [vmem:[%s3386_s1 + $0xe8] sm:$0xff]  ;;  %v2404_v39 = vld [vmem:[%s3386_s1 + $0xa0] sm:$0xff] }
   0xc   :  { %v2430_v34 = vld [vmem:[%s3386_s1 + $0x170] sm:$0xff]  ;;  %v2429_v38 = vld [vmem:[%s3386_s1 + $0x168] sm:$0xff]  ;;  %v2412_v40 = vld [vmem:[%s3386_s1 + $0xe0] sm:$0xff] }
   0xd   :  { %v2422_v37 = vld [vmem:[%s3386_s1 + $0x130] sm:$0xff]  ;;  %v2421_v41 = vld [vmem:[%s3386_s1 + $0x128] sm:$0xff]  ;;  %v2359_v43 = vld [vmem:[%s3388_s0 + $0x1b4] sm:$0xf0] }
   0xe   :  { %2467 = vmatpush.bf16.msra.mxu2 %v2388_v6  ;;  %1141 = vmatpush.bf16.msra.mxu0 %v2388_v6  ;;  %v1866_v42 = vld [vmem:[%s3388_s0 + $0x190] sm:$0xf]  ;;  %v2354_v44 = vld [vmem:[%s3388_s0 + $0x194] sm:$0xf]  ;;  %v1868_v45 = vld [vmem:[%s3388_s0 + $0x1b8] sm:$0xf0] }
   0xf   :  { %2475 = vmatpush.bf16.msra.mxu3 %v2396_v7  ;;  %1190 = vmatpush.bf16.msra.mxu1 %v2396_v7  ;;  %v1706_v46 = vld [vmem:[%s3388_s0 + $0x50] sm:$0xf]  ;;  %v2428_v47 = vld [vmem:[%s3386_s1 + $0x160] sm:$0xff]  ;;  %v2319_v48 = vld [vmem:[%s3388_s0 + $0x74] sm:$0xf0]  ;;  %v1867_v54 = vor.u32 %v2359_v43, %v1866_v42  ;;  %v1871_v55 = vor.u32 %v2354_v44, %v1868_v45 }
  0x10   :  { %v2314_v49 = vld [vmem:[%s3388_s0 + $0x54] sm:$0xf]  ;;  %v2403_v50 = vld [vmem:[%s3386_s1 + $0x98] sm:$0xff]  ;;  %v2420_v53 = vld [vmem:[%s3386_s1 + $0x120] sm:$0xff]  ;;  %v1707_v56 = vor.u32 %v2319_v48, %v1706_v46 }
  0x11   :  { %v1708_v51 = vld [vmem:[%s3388_s0 + $0x78] sm:$0xf0]  ;;  %v2402_v59 = vld [vmem:[%s3386_s1 + $0x90] sm:$0xff]  ;;  %v2401_v62 = vld [vmem:[%s3386_s1 + $0x88] sm:$0xff] }
  0x12   :  { %2468 = vmatpush.bf16.msra.mxu2 %v2387_v8  ;;  %1142 = vmatpush.bf16.msra.mxu0 %v2387_v8  ;;  %v2411_v52 = vld [vmem:[%s3386_s1 + $0xd8] sm:$0xff]  ;;  %v1711_v58 = vor.u32 %v2314_v49, %v1708_v51  ;;  %v2410_v60 = vld [vmem:[%s3386_s1 + $0xd0] sm:$0xff]  ;;  %v2409_v0 = vld [vmem:[%s3386_s1 + $0xc8] sm:$0xff] }
  0x13   :  { %2476 = vmatpush.bf16.msra.mxu3 %v2395_v9  ;;  %1191 = vmatpush.bf16.msra.mxu1 %v2395_v9  ;;  %v2427_v57 = vld [vmem:[%s3386_s1 + $0x158] sm:$0xff]  ;;  %v2426_v63 = vld [vmem:[%s3386_s1 + $0x150] sm:$0xff]  ;;  %v2425_v2 = vld [vmem:[%s3386_s1 + $0x148] sm:$0xff] }
  0x14   :  { %v2419_v61 = vld [vmem:[%s3386_s1 + $0x118] sm:$0xff]  ;;  %v2418_v1 = vld [vmem:[%s3386_s1 + $0x110] sm:$0xff]  ;;  %v2400_v3 = vld [vmem:[%s3386_s1 + $0x80] sm:$0xff] }
  0x15   :  { %v2408_v4 = vld [vmem:[%s3386_s1 + $0xc0] sm:$0xff]  ;;  %v2417_v5 = vld [vmem:[%s3386_s1 + $0x108] sm:$0xff]  ;;  %v2447_v21 = vld [vmem:[%s3386_s1 + $0x1f8] sm:$0xff] }
  0x16   :  { %2469 = vmatpush.bf16.msra.mxu2 %v2386_v10  ;;  %1143 = vmatpush.bf16.msra.mxu0 %v2386_v10  ;;  %v1906_v6 = vld [vmem:[%s3388_s0 + $0x1e0] sm:$0xf]  ;;  %v2369_v7 = vld [vmem:[%s3388_s0 + $0x204] sm:$0xf0]  ;;  %v2364_v8 = vld [vmem:[%s3388_s0 + $0x1e4] sm:$0xf] }
  0x17   :  { %2477 = vmatpush.bf16.msra.mxu3 %v2394_v11  ;;  %1192 = vmatpush.bf16.msra.mxu1 %v2394_v11  ;;  %v1908_v9 = vld [vmem:[%s3388_s0 + $0x208] sm:$0xf0]  ;;  %v1746_v10 = vld [vmem:[%s3388_s0 + $0xa0] sm:$0xf]  ;;  %v2329_v11 = vld [vmem:[%s3388_s0 + $0xc4] sm:$0xf0] }
  0x18   :  { %v1911_v16 = vor.u32 %v2364_v8, %v1908_v9  ;;  %v1747_v17 = vor.u32 %v2329_v11, %v1746_v10  ;;  %v2424_v19 = vld [vmem:[%s3386_s1 + $0x140] sm:$0xff]  ;;  %v2455_v22 = vld [vmem:[%s3386_s1 + $0x238] sm:$0xff]  ;;  %v1946_v24 = vld [vmem:[%s3388_s0 + $0x230] sm:$0xf] }
  0x19   :  { %v2379_v25 = vld [vmem:[%s3388_s0 + $0x254] sm:$0xf0]  ;;  %v2305_v42 = vld [vmem:[%s3388_s0 + $0xc] sm:$0xf]  ;;  %v1676_v43 = vld [vmem:[%s3388_s0 + $0x30] sm:$0xf0] }
  0x1a   :  { %2470 = vmatpush.bf16.msra.mxu2 %v2385_v12  ;;  %1144 = vmatpush.bf16.msra.mxu0 %v2385_v12  ;;  %v2324_v12 = vld [vmem:[%s3388_s0 + $0xa4] sm:$0xf]  ;;  %v1682_v44 = vld [vmem:[%s3388_s0 + $0x10] sm:$0xf]  ;;  %v2311_v45 = vld [vmem:[%s3388_s0 + $0x34] sm:$0xf0]  ;;  %v1679_v49 = vor.u32 %v2305_v42, %v1676_v43 }
  0x1b   :  { %2478 = vmatpush.bf16.msra.mxu3 %v2393_v13  ;;  %1193 = vmatpush.bf16.msra.mxu1 %v2393_v13  ;;  %v1748_v13 = vld [vmem:[%s3388_s0 + $0xc8] sm:$0xf0]  ;;  %v2306_v46 = vld [vmem:[%s3388_s0 + $0x14] sm:$0xf]  ;;  %v1754_v8 = vld [vmem:[%s3388_s0 + $0xa8] sm:$0xf] }
  0x1c   :  { %v1751_v18 = vor.u32 %v2324_v12, %v1748_v13  ;;  %v2330_v9 = vld [vmem:[%s3388_s0 + $0xcc] sm:$0xf0]  ;;  %v2325_v10 = vld [vmem:[%s3388_s0 + $0xac] sm:$0xf]  ;;  %v1756_v11 = vld [vmem:[%s3388_s0 + $0xd0] sm:$0xf0] }
  0x1d   :  { %v1762_v12 = vld [vmem:[%s3388_s0 + $0xb0] sm:$0xf]  ;;  %v2331_v13 = vld [vmem:[%s3388_s0 + $0xd4] sm:$0xf0] }
  0x1e   :  { %2471 = vmatpush.bf16.msra.mxu2 %v2384_v14  ;;  %1145 = vmatpush.bf16.msra.mxu0 %v2384_v14  ;;  %v2416_v14 = vld [vmem:[%s3386_s1 + $0x100] sm:$0xff]  ;;  %v2450_v42 = vld [vmem:[%s3386_s1 + $0x210] sm:$0xff] }
  0x1f   :  { %2479 = vmatpush.bf16.msra.mxu3 %v2392_v15  ;;  %1194 = vmatpush.bf16.msra.mxu1 %v2392_v15  ;;  %v1907_v15 = vor.u32 %v2369_v7, %v1906_v6  ;;  %v2452_v6 = vld [vmem:[%s3386_s1 + $0x220] sm:$0xff]  ;;  %v1842_v43 = vld [vmem:[%s3388_s0 + $0x150] sm:$0xf] }
  0x20   :  { %v2460_v7 = vld [vmem:[%s3386_s1 + $0x260] sm:$0xff] }
  0x21   :  { %1166 = vmatmul.bf16.vlgmr.msra.gmra.mxu2 %v1827_v26  ;;  %1146 = vmatmul.bf16.vlgmr.msra.gmra.mxu0 %v1667_v28  ;;  %v2374_v26 = vld [vmem:[%s3388_s0 + $0x234] sm:$0xf]  ;;  %v1786_v28 = vld [vmem:[%s3388_s0 + $0xf0] sm:$0xf] }
  0x22   :  { %1236 = vmatpush.bf16.msrb.mxu2 %v2407_v20  ;;  %1215 = vmatmul.bf16.vlgmr.msra.gmra.mxu3 %v1831_v27  ;;  %v2439_v20 = vld [vmem:[%s3386_s1 + $0x1b8] sm:$0xff] }
  0x23   :  { %1285 = vmatpush.bf16.msrb.mxu3 %v2415_v23  ;;  %1383 = vmatpush.bf16.msrb.mxu1 %v2431_v29  ;;  %v2463_v23 = vld [vmem:[%s3386_s1 + $0x278] sm:$0xff] }
  0x24   :  { %1195 = vmatmul.bf16.vlgmr.msra.gmra.mxu1 %v1671_v30  ;;  %1334 = vmatpush.bf16.msrb.mxu0 %v2423_v33  ;;  %v1948_v27 = vld [vmem:[%s3388_s0 + $0x258] sm:$0xf0]  ;;  %v2339_v29 = vld [vmem:[%s3388_s0 + $0x114] sm:$0xf0]  ;;  %v2334_v30 = vld [vmem:[%s3388_s0 + $0xf4] sm:$0xf] }
  0x25   :  { %v1951_v33 = vor.u32 %v2374_v26, %v1948_v27  ;;  %v2451_v26 = vld [vmem:[%s3386_s1 + $0x218] sm:$0xff]  ;;  %v1802_v27 = vld [vmem:[%s3388_s0 + $0x100] sm:$0xf] }
  0x26   :  { %1237 = vmatpush.bf16.msrb.mxu2 %v2406_v31  ;;  %v1788_v31 = vld [vmem:[%s3388_s0 + $0x118] sm:$0xf0] }
  0x27   :  { %1286 = vmatpush.bf16.msrb.mxu3 %v2414_v32  ;;  %1384 = vmatpush.bf16.msrb.mxu1 %v2430_v34  ;;  %v1947_v32 = vor.u32 %v2379_v25, %v1946_v24  ;;  %v1787_v34 = vor.u32 %v2339_v29, %v1786_v28  ;;  %v2335_v24 = vld [vmem:[%s3388_s0 + $0xfc] sm:$0xf]  ;;  %v1796_v25 = vld [vmem:[%s3388_s0 + $0x120] sm:$0xf0]  ;;  %v2341_v28 = vld [vmem:[%s3388_s0 + $0x124] sm:$0xf0] }
  0x28   :  { %1335 = vmatpush.bf16.msrb.mxu0 %v2422_v37  ;;  %v2446_v37 = vld [vmem:[%s3386_s1 + $0x1f0] sm:$0xff]  ;;  %v2336_v29 = vld [vmem:[%s3388_s0 + $0x104] sm:$0xf] }
  0x2a   :  { %1238 = vmatpush.bf16.msrb.mxu2 %v2405_v35  ;;  %v1791_v35 = vor.u32 %v2334_v30, %v1788_v31  ;;  %v1804_v30 = vld [vmem:[%s3388_s0 + $0x128] sm:$0xf0] }
  0x2b   :  { %1287 = vmatpush.bf16.msrb.mxu3 %v2413_v36  ;;  %1385 = vmatpush.bf16.msrb.mxu1 %v2429_v38  ;;  %v2438_v36 = vld [vmem:[%s3386_s1 + $0x1b0] sm:$0xff] }
  0x2c   :  { %1336 = vmatpush.bf16.msrb.mxu0 %v2421_v41  ;;  %v2454_v38 = vld [vmem:[%s3386_s1 + $0x230] sm:$0xff] }
  0x2d   :  { %v2310_v41 = vld [vmem:[%s3388_s0 + $0x2c] sm:$0xf0] }
  0x2e   :  { %1239 = vmatpush.bf16.msrb.mxu2 %v2404_v39  ;;  %v2462_v39 = vld [vmem:[%s3386_s1 + $0x270] sm:$0xff] }
  0x2f   :  { %1288 = vmatpush.bf16.msrb.mxu3 %v2412_v40  ;;  %1386 = vmatpush.bf16.msrb.mxu1 %v2428_v47  ;;  %v1674_v40 = vld [vmem:[%s3388_s0 + $0x8] sm:$0xf]  ;;  %v1684_v47 = vld [vmem:[%s3388_s0 + $0x38] sm:$0xf0] }
  0x30   :  { %1337 = vmatpush.bf16.msrb.mxu0 %v2420_v53  ;;  %v1675_v48 = vor.u32 %v2310_v41, %v1674_v40  ;;  %v1687_v51 = vor.u32 %v2306_v46, %v1684_v47  ;;  %v2445_v53 = vld [vmem:[%s3386_s1 + $0x1e8] sm:$0xff]  ;;  %v1836_v41 = vld [vmem:[%s3388_s0 + $0x170] sm:$0xf0]  ;;  %v1844_v46 = vld [vmem:[%s3388_s0 + $0x178] sm:$0xf0] }
  0x31   :  { %1171 = vmatmul.bf16.gmra.mxu2 %v1867_v54  ;;  %1151 = vmatmul.bf16.gmra.mxu0 %v1707_v56  ;;  %v2453_v54 = vld [vmem:[%s3386_s1 + $0x228] sm:$0xff]  ;;  %v1714_v56 = vld [vmem:[%s3388_s0 + $0x58] sm:$0xf] }
  0x32   :  { %1240 = vmatpush.bf16.msrb.mxu2 %v2403_v50  ;;  %1220 = vmatmul.bf16.gmra.mxu3 %v1871_v55  ;;  %v1683_v50 = vor.u32 %v2311_v45, %v1682_v44  ;;  %v2461_v55 = vld [vmem:[%s3386_s1 + $0x268] sm:$0xff]  ;;  %v2351_v44 = vld [vmem:[%s3388_s0 + $0x174] sm:$0xf0]  ;;  %v2346_v45 = vld [vmem:[%s3388_s0 + $0x154] sm:$0xf] }
  0x33   :  { %1289 = vmatpush.bf16.msrb.mxu3 %v2411_v52  ;;  %1387 = vmatpush.bf16.msrb.mxu1 %v2427_v57  ;;  %v2437_v52 = vld [vmem:[%s3386_s1 + $0x1a8] sm:$0xff]  ;;  %v2320_v57 = vld [vmem:[%s3388_s0 + $0x7c] sm:$0xf0] }
  0x34   :  { %1200 = vmatmul.bf16.gmra.mxu1 %v1711_v58  ;;  %1338 = vmatpush.bf16.msrb.mxu0 %v2419_v61  ;;  %v2315_v58 = vld [vmem:[%s3388_s0 + $0x5c] sm:$0xf]  ;;  %v2321_v61 = vld [vmem:[%s3388_s0 + $0x84] sm:$0xf0]  ;;  %v2345_v40 = vld [vmem:[%s3388_s0 + $0x14c] sm:$0xf] }
  0x36   :  { %1241 = vmatpush.bf16.msrb.mxu2 %v2402_v59  ;;  %v1716_v59 = vld [vmem:[%s3388_s0 + $0x80] sm:$0xf0] }
  0x37   :  { %1290 = vmatpush.bf16.msrb.mxu3 %v2410_v60  ;;  %1388 = vmatpush.bf16.msrb.mxu1 %v2426_v63  ;;  %v1722_v60 = vld [vmem:[%s3388_s0 + $0x60] sm:$0xf]  ;;  %v1724_v63 = vld [vmem:[%s3388_s0 + $0x88] sm:$0xf0] }
  0x38   :  { %1339 = vmatpush.bf16.msrb.mxu0 %v2418_v1  ;;  %v1719_v1 = vor.u32 %v2315_v58, %v1716_v59  ;;  %v2441_v58 = vld [vmem:[%s3386_s1 + $0x1c8] sm:$0xff] }
  0x3a   :  { %1242 = vmatpush.bf16.msrb.mxu2 %v2401_v62  ;;  %v2316_v62 = vld [vmem:[%s3388_s0 + $0x64] sm:$0xf] }
  0x3b   :  { %1291 = vmatpush.bf16.msrb.mxu3 %v2409_v0  ;;  %1389 = vmatpush.bf16.msrb.mxu1 %v2425_v2  ;;  %v1715_v0 = vor.u32 %v2320_v57, %v1714_v56  ;;  %v1723_v2 = vor.u32 %v2321_v61, %v1722_v60  ;;  %v2433_v56 = vld [vmem:[%s3386_s1 + $0x188] sm:$0xff] }
  0x3c   :  { %1340 = vmatpush.bf16.msrb.mxu0 %v2417_v5  ;;  %v2444_v5 = vld [vmem:[%s3386_s1 + $0x1e0] sm:$0xff] }
  0x3e   :  { %1243 = vmatpush.bf16.msrb.mxu2 %v2400_v3  ;;  %v1727_v3 = vor.u32 %v2316_v62, %v1724_v63 }
  0x3f   :  { %1292 = vmatpush.bf16.msrb.mxu3 %v2408_v4  ;;  %1390 = vmatpush.bf16.msrb.mxu1 %v2424_v19  ;;  %v2436_v4 = vld [vmem:[%s3386_s1 + $0x1a0] sm:$0xff] }
  0x40   :  { %1341 = vmatpush.bf16.msrb.mxu0 %v2416_v14  ;;  %v2326_v14 = vld [vmem:[%s3388_s0 + $0xb4] sm:$0xf] }
  0x41   :  { %1176 = vmatmul.bf16.gmra.mxu2 %v1907_v15  ;;  %1156 = vmatmul.bf16.gmra.mxu0 %v1747_v17  ;;  %v1764_v15 = vld [vmem:[%s3388_s0 + $0xd8] sm:$0xf0]  ;;  %v1759_v17 = vor.u32 %v2325_v10, %v1756_v11 }
  0x42   :  { %1225 = vmatmul.bf16.gmra.mxu3 %v1911_v16  ;;  %1432 = vmatpush.bf16.msra.mxu2 %v2439_v20  ;;  %v1755_v16 = vor.u32 %v2330_v9, %v1754_v8  ;;  %v1767_v19 = vor.u32 %v2326_v14, %v1764_v15  ;;  %v2435_v20 = vld [vmem:[%s3386_s1 + $0x198] sm:$0xff]  ;;  %v1882_v8 = vld [vmem:[%s3388_s0 + $0x1a0] sm:$0xf]  ;;  %v2361_v9 = vld [vmem:[%s3388_s0 + $0x1c4] sm:$0xf0] }
  0x43   :  { %1481 = vmatpush.bf16.msra.mxu3 %v2447_v21  ;;  %1579 = vmatpush.bf16.msra.mxu1 %v2463_v23  ;;  %v2443_v21 = vld [vmem:[%s3386_s1 + $0x1d8] sm:$0xff]  ;;  %v2340_v23 = vld [vmem:[%s3388_s0 + $0x11c] sm:$0xf0] }
  0x44   :  { %1205 = vmatmul.bf16.gmra.mxu1 %v1751_v18  ;;  %1530 = vmatpush.bf16.msra.mxu0 %v2455_v22  ;;  %v1763_v18 = vor.u32 %v2331_v13, %v1762_v12  ;;  %v1794_v22 = vld [vmem:[%s3388_s0 + $0xf8] sm:$0xf]  ;;  %v2356_v12 = vld [vmem:[%s3388_s0 + $0x1a4] sm:$0xf]  ;;  %v1884_v13 = vld [vmem:[%s3388_s0 + $0x1c8] sm:$0xf0] }
  0x45   :  { %v1795_v31 = vor.u32 %v2340_v23, %v1794_v22 }
  0x46   :  { %1433 = vmatpush.bf16.msra.mxu2 %v2438_v36  ;;  %v2434_v36 = vld [vmem:[%s3386_s1 + $0x190] sm:$0xff] }
  0x47   :  { %1482 = vmatpush.bf16.msra.mxu3 %v2446_v37  ;;  %1580 = vmatpush.bf16.msra.mxu1 %v2462_v39  ;;  %v2442_v37 = vld [vmem:[%s3386_s1 + $0x1d0] sm:$0xff] }
  0x48   :  { %1531 = vmatpush.bf16.msra.mxu0 %v2454_v38  ;;  %v1834_v38 = vld [vmem:[%s3388_s0 + $0x148] sm:$0xf]  ;;  %v2350_v39 = vld [vmem:[%s3388_s0 + $0x16c] sm:$0xf0] }
  0x49   :  { %v1835_v47 = vor.u32 %v2350_v39, %v1834_v38  ;;  %v1916_v38 = vld [vmem:[%s3388_s0 + $0x210] sm:$0xf0]  ;;  %v2448_v39 = vld [vmem:[%s3386_s1 + $0x200] sm:$0xff] }
  0x4a   :  { %1434 = vmatpush.bf16.msra.mxu2 %v2437_v52  ;;  %v1847_v52 = vor.u32 %v2346_v45, %v1844_v46  ;;  %v1924_v45 = vld [vmem:[%s3388_s0 + $0x218] sm:$0xf0] }
  0x4b   :  { %1483 = vmatpush.bf16.msra.mxu3 %v2445_v53  ;;  %1581 = vmatpush.bf16.msra.mxu1 %v2461_v55  ;;  %v2458_v53 = vld [vmem:[%s3386_s1 + $0x250] sm:$0xff] }
  0x4c   :  { %1532 = vmatpush.bf16.msra.mxu0 %v2453_v54 }
  0x4e   :  { %1435 = vmatpush.bf16.msra.mxu2 %v2436_v4 }
  0x4f   :  { %1484 = vmatpush.bf16.msra.mxu3 %v2444_v5  ;;  %1582 = vmatpush.bf16.msra.mxu1 %v2460_v7  ;;  %v2355_v5 = vld [vmem:[%s3388_s0 + $0x19c] sm:$0xf]  ;;  %v2449_v7 = vld [vmem:[%s3386_s1 + $0x208] sm:$0xff] }
  0x50   :  { %1533 = vmatpush.bf16.msra.mxu0 %v2452_v6  ;;  %v1876_v6 = vld [vmem:[%s3388_s0 + $0x1c0] sm:$0xf0] }
  0x51   :  { %1181 = vmatmul.bf16.gmra.mxu2 %v1947_v32  ;;  %1161 = vmatmul.bf16.gmra.mxu0 %v1787_v34  ;;  %v1799_v32 = vor.u32 %v2335_v24, %v1796_v25  ;;  %v1807_v34 = vor.u32 %v2336_v29, %v1804_v30  ;;  %v2432_v24 = vld [vmem:[%s3386_s1 + $0x180] sm:$0xff] }
  0x52   :  { %1230 = vmatmul.bf16.gmra.mxu3 %v1951_v33  ;;  %1436 = vmatpush.bf16.msra.mxu2 %v2435_v20  ;;  %v1803_v33 = vor.u32 %v2341_v28, %v1802_v27  ;;  %v1887_v20 = vor.u32 %v2356_v12, %v1884_v13  ;;  %v2376_v13 = vld [vmem:[%s3388_s0 + $0x244] sm:$0xf] }
  0x53   :  { %1485 = vmatpush.bf16.msra.mxu3 %v2443_v21  ;;  %v2457_v21 = vld [vmem:[%s3386_s1 + $0x248] sm:$0xff] }
  0x54   :  { %1210 = vmatmul.bf16.gmra.mxu1 %v1791_v35  ;;  %1534 = vmatpush.bf16.msra.mxu0 %v2451_v26  ;;  %v2459_v35 = vld [vmem:[%s3386_s1 + $0x258] sm:$0xff]  ;;  %v2440_v26 = vld [vmem:[%s3386_s1 + $0x1c0] sm:$0xff] }
  0x55   :  { %1583 = vmatpush.bf16.msra.mxu1 %v2459_v35  ;;  %v2370_v35 = vld [vmem:[%s3388_s0 + $0x20c] sm:$0xf0] }
  0x56   :  { %1437 = vmatpush.bf16.msra.mxu2 %v2434_v36 }
  0x57   :  { %1486 = vmatpush.bf16.msra.mxu3 %v2442_v37  ;;  %v2365_v37 = vld [vmem:[%s3388_s0 + $0x1ec] sm:$0xf] }
  0x58   :  { %1535 = vmatpush.bf16.msra.mxu0 %v2450_v42 }
  0x59   :  { %1584 = vmatpush.bf16.msra.mxu1 %v2458_v53 }
  0x5a   :  { %1438 = vmatpush.bf16.msra.mxu2 %v2433_v56 }
  0x5b   :  { %1487 = vmatpush.bf16.msra.mxu3 %v2441_v58 }
  0x5c   :  { %1536 = vmatpush.bf16.msra.mxu0 %v2449_v7  ;;  %v2375_v7 = vld [vmem:[%s3388_s0 + $0x23c] sm:$0xf] }
  0x5d   :  { %1585 = vmatpush.bf16.msra.mxu1 %v2457_v21 }
  0x5e   :  { %1439 = vmatpush.bf16.msra.mxu2 %v2432_v24 }
  0x5f   :  { %1488 = vmatpush.bf16.msra.mxu3 %v2440_v26 }
  0x60   :  { %1537 = vmatpush.bf16.msra.mxu0 %v2448_v39  ;;  %v2307_v39 = vld [vmem:[%s3388_s0 + $0x1c] sm:$0xf] }
  0x61   :  { %1244 = vmatmul.bf16.vlgmr.msrb.gmra.mxu2 %v1675_v48  ;;  %1342 = vmatmul.bf16.vlgmr.msrb.gmra.mxu0 %v1683_v50  ;;  %v1839_v48 = vor.u32 %v2345_v40, %v1836_v41  ;;  %v1843_v50 = vor.u32 %v2351_v44, %v1842_v43  ;;  %v1922_v40 = vld [vmem:[%s3388_s0 + $0x1f0] sm:$0xf]  ;;  %v2371_v41 = vld [vmem:[%s3388_s0 + $0x214] sm:$0xf0]  ;;  %v2366_v44 = vld [vmem:[%s3388_s0 + $0x1f4] sm:$0xf] }
  0x62   :  { %1293 = vmatmul.bf16.vlgmr.msrb.gmra.mxu3 %v1679_v49  ;;  %v2933_v49 = vld [vmem:[%s3387_s2] ss:$0 sm:$0xff]  ;;  %v1927_v53 = vor.u32 %v2366_v44, %v1924_v45  ;;  %v2308_v45 = vld [vmem:[%s3388_s0 + $0x24] sm:$0xf] }
  0x64   :  { %1391 = vmatmul.bf16.vlgmr.msrb.gmra.mxu1 %v1687_v51 }
  0x71   :  { %1249 = vmatmul.bf16.gmra.mxu2 %v1715_v0  ;;  %1347 = vmatmul.bf16.gmra.mxu0 %v1723_v2  ;;  %v1874_v2 = vld [vmem:[%s3388_s0 + $0x198] sm:$0xf] }
  0x72   :  { %1298 = vmatmul.bf16.gmra.mxu3 %v1719_v1 }
  0x74   :  { %1396 = vmatmul.bf16.gmra.mxu1 %v1727_v3  ;;  %v2360_v3 = vld [vmem:[%s3388_s0 + $0x1bc] sm:$0xf0] }
  0x75   :  { %v1875_v15 = vor.u32 %v2360_v3, %v1874_v2  ;;  %v1954_v3 = vld [vmem:[%s3388_s0 + $0x238] sm:$0xf] }
  0x81   :  { %1254 = vmatmul.bf16.gmra.mxu2 %v1755_v16  ;;  %1352 = vmatmul.bf16.gmra.mxu0 %v1763_v18  ;;  %v1879_v16 = vor.u32 %v2355_v5, %v1876_v6  ;;  %v2380_v6 = vld [vmem:[%s3388_s0 + $0x25c] sm:$0xf0] }
  0x82   :  { %1303 = vmatmul.bf16.gmra.mxu3 %v1759_v17  ;;  %v1883_v17 = vor.u32 %v2361_v9, %v1882_v8  ;;  %v1956_v8 = vld [vmem:[%s3388_s0 + $0x260] sm:$0xf0]  ;;  %v1962_v9 = vld [vmem:[%s3388_s0 + $0x240] sm:$0xf] }
  0x84   :  { %1401 = vmatmul.bf16.gmra.mxu1 %v1767_v19 }
  0x91   :  { %1259 = vmatmul.bf16.gmra.mxu2 %v1795_v31  ;;  %1357 = vmatmul.bf16.gmra.mxu0 %v1803_v33 }
  0x92   :  { %1308 = vmatmul.bf16.gmra.mxu3 %v1799_v32 }
  0x94   :  { %1406 = vmatmul.bf16.gmra.mxu1 %v1807_v34  ;;  %v1914_v34 = vld [vmem:[%s3388_s0 + $0x1e8] sm:$0xf] }
  0x9e   :  { %v1147_v51 = vpop.f32.mrf.mxu0 }
  0x9f   :  { %v1148_v54 = vadd.f32 %v2933_v49, %v1147_v51 }
  0xa1   :  { %v1196_v55 = vpop.f32.mrf.mxu1  ;;  %1264 = vmatmul.bf16.gmra.mxu2 %v1835_v47  ;;  %1362 = vmatmul.bf16.gmra.mxu0 %v1843_v50  ;;  %v1915_v47 = vor.u32 %v2370_v35, %v1914_v34  ;;  %v1923_v50 = vor.u32 %v2371_v41, %v1922_v40  ;;  %v1690_v35 = vld [vmem:[%s3388_s0 + $0x18] sm:$0xf]  ;;  %v1692_v40 = vld [vmem:[%s3388_s0 + $0x40] sm:$0xf0]  ;;  %v1698_v41 = vld [vmem:[%s3388_s0 + $0x20] sm:$0xf] }
  0xa2   :  { %1313 = vmatmul.bf16.gmra.mxu3 %v1839_v48  ;;  %v2942_v57 = vadd.f32 %v1196_v55, %v1148_v54  ;;  %v1919_v48 = vor.u32 %v2365_v37, %v1916_v38  ;;  %v2456_v54 = vld [vmem:[%s3386_s1 + $0x240] sm:$0xff] }
  0xa3   :  { %1586 = vmatpush.bf16.msra.mxu1 %v2456_v54  ;;  %v2312_v38 = vld [vmem:[%s3388_s0 + $0x3c] sm:$0xf0] }
  0xa4   :  { %1411 = vmatmul.bf16.gmra.mxu1 %v1847_v52  ;;  %v1167_v59 = vpop.f32.mrf.mxu2 }
  0xa5   :  { %v1216_v60 = vpop.f32.mrf.mxu3  ;;  %v1168_v61 = vadd.f32 %v2933_v49, %v1167_v59 }
  0xa6   :  { %v1149_v63 = vpop.f32.mrf.mxu0 }
  0xa7   :  { %v2948_v62 = vadd.f32 %v1216_v60, %v1168_v61  ;;  %v1150_v0 = vadd.f32 %v2933_v49, %v1149_v63 }
  0xa9   :  { %v1198_v1 = vpop.f32.mrf.mxu1 }
  0xaa   :  { %v2957_v4 = vadd.f32 %v1198_v1, %v1150_v0 }
  0xac   :  { %v1169_v10 = vpop.f32.mrf.mxu2 }
  0xad   :  { %v1218_v11 = vpop.f32.mrf.mxu3  ;;  %v1170_v14 = vadd.f32 %v2933_v49, %v1169_v10  ;;  %v2381_v10 = vld [vmem:[%s3388_s0 + $0x264] sm:$0xf0] }
  0xae   :  { %v1152_v19 = vpop.f32.mrf.mxu0 }
  0xaf   :  { %v2981_v18 = vadd.f32 %v1218_v11, %v1170_v14  ;;  %v1153_v22 = vadd.f32 %v2933_v49, %v1152_v19  ;;  %v1964_v14 = vld [vmem:[%s3388_s0 + $0x268] sm:$0xf0]  ;;  %v1963_v19 = vor.u32 %v2381_v10, %v1962_v9  ;;  %v2323_v9 = vld [vmem:[%s3388_s0 + $0x94] sm:$0xf0] }
  0xb1   :  { %v1201_v23 = vpop.f32.mrf.mxu1  ;;  %1269 = vmatmul.bf16.gmra.mxu2 %v1875_v15  ;;  %1367 = vmatmul.bf16.gmra.mxu0 %v1883_v17  ;;  %v1959_v17 = vor.u32 %v2375_v7, %v1956_v8  ;;  %v2317_v7 = vld [vmem:[%s3388_s0 + $0x6c] sm:$0xf]  ;;  %v1738_v8 = vld [vmem:[%s3388_s0 + $0x70] sm:$0xf] }
  0xb2   :  { %1318 = vmatmul.bf16.gmra.mxu3 %v1879_v16  ;;  %v2990_v25 = vadd.f32 %v1201_v23, %v1153_v22  ;;  %v1955_v16 = vor.u32 %v2380_v6, %v1954_v3  ;;  %v1967_v22 = vor.u32 %v2376_v13, %v1964_v14  ;;  %v1730_v3 = vld [vmem:[%s3388_s0 + $0x68] sm:$0xf]  ;;  %v2322_v6 = vld [vmem:[%s3388_s0 + $0x8c] sm:$0xf0]  ;;  %v2318_v13 = vld [vmem:[%s3388_s0 + $0x74] sm:$0xf] }
  0xb3   :  { %v1740_v14 = vld [vmem:[%s3388_s0 + $0x98] sm:$0xf0] }
  0xb4   :  { %1416 = vmatmul.bf16.gmra.mxu1 %v1887_v20  ;;  %v1172_v27 = vpop.f32.mrf.mxu2 }
  0xb5   :  { %v1221_v28 = vpop.f32.mrf.mxu3  ;;  %v1173_v29 = vadd.f32 %v2933_v49, %v1172_v27 }
  0xb6   :  { %v1154_v31 = vpop.f32.mrf.mxu0 }
  0xb7   :  { %v2996_v30 = vadd.f32 %v1221_v28, %v1173_v29  ;;  %v1155_v32 = vadd.f32 %v2933_v49, %v1154_v31 }
  0xb9   :  { %v1203_v33 = vpop.f32.mrf.mxu1 }
  0xba   :  { %v3005_v36 = vadd.f32 %v1203_v33, %v1155_v32 }
  0xbc   :  { %v1174_v42 = vpop.f32.mrf.mxu2 }
  0xbd   :  { %v1223_v43 = vpop.f32.mrf.mxu3  ;;  %v1175_v46 = vadd.f32 %v2933_v49, %v1174_v42  ;;  %v2313_v42 = vld [vmem:[%s3388_s0 + $0x44] sm:$0xf0] }
  0xbe   :  { %v1157_v52 = vpop.f32.mrf.mxu0 }
  0xbf   :  { %v3029_v51 = vadd.f32 %v1223_v43, %v1175_v46  ;;  %v1158_v55 = vadd.f32 %v2933_v49, %v1157_v52  ;;  %v1700_v46 = vld [vmem:[%s3388_s0 + $0x48] sm:$0xf0]  ;;  %v1699_v52 = vor.u32 %v2313_v42, %v1698_v41  ;;  %v2327_v41 = vld [vmem:[%s3388_s0 + $0xbc] sm:$0xf]  ;;  %v1778_v42 = vld [vmem:[%s3388_s0 + $0xc0] sm:$0xf] }
  0xc1   :  { %v1206_v56 = vpop.f32.mrf.mxu1  ;;  %1274 = vmatmul.bf16.gmra.mxu2 %v1915_v47  ;;  %1372 = vmatmul.bf16.gmra.mxu0 %v1923_v50  ;;  %v1695_v50 = vor.u32 %v2307_v39, %v1692_v40  ;;  %v1770_v39 = vld [vmem:[%s3388_s0 + $0xb8] sm:$0xf]  ;;  %v2332_v40 = vld [vmem:[%s3388_s0 + $0xdc] sm:$0xf0] }
  0xc2   :  { %1323 = vmatmul.bf16.gmra.mxu3 %v1919_v48  ;;  %v3035_v58 = vadd.f32 %v1206_v56, %v1158_v55  ;;  %v1691_v48 = vor.u32 %v2312_v38, %v1690_v35  ;;  %v1703_v55 = vor.u32 %v2308_v45, %v1700_v46 }
  0xc4   :  { %1421 = vmatmul.bf16.gmra.mxu1 %v1927_v53  ;;  %v1177_v59 = vpop.f32.mrf.mxu2 }
  0xc5   :  { %v1226_v60 = vpop.f32.mrf.mxu3  ;;  %v1178_v61 = vadd.f32 %v2933_v49, %v1177_v59 }
  0xc6   :  { %v1159_v0 = vpop.f32.mrf.mxu0 }
  0xc7   :  { %v3038_v63 = vadd.f32 %v1226_v60, %v1178_v61  ;;  %v1160_v1 = vadd.f32 %v2933_v49, %v1159_v0 }
  0xc9   :  { %v1208_v2 = vpop.f32.mrf.mxu1 }
  0xca   :  { %v3044_v5 = vadd.f32 %v1208_v2, %v1160_v1 }
  0xcc   :  { %v1179_v11 = vpop.f32.mrf.mxu2 }
  0xcd   :  { %v1228_v12 = vpop.f32.mrf.mxu3  ;;  %v1180_v15 = vadd.f32 %v2933_v49, %v1179_v11 }
  0xce   :  { %v1162_v21 = vpop.f32.mrf.mxu0 }
  0xcf   :  { %v3068_v20 = vadd.f32 %v1228_v12, %v1180_v15  ;;  %v1163_v23 = vadd.f32 %v2933_v49, %v1162_v21 }
  0xd1   :  { %v1211_v24 = vpop.f32.mrf.mxu1  ;;  %1279 = vmatmul.bf16.gmra.mxu2 %v1955_v16  ;;  %1377 = vmatmul.bf16.gmra.mxu0 %v1963_v19  ;;  %v1731_v16 = vor.u32 %v2322_v6, %v1730_v3  ;;  %v1739_v19 = vor.u32 %v2323_v9, %v1738_v8  ;;  %v1810_v8 = vld [vmem:[%s3388_s0 + $0x108] sm:$0xf]  ;;  %v2342_v9 = vld [vmem:[%s3388_s0 + $0x12c] sm:$0xf0] }
  0xd2   :  { %1328 = vmatmul.bf16.gmra.mxu3 %v1959_v17  ;;  %v3071_v26 = vadd.f32 %v1211_v24, %v1163_v23  ;;  %v1743_v23 = vor.u32 %v2318_v13, %v1740_v14  ;;  %v2343_v13 = vld [vmem:[%s3388_s0 + $0x134] sm:$0xf0] }
  0xd4   :  { %1426 = vmatmul.bf16.gmra.mxu1 %v1967_v22  ;;  %v1182_v27 = vpop.f32.mrf.mxu2 }
  0xd5   :  { %v1231_v28 = vpop.f32.mrf.mxu3  ;;  %v1183_v29 = vadd.f32 %v2933_v49, %v1182_v27 }
  0xd6   :  { %v1164_v32 = vpop.f32.mrf.mxu0 }
  0xd7   :  { %v3074_v31 = vadd.f32 %v1231_v28, %v1183_v29  ;;  %v1165_v33 = vadd.f32 %v2933_v49, %v1164_v32 }
  0xd9   :  { %v1213_v34 = vpop.f32.mrf.mxu1 }
  0xda   :  { %v3080_v37 = vadd.f32 %v1213_v34, %v1165_v33 }
  0xdc   :  { %v1184_v43 = vpop.f32.mrf.mxu2 }
  0xdd   :  { %v1233_v44 = vpop.f32.mrf.mxu3  ;;  %v1185_v47 = vadd.f32 %v2933_v49, %v1184_v43  ;;  %v2333_v43 = vld [vmem:[%s3388_s0 + $0xe4] sm:$0xf0] }
  0xde   :  { %v1343_v54 = vpop.f32.mrf.mxu0 }
  0xdf   :  { %v3104_v53 = vadd.f32 %v1233_v44, %v1185_v47  ;;  %v2328_v47 = vld [vmem:[%s3388_s0 + $0xc4] sm:$0xf] }
  0xe1   :  { %v1392_v56 = vpop.f32.mrf.mxu1  ;;  %1440 = vmatmul.bf16.vlgmr.msra.gmra.mxu2 %v1691_v48  ;;  %1538 = vmatmul.bf16.vlgmr.msra.gmra.mxu0 %v1699_v52  ;;  %v1780_v48 = vld [vmem:[%s3388_s0 + $0xe8] sm:$0xf0]  ;;  %v1771_v52 = vor.u32 %v2332_v40, %v1770_v39 }
  0xe2   :  { %1489 = vmatmul.bf16.vlgmr.msra.gmra.mxu3 %v1695_v50 }
  0xe4   :  { %1587 = vmatmul.bf16.vlgmr.msra.gmra.mxu1 %v1703_v55  ;;  %v1245_v59 = vpop.f32.mrf.mxu2  ;;  %v1779_v55 = vor.u32 %v2333_v43, %v1778_v42  ;;  %v1850_v42 = vld [vmem:[%s3388_s0 + $0x158] sm:$0xf]  ;;  %v2352_v43 = vld [vmem:[%s3388_s0 + $0x17c] sm:$0xf0] }
  0xe5   :  { %v1294_v60 = vpop.f32.mrf.mxu3  ;;  %v1246_v61 = vadd.f32 %v1245_v59, %v2942_v57  ;;  %v1732_v57 = vld [vmem:[%s3388_s0 + $0x90] sm:$0xf0] }
  0xe6   :  { %v1345_v1 = vpop.f32.mrf.mxu0  ;;  %v1735_v17 = vor.u32 %v2317_v7, %v1732_v57 }
  0xe7   :  { %v1295_v0 = vadd.f32 %v1294_v60, %v1246_v61  ;;  %v1783_v60 = vor.u32 %v2328_v47, %v1780_v48  ;;  %v2353_v47 = vld [vmem:[%s3388_s0 + $0x184] sm:$0xf0] }
  0xe9   :  { %v1394_v2 = vpop.f32.mrf.mxu1  ;;  %v1344_v49 = vadd.f32 %v1343_v54, %v1295_v0 }
  0xeb   :  { %v3125_v10 = vadd.f32 %v1392_v56, %v1344_v49 }
  0xec   :  { %v1247_v11 = vpop.f32.mrf.mxu2 }
  0xed   :  { %v1296_v12 = vpop.f32.mrf.mxu3  ;;  %v1248_v15 = vadd.f32 %v1247_v11, %v2957_v4  ;;  %v2337_v11 = vld [vmem:[%s3388_s0 + $0x10c] sm:$0xf] }
  0xee   :  { %v1348_v22 = vpop.f32.mrf.mxu0 }
  0xef   :  { %v1297_v21 = vadd.f32 %v1296_v12, %v1248_v15  ;;  %v1818_v12 = vld [vmem:[%s3388_s0 + $0x110] sm:$0xf] }
  0xf1   :  { %v1397_v24 = vpop.f32.mrf.mxu1  ;;  %v1346_v27 = vadd.f32 %v1345_v1, %v1297_v21  ;;  %1445 = vmatmul.bf16.gmra.mxu2 %v1731_v16  ;;  %1543 = vmatmul.bf16.gmra.mxu0 %v1739_v19  ;;  %v1820_v19 = vld [vmem:[%s3388_s0 + $0x138] sm:$0xf0] }
  0xf2   :  { %1494 = vmatmul.bf16.gmra.mxu3 %v1735_v17  ;;  %v2338_v17 = vld [vmem:[%s3388_s0 + $0x114] sm:$0xf] }
  0xf3   :  { %v3134_v28 = vadd.f32 %v1394_v2, %v1346_v27 }
  0xf4   :  { %1592 = vmatmul.bf16.gmra.mxu1 %v1743_v23  ;;  %v1250_v29 = vpop.f32.mrf.mxu2 }
  0xf5   :  { %v1299_v32 = vpop.f32.mrf.mxu3  ;;  %v1251_v33 = vadd.f32 %v1250_v29, %v2990_v25  ;;  %v1772_v25 = vld [vmem:[%s3388_s0 + $0xe0] sm:$0xf0] }
  0xf6   :  { %v1350_v4 = vpop.f32.mrf.mxu0  ;;  %v1775_v54 = vor.u32 %v2327_v41, %v1772_v25 }
  0xf7   :  { %v1300_v34 = vadd.f32 %v1299_v32, %v1251_v33  ;;  %v1823_v32 = vor.u32 %v2338_v17, %v1820_v19  ;;  %v2363_v17 = vld [vmem:[%s3388_s0 + $0x1d4] sm:$0xf0] }
  0xf9   :  { %v1399_v35 = vpop.f32.mrf.mxu1  ;;  %v1349_v38 = vadd.f32 %v1348_v22, %v1300_v34  ;;  %v1811_v22 = vor.u32 %v2342_v9, %v1810_v8 }
  0xfb   :  { %v3155_v44 = vadd.f32 %v1397_v24, %v1349_v38  ;;  %v1819_v24 = vor.u32 %v2343_v13, %v1818_v12  ;;  %v1890_v12 = vld [vmem:[%s3388_s0 + $0x1a8] sm:$0xf]  ;;  %v2362_v13 = vld [vmem:[%s3388_s0 + $0x1cc] sm:$0xf0] }
  0xfc   :  { %v1252_v45 = vpop.f32.mrf.mxu2 }
  0xfd   :  { %v1301_v46 = vpop.f32.mrf.mxu3  ;;  %v1253_v50 = vadd.f32 %v1252_v45, %v3005_v36  ;;  %v2347_v45 = vld [vmem:[%s3388_s0 + $0x15c] sm:$0xf] }
  0xfe   :  { %v1353_v59 = vpop.f32.mrf.mxu0 }
  0xff   :  { %v1302_v56 = vadd.f32 %v1301_v46, %v1253_v50  ;;  %v1858_v46 = vld [vmem:[%s3388_s0 + $0x160] sm:$0xf] }
 0x101   :  { %v1402_v61 = vpop.f32.mrf.mxu1  ;;  %v1351_v0 = vadd.f32 %v1350_v4, %v1302_v56  ;;  %1450 = vmatmul.bf16.gmra.mxu2 %v1771_v52  ;;  %1548 = vmatmul.bf16.gmra.mxu0 %v1779_v55  ;;  %v1860_v55 = vld [vmem:[%s3388_s0 + $0x188] sm:$0xf0] }
 0x102   :  { %1499 = vmatmul.bf16.gmra.mxu3 %v1775_v54  ;;  %v2348_v54 = vld [vmem:[%s3388_s0 + $0x164] sm:$0xf] }
 0x103   :  { %v3164_v1 = vadd.f32 %v1399_v35, %v1351_v0 }
 0x104   :  { %1597 = vmatmul.bf16.gmra.mxu1 %v1783_v60  ;;  %v1255_v2 = vpop.f32.mrf.mxu2 }
 0x105   :  { %v1304_v49 = vpop.f32.mrf.mxu3  ;;  %v1256_v3 = vadd.f32 %v1255_v2, %v3035_v58  ;;  %v1812_v58 = vld [vmem:[%s3388_s0 + $0x130] sm:$0xf0] }
 0x106   :  { %v1355_v36 = vpop.f32.mrf.mxu0  ;;  %v1815_v23 = vor.u32 %v2337_v11, %v1812_v58 }
 0x107   :  { %v1305_v6 = vadd.f32 %v1304_v49, %v1256_v3  ;;  %v1863_v49 = vor.u32 %v2348_v54, %v1860_v55  ;;  %v2373_v54 = vld [vmem:[%s3388_s0 + $0x224] sm:$0xf0] }
 0x109   :  { %v1404_v7 = vpop.f32.mrf.mxu1  ;;  %v1354_v57 = vadd.f32 %v1353_v59, %v1305_v6  ;;  %v1851_v59 = vor.u32 %v2352_v43, %v1850_v42 }
 0x10b   :  { %v3185_v14 = vadd.f32 %v1402_v61, %v1354_v57  ;;  %v1859_v61 = vor.u32 %v2353_v47, %v1858_v46  ;;  %v1930_v46 = vld [vmem:[%s3388_s0 + $0x1f8] sm:$0xf]  ;;  %v2372_v47 = vld [vmem:[%s3388_s0 + $0x21c] sm:$0xf0] }
 0x10c   :  { %v1257_v15 = vpop.f32.mrf.mxu2 }
 0x10d   :  { %v1306_v16 = vpop.f32.mrf.mxu3  ;;  %v1258_v21 = vadd.f32 %v1257_v15, %v3044_v5  ;;  %v2357_v15 = vld [vmem:[%s3388_s0 + $0x1ac] sm:$0xf] }
 0x10e   :  { %v1358_v29 = vpop.f32.mrf.mxu0 }
 0x10f   :  { %v1307_v27 = vadd.f32 %v1306_v16, %v1258_v21  ;;  %v1898_v16 = vld [vmem:[%s3388_s0 + $0x1b0] sm:$0xf] }
 0x111   :  { %v1407_v33 = vpop.f32.mrf.mxu1  ;;  %v1356_v34 = vadd.f32 %v1355_v36, %v1307_v27  ;;  %1455 = vmatmul.bf16.gmra.mxu2 %v1811_v22  ;;  %1553 = vmatmul.bf16.gmra.mxu0 %v1819_v24  ;;  %v1900_v24 = vld [vmem:[%s3388_s0 + $0x1d8] sm:$0xf0] }
 0x112   :  { %1504 = vmatmul.bf16.gmra.mxu3 %v1815_v23  ;;  %v2358_v23 = vld [vmem:[%s3388_s0 + $0x1b4] sm:$0xf] }
 0x113   :  { %v3194_v4 = vadd.f32 %v1404_v7, %v1356_v34 }
 0x114   :  { %1602 = vmatmul.bf16.gmra.mxu1 %v1823_v32  ;;  %v1260_v35 = vpop.f32.mrf.mxu2 }
 0x115   :  { %v1309_v38 = vpop.f32.mrf.mxu3  ;;  %v1261_v39 = vadd.f32 %v1260_v35, %v3071_v26  ;;  %v1852_v26 = vld [vmem:[%s3388_s0 + $0x180] sm:$0xf0] }
 0x116   :  { %v1360_v5 = vpop.f32.mrf.mxu0  ;;  %v1855_v60 = vor.u32 %v2347_v45, %v1852_v26 }
 0x117   :  { %v1310_v40 = vadd.f32 %v1309_v38, %v1261_v39  ;;  %v1903_v38 = vor.u32 %v2358_v23, %v1900_v24  ;;  %v2383_v23 = vld [vmem:[%s3388_s0 + $0x274] sm:$0xf0] }
 0x119   :  { %v1409_v41 = vpop.f32.mrf.mxu1  ;;  %v1359_v25 = vadd.f32 %v1358_v29, %v1310_v40  ;;  %v1891_v29 = vor.u32 %v2362_v13, %v1890_v12 }
 0x11b   :  { %v3215_v48 = vadd.f32 %v1407_v33, %v1359_v25  ;;  %v1899_v33 = vor.u32 %v2363_v17, %v1898_v16  ;;  %v1970_v16 = vld [vmem:[%s3388_s0 + $0x248] sm:$0xf]  ;;  %v2382_v17 = vld [vmem:[%s3388_s0 + $0x26c] sm:$0xf0] }
 0x11c   :  { %v1262_v50 = vpop.f32.mrf.mxu2 }
 0x11d   :  { %v1311_v52 = vpop.f32.mrf.mxu3  ;;  %v1263_v56 = vadd.f32 %v1262_v50, %v3080_v37  ;;  %v2367_v50 = vld [vmem:[%s3388_s0 + $0x1fc] sm:$0xf] }
 0x11e   :  { %v1363_v2 = vpop.f32.mrf.mxu0 }
 0x11f   :  { %v1312_v0 = vadd.f32 %v1311_v52, %v1263_v56  ;;  %v1938_v52 = vld [vmem:[%s3388_s0 + $0x200] sm:$0xf] }
 0x121   :  { %v1412_v3 = vpop.f32.mrf.mxu1  ;;  %v1361_v6 = vadd.f32 %v1360_v5, %v1312_v0  ;;  %1460 = vmatmul.bf16.gmra.mxu2 %v1851_v59  ;;  %1558 = vmatmul.bf16.gmra.mxu0 %v1859_v61  ;;  %v1940_v61 = vld [vmem:[%s3388_s0 + $0x228] sm:$0xf0] }
 0x122   :  { %1509 = vmatmul.bf16.gmra.mxu3 %v1855_v60  ;;  %v2368_v60 = vld [vmem:[%s3388_s0 + $0x204] sm:$0xf] }
 0x123   :  { %v3224_v36 = vadd.f32 %v1409_v41, %v1361_v6 }
 0x124   :  { %1607 = vmatmul.bf16.gmra.mxu1 %v1863_v49  ;;  %v1265_v7 = vpop.f32.mrf.mxu2 }
 0x125   :  { %v1314_v57 = vpop.f32.mrf.mxu3  ;;  %v1266_v8 = vadd.f32 %v1265_v7, %v2948_v62  ;;  %v1892_v62 = vld [vmem:[%s3388_s0 + $0x1d0] sm:$0xf0] }
 0x126   :  { %v1365_v37 = vpop.f32.mrf.mxu0  ;;  %v1895_v32 = vor.u32 %v2357_v15, %v1892_v62 }
 0x127   :  { %v1315_v9 = vadd.f32 %v1314_v57, %v1266_v8  ;;  %v1943_v57 = vor.u32 %v2368_v60, %v1940_v61 }
 0x129   :  { %v1414_v11 = vpop.f32.mrf.mxu1  ;;  %v1364_v58 = vadd.f32 %v1363_v2, %v1315_v9  ;;  %v1931_v2 = vor.u32 %v2372_v47, %v1930_v46 }
 0x12b   :  { %v3245_v19 = vadd.f32 %v1412_v3, %v1364_v58  ;;  %v1939_v3 = vor.u32 %v2373_v54, %v1938_v52 }
 0x12c   :  { %v1267_v21 = vpop.f32.mrf.mxu2 }
 0x12d   :  { %v1316_v22 = vpop.f32.mrf.mxu3  ;;  %v1268_v27 = vadd.f32 %v1267_v21, %v2981_v18  ;;  %v2377_v21 = vld [vmem:[%s3388_s0 + $0x24c] sm:$0xf] }
 0x12e   :  { %v1368_v35 = vpop.f32.mrf.mxu0 }
 0x12f   :  { %v1317_v34 = vadd.f32 %v1316_v22, %v1268_v27  ;;  %v1978_v22 = vld [vmem:[%s3388_s0 + $0x250] sm:$0xf] }
 0x131   :  { %v1417_v39 = vpop.f32.mrf.mxu1  ;;  %v1366_v40 = vadd.f32 %v1365_v37, %v1317_v34  ;;  %1465 = vmatmul.bf16.gmra.mxu2 %v1891_v29  ;;  %1563 = vmatmul.bf16.gmra.mxu0 %v1899_v33  ;;  %v1980_v33 = vld [vmem:[%s3388_s0 + $0x278] sm:$0xf0] }
 0x132   :  { %1514 = vmatmul.bf16.gmra.mxu3 %v1895_v32  ;;  %v2378_v32 = vld [vmem:[%s3388_s0 + $0x254] sm:$0xf] }
 0x133   :  { %v3254_v5 = vadd.f32 %v1414_v11, %v1366_v40 }
 0x134   :  { %1612 = vmatmul.bf16.gmra.mxu1 %v1903_v38  ;;  %v1270_v41 = vpop.f32.mrf.mxu2 }
 0x135   :  { %v1319_v25 = vpop.f32.mrf.mxu3  ;;  %v1271_v42 = vadd.f32 %v1270_v41, %v2996_v30  ;;  %v1932_v30 = vld [vmem:[%s3388_s0 + $0x220] sm:$0xf0] }
 0x136   :  { %v1370_v18 = vpop.f32.mrf.mxu0  ;;  %v1935_v49 = vor.u32 %v2367_v50, %v1932_v30 }
 0x137   :  { %v1320_v43 = vadd.f32 %v1319_v25, %v1271_v42  ;;  %v1983_v25 = vor.u32 %v2378_v32, %v1980_v33 }
 0x139   :  { %v1419_v45 = vpop.f32.mrf.mxu1  ;;  %v1369_v26 = vadd.f32 %v1368_v35, %v1320_v43  ;;  %v1971_v35 = vor.u32 %v2382_v17, %v1970_v16 }
 0x13b   :  { %v3275_v55 = vadd.f32 %v1417_v39, %v1369_v26  ;;  %v1979_v39 = vor.u32 %v2383_v23, %v1978_v22 }
 0x13c   :  { %v1272_v56 = vpop.f32.mrf.mxu2 }
 0x13d   :  { %v1321_v59 = vpop.f32.mrf.mxu3  ;;  %v1273_v0 = vadd.f32 %v1272_v56, %v3029_v51 }
 0x13e   :  { %v1373_v7 = vpop.f32.mrf.mxu0 }
 0x13f   :  { %v1322_v6 = vadd.f32 %v1321_v59, %v1273_v0 }
 0x141   :  { %v1422_v8 = vpop.f32.mrf.mxu1  ;;  %v1371_v9 = vadd.f32 %v1370_v18, %v1322_v6  ;;  %1470 = vmatmul.bf16.gmra.mxu2 %v1931_v2  ;;  %1568 = vmatmul.bf16.gmra.mxu0 %v1939_v3 }
 0x142   :  { %1519 = vmatmul.bf16.gmra.mxu3 %v1935_v49 }
 0x143   :  { %v3284_v37 = vadd.f32 %v1419_v45, %v1371_v9 }
 0x144   :  { %1617 = vmatmul.bf16.gmra.mxu1 %v1943_v57  ;;  %v1275_v11 = vpop.f32.mrf.mxu2 }
 0x145   :  { %v1324_v58 = vpop.f32.mrf.mxu3  ;;  %v1276_v12 = vadd.f32 %v1275_v11, %v3038_v63  ;;  %v1972_v63 = vld [vmem:[%s3388_s0 + $0x270] sm:$0xf0] }
 0x146   :  { %v1375_v51 = vpop.f32.mrf.mxu0  ;;  %v1975_v38 = vor.u32 %v2377_v21, %v1972_v63 }
 0x147   :  { %v1325_v13 = vadd.f32 %v1324_v58, %v1276_v12 }
 0x149   :  { %v1424_v15 = vpop.f32.mrf.mxu1  ;;  %v1374_v62 = vadd.f32 %v1373_v7, %v1325_v13 }
 0x14b   :  { %v3305_v24 = vadd.f32 %v1422_v8, %v1374_v62 }
 0x14c   :  { %v1277_v27 = vpop.f32.mrf.mxu2 }
 0x14d   :  { %v1326_v29 = vpop.f32.mrf.mxu3  ;;  %v1278_v34 = vadd.f32 %v1277_v27, %v3068_v20 }
 0x14e   :  { %v1378_v41 = vpop.f32.mrf.mxu0 }
 0x14f   :  { %v1327_v40 = vadd.f32 %v1326_v29, %v1278_v34 }
 0x151   :  { %v1427_v42 = vpop.f32.mrf.mxu1  ;;  %v1376_v43 = vadd.f32 %v1375_v51, %v1327_v40  ;;  %1475 = vmatmul.bf16.gmra.mxu2 %v1971_v35  ;;  %1573 = vmatmul.bf16.gmra.mxu0 %v1979_v39 }
 0x152   :  { %1524 = vmatmul.bf16.gmra.mxu3 %v1975_v38 }
 0x153   :  { %v3314_v18 = vadd.f32 %v1424_v15, %v1376_v43 }
 0x154   :  { %1622 = vmatmul.bf16.gmra.mxu1 %v1983_v25  ;;  %v1280_v45 = vpop.f32.mrf.mxu2 }
 0x155   :  { %v1329_v26 = vpop.f32.mrf.mxu3  ;;  %v1281_v46 = vadd.f32 %v1280_v45, %v3074_v31 }
 0x156   :  { %v1380_v20 = vpop.f32.mrf.mxu0 }
 0x157   :  { %v1330_v47 = vadd.f32 %v1329_v26, %v1281_v46 }
 0x159   :  { %v1429_v50 = vpop.f32.mrf.mxu1  ;;  %v1379_v30 = vadd.f32 %v1378_v41, %v1330_v47 }
 0x15b   :  { %v3317_v52 = vadd.f32 %v1427_v42, %v1379_v30 }
 0x15c   :  { %v1282_v54 = vpop.f32.mrf.mxu2 }
 0x15d   :  { %v1331_v56 = vpop.f32.mrf.mxu3  ;;  %v1283_v59 = vadd.f32 %v1282_v54, %v3104_v53 }
 0x15e   :  { %v1539_v61 = vpop.f32.mrf.mxu0 }
 0x15f   :  { %v1332_v60 = vadd.f32 %v1331_v56, %v1283_v59 }
 0x161   :  { %v1588_v0 = vpop.f32.mrf.mxu1  ;;  %v1381_v2 = vadd.f32 %v1380_v20, %v1332_v60 }
 0x163   :  { %v3320_v49 = vadd.f32 %v1429_v50, %v1381_v2 }
 0x164   :  { %v1441_v3 = vpop.f32.mrf.mxu2 }
 0x165   :  { %v1490_v6 = vpop.f32.mrf.mxu3  ;;  %v1442_v31 = vadd.f32 %v1441_v3, %v3125_v10 }
 0x166   :  { %v1541_v57 = vpop.f32.mrf.mxu0 }
 0x167   :  { %v1491_v7 = vadd.f32 %v1490_v6, %v1442_v31 }
 0x169   :  { %v1590_v8 = vpop.f32.mrf.mxu1  ;;  %v1540_v9 = vadd.f32 %v1539_v61, %v1491_v7 }
 0x16b   :  { %v1589_v11 = vadd.f32 %v1588_v0, %v1540_v9 }
 0x16c   :  { %v1443_v58 = vpop.f32.mrf.mxu2 }
 0x16d   :  { %v1492_v12 = vpop.f32.mrf.mxu3  ;;  %v1628_v13 = vmax.f32 %v1589_v11, 0.0  ;;  %v1444_v53 = vadd.f32 %v1443_v58, %v3134_v28 }
 0x16e   :  { %v1544_v15 = vpop.f32.mrf.mxu0 }
 0x16f   :  { %1644 = vst [vmem:[%s3389_s3] sm:$0xff] %v1628_v13  ;;  %v1493_v51 = vadd.f32 %v1492_v12, %v1444_v53 }
 0x171   :  { %v1593_v62 = vpop.f32.mrf.mxu1  ;;  %v1542_v16 = vadd.f32 %v1541_v57, %v1493_v51 }
 0x173   :  { %v1591_v17 = vadd.f32 %v1590_v8, %v1542_v16 }
 0x174   :  { %v1446_v10 = vpop.f32.mrf.mxu2 }
 0x175   :  { %v1495_v21 = vpop.f32.mrf.mxu3  ;;  %v1629_v63 = vmax.f32 %v1591_v17, 0.0  ;;  %v1447_v22 = vadd.f32 %v1446_v10, %v3155_v44 }
 0x176   :  { %v1546_v28 = vpop.f32.mrf.mxu0 }
 0x177   :  { %1645 = vst [vmem:[%s3389_s3 + $0x8] sm:$0xff] %v1629_v63  ;;  %v1496_v23 = vadd.f32 %v1495_v21, %v1447_v22 }
 0x179   :  { %v1595_v27 = vpop.f32.mrf.mxu1  ;;  %v1545_v29 = vadd.f32 %v1544_v15, %v1496_v23 }
 0x17b   :  { %v1594_v32 = vadd.f32 %v1593_v62, %v1545_v29 }
 0x17c   :  { %v1448_v33 = vpop.f32.mrf.mxu2 }
 0x17d   :  { %v1497_v34 = vpop.f32.mrf.mxu3  ;;  %v1630_v35 = vmax.f32 %v1594_v32, 0.0  ;;  %v1449_v38 = vadd.f32 %v1448_v33, %v3164_v1 }
 0x17e   :  { %v1549_v44 = vpop.f32.mrf.mxu0 }
 0x17f   :  { %1646 = vst [vmem:[%s3389_s3 + $0x10] sm:$0xff] %v1630_v35  ;;  %v1498_v39 = vadd.f32 %v1497_v34, %v1449_v38 }
 0x181   :  { %v1598_v40 = vpop.f32.mrf.mxu1  ;;  %v1547_v41 = vadd.f32 %v1546_v28, %v1498_v39 }
 0x183   :  { %v1596_v25 = vadd.f32 %v1595_v27, %v1547_v41 }
 0x184   :  { %v1451_v42 = vpop.f32.mrf.mxu2 }
 0x185   :  { %v1500_v43 = vpop.f32.mrf.mxu3  ;;  %v1631_v45 = vmax.f32 %v1596_v25, 0.0  ;;  %v1452_v26 = vadd.f32 %v1451_v42, %v3185_v14 }
 0x186   :  { %v1551_v1 = vpop.f32.mrf.mxu0 }
 0x187   :  { %1647 = vst [vmem:[%s3389_s3 + $0x18] sm:$0xff] %v1631_v45  ;;  %v1501_v46 = vadd.f32 %v1500_v43, %v1452_v26 }
 0x189   :  { %v1600_v47 = vpop.f32.mrf.mxu1  ;;  %v1550_v20 = vadd.f32 %v1549_v44, %v1501_v46 }
 0x18b   :  { %v1599_v50 = vadd.f32 %v1598_v40, %v1550_v20 }
 0x18c   :  { %v1453_v30 = vpop.f32.mrf.mxu2 }
 0x18d   :  { %v1502_v54 = vpop.f32.mrf.mxu3  ;;  %v1632_v56 = vmax.f32 %v1599_v50, 0.0  ;;  %v1454_v59 = vadd.f32 %v1453_v30, %v3194_v4 }
 0x18e   :  { %v1554_v14 = vpop.f32.mrf.mxu0 }
 0x18f   :  { %1648 = vst [vmem:[%s3389_s3 + $0x20] sm:$0xff] %v1632_v56  ;;  %v1503_v60 = vadd.f32 %v1502_v54, %v1454_v59 }
 0x191   :  { %v1603_v61 = vpop.f32.mrf.mxu1  ;;  %v1552_v0 = vadd.f32 %v1551_v1, %v1503_v60 }
 0x193   :  { %v1601_v2 = vadd.f32 %v1600_v47, %v1552_v0 }
 0x194   :  { %v1456_v3 = vpop.f32.mrf.mxu2 }
 0x195   :  { %v1505_v6 = vpop.f32.mrf.mxu3  ;;  %v1633_v31 = vmax.f32 %v1601_v2, 0.0  ;;  %v1457_v7 = vadd.f32 %v1456_v3, %v3215_v48 }
 0x196   :  { %v1556_v4 = vpop.f32.mrf.mxu0 }
 0x197   :  { %1649 = vst [vmem:[%s3389_s3 + $0x28] sm:$0xff] %v1633_v31  ;;  %v1506_v57 = vadd.f32 %v1505_v6, %v1457_v7 }
 0x199   :  { %v1605_v8 = vpop.f32.mrf.mxu1  ;;  %v1555_v9 = vadd.f32 %v1554_v14, %v1506_v57 }
 0x19b   :  { %v1604_v11 = vadd.f32 %v1603_v61, %v1555_v9 }
 0x19c   :  { %v1458_v58 = vpop.f32.mrf.mxu2 }
 0x19d   :  { %v1507_v12 = vpop.f32.mrf.mxu3  ;;  %v1634_v13 = vmax.f32 %v1604_v11, 0.0  ;;  %v1459_v53 = vadd.f32 %v1458_v58, %v3224_v36 }
 0x19e   :  { %v1559_v48 = vpop.f32.mrf.mxu0 }
 0x19f   :  { %1650 = vst [vmem:[%s3389_s3 + $0x30] sm:$0xff] %v1634_v13  ;;  %v1508_v51 = vadd.f32 %v1507_v12, %v1459_v53 }
 0x1a1   :  { %v1608_v15 = vpop.f32.mrf.mxu1  ;;  %v1557_v62 = vadd.f32 %v1556_v4, %v1508_v51 }
 0x1a3   :  { %v1606_v16 = vadd.f32 %v1605_v8, %v1557_v62 }
 0x1a4   :  { %v1461_v17 = vpop.f32.mrf.mxu2 }
 0x1a5   :  { %v1510_v10 = vpop.f32.mrf.mxu3  ;;  %v1635_v21 = vmax.f32 %v1606_v16, 0.0  ;;  %v1462_v63 = vadd.f32 %v1461_v17, %v3245_v19 }
 0x1a6   :  { %v1561_v36 = vpop.f32.mrf.mxu0 }
 0x1a7   :  { %1651 = vst [vmem:[%s3389_s3 + $0x38] sm:$0xff] %v1635_v21  ;;  %v1511_v22 = vadd.f32 %v1510_v10, %v1462_v63 }
 0x1a9   :  { %v1610_v23 = vpop.f32.mrf.mxu1  ;;  %v1560_v28 = vadd.f32 %v1559_v48, %v1511_v22 }
 0x1ab   :  { %v1609_v27 = vadd.f32 %v1608_v15, %v1560_v28 }
 0x1ac   :  { %v1463_v29 = vpop.f32.mrf.mxu2 }
 0x1ad   :  { %v1512_v32 = vpop.f32.mrf.mxu3  ;;  %v1636_v33 = vmax.f32 %v1609_v27, 0.0  ;;  %v1464_v34 = vadd.f32 %v1463_v29, %v3254_v5 }
 0x1ae   :  { %v1564_v19 = vpop.f32.mrf.mxu0 }
 0x1af   :  { %1652 = vst [vmem:[%s3389_s3 + $0x40] sm:$0xff] %v1636_v33  ;;  %v1513_v35 = vadd.f32 %v1512_v32, %v1464_v34 }
 0x1b1   :  { %v1613_v38 = vpop.f32.mrf.mxu1  ;;  %v1562_v39 = vadd.f32 %v1561_v36, %v1513_v35 }
 0x1b3   :  { %v1611_v44 = vadd.f32 %v1610_v23, %v1562_v39 }
 0x1b4   :  { %v1466_v40 = vpop.f32.mrf.mxu2 }
 0x1b5   :  { %v1515_v41 = vpop.f32.mrf.mxu3  ;;  %v1637_v25 = vmax.f32 %v1611_v44, 0.0  ;;  %v1467_v42 = vadd.f32 %v1466_v40, %v3275_v55 }
 0x1b6   :  { %v1566_v5 = vpop.f32.mrf.mxu0 }
 0x1b7   :  { %1653 = vst [vmem:[%s3389_s3 + $0x48] sm:$0xff] %v1637_v25  ;;  %v1516_v43 = vadd.f32 %v1515_v41, %v1467_v42 }
 0x1b9   :  { %v1565_v45 = vadd.f32 %v1564_v19, %v1516_v43  ;;  %v1615_v26 = vpop.f32.mrf.mxu1 }
 0x1bb   :  { %v1614_v46 = vadd.f32 %v1613_v38, %v1565_v45 }
 0x1bc   :  { %v1468_v1 = vpop.f32.mrf.mxu2 }
 0x1bd   :  { %v1517_v47 = vpop.f32.mrf.mxu3  ;;  %v1638_v20 = vmax.f32 %v1614_v46, 0.0  ;;  %v1469_v50 = vadd.f32 %v1468_v1, %v3284_v37 }
 0x1be   :  { %v1569_v54 = vpop.f32.mrf.mxu0 }
 0x1bf   :  { %1654 = vst [vmem:[%s3389_s3 + $0x50] sm:$0xff] %v1638_v20  ;;  %v1518_v30 = vadd.f32 %v1517_v47, %v1469_v50 }
 0x1c1   :  { %v1567_v55 = vadd.f32 %v1566_v5, %v1518_v30  ;;  %v1618_v59 = vpop.f32.mrf.mxu1 }
 0x1c3   :  { %v1616_v56 = vadd.f32 %v1615_v26, %v1567_v55 }
 0x1c4   :  { %v1471_v60 = vpop.f32.mrf.mxu2 }
 0x1c5   :  { %v1520_v14 = vpop.f32.mrf.mxu3  ;;  %v1639_v61 = vmax.f32 %v1616_v56, 0.0  ;;  %v1472_v0 = vadd.f32 %v1471_v60, %v3305_v24 }
 0x1c6   :  { %v1571_v6 = vpop.f32.mrf.mxu0 }
 0x1c7   :  { %1655 = vst [vmem:[%s3389_s3 + $0x58] sm:$0xff] %v1639_v61  ;;  %v1521_v2 = vadd.f32 %v1520_v14, %v1472_v0 }
 0x1c9   :  { %v1570_v37 = vadd.f32 %v1569_v54, %v1521_v2  ;;  %v1620_v8 = vpop.f32.mrf.mxu1 }
 0x1cb   :  { %v1619_v3 = vadd.f32 %v1618_v59, %v1570_v37 }
 0x1cc   :  { %v1473_v31 = vpop.f32.mrf.mxu2 }
 0x1cd   :  { %v1522_v7 = vpop.f32.mrf.mxu3  ;;  %v1640_v57 = vmax.f32 %v1619_v3, 0.0  ;;  %v1474_v4 = vadd.f32 %v1473_v31, %v3314_v18 }
 0x1ce   :  { %v1574_v51 = vpop.f32.mrf.mxu0 }
 0x1cf   :  { %1656 = vst [vmem:[%s3389_s3 + $0x60] sm:$0xff] %v1640_v57  ;;  %v1523_v9 = vadd.f32 %v1522_v7, %v1474_v4 }
 0x1d1   :  { %v1572_v24 = vadd.f32 %v1571_v6, %v1523_v9  ;;  %v1623_v18 = vpop.f32.mrf.mxu1 }
 0x1d3   :  { %v1621_v11 = vadd.f32 %v1620_v8, %v1572_v24 }
 0x1d4   :  { %v1476_v58 = vpop.f32.mrf.mxu2 }
 0x1d5   :  { %v1525_v12 = vpop.f32.mrf.mxu3  ;;  %v1641_v13 = vmax.f32 %v1621_v11, 0.0  ;;  %v1477_v53 = vadd.f32 %v1476_v58, %v3317_v52 }
 0x1d6   :  { %v1576_v52 = vpop.f32.mrf.mxu0 }
 0x1d7   :  { %1657 = vst [vmem:[%s3389_s3 + $0x68] sm:$0xff] %v1641_v13  ;;  %v1526_v48 = vadd.f32 %v1525_v12, %v1477_v53 }
 0x1d9   :  { %v1575_v15 = vadd.f32 %v1574_v51, %v1526_v48  ;;  %v1625_v36 = vpop.f32.mrf.mxu1 }
 0x1db   :  { %v1624_v62 = vadd.f32 %v1623_v18, %v1575_v15 }
 0x1dc   :  { %v1478_v16 = vpop.f32.mrf.mxu2 }
 0x1dd   :  { %v1642_v17 = vmax.f32 %v1624_v62, 0.0  ;;  %v1479_v10 = vadd.f32 %v1478_v16, %v3320_v49  ;;  %v1527_v21 = vpop.f32.mrf.mxu3 }
 0x1df   :  { %1658 = vst [vmem:[%s3389_s3 + $0x70] sm:$0xff] %v1642_v17  ;;  %v1528_v63 = vadd.f32 %v1527_v21, %v1479_v10 }
 0x1e1   :  { %v1577_v22 = vadd.f32 %v1576_v52, %v1528_v63 }
 0x1e3   :  { %v1626_v23 = vadd.f32 %v1625_v36, %v1577_v22 }
 0x1e5   :  { %v1643_v28 = vmax.f32 %v1626_v23, 0.0 }
 0x1e7   :  { %1659 = vst [vmem:[%s3389_s3 + $0x78] sm:$0xff] %v1643_v28 }

// kernel: refine_forward.17
= control target key start
LH: loop header
LB: loop body
LE: loop exit
PB: predicated region body
PF: predicated region fallthrough
CT: control target
= control target key end

     0   :  { %s948_s12 = smov 0   ;;  %s950_s13 = smov 0   ;;  %s1112_s0 = inlined_call_operand.vmem [shape: bf16[512,256], index: 0, kind: input, shape index: {}]   ;;  %s1113_s1 = inlined_call_operand.vmem [shape: bf16[256,128], index: 1, kind: input, shape index: {}]   ;;  %s1114_s2 = inlined_call_operand.vmem [shape: f32[1,128], index: 2, kind: input, shape index: {}]   ;;  %s1115_s3 = inlined_call_operand.vmem [shape: f32[512,128], index: 3, kind: output, shape index: {}]  }
   0x1   :  { %s952_s14 = smov 0  }
   0x2 LB: > { %s25_s15 = sadd.s32 1, %s922_s13  ;;  %p694_p0 = scmp.ge.s32.totalorder %s926_s14, 1  ;;  %s926_s14 = sphi %s952_s14, %s13_s14   ;;  %s922_s13 = sphi %s950_s13, %s1117_s13   ;;  %s918_s12 = sphi %s948_s12, %s1116_s12  }
   0x3   : > { %p27_p1 = scmp.ge.s32.totalorder %s25_s15, 4  ;;  %p170_p2 = scmp.lt.s32.totalorder %s926_s14, 5 }
   0x5   : > { %s1119_s15 = smov (%p27_p1, %s25_s15), 0  ;;  %p171_p3 = pnand %p694_p0, %p170_p2 }
   0x6   : > { %s695_s28 = sshll.u32 (!%p171_p3), %s918_s12, 4 }
   0x7   : > { %174 = sbr.rel (%p171_p3) target bundleno = 239 (0xef), region = 32  ;;  %p206_p4 = scmp.lt.s32.totalorder (!%p171_p3), %s695_s28, 63 }
   0xc   : > { %v854_v0 = vld [vmem:[%s1113_s1 + $0x38] sm:$0xff]  ;;  %v853_v2 = vld [vmem:[%s1113_s1 + $0x30] sm:$0xff]  ;;  %v852_v4 = vld [vmem:[%s1113_s1 + $0x28] sm:$0xff]  ;;  %s1121_s28 = smov (!%p206_p4, %s695_s28), 63 }
   0xd   : > { %v862_v1 = vld [vmem:[%s1113_s1 + $0x78] sm:$0xff]  ;;  %456 = vmatpush.bf16.msra.mxu0 %v854_v0  ;;  %863 = vmatpush.bf16.msra.mxu2 %v854_v0  ;;  %v861_v3 = vld [vmem:[%s1113_s1 + $0x70] sm:$0xff]  ;;  %v860_v5 = vld [vmem:[%s1113_s1 + $0x68] sm:$0xff]  ;;  %s830_s17 = sshll.u32 %s1121_s28, 3 }
   0xe   : > { %505 = vmatpush.bf16.msra.mxu1 %v862_v1  ;;  %871 = vmatpush.bf16.msra.mxu3 %v862_v1  ;;  %v851_v6 = vld [vmem:[%s1113_s1 + $0x20] sm:$0xff]  ;;  %v850_v8 = vld [vmem:[%s1113_s1 + $0x18] sm:$0xff]  ;;  %v849_v10 = vld [vmem:[%s1113_s1 + $0x10] sm:$0xff]  ;;  %s1016_s22 = scalar_lea.vmem %s1112_s0, %s830_s17  ;;  %s1070_s7 = scalar_lea.vmem %s1115_s3, %s830_s17 }
   0xf   : > { %v859_v7 = vld [vmem:[%s1113_s1 + $0x60] sm:$0xff]  ;;  %v858_v9 = vld [vmem:[%s1113_s1 + $0x58] sm:$0xff]  ;;  %v857_v11 = vld [vmem:[%s1113_s1 + $0x50] sm:$0xff] }
  0x10   : > { %v848_v12 = vld [vmem:[%s1113_s1 + $0x8] sm:$0xff]  ;;  %v847_v14 = vld [vmem:[%s1113_s1] sm:$0xff]  ;;  %v710_v28 = vld [vmem:[%s1016_s22 + $0x10] sm:$0xf] }
  0x11   : > { %457 = vmatpush.bf16.msra.mxu0 %v853_v2  ;;  %864 = vmatpush.bf16.msra.mxu2 %v853_v2  ;;  %v856_v13 = vld [vmem:[%s1113_s1 + $0x48] sm:$0xff]  ;;  %v855_v15 = vld [vmem:[%s1113_s1 + $0x40] sm:$0xff]  ;;  %v834_v29 = vld [vmem:[%s1016_s22 + $0x14] sm:$0xf0] }
  0x12   : > { %506 = vmatpush.bf16.msra.mxu1 %v861_v3  ;;  %872 = vmatpush.bf16.msra.mxu3 %v861_v3  ;;  %v702_v16 = vld [vmem:[%s1016_s22] sm:$0xf]  ;;  %v832_v17 = vld [vmem:[%s1016_s22 + $0x4] sm:$0xf0]  ;;  %v831_v20 = vld [vmem:[%s1016_s22 + $0x4] sm:$0xf]  ;;  %v711_v36 = vor.u32 %v834_v29, %v710_v28 }
  0x13   : > { %v734_v18 = vld [vmem:[%s1016_s22 + $0x40] sm:$0xf]  ;;  %v840_v19 = vld [vmem:[%s1016_s22 + $0x44] sm:$0xf0]  ;;  %v704_v21 = vld [vmem:[%s1016_s22 + $0x8] sm:$0xf0]  ;;  %v703_v24 = vor.u32 %v832_v17, %v702_v16 }
  0x14   : > { %v839_v22 = vld [vmem:[%s1016_s22 + $0x44] sm:$0xf]  ;;  %v736_v23 = vld [vmem:[%s1016_s22 + $0x48] sm:$0xf0]  ;;  %v735_v25 = vor.u32 %v840_v19, %v734_v18  ;;  %v707_v26 = vor.u32 %v831_v20, %v704_v21  ;;  %v742_v30 = vld [vmem:[%s1016_s22 + $0x50] sm:$0xf] }
  0x15   : > { %458 = vmatpush.bf16.msra.mxu0 %v852_v4  ;;  %865 = vmatpush.bf16.msra.mxu2 %v852_v4  ;;  %v739_v27 = vor.u32 %v839_v22, %v736_v23  ;;  %v842_v31 = vld [vmem:[%s1016_s22 + $0x54] sm:$0xf0]  ;;  %v833_v32 = vld [vmem:[%s1016_s22 + $0x14] sm:$0xf]  ;;  %v712_v33 = vld [vmem:[%s1016_s22 + $0x18] sm:$0xf0] }
  0x16   : > { %507 = vmatpush.bf16.msra.mxu1 %v860_v5  ;;  %873 = vmatpush.bf16.msra.mxu3 %v860_v5  ;;  %v841_v34 = vld [vmem:[%s1016_s22 + $0x54] sm:$0xf]  ;;  %v744_v35 = vld [vmem:[%s1016_s22 + $0x58] sm:$0xf0]  ;;  %v743_v37 = vor.u32 %v842_v31, %v742_v30  ;;  %v715_v38 = vor.u32 %v833_v32, %v712_v33  ;;  %v718_v40 = vld [vmem:[%s1016_s22 + $0x20] sm:$0xf] }
  0x17   : > { %v747_v39 = vor.u32 %v841_v34, %v744_v35  ;;  %v836_v41 = vld [vmem:[%s1016_s22 + $0x24] sm:$0xf0]  ;;  %v750_v42 = vld [vmem:[%s1016_s22 + $0x60] sm:$0xf]  ;;  %v835_v44 = vld [vmem:[%s1016_s22 + $0x24] sm:$0xf] }
  0x18   : > { %v844_v43 = vld [vmem:[%s1016_s22 + $0x64] sm:$0xf0]  ;;  %v720_v45 = vld [vmem:[%s1016_s22 + $0x28] sm:$0xf0]  ;;  %v843_v46 = vld [vmem:[%s1016_s22 + $0x64] sm:$0xf]  ;;  %v719_v48 = vor.u32 %v836_v41, %v718_v40 }
  0x19   : > { %459 = vmatpush.bf16.msra.mxu0 %v851_v6  ;;  %866 = vmatpush.bf16.msra.mxu2 %v851_v6  ;;  %v752_v47 = vld [vmem:[%s1016_s22 + $0x68] sm:$0xf0]  ;;  %v751_v49 = vor.u32 %v844_v43, %v750_v42  ;;  %v723_v50 = vor.u32 %v835_v44, %v720_v45  ;;  %v726_v52 = vld [vmem:[%s1016_s22 + $0x30] sm:$0xf]  ;;  %v838_v53 = vld [vmem:[%s1016_s22 + $0x34] sm:$0xf0] }
  0x1a   : > { %508 = vmatpush.bf16.msra.mxu1 %v859_v7  ;;  %874 = vmatpush.bf16.msra.mxu3 %v859_v7  ;;  %v755_v51 = vor.u32 %v843_v46, %v752_v47  ;;  %v758_v54 = vld [vmem:[%s1016_s22 + $0x70] sm:$0xf]  ;;  %v846_v55 = vld [vmem:[%s1016_s22 + $0x74] sm:$0xf0]  ;;  %v837_v56 = vld [vmem:[%s1016_s22 + $0x34] sm:$0xf]  ;;  %v727_v60 = vor.u32 %v838_v53, %v726_v52 }
  0x1b   : > { %v728_v57 = vld [vmem:[%s1016_s22 + $0x38] sm:$0xf0]  ;;  %v845_v58 = vld [vmem:[%s1016_s22 + $0x74] sm:$0xf]  ;;  %v759_v61 = vor.u32 %v846_v55, %v758_v54  ;;  %v1062_v0 = vld [vmem:[%s1114_s2] ss:$0 sm:$0xff] }
  0x1c   : > { %v760_v59 = vld [vmem:[%s1016_s22 + $0x78] sm:$0xf0]  ;;  %v731_v62 = vor.u32 %v837_v56, %v728_v57 }
  0x1d   : > { %460 = vmatpush.bf16.msra.mxu0 %v850_v8  ;;  %867 = vmatpush.bf16.msra.mxu2 %v850_v8  ;;  %v763_v63 = vor.u32 %v845_v58, %v760_v59 }
  0x1e   : > { %509 = vmatpush.bf16.msra.mxu1 %v858_v9  ;;  %875 = vmatpush.bf16.msra.mxu3 %v858_v9 }
  0x21   : > { %461 = vmatpush.bf16.msra.mxu0 %v849_v10  ;;  %868 = vmatpush.bf16.msra.mxu2 %v849_v10 }
  0x22   : > { %510 = vmatpush.bf16.msra.mxu1 %v857_v11  ;;  %876 = vmatpush.bf16.msra.mxu3 %v857_v11 }
  0x25   : > { %462 = vmatpush.bf16.msra.mxu0 %v848_v12  ;;  %869 = vmatpush.bf16.msra.mxu2 %v848_v12 }
  0x26   : > { %511 = vmatpush.bf16.msra.mxu1 %v856_v13  ;;  %877 = vmatpush.bf16.msra.mxu3 %v856_v13 }
  0x29   : > { %463 = vmatpush.bf16.msra.mxu0 %v847_v14  ;;  %870 = vmatpush.bf16.msra.mxu2 %v847_v14 }
  0x2a   : > { %512 = vmatpush.bf16.msra.mxu1 %v855_v15  ;;  %878 = vmatpush.bf16.msra.mxu3 %v855_v15 }
  0x2c   : > { %464 = vmatmul.bf16.vlgmr.msra.gmra.mxu0 %v703_v24  ;;  %484 = vmatmul.bf16.vlgmr.msra.gmra.mxu2 %v735_v25 }
  0x2d   : > { %513 = vmatmul.bf16.vlgmr.msra.gmra.mxu1 %v707_v26  ;;  %533 = vmatmul.bf16.vlgmr.msra.gmra.mxu3 %v739_v27 }
  0x3c   : > { %469 = vmatmul.bf16.gmra.mxu0 %v711_v36  ;;  %489 = vmatmul.bf16.gmra.mxu2 %v743_v37 }
  0x3d   : > { %518 = vmatmul.bf16.gmra.mxu1 %v715_v38  ;;  %538 = vmatmul.bf16.gmra.mxu3 %v747_v39 }
  0x4c   : > { %474 = vmatmul.bf16.gmra.mxu0 %v719_v48  ;;  %494 = vmatmul.bf16.gmra.mxu2 %v751_v49 }
  0x4d   : > { %523 = vmatmul.bf16.gmra.mxu1 %v723_v50  ;;  %543 = vmatmul.bf16.gmra.mxu3 %v755_v51 }
  0x5c   : > { %479 = vmatmul.bf16.gmra.mxu0 %v727_v60  ;;  %499 = vmatmul.bf16.gmra.mxu2 %v759_v61 }
  0x5d   : > { %528 = vmatmul.bf16.gmra.mxu1 %v731_v62  ;;  %548 = vmatmul.bf16.gmra.mxu3 %v763_v63 }
  0xa9   : > { %v465_v1 = vpop.f32.mrf.mxu0 }
  0xaa   : > { %v466_v2 = vadd.f32 %v1062_v0, %v465_v1  ;;  %v514_v3 = vpop.f32.mrf.mxu1 }
  0xac   : > { %v515_v4 = vadd.f32 %v514_v3, %v466_v2 }
  0xae   : > { %v554_v5 = vmax.f32 %v515_v4, 0.0 }
  0xaf   : > { %v485_v6 = vpop.f32.mrf.mxu2 }
  0xb0   : > { %570 = vst [vmem:[%s1070_s7] sm:$0xff] %v554_v5  ;;  %v486_v7 = vadd.f32 %v1062_v0, %v485_v6  ;;  %v534_v8 = vpop.f32.mrf.mxu3 }
  0xb1   : > { %v467_v9 = vpop.f32.mrf.mxu0 }
  0xb2   : > { %v535_v10 = vadd.f32 %v534_v8, %v486_v7  ;;  %v468_v11 = vadd.f32 %v1062_v0, %v467_v9  ;;  %v516_v12 = vpop.f32.mrf.mxu1 }
  0xb4   : > { %v562_v13 = vmax.f32 %v535_v10, 0.0  ;;  %v517_v14 = vadd.f32 %v516_v12, %v468_v11 }
  0xb6   : > { %578 = vst [vmem:[%s1070_s7 + $0x40] sm:$0xff] %v562_v13  ;;  %v555_v15 = vmax.f32 %v517_v14, 0.0 }
  0xb7   : > { %v487_v16 = vpop.f32.mrf.mxu2 }
  0xb8   : > { %571 = vst [vmem:[%s1070_s7 + $0x8] sm:$0xff] %v555_v15  ;;  %v488_v17 = vadd.f32 %v1062_v0, %v487_v16  ;;  %v536_v18 = vpop.f32.mrf.mxu3 }
  0xb9   : > { %v470_v19 = vpop.f32.mrf.mxu0 }
  0xba   : > { %v537_v20 = vadd.f32 %v536_v18, %v488_v17  ;;  %v471_v21 = vadd.f32 %v1062_v0, %v470_v19  ;;  %v519_v22 = vpop.f32.mrf.mxu1 }
  0xbc   : > { %v563_v23 = vmax.f32 %v537_v20, 0.0  ;;  %v520_v24 = vadd.f32 %v519_v22, %v471_v21 }
  0xbe   : > { %579 = vst [vmem:[%s1070_s7 + $0x48] sm:$0xff] %v563_v23  ;;  %v556_v25 = vmax.f32 %v520_v24, 0.0 }
  0xbf   : > { %v490_v26 = vpop.f32.mrf.mxu2 }
  0xc0   : > { %572 = vst [vmem:[%s1070_s7 + $0x10] sm:$0xff] %v556_v25  ;;  %v491_v27 = vadd.f32 %v1062_v0, %v490_v26  ;;  %v539_v28 = vpop.f32.mrf.mxu3 }
  0xc1   : > { %v472_v29 = vpop.f32.mrf.mxu0 }
  0xc2   : > { %v540_v30 = vadd.f32 %v539_v28, %v491_v27  ;;  %v473_v31 = vadd.f32 %v1062_v0, %v472_v29  ;;  %v521_v32 = vpop.f32.mrf.mxu1 }
  0xc4   : > { %v564_v33 = vmax.f32 %v540_v30, 0.0  ;;  %v522_v34 = vadd.f32 %v521_v32, %v473_v31 }
  0xc6   : > { %580 = vst [vmem:[%s1070_s7 + $0x50] sm:$0xff] %v564_v33  ;;  %v557_v35 = vmax.f32 %v522_v34, 0.0 }
  0xc7   : > { %v492_v36 = vpop.f32.mrf.mxu2 }
  0xc8   : > { %573 = vst [vmem:[%s1070_s7 + $0x18] sm:$0xff] %v557_v35  ;;  %v493_v37 = vadd.f32 %v1062_v0, %v492_v36  ;;  %v541_v38 = vpop.f32.mrf.mxu3 }
  0xc9   : > { %v475_v39 = vpop.f32.mrf.mxu0 }
  0xca   : > { %v542_v40 = vadd.f32 %v541_v38, %v493_v37  ;;  %v476_v41 = vadd.f32 %v1062_v0, %v475_v39  ;;  %v524_v42 = vpop.f32.mrf.mxu1 }
  0xcc   : > { %v565_v43 = vmax.f32 %v542_v40, 0.0  ;;  %v525_v44 = vadd.f32 %v524_v42, %v476_v41 }
  0xce   : > { %581 = vst [vmem:[%s1070_s7 + $0x58] sm:$0xff] %v565_v43  ;;  %v558_v45 = vmax.f32 %v525_v44, 0.0 }
  0xcf   : > { %v495_v46 = vpop.f32.mrf.mxu2 }
  0xd0   : > { %574 = vst [vmem:[%s1070_s7 + $0x20] sm:$0xff] %v558_v45  ;;  %v496_v47 = vadd.f32 %v1062_v0, %v495_v46  ;;  %v544_v48 = vpop.f32.mrf.mxu3 }
  0xd1   : > { %v477_v49 = vpop.f32.mrf.mxu0 }
  0xd2   : > { %v545_v50 = vadd.f32 %v544_v48, %v496_v47  ;;  %v478_v51 = vadd.f32 %v1062_v0, %v477_v49  ;;  %v526_v52 = vpop.f32.mrf.mxu1 }
  0xd4   : > { %v566_v53 = vmax.f32 %v545_v50, 0.0  ;;  %v527_v54 = vadd.f32 %v526_v52, %v478_v51 }
  0xd6   : > { %582 = vst [vmem:[%s1070_s7 + $0x60] sm:$0xff] %v566_v53  ;;  %v559_v55 = vmax.f32 %v527_v54, 0.0 }
  0xd7   : > { %v497_v56 = vpop.f32.mrf.mxu2 }
  0xd8   : > { %575 = vst [vmem:[%s1070_s7 + $0x28] sm:$0xff] %v559_v55  ;;  %v498_v57 = vadd.f32 %v1062_v0, %v497_v56  ;;  %v546_v58 = vpop.f32.mrf.mxu3 }
  0xd9   : > { %v480_v59 = vpop.f32.mrf.mxu0 }
  0xda   : > { %v547_v60 = vadd.f32 %v546_v58, %v498_v57  ;;  %v481_v61 = vadd.f32 %v1062_v0, %v480_v59  ;;  %v529_v62 = vpop.f32.mrf.mxu1 }
  0xdc   : > { %v567_v63 = vmax.f32 %v547_v60, 0.0  ;;  %v530_v1 = vadd.f32 %v529_v62, %v481_v61 }
  0xde   : > { %583 = vst [vmem:[%s1070_s7 + $0x68] sm:$0xff] %v567_v63  ;;  %v560_v2 = vmax.f32 %v530_v1, 0.0 }
  0xdf   : > { %v500_v3 = vpop.f32.mrf.mxu2 }
  0xe0   : > { %576 = vst [vmem:[%s1070_s7 + $0x30] sm:$0xff] %v560_v2  ;;  %v501_v4 = vadd.f32 %v1062_v0, %v500_v3  ;;  %v549_v5 = vpop.f32.mrf.mxu3 }
  0xe1   : > { %v482_v6 = vpop.f32.mrf.mxu0 }
  0xe2   : > { %v550_v7 = vadd.f32 %v549_v5, %v501_v4  ;;  %v483_v8 = vadd.f32 %v1062_v0, %v482_v6  ;;  %v531_v9 = vpop.f32.mrf.mxu1 }
  0xe4   : > { %v568_v10 = vmax.f32 %v550_v7, 0.0  ;;  %v532_v11 = vadd.f32 %v531_v9, %v483_v8 }
  0xe6   : > { %584 = vst [vmem:[%s1070_s7 + $0x70] sm:$0xff] %v568_v10  ;;  %v561_v12 = vmax.f32 %v532_v11, 0.0 }
  0xe7   : > { %v502_v13 = vpop.f32.mrf.mxu2 }
  0xe8   : > { %577 = vst [vmem:[%s1070_s7 + $0x38] sm:$0xff] %v561_v12  ;;  %v503_v14 = vadd.f32 %v1062_v0, %v502_v13  ;;  %v551_v15 = vpop.f32.mrf.mxu3 }
  0xea   : > { %v552_v16 = vadd.f32 %v551_v15, %v503_v14 }
  0xec   : > { %v569_v17 = vmax.f32 %v552_v16, 0.0 }
  0xee   : > { %585 = vst [vmem:[%s1070_s7 + $0x78] sm:$0xff] %v569_v17 }
  0xef PF: > { %s13_s14 = sadd.s32 1, %s926_s14   ;;  %s1116_s12 = smov %s922_s13 }
  0xf0   : > { %p10_p5 = scmp.ge.s32.totalorder %s13_s14, 6   ;;  %s1117_s13 = smov %s1119_s15 }
  0xf2   :  { %12 = sbr.rel (!%p10_p5) target bundleno = 2 (0x2), region = 68 }

// kernel: refine_forward.18
= control target key start
LH: loop header
LB: loop body
LE: loop exit
PB: predicated region body
PF: predicated region fallthrough
CT: control target
= control target key end

     0   :  { %s2875_s12 = smov 0   ;;  %s2877_s13 = smov 0   ;;  %s3452_s0 = inlined_call_operand.vmem [shape: bf16[512,1280], index: 0, kind: input, shape index: {}]   ;;  %s3453_s1 = inlined_call_operand.vmem [shape: bf16[1280,128], index: 1, kind: input, shape index: {}]   ;;  %s3454_s2 = inlined_call_operand.vmem [shape: f32[1,128], index: 2, kind: input, shape index: {}]   ;;  %s3455_s3 = inlined_call_operand.vmem [shape: f32[512,128], index: 3, kind: output, shape index: {}]  }
   0x1   :  { %s2879_s14 = smov 0  }
   0x2 LB: > { %s25_s15 = sadd.s32 1, %s2849_s13  ;;  %p1982_p0 = scmp.ge.s32.totalorder %s2853_s14, 1  ;;  %s2853_s14 = sphi %s2879_s14, %s13_s14   ;;  %s2849_s13 = sphi %s2877_s13, %s3457_s13   ;;  %s2845_s12 = sphi %s2875_s12, %s3456_s12  }
   0x3   : > { %p27_p1 = scmp.ge.s32.totalorder %s25_s15, 4  ;;  %p170_p2 = scmp.lt.s32.totalorder %s2853_s14, 5 }
   0x5   : > { %s3459_s15 = smov (%p27_p1, %s25_s15), 0  ;;  %p171_p3 = pnand %p1982_p0, %p170_p2 }
   0x6   : > { %s1983_s28 = sshll.u32 (!%p171_p3), %s2845_s12, 4 }
   0x7   : > { %174 = sbr.rel (%p171_p3) target bundleno = 499 (0x1f3), region = 32  ;;  %p206_p4 = scmp.lt.s32.totalorder (!%p171_p3), %s1983_s28, 63 }
   0xc   : > { %v2716_v0 = vld [vmem:[%s3453_s1 + $0x38] sm:$0xff]  ;;  %v2715_v2 = vld [vmem:[%s3453_s1 + $0x30] sm:$0xff]  ;;  %v2714_v4 = vld [vmem:[%s3453_s1 + $0x28] sm:$0xff]  ;;  %s3461_s28 = smov (!%p206_p4, %s1983_s28), 63 }
   0xd   : > { %v2724_v1 = vld [vmem:[%s3453_s1 + $0x78] sm:$0xff]  ;;  %2789 = vmatpush.bf16.msra.mxu2 %v2716_v0  ;;  %v2723_v3 = vld [vmem:[%s3453_s1 + $0x70] sm:$0xff]  ;;  %1352 = vmatpush.bf16.msra.mxu0 %v2716_v0  ;;  %v2722_v5 = vld [vmem:[%s3453_s1 + $0x68] sm:$0xff]  ;;  %s2805_s17 = smul.u32 40, %s3461_s28 }
   0xe   : > { %2797 = vmatpush.bf16.msra.mxu3 %v2724_v1  ;;  %1401 = vmatpush.bf16.msra.mxu1 %v2724_v1  ;;  %v2713_v6 = vld [vmem:[%s3453_s1 + $0x20] sm:$0xff]  ;;  %v2712_v8 = vld [vmem:[%s3453_s1 + $0x18] sm:$0xff]  ;;  %v2711_v10 = vld [vmem:[%s3453_s1 + $0x10] sm:$0xff] }
   0xf   : > { %v2721_v7 = vld [vmem:[%s3453_s1 + $0x60] sm:$0xff]  ;;  %v2720_v9 = vld [vmem:[%s3453_s1 + $0x58] sm:$0xff]  ;;  %v2719_v11 = vld [vmem:[%s3453_s1 + $0x50] sm:$0xff]  ;;  %s2944_s24 = scalar_lea.vmem %s3452_s0, %s2805_s17 }
  0x10   : > { %v2710_v12 = vld [vmem:[%s3453_s1 + $0x8] sm:$0xff]  ;;  %v2709_v14 = vld [vmem:[%s3453_s1] sm:$0xff]  ;;  %v2732_v20 = vld [vmem:[%s3453_s1 + $0xb8] sm:$0xff] }
  0x11   : > { %2790 = vmatpush.bf16.msra.mxu2 %v2715_v2  ;;  %1353 = vmatpush.bf16.msra.mxu0 %v2715_v2  ;;  %v2718_v13 = vld [vmem:[%s3453_s1 + $0x48] sm:$0xff]  ;;  %v2717_v15 = vld [vmem:[%s3453_s1 + $0x40] sm:$0xff]  ;;  %v2740_v23 = vld [vmem:[%s3453_s1 + $0xf8] sm:$0xff] }
  0x12   : > { %2798 = vmatpush.bf16.msra.mxu3 %v2723_v3  ;;  %1402 = vmatpush.bf16.msra.mxu1 %v2723_v3  ;;  %v2149_v16 = vld [vmem:[%s2944_s24 + $0x140] sm:$0xf]  ;;  %v2674_v17 = vld [vmem:[%s2944_s24 + $0x164] sm:$0xf0]  ;;  %v2669_v18 = vld [vmem:[%s2944_s24 + $0x144] sm:$0xf] }
  0x13   : > { %v2151_v19 = vld [vmem:[%s2944_s24 + $0x168] sm:$0xf0]  ;;  %v1989_v21 = vld [vmem:[%s2944_s24] sm:$0xf]  ;;  %v2634_v22 = vld [vmem:[%s2944_s24 + $0x24] sm:$0xf0]  ;;  %v2150_v26 = vor.u32 %v2674_v17, %v2149_v16 }
  0x14   : > { %v2629_v24 = vld [vmem:[%s2944_s24 + $0x4] sm:$0xf]  ;;  %v1991_v25 = vld [vmem:[%s2944_s24 + $0x28] sm:$0xf0]  ;;  %v2154_v27 = vor.u32 %v2669_v18, %v2151_v19  ;;  %v1990_v28 = vor.u32 %v2634_v22, %v1989_v21  ;;  %v2756_v29 = vld [vmem:[%s3453_s1 + $0x178] sm:$0xff] }
  0x15   : > { %2791 = vmatpush.bf16.msra.mxu2 %v2714_v4  ;;  %1354 = vmatpush.bf16.msra.mxu0 %v2714_v4  ;;  %v1994_v30 = vor.u32 %v2629_v24, %v1991_v25  ;;  %v2731_v31 = vld [vmem:[%s3453_s1 + $0xb0] sm:$0xff]  ;;  %v2748_v33 = vld [vmem:[%s3453_s1 + $0x138] sm:$0xff]  ;;  %v2730_v35 = vld [vmem:[%s3453_s1 + $0xa8] sm:$0xff] }
  0x16   : > { %2799 = vmatpush.bf16.msra.mxu3 %v2722_v5  ;;  %1403 = vmatpush.bf16.msra.mxu1 %v2722_v5  ;;  %v2739_v32 = vld [vmem:[%s3453_s1 + $0xf0] sm:$0xff]  ;;  %v2738_v36 = vld [vmem:[%s3453_s1 + $0xe8] sm:$0xff]  ;;  %v2729_v39 = vld [vmem:[%s3453_s1 + $0xa0] sm:$0xff] }
  0x17   : > { %v2755_v34 = vld [vmem:[%s3453_s1 + $0x170] sm:$0xff]  ;;  %v2754_v38 = vld [vmem:[%s3453_s1 + $0x168] sm:$0xff]  ;;  %v2737_v40 = vld [vmem:[%s3453_s1 + $0xe0] sm:$0xff] }
  0x18   : > { %v2747_v37 = vld [vmem:[%s3453_s1 + $0x130] sm:$0xff]  ;;  %v2746_v41 = vld [vmem:[%s3453_s1 + $0x128] sm:$0xff]  ;;  %v2684_v43 = vld [vmem:[%s2944_s24 + $0x1b4] sm:$0xf0] }
  0x19   : > { %2792 = vmatpush.bf16.msra.mxu2 %v2713_v6  ;;  %1355 = vmatpush.bf16.msra.mxu0 %v2713_v6  ;;  %v2189_v42 = vld [vmem:[%s2944_s24 + $0x190] sm:$0xf]  ;;  %v2679_v44 = vld [vmem:[%s2944_s24 + $0x194] sm:$0xf]  ;;  %v2191_v45 = vld [vmem:[%s2944_s24 + $0x1b8] sm:$0xf0] }
  0x1a   : > { %2800 = vmatpush.bf16.msra.mxu3 %v2721_v7  ;;  %1404 = vmatpush.bf16.msra.mxu1 %v2721_v7  ;;  %v2029_v46 = vld [vmem:[%s2944_s24 + $0x50] sm:$0xf]  ;;  %v2753_v47 = vld [vmem:[%s3453_s1 + $0x160] sm:$0xff]  ;;  %v2644_v48 = vld [vmem:[%s2944_s24 + $0x74] sm:$0xf0]  ;;  %v2190_v54 = vor.u32 %v2684_v43, %v2189_v42  ;;  %v2194_v55 = vor.u32 %v2679_v44, %v2191_v45 }
  0x1b   : > { %v2639_v49 = vld [vmem:[%s2944_s24 + $0x54] sm:$0xf]  ;;  %v2728_v50 = vld [vmem:[%s3453_s1 + $0x98] sm:$0xff]  ;;  %v2745_v53 = vld [vmem:[%s3453_s1 + $0x120] sm:$0xff]  ;;  %v2030_v56 = vor.u32 %v2644_v48, %v2029_v46 }
  0x1c   : > { %v2031_v51 = vld [vmem:[%s2944_s24 + $0x78] sm:$0xf0]  ;;  %v2727_v59 = vld [vmem:[%s3453_s1 + $0x90] sm:$0xff]  ;;  %v2726_v62 = vld [vmem:[%s3453_s1 + $0x88] sm:$0xff] }
  0x1d   : > { %2793 = vmatpush.bf16.msra.mxu2 %v2712_v8  ;;  %1356 = vmatpush.bf16.msra.mxu0 %v2712_v8  ;;  %v2736_v52 = vld [vmem:[%s3453_s1 + $0xd8] sm:$0xff]  ;;  %v2034_v58 = vor.u32 %v2639_v49, %v2031_v51  ;;  %v2735_v60 = vld [vmem:[%s3453_s1 + $0xd0] sm:$0xff]  ;;  %v2734_v0 = vld [vmem:[%s3453_s1 + $0xc8] sm:$0xff] }
  0x1e   : > { %2801 = vmatpush.bf16.msra.mxu3 %v2720_v9  ;;  %1405 = vmatpush.bf16.msra.mxu1 %v2720_v9  ;;  %v2752_v57 = vld [vmem:[%s3453_s1 + $0x158] sm:$0xff]  ;;  %v2751_v63 = vld [vmem:[%s3453_s1 + $0x150] sm:$0xff]  ;;  %v2750_v2 = vld [vmem:[%s3453_s1 + $0x148] sm:$0xff] }
  0x1f   : > { %v2744_v61 = vld [vmem:[%s3453_s1 + $0x118] sm:$0xff]  ;;  %v2743_v1 = vld [vmem:[%s3453_s1 + $0x110] sm:$0xff]  ;;  %v2725_v3 = vld [vmem:[%s3453_s1 + $0x80] sm:$0xff] }
  0x20   : > { %v2733_v4 = vld [vmem:[%s3453_s1 + $0xc0] sm:$0xff]  ;;  %v2742_v5 = vld [vmem:[%s3453_s1 + $0x108] sm:$0xff]  ;;  %v2772_v21 = vld [vmem:[%s3453_s1 + $0x1f8] sm:$0xff] }
  0x21   : > { %2794 = vmatpush.bf16.msra.mxu2 %v2711_v10  ;;  %1357 = vmatpush.bf16.msra.mxu0 %v2711_v10  ;;  %v2229_v6 = vld [vmem:[%s2944_s24 + $0x1e0] sm:$0xf]  ;;  %v2694_v7 = vld [vmem:[%s2944_s24 + $0x204] sm:$0xf0]  ;;  %v2689_v8 = vld [vmem:[%s2944_s24 + $0x1e4] sm:$0xf] }
  0x22   : > { %2802 = vmatpush.bf16.msra.mxu3 %v2719_v11  ;;  %1406 = vmatpush.bf16.msra.mxu1 %v2719_v11  ;;  %v2231_v9 = vld [vmem:[%s2944_s24 + $0x208] sm:$0xf0]  ;;  %v2069_v10 = vld [vmem:[%s2944_s24 + $0xa0] sm:$0xf]  ;;  %v2654_v11 = vld [vmem:[%s2944_s24 + $0xc4] sm:$0xf0] }
  0x23   : > { %v2234_v16 = vor.u32 %v2689_v8, %v2231_v9  ;;  %v2070_v17 = vor.u32 %v2654_v11, %v2069_v10  ;;  %v2749_v19 = vld [vmem:[%s3453_s1 + $0x140] sm:$0xff]  ;;  %v2780_v22 = vld [vmem:[%s3453_s1 + $0x238] sm:$0xff]  ;;  %v2269_v24 = vld [vmem:[%s2944_s24 + $0x230] sm:$0xf] }
  0x24   : > { %v2704_v25 = vld [vmem:[%s2944_s24 + $0x254] sm:$0xf0]  ;;  %v2630_v42 = vld [vmem:[%s2944_s24 + $0xc] sm:$0xf]  ;;  %v1999_v43 = vld [vmem:[%s2944_s24 + $0x30] sm:$0xf0] }
  0x25   : > { %2795 = vmatpush.bf16.msra.mxu2 %v2710_v12  ;;  %1358 = vmatpush.bf16.msra.mxu0 %v2710_v12  ;;  %v2649_v12 = vld [vmem:[%s2944_s24 + $0xa4] sm:$0xf]  ;;  %v2005_v44 = vld [vmem:[%s2944_s24 + $0x10] sm:$0xf]  ;;  %v2636_v45 = vld [vmem:[%s2944_s24 + $0x34] sm:$0xf0]  ;;  %v2002_v49 = vor.u32 %v2630_v42, %v1999_v43 }
  0x26   : > { %2803 = vmatpush.bf16.msra.mxu3 %v2718_v13  ;;  %1407 = vmatpush.bf16.msra.mxu1 %v2718_v13  ;;  %v2071_v13 = vld [vmem:[%s2944_s24 + $0xc8] sm:$0xf0]  ;;  %v2631_v46 = vld [vmem:[%s2944_s24 + $0x14] sm:$0xf]  ;;  %v2077_v8 = vld [vmem:[%s2944_s24 + $0xa8] sm:$0xf] }
  0x27   : > { %v2074_v18 = vor.u32 %v2649_v12, %v2071_v13  ;;  %v2655_v9 = vld [vmem:[%s2944_s24 + $0xcc] sm:$0xf0]  ;;  %v2650_v10 = vld [vmem:[%s2944_s24 + $0xac] sm:$0xf]  ;;  %v2079_v11 = vld [vmem:[%s2944_s24 + $0xd0] sm:$0xf0] }
  0x28   : > { %v2085_v12 = vld [vmem:[%s2944_s24 + $0xb0] sm:$0xf]  ;;  %v2656_v13 = vld [vmem:[%s2944_s24 + $0xd4] sm:$0xf0] }
  0x29   : > { %2796 = vmatpush.bf16.msra.mxu2 %v2709_v14  ;;  %1359 = vmatpush.bf16.msra.mxu0 %v2709_v14  ;;  %v2741_v14 = vld [vmem:[%s3453_s1 + $0x100] sm:$0xff]  ;;  %v2775_v42 = vld [vmem:[%s3453_s1 + $0x210] sm:$0xff] }
  0x2a   : > { %2804 = vmatpush.bf16.msra.mxu3 %v2717_v15  ;;  %1408 = vmatpush.bf16.msra.mxu1 %v2717_v15  ;;  %v2230_v15 = vor.u32 %v2694_v7, %v2229_v6  ;;  %v2777_v6 = vld [vmem:[%s3453_s1 + $0x220] sm:$0xff]  ;;  %v2165_v43 = vld [vmem:[%s2944_s24 + $0x150] sm:$0xf] }
  0x2b   : > { %v2785_v7 = vld [vmem:[%s3453_s1 + $0x260] sm:$0xff] }
  0x2c   : > { %1380 = vmatmul.bf16.vlgmr.msra.gmra.mxu2 %v2150_v26  ;;  %1360 = vmatmul.bf16.vlgmr.msra.gmra.mxu0 %v1990_v28  ;;  %v2699_v26 = vld [vmem:[%s2944_s24 + $0x234] sm:$0xf]  ;;  %v2109_v28 = vld [vmem:[%s2944_s24 + $0xf0] sm:$0xf] }
  0x2d   : > { %1450 = vmatpush.bf16.msrb.mxu2 %v2732_v20  ;;  %1429 = vmatmul.bf16.vlgmr.msra.gmra.mxu3 %v2154_v27  ;;  %v2764_v20 = vld [vmem:[%s3453_s1 + $0x1b8] sm:$0xff] }
  0x2e   : > { %1499 = vmatpush.bf16.msrb.mxu3 %v2740_v23  ;;  %1597 = vmatpush.bf16.msrb.mxu1 %v2756_v29  ;;  %v2788_v23 = vld [vmem:[%s3453_s1 + $0x278] sm:$0xff] }
  0x2f   : > { %1409 = vmatmul.bf16.vlgmr.msra.gmra.mxu1 %v1994_v30  ;;  %1548 = vmatpush.bf16.msrb.mxu0 %v2748_v33  ;;  %v2271_v27 = vld [vmem:[%s2944_s24 + $0x258] sm:$0xf0]  ;;  %v2664_v29 = vld [vmem:[%s2944_s24 + $0x114] sm:$0xf0]  ;;  %v2659_v30 = vld [vmem:[%s2944_s24 + $0xf4] sm:$0xf] }
  0x30   : > { %v2274_v33 = vor.u32 %v2699_v26, %v2271_v27  ;;  %v2776_v26 = vld [vmem:[%s3453_s1 + $0x218] sm:$0xff]  ;;  %v2125_v27 = vld [vmem:[%s2944_s24 + $0x100] sm:$0xf] }
  0x31   : > { %1451 = vmatpush.bf16.msrb.mxu2 %v2731_v31  ;;  %v2111_v31 = vld [vmem:[%s2944_s24 + $0x118] sm:$0xf0] }
  0x32   : > { %1500 = vmatpush.bf16.msrb.mxu3 %v2739_v32  ;;  %1598 = vmatpush.bf16.msrb.mxu1 %v2755_v34  ;;  %v2270_v32 = vor.u32 %v2704_v25, %v2269_v24  ;;  %v2110_v34 = vor.u32 %v2664_v29, %v2109_v28  ;;  %v2660_v24 = vld [vmem:[%s2944_s24 + $0xfc] sm:$0xf]  ;;  %v2119_v25 = vld [vmem:[%s2944_s24 + $0x120] sm:$0xf0]  ;;  %v2666_v28 = vld [vmem:[%s2944_s24 + $0x124] sm:$0xf0] }
  0x33   : > { %1549 = vmatpush.bf16.msrb.mxu0 %v2747_v37  ;;  %v2771_v37 = vld [vmem:[%s3453_s1 + $0x1f0] sm:$0xff]  ;;  %v2661_v29 = vld [vmem:[%s2944_s24 + $0x104] sm:$0xf] }
  0x35   : > { %1452 = vmatpush.bf16.msrb.mxu2 %v2730_v35  ;;  %v2114_v35 = vor.u32 %v2659_v30, %v2111_v31  ;;  %v2127_v30 = vld [vmem:[%s2944_s24 + $0x128] sm:$0xf0] }
  0x36   : > { %1501 = vmatpush.bf16.msrb.mxu3 %v2738_v36  ;;  %1599 = vmatpush.bf16.msrb.mxu1 %v2754_v38  ;;  %v2763_v36 = vld [vmem:[%s3453_s1 + $0x1b0] sm:$0xff] }
  0x37   : > { %1550 = vmatpush.bf16.msrb.mxu0 %v2746_v41  ;;  %v2779_v38 = vld [vmem:[%s3453_s1 + $0x230] sm:$0xff] }
  0x38   : > { %v2635_v41 = vld [vmem:[%s2944_s24 + $0x2c] sm:$0xf0] }
  0x39   : > { %1453 = vmatpush.bf16.msrb.mxu2 %v2729_v39  ;;  %v2787_v39 = vld [vmem:[%s3453_s1 + $0x270] sm:$0xff] }
  0x3a   : > { %1502 = vmatpush.bf16.msrb.mxu3 %v2737_v40  ;;  %1600 = vmatpush.bf16.msrb.mxu1 %v2753_v47  ;;  %v1997_v40 = vld [vmem:[%s2944_s24 + $0x8] sm:$0xf]  ;;  %v2007_v47 = vld [vmem:[%s2944_s24 + $0x38] sm:$0xf0] }
  0x3b   : > { %1551 = vmatpush.bf16.msrb.mxu0 %v2745_v53  ;;  %v1998_v48 = vor.u32 %v2635_v41, %v1997_v40  ;;  %v2010_v51 = vor.u32 %v2631_v46, %v2007_v47  ;;  %v2770_v53 = vld [vmem:[%s3453_s1 + $0x1e8] sm:$0xff]  ;;  %v2159_v41 = vld [vmem:[%s2944_s24 + $0x170] sm:$0xf0]  ;;  %v2167_v46 = vld [vmem:[%s2944_s24 + $0x178] sm:$0xf0] }
  0x3c   : > { %1385 = vmatmul.bf16.gmra.mxu2 %v2190_v54  ;;  %1365 = vmatmul.bf16.gmra.mxu0 %v2030_v56  ;;  %v2778_v54 = vld [vmem:[%s3453_s1 + $0x228] sm:$0xff]  ;;  %v2037_v56 = vld [vmem:[%s2944_s24 + $0x58] sm:$0xf] }
  0x3d   : > { %1454 = vmatpush.bf16.msrb.mxu2 %v2728_v50  ;;  %1434 = vmatmul.bf16.gmra.mxu3 %v2194_v55  ;;  %v2006_v50 = vor.u32 %v2636_v45, %v2005_v44  ;;  %v2786_v55 = vld [vmem:[%s3453_s1 + $0x268] sm:$0xff]  ;;  %v2676_v44 = vld [vmem:[%s2944_s24 + $0x174] sm:$0xf0]  ;;  %v2671_v45 = vld [vmem:[%s2944_s24 + $0x154] sm:$0xf] }
  0x3e   : > { %1503 = vmatpush.bf16.msrb.mxu3 %v2736_v52  ;;  %1601 = vmatpush.bf16.msrb.mxu1 %v2752_v57  ;;  %v2762_v52 = vld [vmem:[%s3453_s1 + $0x1a8] sm:$0xff]  ;;  %v2645_v57 = vld [vmem:[%s2944_s24 + $0x7c] sm:$0xf0] }
  0x3f   : > { %1414 = vmatmul.bf16.gmra.mxu1 %v2034_v58  ;;  %1552 = vmatpush.bf16.msrb.mxu0 %v2744_v61  ;;  %v2640_v58 = vld [vmem:[%s2944_s24 + $0x5c] sm:$0xf]  ;;  %v2646_v61 = vld [vmem:[%s2944_s24 + $0x84] sm:$0xf0]  ;;  %v2670_v40 = vld [vmem:[%s2944_s24 + $0x14c] sm:$0xf] }
  0x41   : > { %1455 = vmatpush.bf16.msrb.mxu2 %v2727_v59  ;;  %v2039_v59 = vld [vmem:[%s2944_s24 + $0x80] sm:$0xf0] }
  0x42   : > { %1504 = vmatpush.bf16.msrb.mxu3 %v2735_v60  ;;  %1602 = vmatpush.bf16.msrb.mxu1 %v2751_v63  ;;  %v2045_v60 = vld [vmem:[%s2944_s24 + $0x60] sm:$0xf]  ;;  %v2047_v63 = vld [vmem:[%s2944_s24 + $0x88] sm:$0xf0] }
  0x43   : > { %1553 = vmatpush.bf16.msrb.mxu0 %v2743_v1  ;;  %v2042_v1 = vor.u32 %v2640_v58, %v2039_v59  ;;  %v2766_v58 = vld [vmem:[%s3453_s1 + $0x1c8] sm:$0xff] }
  0x45   : > { %1456 = vmatpush.bf16.msrb.mxu2 %v2726_v62  ;;  %v2641_v62 = vld [vmem:[%s2944_s24 + $0x64] sm:$0xf] }
  0x46   : > { %1505 = vmatpush.bf16.msrb.mxu3 %v2734_v0  ;;  %1603 = vmatpush.bf16.msrb.mxu1 %v2750_v2  ;;  %v2038_v0 = vor.u32 %v2645_v57, %v2037_v56  ;;  %v2046_v2 = vor.u32 %v2646_v61, %v2045_v60  ;;  %v2758_v56 = vld [vmem:[%s3453_s1 + $0x188] sm:$0xff] }
  0x47   : > { %1554 = vmatpush.bf16.msrb.mxu0 %v2742_v5  ;;  %v2769_v5 = vld [vmem:[%s3453_s1 + $0x1e0] sm:$0xff] }
  0x49   : > { %1457 = vmatpush.bf16.msrb.mxu2 %v2725_v3  ;;  %v2050_v3 = vor.u32 %v2641_v62, %v2047_v63 }
  0x4a   : > { %1506 = vmatpush.bf16.msrb.mxu3 %v2733_v4  ;;  %1604 = vmatpush.bf16.msrb.mxu1 %v2749_v19  ;;  %v2761_v4 = vld [vmem:[%s3453_s1 + $0x1a0] sm:$0xff] }
  0x4b   : > { %1555 = vmatpush.bf16.msrb.mxu0 %v2741_v14  ;;  %v2651_v14 = vld [vmem:[%s2944_s24 + $0xb4] sm:$0xf] }
  0x4c   : > { %1390 = vmatmul.bf16.gmra.mxu2 %v2230_v15  ;;  %1370 = vmatmul.bf16.gmra.mxu0 %v2070_v17  ;;  %v2087_v15 = vld [vmem:[%s2944_s24 + $0xd8] sm:$0xf0]  ;;  %v2082_v17 = vor.u32 %v2650_v10, %v2079_v11 }
  0x4d   : > { %1439 = vmatmul.bf16.gmra.mxu3 %v2234_v16  ;;  %1646 = vmatpush.bf16.msra.mxu2 %v2764_v20  ;;  %v2078_v16 = vor.u32 %v2655_v9, %v2077_v8  ;;  %v2090_v19 = vor.u32 %v2651_v14, %v2087_v15  ;;  %v2760_v20 = vld [vmem:[%s3453_s1 + $0x198] sm:$0xff]  ;;  %v2205_v8 = vld [vmem:[%s2944_s24 + $0x1a0] sm:$0xf]  ;;  %v2686_v9 = vld [vmem:[%s2944_s24 + $0x1c4] sm:$0xf0] }
  0x4e   : > { %1695 = vmatpush.bf16.msra.mxu3 %v2772_v21  ;;  %1793 = vmatpush.bf16.msra.mxu1 %v2788_v23  ;;  %v2768_v21 = vld [vmem:[%s3453_s1 + $0x1d8] sm:$0xff]  ;;  %v2665_v23 = vld [vmem:[%s2944_s24 + $0x11c] sm:$0xf0] }
  0x4f   : > { %1419 = vmatmul.bf16.gmra.mxu1 %v2074_v18  ;;  %1744 = vmatpush.bf16.msra.mxu0 %v2780_v22  ;;  %v2086_v18 = vor.u32 %v2656_v13, %v2085_v12  ;;  %v2117_v22 = vld [vmem:[%s2944_s24 + $0xf8] sm:$0xf]  ;;  %v2681_v12 = vld [vmem:[%s2944_s24 + $0x1a4] sm:$0xf]  ;;  %v2207_v13 = vld [vmem:[%s2944_s24 + $0x1c8] sm:$0xf0] }
  0x50   : > { %v2118_v31 = vor.u32 %v2665_v23, %v2117_v22 }
  0x51   : > { %1647 = vmatpush.bf16.msra.mxu2 %v2763_v36  ;;  %v2759_v36 = vld [vmem:[%s3453_s1 + $0x190] sm:$0xff] }
  0x52   : > { %1696 = vmatpush.bf16.msra.mxu3 %v2771_v37  ;;  %1794 = vmatpush.bf16.msra.mxu1 %v2787_v39  ;;  %v2767_v37 = vld [vmem:[%s3453_s1 + $0x1d0] sm:$0xff] }
  0x53   : > { %1745 = vmatpush.bf16.msra.mxu0 %v2779_v38  ;;  %v2157_v38 = vld [vmem:[%s2944_s24 + $0x148] sm:$0xf]  ;;  %v2675_v39 = vld [vmem:[%s2944_s24 + $0x16c] sm:$0xf0] }
  0x54   : > { %v2158_v47 = vor.u32 %v2675_v39, %v2157_v38  ;;  %v2239_v38 = vld [vmem:[%s2944_s24 + $0x210] sm:$0xf0]  ;;  %v2773_v39 = vld [vmem:[%s3453_s1 + $0x200] sm:$0xff] }
  0x55   : > { %1648 = vmatpush.bf16.msra.mxu2 %v2762_v52  ;;  %v2170_v52 = vor.u32 %v2671_v45, %v2167_v46  ;;  %v2247_v45 = vld [vmem:[%s2944_s24 + $0x218] sm:$0xf0] }
  0x56   : > { %1697 = vmatpush.bf16.msra.mxu3 %v2770_v53  ;;  %1795 = vmatpush.bf16.msra.mxu1 %v2786_v55  ;;  %v2783_v53 = vld [vmem:[%s3453_s1 + $0x250] sm:$0xff] }
  0x57   : > { %1746 = vmatpush.bf16.msra.mxu0 %v2778_v54 }
  0x59   : > { %1649 = vmatpush.bf16.msra.mxu2 %v2761_v4 }
  0x5a   : > { %1698 = vmatpush.bf16.msra.mxu3 %v2769_v5  ;;  %1796 = vmatpush.bf16.msra.mxu1 %v2785_v7  ;;  %v2680_v5 = vld [vmem:[%s2944_s24 + $0x19c] sm:$0xf]  ;;  %v2774_v7 = vld [vmem:[%s3453_s1 + $0x208] sm:$0xff] }
  0x5b   : > { %1747 = vmatpush.bf16.msra.mxu0 %v2777_v6  ;;  %v2199_v6 = vld [vmem:[%s2944_s24 + $0x1c0] sm:$0xf0] }
  0x5c   : > { %1395 = vmatmul.bf16.gmra.mxu2 %v2270_v32  ;;  %1375 = vmatmul.bf16.gmra.mxu0 %v2110_v34  ;;  %v2122_v32 = vor.u32 %v2660_v24, %v2119_v25  ;;  %v2130_v34 = vor.u32 %v2661_v29, %v2127_v30  ;;  %v2757_v24 = vld [vmem:[%s3453_s1 + $0x180] sm:$0xff] }
  0x5d   : > { %1444 = vmatmul.bf16.gmra.mxu3 %v2274_v33  ;;  %1650 = vmatpush.bf16.msra.mxu2 %v2760_v20  ;;  %v2126_v33 = vor.u32 %v2666_v28, %v2125_v27  ;;  %v2210_v20 = vor.u32 %v2681_v12, %v2207_v13  ;;  %v2701_v13 = vld [vmem:[%s2944_s24 + $0x244] sm:$0xf] }
  0x5e   : > { %1699 = vmatpush.bf16.msra.mxu3 %v2768_v21  ;;  %v2782_v21 = vld [vmem:[%s3453_s1 + $0x248] sm:$0xff] }
  0x5f   : > { %1424 = vmatmul.bf16.gmra.mxu1 %v2114_v35  ;;  %1748 = vmatpush.bf16.msra.mxu0 %v2776_v26  ;;  %v2784_v35 = vld [vmem:[%s3453_s1 + $0x258] sm:$0xff]  ;;  %v2765_v26 = vld [vmem:[%s3453_s1 + $0x1c0] sm:$0xff] }
  0x60   : > { %1797 = vmatpush.bf16.msra.mxu1 %v2784_v35  ;;  %v2695_v35 = vld [vmem:[%s2944_s24 + $0x20c] sm:$0xf0] }
  0x61   : > { %1651 = vmatpush.bf16.msra.mxu2 %v2759_v36 }
  0x62   : > { %1700 = vmatpush.bf16.msra.mxu3 %v2767_v37  ;;  %v2690_v37 = vld [vmem:[%s2944_s24 + $0x1ec] sm:$0xf] }
  0x63   : > { %1749 = vmatpush.bf16.msra.mxu0 %v2775_v42 }
  0x64   : > { %1798 = vmatpush.bf16.msra.mxu1 %v2783_v53 }
  0x65   : > { %1652 = vmatpush.bf16.msra.mxu2 %v2758_v56 }
  0x66   : > { %1701 = vmatpush.bf16.msra.mxu3 %v2766_v58 }
  0x67   : > { %1750 = vmatpush.bf16.msra.mxu0 %v2774_v7  ;;  %v2700_v7 = vld [vmem:[%s2944_s24 + $0x23c] sm:$0xf] }
  0x68   : > { %1799 = vmatpush.bf16.msra.mxu1 %v2782_v21 }
  0x69   : > { %1653 = vmatpush.bf16.msra.mxu2 %v2757_v24 }
  0x6a   : > { %1702 = vmatpush.bf16.msra.mxu3 %v2765_v26 }
  0x6b   : > { %1751 = vmatpush.bf16.msra.mxu0 %v2773_v39  ;;  %v2632_v39 = vld [vmem:[%s2944_s24 + $0x1c] sm:$0xf] }
  0x6c   : > { %1458 = vmatmul.bf16.vlgmr.msrb.gmra.mxu2 %v1998_v48  ;;  %1556 = vmatmul.bf16.vlgmr.msrb.gmra.mxu0 %v2006_v50  ;;  %v2162_v48 = vor.u32 %v2670_v40, %v2159_v41  ;;  %v2166_v50 = vor.u32 %v2676_v44, %v2165_v43  ;;  %v2245_v40 = vld [vmem:[%s2944_s24 + $0x1f0] sm:$0xf]  ;;  %v2696_v41 = vld [vmem:[%s2944_s24 + $0x214] sm:$0xf0]  ;;  %v2691_v44 = vld [vmem:[%s2944_s24 + $0x1f4] sm:$0xf] }
  0x6d   : > { %1507 = vmatmul.bf16.vlgmr.msrb.gmra.mxu3 %v2002_v49  ;;  %v3192_v49 = vld [vmem:[%s3454_s2] ss:$0 sm:$0xff]  ;;  %v2250_v53 = vor.u32 %v2691_v44, %v2247_v45  ;;  %v2633_v45 = vld [vmem:[%s2944_s24 + $0x24] sm:$0xf] }
  0x6f   : > { %1605 = vmatmul.bf16.vlgmr.msrb.gmra.mxu1 %v2010_v51 }
  0x7c   : > { %1463 = vmatmul.bf16.gmra.mxu2 %v2038_v0  ;;  %1561 = vmatmul.bf16.gmra.mxu0 %v2046_v2  ;;  %v2197_v2 = vld [vmem:[%s2944_s24 + $0x198] sm:$0xf] }
  0x7d   : > { %1512 = vmatmul.bf16.gmra.mxu3 %v2042_v1 }
  0x7f   : > { %1610 = vmatmul.bf16.gmra.mxu1 %v2050_v3  ;;  %v2685_v3 = vld [vmem:[%s2944_s24 + $0x1bc] sm:$0xf0] }
  0x80   : > { %v2198_v15 = vor.u32 %v2685_v3, %v2197_v2  ;;  %v2277_v3 = vld [vmem:[%s2944_s24 + $0x238] sm:$0xf] }
  0x8c   : > { %1468 = vmatmul.bf16.gmra.mxu2 %v2078_v16  ;;  %1566 = vmatmul.bf16.gmra.mxu0 %v2086_v18  ;;  %v2202_v16 = vor.u32 %v2680_v5, %v2199_v6  ;;  %v2705_v6 = vld [vmem:[%s2944_s24 + $0x25c] sm:$0xf0] }
  0x8d   : > { %1517 = vmatmul.bf16.gmra.mxu3 %v2082_v17  ;;  %v2206_v17 = vor.u32 %v2686_v9, %v2205_v8  ;;  %v2279_v8 = vld [vmem:[%s2944_s24 + $0x260] sm:$0xf0]  ;;  %v2285_v9 = vld [vmem:[%s2944_s24 + $0x240] sm:$0xf] }
  0x8f   : > { %1615 = vmatmul.bf16.gmra.mxu1 %v2090_v19 }
  0x9c   : > { %1473 = vmatmul.bf16.gmra.mxu2 %v2118_v31  ;;  %1571 = vmatmul.bf16.gmra.mxu0 %v2126_v33 }
  0x9d   : > { %1522 = vmatmul.bf16.gmra.mxu3 %v2122_v32 }
  0x9f   : > { %1620 = vmatmul.bf16.gmra.mxu1 %v2130_v34  ;;  %v2237_v34 = vld [vmem:[%s2944_s24 + $0x1e8] sm:$0xf] }
  0xa9   : > { %v1361_v51 = vpop.f32.mrf.mxu0 }
  0xaa   : > { %v1362_v54 = vadd.f32 %v3192_v49, %v1361_v51 }
  0xac   : > { %v1410_v55 = vpop.f32.mrf.mxu1  ;;  %1478 = vmatmul.bf16.gmra.mxu2 %v2158_v47  ;;  %1576 = vmatmul.bf16.gmra.mxu0 %v2166_v50  ;;  %v2238_v47 = vor.u32 %v2695_v35, %v2237_v34  ;;  %v2246_v50 = vor.u32 %v2696_v41, %v2245_v40  ;;  %v2013_v35 = vld [vmem:[%s2944_s24 + $0x18] sm:$0xf]  ;;  %v2015_v40 = vld [vmem:[%s2944_s24 + $0x40] sm:$0xf0]  ;;  %v2021_v41 = vld [vmem:[%s2944_s24 + $0x20] sm:$0xf] }
  0xad   : > { %1527 = vmatmul.bf16.gmra.mxu3 %v2162_v48  ;;  %v3201_v57 = vadd.f32 %v1410_v55, %v1362_v54  ;;  %v2242_v48 = vor.u32 %v2690_v37, %v2239_v38  ;;  %v2781_v54 = vld [vmem:[%s3453_s1 + $0x240] sm:$0xff] }
  0xae   : > { %1800 = vmatpush.bf16.msra.mxu1 %v2781_v54  ;;  %v2637_v38 = vld [vmem:[%s2944_s24 + $0x3c] sm:$0xf0] }
  0xaf   : > { %1625 = vmatmul.bf16.gmra.mxu1 %v2170_v52  ;;  %v1381_v59 = vpop.f32.mrf.mxu2 }
  0xb0   : > { %v1430_v60 = vpop.f32.mrf.mxu3  ;;  %v1382_v61 = vadd.f32 %v3192_v49, %v1381_v59 }
  0xb1   : > { %v1363_v63 = vpop.f32.mrf.mxu0 }
  0xb2   : > { %v3207_v62 = vadd.f32 %v1430_v60, %v1382_v61  ;;  %v1364_v0 = vadd.f32 %v3192_v49, %v1363_v63 }
  0xb4   : > { %v1412_v1 = vpop.f32.mrf.mxu1 }
  0xb5   : > { %v3212_v4 = vadd.f32 %v1412_v1, %v1364_v0 }
  0xb7   : > { %v1383_v10 = vpop.f32.mrf.mxu2 }
  0xb8   : > { %v1432_v11 = vpop.f32.mrf.mxu3  ;;  %v1384_v14 = vadd.f32 %v3192_v49, %v1383_v10  ;;  %v2706_v10 = vld [vmem:[%s2944_s24 + $0x264] sm:$0xf0] }
  0xb9   : > { %v1366_v19 = vpop.f32.mrf.mxu0 }
  0xba   : > { %v3224_v18 = vadd.f32 %v1432_v11, %v1384_v14  ;;  %v1367_v22 = vadd.f32 %v3192_v49, %v1366_v19  ;;  %v2287_v14 = vld [vmem:[%s2944_s24 + $0x268] sm:$0xf0]  ;;  %v2286_v19 = vor.u32 %v2706_v10, %v2285_v9  ;;  %v2061_v9 = vld [vmem:[%s2944_s24 + $0x70] sm:$0xf]  ;;  %v2648_v10 = vld [vmem:[%s2944_s24 + $0x94] sm:$0xf0] }
  0xbc   : > { %v1415_v23 = vpop.f32.mrf.mxu1  ;;  %1483 = vmatmul.bf16.gmra.mxu2 %v2198_v15  ;;  %1581 = vmatmul.bf16.gmra.mxu0 %v2206_v17  ;;  %v2282_v17 = vor.u32 %v2700_v7, %v2279_v8  ;;  %v2642_v7 = vld [vmem:[%s2944_s24 + $0x6c] sm:$0xf]  ;;  %v2055_v8 = vld [vmem:[%s2944_s24 + $0x90] sm:$0xf0] }
  0xbd   : > { %1532 = vmatmul.bf16.gmra.mxu3 %v2202_v16  ;;  %v3233_v25 = vadd.f32 %v1415_v23, %v1367_v22  ;;  %v2278_v16 = vor.u32 %v2705_v6, %v2277_v3  ;;  %v2290_v22 = vor.u32 %v2701_v13, %v2287_v14  ;;  %v2053_v3 = vld [vmem:[%s2944_s24 + $0x68] sm:$0xf]  ;;  %v2647_v6 = vld [vmem:[%s2944_s24 + $0x8c] sm:$0xf0]  ;;  %v2643_v14 = vld [vmem:[%s2944_s24 + $0x74] sm:$0xf] }
  0xbf   : > { %1630 = vmatmul.bf16.gmra.mxu1 %v2210_v20  ;;  %v1386_v27 = vpop.f32.mrf.mxu2 }
  0xc0   : > { %v1435_v28 = vpop.f32.mrf.mxu3  ;;  %v1387_v29 = vadd.f32 %v3192_v49, %v1386_v27 }
  0xc1   : > { %v1368_v31 = vpop.f32.mrf.mxu0 }
  0xc2   : > { %v3239_v30 = vadd.f32 %v1435_v28, %v1387_v29  ;;  %v1369_v32 = vadd.f32 %v3192_v49, %v1368_v31 }
  0xc4   : > { %v1417_v33 = vpop.f32.mrf.mxu1 }
  0xc5   : > { %v3244_v36 = vadd.f32 %v1417_v33, %v1369_v32 }
  0xc7   : > { %v1388_v42 = vpop.f32.mrf.mxu2 }
  0xc8   : > { %v1437_v43 = vpop.f32.mrf.mxu3  ;;  %v1389_v46 = vadd.f32 %v3192_v49, %v1388_v42  ;;  %v2638_v42 = vld [vmem:[%s2944_s24 + $0x44] sm:$0xf0] }
  0xc9   : > { %v1371_v52 = vpop.f32.mrf.mxu0 }
  0xca   : > { %v3256_v51 = vadd.f32 %v1437_v43, %v1389_v46  ;;  %v1372_v55 = vadd.f32 %v3192_v49, %v1371_v52  ;;  %v2023_v46 = vld [vmem:[%s2944_s24 + $0x48] sm:$0xf0]  ;;  %v2022_v52 = vor.u32 %v2638_v42, %v2021_v41  ;;  %v2652_v41 = vld [vmem:[%s2944_s24 + $0xbc] sm:$0xf]  ;;  %v2095_v42 = vld [vmem:[%s2944_s24 + $0xe0] sm:$0xf0] }
  0xcc   : > { %v1420_v56 = vpop.f32.mrf.mxu1  ;;  %1488 = vmatmul.bf16.gmra.mxu2 %v2238_v47  ;;  %1586 = vmatmul.bf16.gmra.mxu0 %v2246_v50  ;;  %v2018_v50 = vor.u32 %v2632_v39, %v2015_v40  ;;  %v2093_v39 = vld [vmem:[%s2944_s24 + $0xb8] sm:$0xf]  ;;  %v2657_v40 = vld [vmem:[%s2944_s24 + $0xdc] sm:$0xf0] }
  0xcd   : > { %1537 = vmatmul.bf16.gmra.mxu3 %v2242_v48  ;;  %v3262_v58 = vadd.f32 %v1420_v56, %v1372_v55  ;;  %v2014_v48 = vor.u32 %v2637_v38, %v2013_v35  ;;  %v2026_v55 = vor.u32 %v2633_v45, %v2023_v46 }
  0xcf   : > { %1635 = vmatmul.bf16.gmra.mxu1 %v2250_v53  ;;  %v1391_v59 = vpop.f32.mrf.mxu2 }
  0xd0   : > { %v1440_v60 = vpop.f32.mrf.mxu3  ;;  %v1392_v61 = vadd.f32 %v3192_v49, %v1391_v59 }
  0xd1   : > { %v1373_v0 = vpop.f32.mrf.mxu0 }
  0xd2   : > { %v3265_v63 = vadd.f32 %v1440_v60, %v1392_v61  ;;  %v1374_v1 = vadd.f32 %v3192_v49, %v1373_v0 }
  0xd4   : > { %v1422_v2 = vpop.f32.mrf.mxu1 }
  0xd5   : > { %v3269_v5 = vadd.f32 %v1422_v2, %v1374_v1 }
  0xd7   : > { %v1393_v11 = vpop.f32.mrf.mxu2 }
  0xd8   : > { %v1442_v12 = vpop.f32.mrf.mxu3  ;;  %v1394_v15 = vadd.f32 %v3192_v49, %v1393_v11 }
  0xd9   : > { %v1376_v21 = vpop.f32.mrf.mxu0 }
  0xda   : > { %v3279_v20 = vadd.f32 %v1442_v12, %v1394_v15  ;;  %v1377_v23 = vadd.f32 %v3192_v49, %v1376_v21  ;;  %v2063_v15 = vld [vmem:[%s2944_s24 + $0x98] sm:$0xf0] }
  0xdc   : > { %v1425_v24 = vpop.f32.mrf.mxu1  ;;  %1493 = vmatmul.bf16.gmra.mxu2 %v2278_v16  ;;  %1591 = vmatmul.bf16.gmra.mxu0 %v2286_v19  ;;  %v2062_v19 = vor.u32 %v2648_v10, %v2061_v9  ;;  %v2133_v9 = vld [vmem:[%s2944_s24 + $0x108] sm:$0xf]  ;;  %v2667_v10 = vld [vmem:[%s2944_s24 + $0x12c] sm:$0xf0] }
  0xdd   : > { %1542 = vmatmul.bf16.gmra.mxu3 %v2282_v17  ;;  %v3282_v26 = vadd.f32 %v1425_v24, %v1377_v23  ;;  %v2054_v17 = vor.u32 %v2647_v6, %v2053_v3  ;;  %v2066_v23 = vor.u32 %v2643_v14, %v2063_v15  ;;  %v2141_v14 = vld [vmem:[%s2944_s24 + $0x110] sm:$0xf]  ;;  %v2668_v15 = vld [vmem:[%s2944_s24 + $0x134] sm:$0xf0] }
  0xdf   : > { %1640 = vmatmul.bf16.gmra.mxu1 %v2290_v22  ;;  %v1396_v27 = vpop.f32.mrf.mxu2 }
  0xe0   : > { %v1445_v28 = vpop.f32.mrf.mxu3  ;;  %v1397_v29 = vadd.f32 %v3192_v49, %v1396_v27 }
  0xe1   : > { %v1378_v32 = vpop.f32.mrf.mxu0 }
  0xe2   : > { %v3285_v31 = vadd.f32 %v1445_v28, %v1397_v29  ;;  %v1379_v33 = vadd.f32 %v3192_v49, %v1378_v32 }
  0xe4   : > { %v1427_v34 = vpop.f32.mrf.mxu1 }
  0xe5   : > { %v3289_v37 = vadd.f32 %v1427_v34, %v1379_v33 }
  0xe7   : > { %v1398_v43 = vpop.f32.mrf.mxu2 }
  0xe8   : > { %v1447_v44 = vpop.f32.mrf.mxu3  ;;  %v1399_v47 = vadd.f32 %v3192_v49, %v1398_v43  ;;  %v2101_v43 = vld [vmem:[%s2944_s24 + $0xc0] sm:$0xf] }
  0xe9   : > { %v1557_v54 = vpop.f32.mrf.mxu0 }
  0xea   : > { %v3299_v53 = vadd.f32 %v1447_v44, %v1399_v47  ;;  %v2658_v44 = vld [vmem:[%s2944_s24 + $0xe4] sm:$0xf0] }
  0xec   : > { %v1606_v56 = vpop.f32.mrf.mxu1  ;;  %1654 = vmatmul.bf16.vlgmr.msra.gmra.mxu2 %v2014_v48  ;;  %1752 = vmatmul.bf16.vlgmr.msra.gmra.mxu0 %v2022_v52  ;;  %v2653_v48 = vld [vmem:[%s2944_s24 + $0xc4] sm:$0xf] }
  0xed   : > { %1703 = vmatmul.bf16.vlgmr.msra.gmra.mxu3 %v2018_v50  ;;  %v2103_v50 = vld [vmem:[%s2944_s24 + $0xe8] sm:$0xf0] }
  0xef   : > { %1801 = vmatmul.bf16.vlgmr.msra.gmra.mxu1 %v2026_v55  ;;  %v1459_v59 = vpop.f32.mrf.mxu2  ;;  %v2102_v55 = vor.u32 %v2658_v44, %v2101_v43  ;;  %v2173_v43 = vld [vmem:[%s2944_s24 + $0x158] sm:$0xf]  ;;  %v2677_v44 = vld [vmem:[%s2944_s24 + $0x17c] sm:$0xf0] }
  0xf0   : > { %v1508_v49 = vpop.f32.mrf.mxu3  ;;  %v1460_v60 = vadd.f32 %v1459_v59, %v3201_v57  ;;  %v2058_v57 = vor.u32 %v2642_v7, %v2055_v8 }
  0xf1   : > { %v1559_v0 = vpop.f32.mrf.mxu0 }
  0xf2   : > { %v1509_v61 = vadd.f32 %v1508_v49, %v1460_v60  ;;  %v2106_v49 = vor.u32 %v2653_v48, %v2103_v50  ;;  %v2181_v48 = vld [vmem:[%s2944_s24 + $0x160] sm:$0xf]  ;;  %v2678_v50 = vld [vmem:[%s2944_s24 + $0x184] sm:$0xf0] }
  0xf4   : > { %v1608_v1 = vpop.f32.mrf.mxu1  ;;  %v1558_v2 = vadd.f32 %v1557_v54, %v1509_v61  ;;  %v2094_v54 = vor.u32 %v2657_v40, %v2093_v39 }
  0xf6   : > { %v3308_v11 = vadd.f32 %v1606_v56, %v1558_v2 }
  0xf7   : > { %v1461_v12 = vpop.f32.mrf.mxu2 }
  0xf8   : > { %v1510_v13 = vpop.f32.mrf.mxu3  ;;  %v1462_v16 = vadd.f32 %v1461_v12, %v3212_v4  ;;  %v2662_v12 = vld [vmem:[%s2944_s24 + $0x10c] sm:$0xf] }
  0xf9   : > { %v1562_v22 = vpop.f32.mrf.mxu0 }
  0xfa   : > { %v1511_v21 = vadd.f32 %v1510_v13, %v1462_v16  ;;  %v2135_v13 = vld [vmem:[%s2944_s24 + $0x130] sm:$0xf0] }
  0xfc   : > { %v1611_v24 = vpop.f32.mrf.mxu1  ;;  %v1560_v27 = vadd.f32 %v1559_v0, %v1511_v21  ;;  %1659 = vmatmul.bf16.gmra.mxu2 %v2054_v17  ;;  %1757 = vmatmul.bf16.gmra.mxu0 %v2062_v19  ;;  %v2663_v19 = vld [vmem:[%s2944_s24 + $0x114] sm:$0xf]  ;;  %v2143_v21 = vld [vmem:[%s2944_s24 + $0x138] sm:$0xf0] }
  0xfd   : > { %1708 = vmatmul.bf16.gmra.mxu3 %v2058_v57 }
  0xfe   : > { %v3313_v28 = vadd.f32 %v1608_v1, %v1560_v27 }
  0xff   : > { %1806 = vmatmul.bf16.gmra.mxu1 %v2066_v23  ;;  %v1464_v4 = vpop.f32.mrf.mxu2  ;;  %v2134_v23 = vor.u32 %v2667_v10, %v2133_v9 }
 0x100   : > { %v1513_v29 = vpop.f32.mrf.mxu3  ;;  %v1465_v32 = vadd.f32 %v1464_v4, %v3233_v25  ;;  %v2098_v25 = vor.u32 %v2652_v41, %v2095_v42 }
 0x101   : > { %v1564_v34 = vpop.f32.mrf.mxu0 }
 0x102   : > { %v1514_v33 = vadd.f32 %v1513_v29, %v1465_v32  ;;  %v2146_v29 = vor.u32 %v2663_v19, %v2143_v21  ;;  %v2221_v19 = vld [vmem:[%s2944_s24 + $0x1b0] sm:$0xf]  ;;  %v2688_v21 = vld [vmem:[%s2944_s24 + $0x1d4] sm:$0xf0] }
 0x104   : > { %v1613_v35 = vpop.f32.mrf.mxu1  ;;  %v1563_v38 = vadd.f32 %v1562_v22, %v1514_v33 }
 0x106   : > { %v3322_v45 = vadd.f32 %v1611_v24, %v1563_v38  ;;  %v2142_v24 = vor.u32 %v2668_v15, %v2141_v14  ;;  %v2213_v14 = vld [vmem:[%s2944_s24 + $0x1a8] sm:$0xf]  ;;  %v2687_v15 = vld [vmem:[%s2944_s24 + $0x1cc] sm:$0xf0] }
 0x107   : > { %v1466_v46 = vpop.f32.mrf.mxu2 }
 0x108   : > { %v1515_v47 = vpop.f32.mrf.mxu3  ;;  %v1467_v52 = vadd.f32 %v1466_v46, %v3244_v36  ;;  %v2672_v46 = vld [vmem:[%s2944_s24 + $0x15c] sm:$0xf] }
 0x109   : > { %v1567_v59 = vpop.f32.mrf.mxu0 }
 0x10a   : > { %v1516_v56 = vadd.f32 %v1515_v47, %v1467_v52  ;;  %v2175_v47 = vld [vmem:[%s2944_s24 + $0x180] sm:$0xf0] }
 0x10c   : > { %v1616_v60 = vpop.f32.mrf.mxu1  ;;  %v1565_v61 = vadd.f32 %v1564_v34, %v1516_v56  ;;  %1664 = vmatmul.bf16.gmra.mxu2 %v2094_v54  ;;  %1762 = vmatmul.bf16.gmra.mxu0 %v2102_v55  ;;  %v2673_v55 = vld [vmem:[%s2944_s24 + $0x164] sm:$0xf]  ;;  %v2183_v56 = vld [vmem:[%s2944_s24 + $0x188] sm:$0xf0] }
 0x10d   : > { %1713 = vmatmul.bf16.gmra.mxu3 %v2098_v25 }
 0x10e   : > { %v3327_v0 = vadd.f32 %v1613_v35, %v1565_v61 }
 0x10f   : > { %1811 = vmatmul.bf16.gmra.mxu1 %v2106_v49  ;;  %v1469_v36 = vpop.f32.mrf.mxu2  ;;  %v2174_v49 = vor.u32 %v2677_v44, %v2173_v43 }
 0x110   : > { %v1518_v1 = vpop.f32.mrf.mxu3  ;;  %v1470_v2 = vadd.f32 %v1469_v36, %v3262_v58  ;;  %v2138_v58 = vor.u32 %v2662_v12, %v2135_v13 }
 0x111   : > { %v1569_v6 = vpop.f32.mrf.mxu0 }
 0x112   : > { %v1519_v3 = vadd.f32 %v1518_v1, %v1470_v2  ;;  %v2186_v1 = vor.u32 %v2673_v55, %v2183_v56  ;;  %v2261_v55 = vld [vmem:[%s2944_s24 + $0x200] sm:$0xf]  ;;  %v2698_v56 = vld [vmem:[%s2944_s24 + $0x224] sm:$0xf0] }
 0x114   : > { %v1618_v7 = vpop.f32.mrf.mxu1  ;;  %v1568_v8 = vadd.f32 %v1567_v59, %v1519_v3 }
 0x116   : > { %v3336_v16 = vadd.f32 %v1616_v60, %v1568_v8  ;;  %v2182_v60 = vor.u32 %v2678_v50, %v2181_v48  ;;  %v2253_v48 = vld [vmem:[%s2944_s24 + $0x1f8] sm:$0xf]  ;;  %v2697_v50 = vld [vmem:[%s2944_s24 + $0x21c] sm:$0xf0] }
 0x117   : > { %v1471_v17 = vpop.f32.mrf.mxu2 }
 0x118   : > { %v1520_v57 = vpop.f32.mrf.mxu3  ;;  %v1472_v22 = vadd.f32 %v1471_v17, %v3269_v5  ;;  %v2682_v17 = vld [vmem:[%s2944_s24 + $0x1ac] sm:$0xf] }
 0x119   : > { %v1572_v4 = vpop.f32.mrf.mxu0 }
 0x11a   : > { %v1521_v27 = vadd.f32 %v1520_v57, %v1472_v22  ;;  %v2215_v57 = vld [vmem:[%s2944_s24 + $0x1d0] sm:$0xf0] }
 0x11c   : > { %v1621_v32 = vpop.f32.mrf.mxu1  ;;  %v1570_v33 = vadd.f32 %v1569_v6, %v1521_v27  ;;  %1669 = vmatmul.bf16.gmra.mxu2 %v2134_v23  ;;  %1767 = vmatmul.bf16.gmra.mxu0 %v2142_v24  ;;  %v2683_v24 = vld [vmem:[%s2944_s24 + $0x1b4] sm:$0xf]  ;;  %v2223_v27 = vld [vmem:[%s2944_s24 + $0x1d8] sm:$0xf0] }
 0x11d   : > { %1718 = vmatmul.bf16.gmra.mxu3 %v2138_v58 }
 0x11e   : > { %v3341_v34 = vadd.f32 %v1618_v7, %v1570_v33 }
 0x11f   : > { %1816 = vmatmul.bf16.gmra.mxu1 %v2146_v29  ;;  %v1474_v5 = vpop.f32.mrf.mxu2  ;;  %v2214_v29 = vor.u32 %v2687_v15, %v2213_v14 }
 0x120   : > { %v1523_v35 = vpop.f32.mrf.mxu3  ;;  %v1475_v38 = vadd.f32 %v1474_v5, %v3282_v26  ;;  %v2178_v26 = vor.u32 %v2672_v46, %v2175_v47 }
 0x121   : > { %v1574_v40 = vpop.f32.mrf.mxu0 }
 0x122   : > { %v1524_v39 = vadd.f32 %v1523_v35, %v1475_v38  ;;  %v2226_v35 = vor.u32 %v2683_v24, %v2223_v27  ;;  %v2301_v24 = vld [vmem:[%s2944_s24 + $0x250] sm:$0xf]  ;;  %v2708_v27 = vld [vmem:[%s2944_s24 + $0x274] sm:$0xf0] }
 0x124   : > { %v1623_v41 = vpop.f32.mrf.mxu1  ;;  %v1573_v42 = vadd.f32 %v1572_v4, %v1524_v39 }
 0x126   : > { %v3350_v52 = vadd.f32 %v1621_v32, %v1573_v42  ;;  %v2222_v32 = vor.u32 %v2688_v21, %v2221_v19  ;;  %v2293_v19 = vld [vmem:[%s2944_s24 + $0x248] sm:$0xf]  ;;  %v2707_v21 = vld [vmem:[%s2944_s24 + $0x26c] sm:$0xf0] }
 0x127   : > { %v1476_v54 = vpop.f32.mrf.mxu2 }
 0x128   : > { %v1525_v25 = vpop.f32.mrf.mxu3  ;;  %v1477_v59 = vadd.f32 %v1476_v54, %v3289_v37  ;;  %v2692_v54 = vld [vmem:[%s2944_s24 + $0x1fc] sm:$0xf] }
 0x129   : > { %v1577_v36 = vpop.f32.mrf.mxu0 }
 0x12a   : > { %v1526_v61 = vadd.f32 %v1525_v25, %v1477_v59  ;;  %v2255_v25 = vld [vmem:[%s2944_s24 + $0x220] sm:$0xf0] }
 0x12c   : > { %v1626_v2 = vpop.f32.mrf.mxu1  ;;  %v1575_v3 = vadd.f32 %v1574_v40, %v1526_v61  ;;  %1674 = vmatmul.bf16.gmra.mxu2 %v2174_v49  ;;  %1772 = vmatmul.bf16.gmra.mxu0 %v2182_v60  ;;  %v2693_v60 = vld [vmem:[%s2944_s24 + $0x204] sm:$0xf]  ;;  %v2263_v61 = vld [vmem:[%s2944_s24 + $0x228] sm:$0xf0] }
 0x12d   : > { %1723 = vmatmul.bf16.gmra.mxu3 %v2178_v26 }
 0x12e   : > { %v3355_v6 = vadd.f32 %v1623_v41, %v1575_v3 }
 0x12f   : > { %1821 = vmatmul.bf16.gmra.mxu1 %v2186_v1  ;;  %v1479_v37 = vpop.f32.mrf.mxu2  ;;  %v2254_v1 = vor.u32 %v2697_v50, %v2253_v48 }
 0x130   : > { %v1528_v7 = vpop.f32.mrf.mxu3  ;;  %v1480_v8 = vadd.f32 %v1479_v37, %v3207_v62  ;;  %v2218_v62 = vor.u32 %v2682_v17, %v2215_v57 }
 0x131   : > { %v1579_v10 = vpop.f32.mrf.mxu0 }
 0x132   : > { %v1529_v9 = vadd.f32 %v1528_v7, %v1480_v8  ;;  %v2266_v7 = vor.u32 %v2693_v60, %v2263_v61 }
 0x134   : > { %v1628_v12 = vpop.f32.mrf.mxu1  ;;  %v1578_v13 = vadd.f32 %v1577_v36, %v1529_v9 }
 0x136   : > { %v3364_v22 = vadd.f32 %v1626_v2, %v1578_v13  ;;  %v2262_v2 = vor.u32 %v2698_v56, %v2261_v55 }
 0x137   : > { %v1481_v23 = vpop.f32.mrf.mxu2 }
 0x138   : > { %v1530_v58 = vpop.f32.mrf.mxu3  ;;  %v1482_v4 = vadd.f32 %v1481_v23, %v3224_v18  ;;  %v2702_v23 = vld [vmem:[%s2944_s24 + $0x24c] sm:$0xf] }
 0x139   : > { %v1582_v5 = vpop.f32.mrf.mxu0 }
 0x13a   : > { %v1531_v33 = vadd.f32 %v1530_v58, %v1482_v4  ;;  %v2295_v58 = vld [vmem:[%s2944_s24 + $0x270] sm:$0xf0] }
 0x13c   : > { %v1631_v38 = vpop.f32.mrf.mxu1  ;;  %v1580_v39 = vadd.f32 %v1579_v10, %v1531_v33  ;;  %1679 = vmatmul.bf16.gmra.mxu2 %v2214_v29  ;;  %1777 = vmatmul.bf16.gmra.mxu0 %v2222_v32  ;;  %v2703_v32 = vld [vmem:[%s2944_s24 + $0x254] sm:$0xf]  ;;  %v2303_v33 = vld [vmem:[%s2944_s24 + $0x278] sm:$0xf0]  ;;  %s1986_s24 = sshll.u32 %s3461_s28, 3 }
 0x13d   : > { %1728 = vmatmul.bf16.gmra.mxu3 %v2218_v62  ;;  %s3410_s30 = scalar_lea.vmem %s3455_s3, %s1986_s24 }
 0x13e   : > { %v3369_v40 = vadd.f32 %v1628_v12, %v1580_v39 }
 0x13f   : > { %1826 = vmatmul.bf16.gmra.mxu1 %v2226_v35  ;;  %v1484_v18 = vpop.f32.mrf.mxu2  ;;  %v2294_v35 = vor.u32 %v2707_v21, %v2293_v19 }
 0x140   : > { %v1533_v41 = vpop.f32.mrf.mxu3  ;;  %v1485_v42 = vadd.f32 %v1484_v18, %v3239_v30  ;;  %v2258_v30 = vor.u32 %v2692_v54, %v2255_v25 }
 0x141   : > { %v1584_v44 = vpop.f32.mrf.mxu0 }
 0x142   : > { %v1534_v43 = vadd.f32 %v1533_v41, %v1485_v42  ;;  %v2306_v41 = vor.u32 %v2703_v32, %v2303_v33 }
 0x144   : > { %v1633_v46 = vpop.f32.mrf.mxu1  ;;  %v1583_v47 = vadd.f32 %v1582_v5, %v1534_v43 }
 0x146   : > { %v3378_v59 = vadd.f32 %v1631_v38, %v1583_v47  ;;  %v2302_v38 = vor.u32 %v2708_v27, %v2301_v24 }
 0x147   : > { %v1486_v49 = vpop.f32.mrf.mxu2 }
 0x148   : > { %v1535_v26 = vpop.f32.mrf.mxu3  ;;  %v1487_v36 = vadd.f32 %v1486_v49, %v3256_v51 }
 0x149   : > { %v1587_v37 = vpop.f32.mrf.mxu0 }
 0x14a   : > { %v1536_v3 = vadd.f32 %v1535_v26, %v1487_v36 }
 0x14c   : > { %v1636_v8 = vpop.f32.mrf.mxu1  ;;  %v1585_v9 = vadd.f32 %v1584_v44, %v1536_v3  ;;  %1684 = vmatmul.bf16.gmra.mxu2 %v2254_v1  ;;  %1782 = vmatmul.bf16.gmra.mxu0 %v2262_v2 }
 0x14d   : > { %1733 = vmatmul.bf16.gmra.mxu3 %v2258_v30 }
 0x14e   : > { %v3383_v10 = vadd.f32 %v1633_v46, %v1585_v9 }
 0x14f   : > { %1831 = vmatmul.bf16.gmra.mxu1 %v2266_v7  ;;  %v1489_v51 = vpop.f32.mrf.mxu2 }
 0x150   : > { %v1538_v12 = vpop.f32.mrf.mxu3  ;;  %v1490_v13 = vadd.f32 %v1489_v51, %v3265_v63  ;;  %v2298_v63 = vor.u32 %v2702_v23, %v2295_v58 }
 0x151   : > { %v1589_v15 = vpop.f32.mrf.mxu0 }
 0x152   : > { %v1539_v14 = vadd.f32 %v1538_v12, %v1490_v13 }
 0x154   : > { %v1638_v17 = vpop.f32.mrf.mxu1  ;;  %v1588_v57 = vadd.f32 %v1587_v37, %v1539_v14 }
 0x156   : > { %v3392_v4 = vadd.f32 %v1636_v8, %v1588_v57 }
 0x157   : > { %v1491_v29 = vpop.f32.mrf.mxu2 }
 0x158   : > { %v1540_v62 = vpop.f32.mrf.mxu3  ;;  %v1492_v5 = vadd.f32 %v1491_v29, %v3279_v20 }
 0x159   : > { %v1592_v18 = vpop.f32.mrf.mxu0 }
 0x15a   : > { %v1541_v39 = vadd.f32 %v1540_v62, %v1492_v5 }
 0x15c   : > { %v1641_v42 = vpop.f32.mrf.mxu1  ;;  %v1590_v43 = vadd.f32 %v1589_v15, %v1541_v39  ;;  %1689 = vmatmul.bf16.gmra.mxu2 %v2294_v35  ;;  %1787 = vmatmul.bf16.gmra.mxu0 %v2302_v38 }
 0x15d   : > { %1738 = vmatmul.bf16.gmra.mxu3 %v2298_v63 }
 0x15e   : > { %v3397_v44 = vadd.f32 %v1638_v17, %v1590_v43 }
 0x15f   : > { %1836 = vmatmul.bf16.gmra.mxu1 %v2306_v41  ;;  %v1494_v46 = vpop.f32.mrf.mxu2 }
 0x160   : > { %v1543_v47 = vpop.f32.mrf.mxu3  ;;  %v1495_v48 = vadd.f32 %v1494_v46, %v3285_v31 }
 0x161   : > { %v1594_v20 = vpop.f32.mrf.mxu0 }
 0x162   : > { %v1544_v50 = vadd.f32 %v1543_v47, %v1495_v48 }
 0x164   : > { %v1643_v54 = vpop.f32.mrf.mxu1  ;;  %v1593_v25 = vadd.f32 %v1592_v18, %v1544_v50 }
 0x166   : > { %v3400_v55 = vadd.f32 %v1641_v42, %v1593_v25 }
 0x167   : > { %v1496_v56 = vpop.f32.mrf.mxu2 }
 0x168   : > { %v1545_v49 = vpop.f32.mrf.mxu3  ;;  %v1497_v26 = vadd.f32 %v1496_v56, %v3299_v53 }
 0x169   : > { %v1753_v61 = vpop.f32.mrf.mxu0 }
 0x16a   : > { %v1546_v60 = vadd.f32 %v1545_v49, %v1497_v26 }
 0x16c   : > { %v1802_v36 = vpop.f32.mrf.mxu1  ;;  %v1595_v1 = vadd.f32 %v1594_v20, %v1546_v60 }
 0x16e   : > { %v3403_v30 = vadd.f32 %v1643_v54, %v1595_v1 }
 0x16f   : > { %v1655_v2 = vpop.f32.mrf.mxu2 }
 0x170   : > { %v1704_v3 = vpop.f32.mrf.mxu3  ;;  %v1656_v31 = vadd.f32 %v1655_v2, %v3308_v11 }
 0x171   : > { %v1755_v7 = vpop.f32.mrf.mxu0 }
 0x172   : > { %v1705_v37 = vadd.f32 %v1704_v3, %v1656_v31 }
 0x174   : > { %v1804_v8 = vpop.f32.mrf.mxu1  ;;  %v1754_v9 = vadd.f32 %v1753_v61, %v1705_v37 }
 0x176   : > { %v1803_v51 = vadd.f32 %v1802_v36, %v1754_v9 }
 0x177   : > { %v1657_v53 = vpop.f32.mrf.mxu2 }
 0x178   : > { %v1706_v12 = vpop.f32.mrf.mxu3  ;;  %v1842_v13 = vmax.f32 %v1803_v51, 0.0  ;;  %v1658_v14 = vadd.f32 %v1657_v53, %v3313_v28 }
 0x179   : > { %v1758_v15 = vpop.f32.mrf.mxu0 }
 0x17a   : > { %1858 = vst [vmem:[%s3410_s30] sm:$0xff] %v1842_v13  ;;  %v1707_v11 = vadd.f32 %v1706_v12, %v1658_v14 }
 0x17c   : > { %v1807_v17 = vpop.f32.mrf.mxu1  ;;  %v1756_v57 = vadd.f32 %v1755_v7, %v1707_v11 }
 0x17e   : > { %v1805_v19 = vadd.f32 %v1804_v8, %v1756_v57 }
 0x17f   : > { %v1660_v21 = vpop.f32.mrf.mxu2 }
 0x180   : > { %v1709_v23 = vpop.f32.mrf.mxu3  ;;  %v1843_v58 = vmax.f32 %v1805_v19, 0.0  ;;  %v1661_v24 = vadd.f32 %v1660_v21, %v3322_v45 }
 0x181   : > { %v1760_v29 = vpop.f32.mrf.mxu0 }
 0x182   : > { %1859 = vst [vmem:[%s3410_s30 + $0x8] sm:$0xff] %v1843_v58  ;;  %v1710_v27 = vadd.f32 %v1709_v23, %v1661_v24 }
 0x184   : > { %v1809_v62 = vpop.f32.mrf.mxu1  ;;  %v1759_v32 = vadd.f32 %v1758_v15, %v1710_v27 }
 0x186   : > { %v1808_v33 = vadd.f32 %v1807_v17, %v1759_v32 }
 0x187   : > { %v1662_v28 = vpop.f32.mrf.mxu2 }
 0x188   : > { %v1711_v5 = vpop.f32.mrf.mxu3  ;;  %v1844_v35 = vmax.f32 %v1808_v33, 0.0  ;;  %v1663_v63 = vadd.f32 %v1662_v28, %v3327_v0 }
 0x189   : > { %v1763_v39 = vpop.f32.mrf.mxu0 }
 0x18a   : > { %1860 = vst [vmem:[%s3410_s30 + $0x10] sm:$0xff] %v1844_v35  ;;  %v1712_v38 = vadd.f32 %v1711_v5, %v1663_v63 }
 0x18c   : > { %v1812_v18 = vpop.f32.mrf.mxu1  ;;  %v1761_v41 = vadd.f32 %v1760_v29, %v1712_v38 }
 0x18e   : > { %v1810_v42 = vadd.f32 %v1809_v62, %v1761_v41 }
 0x18f   : > { %v1665_v45 = vpop.f32.mrf.mxu2 }
 0x190   : > { %v1714_v43 = vpop.f32.mrf.mxu3  ;;  %v1845_v46 = vmax.f32 %v1810_v42, 0.0  ;;  %v1666_v47 = vadd.f32 %v1665_v45, %v3336_v16 }
 0x191   : > { %v1765_v50 = vpop.f32.mrf.mxu0 }
 0x192   : > { %1861 = vst [vmem:[%s3410_s30 + $0x18] sm:$0xff] %v1845_v46  ;;  %v1715_v48 = vadd.f32 %v1714_v43, %v1666_v47 }
 0x194   : > { %v1814_v20 = vpop.f32.mrf.mxu1  ;;  %v1764_v54 = vadd.f32 %v1763_v39, %v1715_v48 }
 0x196   : > { %v1813_v25 = vadd.f32 %v1812_v18, %v1764_v54 }
 0x197   : > { %v1667_v0 = vpop.f32.mrf.mxu2 }
 0x198   : > { %v1716_v56 = vpop.f32.mrf.mxu3  ;;  %v1846_v49 = vmax.f32 %v1813_v25, 0.0  ;;  %v1668_v26 = vadd.f32 %v1667_v0, %v3341_v34 }
 0x199   : > { %v1768_v61 = vpop.f32.mrf.mxu0 }
 0x19a   : > { %1862 = vst [vmem:[%s3410_s30 + $0x20] sm:$0xff] %v1846_v49  ;;  %v1717_v60 = vadd.f32 %v1716_v56, %v1668_v26 }
 0x19c   : > { %v1817_v36 = vpop.f32.mrf.mxu1  ;;  %v1766_v1 = vadd.f32 %v1765_v50, %v1717_v60 }
 0x19e   : > { %v1815_v2 = vadd.f32 %v1814_v20, %v1766_v1 }
 0x19f   : > { %v1670_v16 = vpop.f32.mrf.mxu2 }
 0x1a0   : > { %v1719_v3 = vpop.f32.mrf.mxu3  ;;  %v1847_v31 = vmax.f32 %v1815_v2, 0.0  ;;  %v1671_v37 = vadd.f32 %v1670_v16, %v3350_v52 }
 0x1a1   : > { %v1770_v8 = vpop.f32.mrf.mxu0 }
 0x1a2   : > { %1863 = vst [vmem:[%s3410_s30 + $0x28] sm:$0xff] %v1847_v31  ;;  %v1720_v7 = vadd.f32 %v1719_v3, %v1671_v37 }
 0x1a4   : > { %v1819_v9 = vpop.f32.mrf.mxu1  ;;  %v1769_v51 = vadd.f32 %v1768_v61, %v1720_v7 }
 0x1a6   : > { %v1818_v53 = vadd.f32 %v1817_v36, %v1769_v51 }
 0x1a7   : > { %v1672_v34 = vpop.f32.mrf.mxu2 }
 0x1a8   : > { %v1721_v12 = vpop.f32.mrf.mxu3  ;;  %v1848_v13 = vmax.f32 %v1818_v53, 0.0  ;;  %v1673_v14 = vadd.f32 %v1672_v34, %v3355_v6 }
 0x1a9   : > { %v1773_v15 = vpop.f32.mrf.mxu0 }
 0x1aa   : > { %1864 = vst [vmem:[%s3410_s30 + $0x30] sm:$0xff] %v1848_v13  ;;  %v1722_v11 = vadd.f32 %v1721_v12, %v1673_v14 }
 0x1ac   : > { %v1822_v17 = vpop.f32.mrf.mxu1  ;;  %v1771_v57 = vadd.f32 %v1770_v8, %v1722_v11 }
 0x1ae   : > { %v1820_v19 = vadd.f32 %v1819_v9, %v1771_v57 }
 0x1af   : > { %v1675_v52 = vpop.f32.mrf.mxu2 }
 0x1b0   : > { %v1724_v21 = vpop.f32.mrf.mxu3  ;;  %v1849_v23 = vmax.f32 %v1820_v19, 0.0  ;;  %v1676_v58 = vadd.f32 %v1675_v52, %v3364_v22 }
 0x1b1   : > { %v1775_v27 = vpop.f32.mrf.mxu0 }
 0x1b2   : > { %1865 = vst [vmem:[%s3410_s30 + $0x38] sm:$0xff] %v1849_v23  ;;  %v1725_v24 = vadd.f32 %v1724_v21, %v1676_v58 }
 0x1b4   : > { %v1824_v29 = vpop.f32.mrf.mxu1  ;;  %v1774_v62 = vadd.f32 %v1773_v15, %v1725_v24 }
 0x1b6   : > { %v1823_v32 = vadd.f32 %v1822_v17, %v1774_v62 }
 0x1b7   : > { %v1677_v6 = vpop.f32.mrf.mxu2 }
 0x1b8   : > { %v1726_v33 = vpop.f32.mrf.mxu3  ;;  %v1850_v28 = vmax.f32 %v1823_v32, 0.0  ;;  %v1678_v5 = vadd.f32 %v1677_v6, %v3369_v40 }
 0x1b9   : > { %v1778_v63 = vpop.f32.mrf.mxu0 }
 0x1ba   : > { %1866 = vst [vmem:[%s3410_s30 + $0x40] sm:$0xff] %v1850_v28  ;;  %v1727_v35 = vadd.f32 %v1726_v33, %v1678_v5 }
 0x1bc   : > { %v1827_v38 = vpop.f32.mrf.mxu1  ;;  %v1776_v39 = vadd.f32 %v1775_v27, %v1727_v35 }
 0x1be   : > { %v1825_v18 = vadd.f32 %v1824_v29, %v1776_v39 }
 0x1bf   : > { %v1680_v22 = vpop.f32.mrf.mxu2 }
 0x1c0   : > { %v1729_v41 = vpop.f32.mrf.mxu3  ;;  %v1851_v42 = vmax.f32 %v1825_v18, 0.0  ;;  %v1681_v45 = vadd.f32 %v1680_v22, %v3378_v59 }
 0x1c1   : > { %v1780_v46 = vpop.f32.mrf.mxu0 }
 0x1c2   : > { %1867 = vst [vmem:[%s3410_s30 + $0x48] sm:$0xff] %v1851_v42  ;;  %v1730_v43 = vadd.f32 %v1729_v41, %v1681_v45 }
 0x1c4   : > { %v1779_v47 = vadd.f32 %v1778_v63, %v1730_v43  ;;  %v1829_v48 = vpop.f32.mrf.mxu1 }
 0x1c6   : > { %v1828_v50 = vadd.f32 %v1827_v38, %v1779_v47 }
 0x1c7   : > { %v1682_v40 = vpop.f32.mrf.mxu2 }
 0x1c8   : > { %v1731_v20 = vpop.f32.mrf.mxu3  ;;  %v1852_v54 = vmax.f32 %v1828_v50, 0.0  ;;  %v1683_v25 = vadd.f32 %v1682_v40, %v3383_v10 }
 0x1c9   : > { %v1783_v49 = vpop.f32.mrf.mxu0 }
 0x1ca   : > { %1868 = vst [vmem:[%s3410_s30 + $0x50] sm:$0xff] %v1852_v54  ;;  %v1732_v0 = vadd.f32 %v1731_v20, %v1683_v25 }
 0x1cc   : > { %v1781_v56 = vadd.f32 %v1780_v46, %v1732_v0  ;;  %v1832_v60 = vpop.f32.mrf.mxu1 }
 0x1ce   : > { %v1830_v26 = vadd.f32 %v1829_v48, %v1781_v56 }
 0x1cf   : > { %v1685_v59 = vpop.f32.mrf.mxu2 }
 0x1d0   : > { %v1734_v61 = vpop.f32.mrf.mxu3  ;;  %v1853_v36 = vmax.f32 %v1830_v26, 0.0  ;;  %v1686_v1 = vadd.f32 %v1685_v59, %v3392_v4 }
 0x1d1   : > { %v1785_v31 = vpop.f32.mrf.mxu0 }
 0x1d2   : > { %1869 = vst [vmem:[%s3410_s30 + $0x58] sm:$0xff] %v1853_v36  ;;  %v1735_v2 = vadd.f32 %v1734_v61, %v1686_v1 }
 0x1d4   : > { %v1784_v16 = vadd.f32 %v1783_v49, %v1735_v2  ;;  %v1834_v9 = vpop.f32.mrf.mxu1 }
 0x1d6   : > { %v1833_v3 = vadd.f32 %v1832_v60, %v1784_v16 }
 0x1d7   : > { %v1687_v37 = vpop.f32.mrf.mxu2 }
 0x1d8   : > { %v1736_v10 = vpop.f32.mrf.mxu3  ;;  %v1854_v7 = vmax.f32 %v1833_v3, 0.0  ;;  %v1688_v8 = vadd.f32 %v1687_v37, %v3397_v44 }
 0x1d9   : > { %v1788_v11 = vpop.f32.mrf.mxu0 }
 0x1da   : > { %1870 = vst [vmem:[%s3410_s30 + $0x60] sm:$0xff] %v1854_v7  ;;  %v1737_v51 = vadd.f32 %v1736_v10, %v1688_v8 }
 0x1dc   : > { %v1786_v53 = vadd.f32 %v1785_v31, %v1737_v51  ;;  %v1837_v17 = vpop.f32.mrf.mxu1 }
 0x1de   : > { %v1835_v34 = vadd.f32 %v1834_v9, %v1786_v53 }
 0x1df   : > { %v1690_v12 = vpop.f32.mrf.mxu2 }
 0x1e0   : > { %v1739_v13 = vpop.f32.mrf.mxu3  ;;  %v1855_v4 = vmax.f32 %v1835_v34, 0.0  ;;  %v1691_v14 = vadd.f32 %v1690_v12, %v3400_v55 }
 0x1e1   : > { %v1790_v24 = vpop.f32.mrf.mxu0 }
 0x1e2   : > { %1871 = vst [vmem:[%s3410_s30 + $0x68] sm:$0xff] %v1855_v4  ;;  %v1740_v15 = vadd.f32 %v1739_v13, %v1691_v14 }
 0x1e4   : > { %v1789_v57 = vadd.f32 %v1788_v11, %v1740_v15  ;;  %v1839_v29 = vpop.f32.mrf.mxu1 }
 0x1e6   : > { %v1838_v19 = vadd.f32 %v1837_v17, %v1789_v57 }
 0x1e7   : > { %v1692_v52 = vpop.f32.mrf.mxu2 }
 0x1e8   : > { %v1856_v44 = vmax.f32 %v1838_v19, 0.0  ;;  %v1693_v21 = vadd.f32 %v1692_v52, %v3403_v30  ;;  %v1741_v23 = vpop.f32.mrf.mxu3 }
 0x1ea   : > { %1872 = vst [vmem:[%s3410_s30 + $0x70] sm:$0xff] %v1856_v44  ;;  %v1742_v58 = vadd.f32 %v1741_v23, %v1693_v21 }
 0x1ec   : > { %v1791_v27 = vadd.f32 %v1790_v24, %v1742_v58 }
 0x1ee   : > { %v1840_v62 = vadd.f32 %v1839_v29, %v1791_v27 }
 0x1f0   : > { %v1857_v32 = vmax.f32 %v1840_v62, 0.0 }
 0x1f2   : > { %1873 = vst [vmem:[%s3410_s30 + $0x78] sm:$0xff] %v1857_v32 }
 0x1f3 PF: > { %s13_s14 = sadd.s32 1, %s2853_s14   ;;  %s3456_s12 = smov %s2849_s13 }
 0x1f4   : > { %p10_p5 = scmp.ge.s32.totalorder %s13_s14, 6   ;;  %s3457_s13 = smov %s3459_s15 }
 0x1f6   :  { %12 = sbr.rel (!%p10_p5) target bundleno = 2 (0x2), region = 68 }

// kernel: refine_forward.19
= control target key start
LH: loop header
LB: loop body
LE: loop exit
PB: predicated region body
PF: predicated region fallthrough
CT: control target
= control target key end

     0   :  { %s2493_s12 = smov 0   ;;  %s2495_s13 = smov 0   ;;  %s2998_s0 = inlined_call_operand.vmem [shape: bf16[672,1152], index: 0, kind: input, shape index: {}]   ;;  %s2999_s1 = inlined_call_operand.vmem [shape: bf16[1152,2], index: 1, kind: input, shape index: {}]   ;;  %s3000_s2 = inlined_call_operand.vmem [shape: f32[1,2], index: 2, kind: input, shape index: {}]   ;;  %s3001_s3 = inlined_call_operand.vmem [shape: f32[672,2], index: 3, kind: output, shape index: {}]  }
   0x1   :  { %s2497_s14 = smov 0  }
   0x2 LB: > { %s25_s15 = sadd.s32 1, %s2467_s13  ;;  %p1719_p0 = scmp.ge.s32.totalorder %s2471_s14, 1  ;;  %s2471_s14 = sphi %s2497_s14, %s13_s14   ;;  %s2467_s13 = sphi %s2495_s13, %s3003_s13   ;;  %s2463_s12 = sphi %s2493_s12, %s3002_s12  }
   0x3   : > { %p27_p1 = scmp.ge.s32.totalorder %s25_s15, 6  ;;  %p170_p2 = scmp.lt.s32.totalorder %s2471_s14, 7 }
   0x5   : > { %s3005_s15 = smov (%p27_p1, %s25_s15), 0  ;;  %p171_p3 = pnand %p1719_p0, %p170_p2 }
   0x6   : > { %s205_s22 = smul.u32 (!%p171_p3), 14, %s2463_s12 }
   0x7   : > { %174 = sbr.rel (%p171_p3) target bundleno = 431 (0x1af), region = 32 }
   0x8   : > { %p206_p4 = scmp.lt.s32.totalorder (!%p171_p3), %s205_s22, 83 }
   0xc   : > { %v2334_v0 = vld [vmem:[%s2999_s1 + $0x38] sm:$0xff]  ;;  %v2333_v1 = vld [vmem:[%s2999_s1 + $0x30] sm:$0xff]  ;;  %v2332_v2 = vld [vmem:[%s2999_s1 + $0x28] sm:$0xff]  ;;  %s3007_s22 = smov (!%p206_p4, %s205_s22), 83  ;;  %vm1596_vm0 = vcmask 15360  }
   0xd   : > { %2399 = vmatpush.bf16.msra.mxu1 %v2334_v0  ;;  %2400 = vmatpush.bf16.msra.mxu2 %v2334_v0  ;;  %v2331_v3 = vld [vmem:[%s2999_s1 + $0x20] sm:$0xff]  ;;  %v2330_v4 = vld [vmem:[%s2999_s1 + $0x18] sm:$0xff]  ;;  %v2329_v5 = vld [vmem:[%s2999_s1 + $0x10] sm:$0xff]  ;;  %s2423_s29 = smul.u32 36, %s3007_s22 }
   0xe   : > { %2401 = vmatpush.bf16.msra.mxu3 %v2334_v0  ;;  %1200 = vmatpush.bf16.msra.mxu0 %v2334_v0  ;;  %v2328_v6 = vld [vmem:[%s2999_s1 + $0x8] sm:$0xff]  ;;  %v2327_v7 = vld [vmem:[%s2999_s1] sm:$0xff]  ;;  %v2358_v12 = vld [vmem:[%s2999_s1 + $0xf8] sm:$0xff] }
   0xf   : > { %s2541_s7 = scalar_lea.vmem %s2998_s0, %s2423_s29  ;;  %v2350_v15 = vld [vmem:[%s2999_s1 + $0xb8] sm:$0xff]  ;;  %v2357_v24 = vld [vmem:[%s2999_s1 + $0xf0] sm:$0xff]  ;;  %v2356_v28 = vld [vmem:[%s2999_s1 + $0xe8] sm:$0xff] }
  0x10   : > { %v1796_v8 = vld [vmem:[%s2541_s7 + $0x90] sm:$0xf]  ;;  %v2286_v9 = vld [vmem:[%s2541_s7 + $0xb0] sm:$0xf0]  ;;  %v1868_v10 = vld [vmem:[%s2541_s7 + $0x120] sm:$0xf] }
  0x11   : > { %2402 = vmatpush.bf16.msra.mxu1 %v2333_v1  ;;  %2403 = vmatpush.bf16.msra.mxu2 %v2333_v1  ;;  %v2304_v11 = vld [vmem:[%s2541_s7 + $0x140] sm:$0xf0]  ;;  %v1724_v13 = vld [vmem:[%s2541_s7] sm:$0xf]  ;;  %v1940_v16 = vld [vmem:[%s2541_s7 + $0x1b0] sm:$0xf]  ;;  %v1797_v18 = vor.u32 %v2286_v9, %v1796_v8 }
  0x12   : > { %2404 = vmatpush.bf16.msra.mxu3 %v2333_v1  ;;  %1201 = vmatpush.bf16.msra.mxu0 %v2333_v1  ;;  %v2268_v14 = vld [vmem:[%s2541_s7 + $0x20] sm:$0xf0]  ;;  %v2322_v17 = vld [vmem:[%s2541_s7 + $0x1d0] sm:$0xf0]  ;;  %v1869_v19 = vor.u32 %v2304_v11, %v1868_v10  ;;  %v2342_v20 = vld [vmem:[%s2999_s1 + $0x78] sm:$0xff] }
  0x13   : > { %v1725_v21 = vor.u32 %v2268_v14, %v1724_v13  ;;  %v2366_v22 = vld [vmem:[%s2999_s1 + $0x138] sm:$0xff]  ;;  %v1941_v23 = vor.u32 %v2322_v17, %v1940_v16  ;;  %v2349_v25 = vld [vmem:[%s2999_s1 + $0xb0] sm:$0xff]  ;;  %v2348_v29 = vld [vmem:[%s2999_s1 + $0xa8] sm:$0xff] }
  0x14   : > { %v2341_v26 = vld [vmem:[%s2999_s1 + $0x70] sm:$0xff]  ;;  %v2340_v30 = vld [vmem:[%s2999_s1 + $0x68] sm:$0xff]  ;;  %v2355_v32 = vld [vmem:[%s2999_s1 + $0xe0] sm:$0xff] }
  0x15   : > { %2405 = vmatpush.bf16.msra.mxu1 %v2332_v2  ;;  %2406 = vmatpush.bf16.msra.mxu2 %v2332_v2  ;;  %v2365_v27 = vld [vmem:[%s2999_s1 + $0x130] sm:$0xff]  ;;  %v2364_v31 = vld [vmem:[%s2999_s1 + $0x128] sm:$0xff]  ;;  %v2347_v33 = vld [vmem:[%s2999_s1 + $0xa0] sm:$0xff] }
  0x16   : > { %2407 = vmatpush.bf16.msra.mxu3 %v2332_v2  ;;  %1202 = vmatpush.bf16.msra.mxu0 %v2332_v2  ;;  %v2339_v34 = vld [vmem:[%s2999_s1 + $0x60] sm:$0xff]  ;;  %v1832_v35 = vld [vmem:[%s2541_s7 + $0xd8] sm:$0xf]  ;;  %v2295_v36 = vld [vmem:[%s2541_s7 + $0xf8] sm:$0xf0] }
  0x17   : > { %v1904_v37 = vld [vmem:[%s2541_s7 + $0x168] sm:$0xf]  ;;  %v2313_v38 = vld [vmem:[%s2541_s7 + $0x188] sm:$0xf0]  ;;  %v2363_v39 = vld [vmem:[%s2999_s1 + $0x120] sm:$0xff]  ;;  %v1833_v44 = vor.u32 %v2295_v36, %v1832_v35 }
  0x18   : > { %v1760_v40 = vld [vmem:[%s2541_s7 + $0x48] sm:$0xf]  ;;  %v2277_v41 = vld [vmem:[%s2541_s7 + $0x68] sm:$0xf0]  ;;  %v2354_v42 = vld [vmem:[%s2999_s1 + $0xd8] sm:$0xff]  ;;  %v1905_v45 = vor.u32 %v2313_v38, %v1904_v37 }
  0x19   : > { %2408 = vmatpush.bf16.msra.mxu1 %v2331_v3  ;;  %2409 = vmatpush.bf16.msra.mxu2 %v2331_v3  ;;  %v2346_v43 = vld [vmem:[%s2999_s1 + $0x98] sm:$0xff]  ;;  %v1761_v47 = vor.u32 %v2277_v41, %v1760_v40  ;;  %v2353_v49 = vld [vmem:[%s2999_s1 + $0xd0] sm:$0xff]  ;;  %v2352_v53 = vld [vmem:[%s2999_s1 + $0xc8] sm:$0xff] }
  0x1a   : > { %2410 = vmatpush.bf16.msra.mxu3 %v2331_v3  ;;  %1203 = vmatpush.bf16.msra.mxu0 %v2331_v3  ;;  %v2338_v46 = vld [vmem:[%s2999_s1 + $0x58] sm:$0xff]  ;;  %v2345_v50 = vld [vmem:[%s2999_s1 + $0x90] sm:$0xff]  ;;  %v2344_v54 = vld [vmem:[%s2999_s1 + $0x88] sm:$0xff] }
  0x1b   : > { %v2362_v48 = vld [vmem:[%s2999_s1 + $0x118] sm:$0xff]  ;;  %v2337_v51 = vld [vmem:[%s2999_s1 + $0x50] sm:$0xff]  ;;  %v2336_v55 = vld [vmem:[%s2999_s1 + $0x48] sm:$0xff] }
  0x1c   : > { %v2361_v52 = vld [vmem:[%s2999_s1 + $0x110] sm:$0xff]  ;;  %v2351_v56 = vld [vmem:[%s2999_s1 + $0xc0] sm:$0xff]  ;;  %v2360_v57 = vld [vmem:[%s2999_s1 + $0x108] sm:$0xff] }
  0x1d   : > { %2411 = vmatpush.bf16.msra.mxu1 %v2330_v4  ;;  %2412 = vmatpush.bf16.msra.mxu2 %v2330_v4  ;;  %v2343_v58 = vld [vmem:[%s2999_s1 + $0x80] sm:$0xff]  ;;  %v2265_v60 = vld [vmem:[%s2541_s7 + $0xc] sm:$0xf]  ;;  %v1734_v61 = vld [vmem:[%s2541_s7 + $0x2c] sm:$0xf0] }
  0x1e   : > { %2413 = vmatpush.bf16.msra.mxu3 %v2330_v4  ;;  %1204 = vmatpush.bf16.msra.mxu0 %v2330_v4  ;;  %v2335_v59 = vld [vmem:[%s2999_s1 + $0x40] sm:$0xff]  ;;  %v2382_v63 = vld [vmem:[%s2999_s1 + $0x1b8] sm:$0xff]  ;;  %v1726_v1 = vld [vmem:[%s2541_s7 + $0x24] sm:$0xf0]  ;;  %v1737_v4 = vor.u32 %v2265_v60, %v1734_v61 }
  0x1f   : > { %v2264_v62 = vld [vmem:[%s2541_s7 + $0x4] sm:$0xf]  ;;  %v2390_v0 = vld [vmem:[%s2999_s1 + $0x1f8] sm:$0xff]  ;;  %v1732_v2 = vld [vmem:[%s2541_s7 + $0x8] sm:$0xf] }
  0x20   : > { %v2269_v3 = vld [vmem:[%s2541_s7 + $0x28] sm:$0xf0]  ;;  %v2374_v8 = vld [vmem:[%s2999_s1 + $0x178] sm:$0xff]  ;;  %v1729_v10 = vor.u32 %v2264_v62, %v1726_v1  ;;  %v2381_v13 = vld [vmem:[%s2999_s1 + $0x1b0] sm:$0xff] }
  0x21   : > { %2414 = vmatpush.bf16.msra.mxu1 %v2329_v5  ;;  %2415 = vmatpush.bf16.msra.mxu2 %v2329_v5  ;;  %v2398_v9 = vld [vmem:[%s2999_s1 + $0x238] sm:$0xff]  ;;  %v1733_v11 = vor.u32 %v2269_v3, %v1732_v2  ;;  %v2389_v14 = vld [vmem:[%s2999_s1 + $0x1f0] sm:$0xff]  ;;  %v2380_v17 = vld [vmem:[%s2999_s1 + $0x1a8] sm:$0xff] }
  0x22   : > { %2416 = vmatpush.bf16.msra.mxu3 %v2329_v5  ;;  %1205 = vmatpush.bf16.msra.mxu0 %v2329_v5  ;;  %v2359_v5 = vld [vmem:[%s2999_s1 + $0x100] sm:$0xff]  ;;  %v2397_v16 = vld [vmem:[%s2999_s1 + $0x230] sm:$0xff]  ;;  %v2378_v37 = vld [vmem:[%s2999_s1 + $0x198] sm:$0xff] }
  0x23   : > { %v2371_v35 = vld [vmem:[%s2999_s1 + $0x160] sm:$0xff]  ;;  %v2386_v38 = vld [vmem:[%s2999_s1 + $0x1d8] sm:$0xff] }
  0x24   : > { %v2395_v36 = vld [vmem:[%s2999_s1 + $0x220] sm:$0xff]  ;;  %v2283_v40 = vld [vmem:[%s2541_s7 + $0x9c] sm:$0xf] }
  0x25   : > { %2417 = vmatpush.bf16.msra.mxu1 %v2328_v6  ;;  %2418 = vmatpush.bf16.msra.mxu2 %v2328_v6  ;;  %v1806_v41 = vld [vmem:[%s2541_s7 + $0xbc] sm:$0xf0]  ;;  %v2296_v61 = vld [vmem:[%s2541_s7 + $0x100] sm:$0xf0] }
  0x26   : > { %2419 = vmatpush.bf16.msra.mxu3 %v2328_v6  ;;  %1206 = vmatpush.bf16.msra.mxu0 %v2328_v6  ;;  %v1740_v6 = vld [vmem:[%s2541_s7 + $0x10] sm:$0xf]  ;;  %v1840_v60 = vld [vmem:[%s2541_s7 + $0xe0] sm:$0xf] }
  0x27   : > { %v1841_v2 = vor.u32 %v2296_v61, %v1840_v60  ;;  %v2266_v60 = vld [vmem:[%s2541_s7 + $0x14] sm:$0xf]  ;;  %v1742_v61 = vld [vmem:[%s2541_s7 + $0x34] sm:$0xf0] }
  0x29   : > { %2420 = vmatpush.bf16.msra.mxu1 %v2327_v7  ;;  %2421 = vmatpush.bf16.msra.mxu2 %v2327_v7 }
  0x2a   : > { %2422 = vmatpush.bf16.msra.mxu3 %v2327_v7  ;;  %1207 = vmatpush.bf16.msra.mxu0 %v2327_v7  ;;  %v2270_v7 = vld [vmem:[%s2541_s7 + $0x30] sm:$0xf0] }
  0x2c   : > { %1218 = vmatmul.bf16.vlgmr.msra.gmra.mxu1 %v1797_v18  ;;  %1228 = vmatmul.bf16.vlgmr.msra.gmra.mxu2 %v1869_v19  ;;  %v2388_v18 = vld [vmem:[%s2999_s1 + $0x1e8] sm:$0xff] }
  0x2d   : > { %1288 = vmatpush.bf16.msrb.mxu2 %v2350_v15  ;;  %1244 = vmatpush.bf16.msrb.mxu1 %v2342_v20  ;;  %v2373_v15 = vld [vmem:[%s2999_s1 + $0x170] sm:$0xff]  ;;  %v2372_v19 = vld [vmem:[%s2999_s1 + $0x168] sm:$0xff] }
  0x2e   : > { %1332 = vmatpush.bf16.msrb.mxu3 %v2358_v12  ;;  %1208 = vmatmul.bf16.vlgmr.msra.gmra.mxu0 %v1725_v21  ;;  %v1741_v12 = vor.u32 %v2270_v7, %v1740_v6  ;;  %v2396_v20 = vld [vmem:[%s2999_s1 + $0x228] sm:$0xff]  ;;  %v2379_v21 = vld [vmem:[%s2999_s1 + $0x1a0] sm:$0xff] }
  0x2f   : > { %1376 = vmatpush.bf16.msrb.mxu0 %v2366_v22  ;;  %1238 = vmatmul.bf16.vlgmr.msra.gmra.mxu3 %v1941_v23  ;;  %v2387_v22 = vld [vmem:[%s2999_s1 + $0x1e0] sm:$0xff]  ;;  %v2274_v23 = vld [vmem:[%s2541_s7 + $0x54] sm:$0xf]  ;;  %v2384_v6 = vld [vmem:[%s2999_s1 + $0x1c8] sm:$0xff] }
  0x30   : > { %v2368_v7 = vld [vmem:[%s2999_s1 + $0x148] sm:$0xff] }
  0x31   : > { %1289 = vmatpush.bf16.msrb.mxu2 %v2349_v25  ;;  %1245 = vmatpush.bf16.msrb.mxu1 %v2341_v26  ;;  %v2273_v25 = vld [vmem:[%s2541_s7 + $0x4c] sm:$0xf]  ;;  %v1762_v26 = vld [vmem:[%s2541_s7 + $0x6c] sm:$0xf0] }
  0x32   : > { %1333 = vmatpush.bf16.msrb.mxu3 %v2357_v24  ;;  %v1770_v24 = vld [vmem:[%s2541_s7 + $0x74] sm:$0xf0] }
  0x33   : > { %1377 = vmatpush.bf16.msrb.mxu0 %v2365_v27  ;;  %v1768_v27 = vld [vmem:[%s2541_s7 + $0x50] sm:$0xf] }
  0x35   : > { %1290 = vmatpush.bf16.msrb.mxu2 %v2348_v29  ;;  %1246 = vmatpush.bf16.msrb.mxu1 %v2340_v30  ;;  %v1773_v29 = vor.u32 %v2274_v23, %v1770_v24  ;;  %v1776_v30 = vld [vmem:[%s2541_s7 + $0x58] sm:$0xf]  ;;  %v2367_v23 = vld [vmem:[%s2999_s1 + $0x140] sm:$0xff]  ;;  %v2310_v24 = vld [vmem:[%s2541_s7 + $0x174] sm:$0xf] }
  0x36   : > { %1334 = vmatpush.bf16.msrb.mxu3 %v2356_v28  ;;  %v2278_v28 = vld [vmem:[%s2541_s7 + $0x70] sm:$0xf0] }
  0x37   : > { %1378 = vmatpush.bf16.msrb.mxu0 %v2364_v31  ;;  %v2279_v31 = vld [vmem:[%s2541_s7 + $0x78] sm:$0xf0] }
  0x39   : > { %1291 = vmatpush.bf16.msrb.mxu2 %v2347_v33  ;;  %1247 = vmatpush.bf16.msrb.mxu1 %v2339_v34  ;;  %v1769_v33 = vor.u32 %v2278_v28, %v1768_v27  ;;  %v1777_v34 = vor.u32 %v2279_v31, %v1776_v30  ;;  %v1906_v27 = vld [vmem:[%s2541_s7 + $0x18c] sm:$0xf0]  ;;  %v1920_v31 = vld [vmem:[%s2541_s7 + $0x178] sm:$0xf] }
  0x3a   : > { %1335 = vmatpush.bf16.msrb.mxu3 %v2355_v32  ;;  %v1765_v32 = vor.u32 %v2273_v25, %v1762_v26  ;;  %v1914_v25 = vld [vmem:[%s2541_s7 + $0x194] sm:$0xf0]  ;;  %v2309_v26 = vld [vmem:[%s2541_s7 + $0x16c] sm:$0xf]  ;;  %v1912_v28 = vld [vmem:[%s2541_s7 + $0x170] sm:$0xf] }
  0x3b   : > { %1379 = vmatpush.bf16.msrb.mxu0 %v2363_v39  ;;  %v2370_v39 = vld [vmem:[%s2999_s1 + $0x158] sm:$0xff]  ;;  %v1917_v30 = vor.u32 %v2310_v24, %v1914_v25  ;;  %v2281_v24 = vld [vmem:[%s2541_s7 + $0x88] sm:$0xf0] }
  0x3c   : > { %1223 = vmatmul.bf16.gmra.mxu1 %v1833_v44  ;;  %1233 = vmatmul.bf16.gmra.mxu2 %v1905_v45  ;;  %v1804_v44 = vld [vmem:[%s2541_s7 + $0x98] sm:$0xf]  ;;  %v2287_v45 = vld [vmem:[%s2541_s7 + $0xb8] sm:$0xf0] }
  0x3d   : > { %1292 = vmatpush.bf16.msrb.mxu2 %v2346_v43  ;;  %1248 = vmatpush.bf16.msrb.mxu1 %v2338_v46  ;;  %v1798_v43 = vld [vmem:[%s2541_s7 + $0xb4] sm:$0xf0]  ;;  %v1809_v46 = vor.u32 %v2283_v40, %v1806_v41 }
  0x3e   : > { %1336 = vmatpush.bf16.msrb.mxu3 %v2354_v42  ;;  %1213 = vmatmul.bf16.gmra.mxu0 %v1761_v47  ;;  %v2282_v42 = vld [vmem:[%s2541_s7 + $0x94] sm:$0xf]  ;;  %v1812_v47 = vld [vmem:[%s2541_s7 + $0xa0] sm:$0xf]  ;;  %v1942_v40 = vld [vmem:[%s2541_s7 + $0x1d4] sm:$0xf0] }
  0x3f   : > { %1380 = vmatpush.bf16.msrb.mxu0 %v2362_v48  ;;  %v2288_v48 = vld [vmem:[%s2541_s7 + $0xc0] sm:$0xf0]  ;;  %v1948_v41 = vld [vmem:[%s2541_s7 + $0x1b8] sm:$0xf] }
  0x41   : > { %1293 = vmatpush.bf16.msrb.mxu2 %v2345_v50  ;;  %1249 = vmatpush.bf16.msrb.mxu1 %v2337_v51  ;;  %v1805_v50 = vor.u32 %v2287_v45, %v1804_v44  ;;  %v1813_v51 = vor.u32 %v2288_v48, %v1812_v47  ;;  %v1956_v44 = vld [vmem:[%s2541_s7 + $0x1c0] sm:$0xf]  ;;  %v2324_v45 = vld [vmem:[%s2541_s7 + $0x1e0] sm:$0xf0] }
  0x42   : > { %1337 = vmatpush.bf16.msrb.mxu3 %v2353_v49  ;;  %v1801_v49 = vor.u32 %v2282_v42, %v1798_v43  ;;  %v2323_v42 = vld [vmem:[%s2541_s7 + $0x1d8] sm:$0xf0] }
  0x43   : > { %1381 = vmatpush.bf16.msrb.mxu0 %v2361_v52  ;;  %v2394_v52 = vld [vmem:[%s2999_s1 + $0x218] sm:$0xff]  ;;  %v1949_v47 = vor.u32 %v2323_v42, %v1948_v41  ;;  %v2285_v42 = vld [vmem:[%s2541_s7 + $0xac] sm:$0xf] }
  0x45   : > { %1294 = vmatpush.bf16.msrb.mxu2 %v2344_v54  ;;  %1250 = vmatpush.bf16.msrb.mxu1 %v2336_v55  ;;  %v2385_v54 = vld [vmem:[%s2999_s1 + $0x1d0] sm:$0xff] }
  0x46   : > { %1338 = vmatpush.bf16.msrb.mxu3 %v2352_v53  ;;  %v2377_v53 = vld [vmem:[%s2999_s1 + $0x190] sm:$0xff] }
  0x47   : > { %1382 = vmatpush.bf16.msrb.mxu0 %v2360_v57  ;;  %v2369_v55 = vld [vmem:[%s2999_s1 + $0x150] sm:$0xff]  ;;  %v1842_v57 = vld [vmem:[%s2541_s7 + $0x104] sm:$0xf0] }
  0x49   : > { %1295 = vmatpush.bf16.msrb.mxu2 %v2343_v58  ;;  %1251 = vmatpush.bf16.msrb.mxu1 %v2335_v59  ;;  %v2291_v58 = vld [vmem:[%s2541_s7 + $0xdc] sm:$0xf]  ;;  %v1834_v59 = vld [vmem:[%s2541_s7 + $0xfc] sm:$0xf0] }
  0x4a   : > { %1339 = vmatpush.bf16.msrb.mxu3 %v2351_v56  ;;  %v2292_v56 = vld [vmem:[%s2541_s7 + $0xe4] sm:$0xf]  ;;  %v1837_v1 = vor.u32 %v2291_v58, %v1834_v59  ;;  %v2267_v58 = vld [vmem:[%s2541_s7 + $0x1c] sm:$0xf]  ;;  %v1750_v59 = vld [vmem:[%s2541_s7 + $0x3c] sm:$0xf0] }
  0x4b   : > { %1383 = vmatpush.bf16.msrb.mxu0 %v2359_v5  ;;  %v1845_v62 = vor.u32 %v2292_v56, %v1842_v57  ;;  %v2376_v5 = vld [vmem:[%s2999_s1 + $0x188] sm:$0xff] }
  0x4c   : > { %1252 = vmatmul.bf16.vlgmr.msrb.gmra.mxu1 %v1729_v10  ;;  %1296 = vmatmul.bf16.vlgmr.msrb.gmra.mxu2 %v1733_v11  ;;  %v2300_v10 = vld [vmem:[%s2541_s7 + $0x124] sm:$0xf]  ;;  %v1870_v11 = vld [vmem:[%s2541_s7 + $0x144] sm:$0xf0] }
  0x4d   : > { %1464 = vmatpush.bf16.msra.mxu2 %v2382_v63  ;;  %1340 = vmatmul.bf16.vlgmr.msrb.gmra.mxu3 %v1737_v4  ;;  %v1848_v63 = vld [vmem:[%s2541_s7 + $0xe8] sm:$0xf]  ;;  %v2393_v4 = vld [vmem:[%s2999_s1 + $0x210] sm:$0xff] }
  0x4e   : > { %1508 = vmatpush.bf16.msra.mxu3 %v2390_v0  ;;  %1420 = vmatpush.bf16.msra.mxu1 %v2374_v8  ;;  %v2297_v0 = vld [vmem:[%s2541_s7 + $0x108] sm:$0xf0] }
  0x4f   : > { %1552 = vmatpush.bf16.msra.mxu0 %v2398_v9  ;;  %v1849_v3 = vor.u32 %v2297_v0, %v1848_v63  ;;  %v2301_v8 = vld [vmem:[%s2541_s7 + $0x12c] sm:$0xf]  ;;  %v1878_v9 = vld [vmem:[%s2541_s7 + $0x14c] sm:$0xf0]  ;;  %v2271_v63 = vld [vmem:[%s2541_s7 + $0x38] sm:$0xf0]  ;;  %v1753_v0 = vor.u32 %v2267_v58, %v1750_v59 }
  0x50   : > { %1384 = vmatmul.bf16.vlgmr.msrb.gmra.mxu0 %v1741_v12  ;;  %v1876_v12 = vld [vmem:[%s2541_s7 + $0x128] sm:$0xf]  ;;  %v2290_v58 = vld [vmem:[%s2541_s7 + $0xd0] sm:$0xf0] }
  0x51   : > { %1465 = vmatpush.bf16.msra.mxu2 %v2381_v13  ;;  %v2305_v13 = vld [vmem:[%s2541_s7 + $0x148] sm:$0xf0] }
  0x52   : > { %1509 = vmatpush.bf16.msra.mxu3 %v2389_v14  ;;  %1421 = vmatpush.bf16.msra.mxu1 %v2373_v15  ;;  %v1881_v14 = vor.u32 %v2301_v8, %v1878_v9  ;;  %v1884_v15 = vld [vmem:[%s2541_s7 + $0x130] sm:$0xf] }
  0x53   : > { %1553 = vmatpush.bf16.msra.mxu0 %v2397_v16  ;;  %v2306_v16 = vld [vmem:[%s2541_s7 + $0x150] sm:$0xf0] }
  0x55   : > { %1466 = vmatpush.bf16.msra.mxu2 %v2380_v17  ;;  %v1873_v17 = vor.u32 %v2300_v10, %v1870_v11 }
  0x56   : > { %1510 = vmatpush.bf16.msra.mxu3 %v2388_v18  ;;  %1422 = vmatpush.bf16.msra.mxu1 %v2372_v19  ;;  %v1877_v18 = vor.u32 %v2305_v13, %v1876_v12  ;;  %v1885_v19 = vor.u32 %v2306_v16, %v1884_v15  ;;  %v2276_v16 = vld [vmem:[%s2541_s7 + $0x64] sm:$0xf] }
  0x57   : > { %1554 = vmatpush.bf16.msra.mxu0 %v2396_v20  ;;  %v2392_v20 = vld [vmem:[%s2999_s1 + $0x208] sm:$0xff] }
  0x59   : > { %1467 = vmatpush.bf16.msra.mxu2 %v2379_v21  ;;  %v2375_v21 = vld [vmem:[%s2999_s1 + $0x180] sm:$0xff] }
  0x5a   : > { %1511 = vmatpush.bf16.msra.mxu3 %v2387_v22  ;;  %1423 = vmatpush.bf16.msra.mxu1 %v2371_v35  ;;  %v2383_v22 = vld [vmem:[%s2999_s1 + $0x1c0] sm:$0xff] }
  0x5b   : > { %1555 = vmatpush.bf16.msra.mxu0 %v2395_v36  ;;  %v2391_v35 = vld [vmem:[%s2999_s1 + $0x200] sm:$0xff] }
  0x5c   : > { %1257 = vmatmul.bf16.gmra.mxu1 %v1765_v32  ;;  %1301 = vmatmul.bf16.gmra.mxu2 %v1769_v33  ;;  %v2315_v32 = vld [vmem:[%s2541_s7 + $0x198] sm:$0xf0]  ;;  %v1909_v33 = vor.u32 %v2309_v26, %v1906_v27 }
  0x5d   : > { %1345 = vmatmul.bf16.gmra.mxu3 %v1773_v29  ;;  %1468 = vmatpush.bf16.msra.mxu2 %v2378_v37  ;;  %v2314_v29 = vld [vmem:[%s2541_s7 + $0x190] sm:$0xf0]  ;;  %v1921_v36 = vor.u32 %v2315_v32, %v1920_v31  ;;  %v2319_v37 = vld [vmem:[%s2541_s7 + $0x1bc] sm:$0xf] }
  0x5e   : > { %1512 = vmatpush.bf16.msra.mxu3 %v2386_v38  ;;  %1424 = vmatpush.bf16.msra.mxu1 %v2370_v39  ;;  %v1950_v38 = vld [vmem:[%s2541_s7 + $0x1dc] sm:$0xf0]  ;;  %v2318_v39 = vld [vmem:[%s2541_s7 + $0x1b4] sm:$0xf] }
  0x5f   : > { %1556 = vmatpush.bf16.msra.mxu0 %v2394_v52  ;;  %v1953_v43 = vor.u32 %v2319_v37, %v1950_v38 }
  0x60   : > { %1389 = vmatmul.bf16.gmra.mxu0 %v1777_v34  ;;  %v1913_v34 = vor.u32 %v2314_v29, %v1912_v28 }
  0x61   : > { %1469 = vmatpush.bf16.msra.mxu2 %v2377_v53 }
  0x62   : > { %1513 = vmatpush.bf16.msra.mxu3 %v2385_v54  ;;  %1425 = vmatpush.bf16.msra.mxu1 %v2369_v55 }
  0x63   : > { %1557 = vmatpush.bf16.msra.mxu0 %v2393_v4 }
  0x65   : > { %1470 = vmatpush.bf16.msra.mxu2 %v2376_v5  ;;  %v1745_v5 = vor.u32 %v2266_v60, %v1742_v61 }
  0x66   : > { %1514 = vmatpush.bf16.msra.mxu3 %v2384_v6  ;;  %1426 = vmatpush.bf16.msra.mxu1 %v2368_v7 }
  0x67   : > { %1558 = vmatpush.bf16.msra.mxu0 %v2392_v20  ;;  %v1784_v20 = vld [vmem:[%s2541_s7 + $0x60] sm:$0xf] }
  0x69   : > { %1471 = vmatpush.bf16.msra.mxu2 %v2375_v21  ;;  %v2280_v21 = vld [vmem:[%s2541_s7 + $0x80] sm:$0xf0] }
  0x6a   : > { %1515 = vmatpush.bf16.msra.mxu3 %v2383_v22  ;;  %1427 = vmatpush.bf16.msra.mxu1 %v2367_v23  ;;  %v1792_v23 = vld [vmem:[%s2541_s7 + $0x68] sm:$0xf]  ;;  %v1785_v29 = vor.u32 %v2280_v21, %v1784_v20  ;;  %v1858_v20 = vld [vmem:[%s2541_s7 + $0x114] sm:$0xf0]  ;;  %v2293_v21 = vld [vmem:[%s2541_s7 + $0xec] sm:$0xf] }
  0x6b   : > { %1559 = vmatpush.bf16.msra.mxu0 %v2391_v35  ;;  %v1793_v31 = vor.u32 %v2281_v24, %v1792_v23  ;;  %v1850_v24 = vld [vmem:[%s2541_s7 + $0x10c] sm:$0xf0] }
  0x6c   : > { %1262 = vmatmul.bf16.gmra.mxu1 %v1801_v49  ;;  %1306 = vmatmul.bf16.gmra.mxu2 %v1805_v50  ;;  %v1957_v49 = vor.u32 %v2324_v45, %v1956_v44  ;;  %v2284_v44 = vld [vmem:[%s2541_s7 + $0xa4] sm:$0xf] }
  0x6d   : > { %1350 = vmatmul.bf16.gmra.mxu3 %v1809_v46  ;;  %v1945_v46 = vor.u32 %v2318_v39, %v1942_v40 }
  0x70   : > { %1394 = vmatmul.bf16.gmra.mxu0 %v1813_v51  ;;  %v2813_v51 = vld [vmem:[%s3000_s2] ss:$0 sm:$0xff] }
  0x7c   : > { %1267 = vmatmul.bf16.gmra.mxu1 %v1837_v1  ;;  %1311 = vmatmul.bf16.gmra.mxu2 %v1841_v2  ;;  %v1756_v1 = vld [vmem:[%s2541_s7 + $0x20] sm:$0xf]  ;;  %v2272_v2 = vld [vmem:[%s2541_s7 + $0x40] sm:$0xf0] }
  0x7d   : > { %1355 = vmatmul.bf16.gmra.mxu3 %v1845_v62  ;;  %v1748_v62 = vld [vmem:[%s2541_s7 + $0x18] sm:$0xf]  ;;  %v1757_v8 = vor.u32 %v2272_v2, %v1756_v1 }
  0x7e   : > { %v1749_v6 = vor.u32 %v2271_v63, %v1748_v62 }
  0x80   : > { %1399 = vmatmul.bf16.gmra.mxu0 %v1849_v3 }
  0x8c   : > { %1272 = vmatmul.bf16.gmra.mxu1 %v1873_v17  ;;  %1316 = vmatmul.bf16.gmra.mxu2 %v1877_v18  ;;  %v1786_v17 = vld [vmem:[%s2541_s7 + $0x84] sm:$0xf0]  ;;  %v2275_v18 = vld [vmem:[%s2541_s7 + $0x5c] sm:$0xf] }
  0x8d   : > { %1360 = vmatmul.bf16.gmra.mxu3 %v1881_v14  ;;  %v1789_v22 = vor.u32 %v2276_v16, %v1786_v17 }
  0x90   : > { %1404 = vmatmul.bf16.gmra.mxu0 %v1885_v19  ;;  %v1778_v19 = vld [vmem:[%s2541_s7 + $0x7c] sm:$0xf0] }
  0x91   : > { %v1781_v28 = vor.u32 %v2275_v18, %v1778_v19  ;;  %v2294_v19 = vld [vmem:[%s2541_s7 + $0xf4] sm:$0xf] }
  0x9c   : > { %1277 = vmatmul.bf16.gmra.mxu1 %v1909_v33  ;;  %1321 = vmatmul.bf16.gmra.mxu2 %v1913_v34 }
  0x9d   : > { %1365 = vmatmul.bf16.gmra.mxu3 %v1917_v30 }
  0xa0   : > { %1409 = vmatmul.bf16.gmra.mxu0 %v1921_v36 }
  0xa9   : > { %v2808_v48 = vpop.f32.mrf.mxu1 }
  0xab   : > { %v1209_v50 = vpop.f32.mrf.mxu0 }
  0xac   : > { %1282 = vmatmul.bf16.gmra.mxu1 %v1945_v46  ;;  %1326 = vmatmul.bf16.gmra.mxu2 %v1949_v47  ;;  %v1210_v26 = vadd.f32 %v2813_v51, %v1209_v50  ;;  %v1814_v47 = vld [vmem:[%s2541_s7 + $0xc4] sm:$0xf0]  ;;  %v2289_v50 = vld [vmem:[%s2541_s7 + $0xc8] sm:$0xf0] }
  0xad   : > { %1370 = vmatmul.bf16.gmra.mxu3 %v1953_v43  ;;  %v1822_v43 = vld [vmem:[%s2541_s7 + $0xcc] sm:$0xf0]  ;;  %v1817_v61 = vor.u32 %v2284_v44, %v1814_v47 }
  0xaf   : > { %v1229_v52 = vpop.f32.mrf.mxu2 }
  0xb0   : > { %1414 = vmatmul.bf16.gmra.mxu0 %v1957_v49  ;;  %v2816_v53 = vadd.f32 %v2813_v51, %v1229_v52  ;;  %v1820_v49 = vld [vmem:[%s2541_s7 + $0xa8] sm:$0xf]  ;;  %v1825_v52 = vor.u32 %v2285_v42, %v1822_v43 }
  0xb1   : > { %v2818_v54 = vpop.f32.mrf.mxu1  ;;  %v1821_v62 = vor.u32 %v2289_v50, %v1820_v49  ;;  %v2303_v50 = vld [vmem:[%s2541_s7 + $0x13c] sm:$0xf] }
  0xb2   : > { %v1239_v55 = vpop.f32.mrf.mxu3  ;;  %v1222_v42 = vadd.f32 %v2813_v51, %v2818_v54 }
  0xb3   : > { %v1211_v56 = vpop.f32.mrf.mxu0  ;;  %v2821_v57 = vadd.f32 %v2813_v51, %v1239_v55  ;;  %v1828_v55 = vld [vmem:[%s2541_s7 + $0xb0] sm:$0xf] }
  0xb4   : > { %v1212_v36 = vadd.f32 %v2813_v51, %v1211_v56 }
  0xb7   : > { %v1231_v3 = vpop.f32.mrf.mxu2 }
  0xb8   : > { %v2832_v4 = vadd.f32 %v2813_v51, %v1231_v3 }
  0xb9   : > { %v2834_v7 = vpop.f32.mrf.mxu1 }
  0xba   : > { %v1241_v9 = vpop.f32.mrf.mxu3  ;;  %v1225_v54 = vadd.f32 %v2813_v51, %v2834_v7 }
  0xbb   : > { %v1214_v10 = vpop.f32.mrf.mxu0  ;;  %v2837_v11 = vadd.f32 %v2813_v51, %v1241_v9 }
  0xbc   : > { %1428 = vmatmul.bf16.vlgmr.msra.gmra.mxu1 %v1745_v5  ;;  %1472 = vmatmul.bf16.vlgmr.msra.gmra.mxu2 %v1749_v6  ;;  %v1215_v56 = vadd.f32 %v2813_v51, %v1214_v10 }
  0xbd   : > { %1516 = vmatmul.bf16.vlgmr.msra.gmra.mxu3 %v1753_v0  ;;  %v1829_v0 = vor.u32 %v2290_v58, %v1828_v55  ;;  %v2302_v55 = vld [vmem:[%s2541_s7 + $0x134] sm:$0xf] }
  0xbf   : > { %v1234_v12 = vpop.f32.mrf.mxu2 }
  0xc0   : > { %1560 = vmatmul.bf16.vlgmr.msra.gmra.mxu0 %v1757_v8  ;;  %v2840_v13 = vadd.f32 %v2813_v51, %v1234_v12 }
  0xc1   : > { %v2842_v14 = vpop.f32.mrf.mxu1 }
  0xc3   : > { %v1216_v15 = vpop.f32.mrf.mxu0 }
  0xc4   : > { %v1217_v9 = vadd.f32 %v2813_v51, %v1216_v15  ;;  %v1220_v15 = vadd.f32 %v2813_v51, %v2808_v48 }
  0xc7   : > { %v1236_v25 = vpop.f32.mrf.mxu2 }
  0xc8   : > { %v2854_v27 = vadd.f32 %v2813_v51, %v1236_v25  ;;  %v1856_v25 = vld [vmem:[%s2541_s7 + $0xf0] sm:$0xf] }
  0xc9   : > { %v1253_v30 = vpop.f32.mrf.mxu1 }
  0xca   : > { %v1254_v32 = vadd.f32 %v1253_v30, %v1210_v26  ;;  %v2298_v26 = vld [vmem:[%s2541_s7 + $0x110] sm:$0xf0]  ;;  %v2299_v30 = vld [vmem:[%s2541_s7 + $0x118] sm:$0xf0] }
  0xcc   : > { %1433 = vmatmul.bf16.gmra.mxu1 %v1781_v28  ;;  %1477 = vmatmul.bf16.gmra.mxu2 %v1785_v29  ;;  %v1861_v28 = vor.u32 %v2294_v19, %v1858_v20  ;;  %v1864_v29 = vld [vmem:[%s2541_s7 + $0xf8] sm:$0xf]  ;;  %v1227_v19 = vadd.f32 %v2813_v51, %v2842_v14 }
  0xcd   : > { %1521 = vmatmul.bf16.gmra.mxu3 %v1789_v22  ;;  %v1385_v33 = vpop.f32.mrf.mxu0 }
  0xcf   : > { %v1297_v35 = vpop.f32.mrf.mxu2 }
  0xd0   : > { %v1341_v34 = vpop.f32.mrf.mxu3  ;;  %1565 = vmatmul.bf16.gmra.mxu0 %v1793_v31  ;;  %v1298_v37 = vadd.f32 %v1297_v35, %v1254_v32 }
  0xd1   : > { %v1255_v38 = vpop.f32.mrf.mxu1 }
  0xd2   : > { %v1342_v39 = vadd.f32 %v1341_v34, %v1298_v37  ;;  %v1256_v40 = vadd.f32 %v1255_v38, %v1212_v36  ;;  %v1857_v34 = vor.u32 %v2298_v26, %v1856_v25  ;;  %v1865_v36 = vor.u32 %v2299_v30, %v1864_v29  ;;  %v2312_v26 = vld [vmem:[%s2541_s7 + $0x184] sm:$0xf]  ;;  %v2311_v29 = vld [vmem:[%s2541_s7 + $0x17c] sm:$0xf] }
  0xd4   : > { %v2860_v45 = vadd.f32 %v1385_v33, %v1342_v39  ;;  %v1853_v33 = vor.u32 %v2293_v21, %v1850_v24 }
  0xd5   : > { %v1387_v41 = vpop.f32.mrf.mxu0 }
  0xd7   : > { %v1299_v59 = vpop.f32.mrf.mxu2 }
  0xd8   : > { %v1343_v46 = vpop.f32.mrf.mxu3  ;;  %v1300_v60 = vadd.f32 %v1299_v59, %v1256_v40 }
  0xd9   : > { %v1258_v63 = vpop.f32.mrf.mxu1 }
  0xda   : > { %v1344_v1 = vadd.f32 %v1343_v46, %v1300_v60  ;;  %v1259_v2 = vadd.f32 %v1258_v63, %v1215_v56  ;;  %v1886_v56 = vld [vmem:[%s2541_s7 + $0x154] sm:$0xf0]  ;;  %v1900_v63 = vld [vmem:[%s2541_s7 + $0x140] sm:$0xf] }
  0xdb   : > { %v1892_v60 = vld [vmem:[%s2541_s7 + $0x138] sm:$0xf] }
  0xdc   : > { %1438 = vmatmul.bf16.gmra.mxu1 %v1817_v61  ;;  %1482 = vmatmul.bf16.gmra.mxu2 %v1821_v62  ;;  %v2868_v5 = vadd.f32 %v1387_v41, %v1344_v1  ;;  %v2307_v61 = vld [vmem:[%s2541_s7 + $0x158] sm:$0xf0] }
  0xdd   : > { %1526 = vmatmul.bf16.gmra.mxu3 %v1825_v52  ;;  %v1390_v3 = vpop.f32.mrf.mxu0  ;;  %v1894_v52 = vld [vmem:[%s2541_s7 + $0x15c] sm:$0xf0] }
  0xde   : > { %v1897_v62 = vor.u32 %v2303_v50, %v1894_v52 }
  0xdf   : > { %v1302_v8 = vpop.f32.mrf.mxu2 }
  0xe0   : > { %v1346_v6 = vpop.f32.mrf.mxu3  ;;  %1570 = vmatmul.bf16.gmra.mxu0 %v1829_v0  ;;  %v1303_v10 = vadd.f32 %v1302_v8, %v1259_v2  ;;  %v2308_v0 = vld [vmem:[%s2541_s7 + $0x160] sm:$0xf0] }
  0xe1   : > { %v1260_v12 = vpop.f32.mrf.mxu1 }
  0xe2   : > { %v1347_v16 = vadd.f32 %v1346_v6, %v1303_v10  ;;  %v1261_v17 = vadd.f32 %v1260_v12, %v1217_v9  ;;  %v1893_v6 = vor.u32 %v2307_v61, %v1892_v60  ;;  %v1901_v9 = vor.u32 %v2308_v0, %v1900_v63  ;;  %v2320_v60 = vld [vmem:[%s2541_s7 + $0x1c4] sm:$0xf]  ;;  %v1958_v63 = vld [vmem:[%s2541_s7 + $0x1e4] sm:$0xf0] }
  0xe3   : > { %v1964_v0 = vld [vmem:[%s2541_s7 + $0x1c8] sm:$0xf] }
  0xe4   : > { %v2874_v22 = vadd.f32 %v1390_v3, %v1347_v16  ;;  %v1889_v3 = vor.u32 %v2302_v55, %v1886_v56  ;;  %v1966_v56 = vld [vmem:[%s2541_s7 + $0x1ec] sm:$0xf0] }
  0xe5   : > { %v1392_v18 = vpop.f32.mrf.mxu0 }
  0xe7   : > { %v1304_v31 = vpop.f32.mrf.mxu2 }
  0xe8   : > { %v1348_v23 = vpop.f32.mrf.mxu3  ;;  %v1305_v32 = vadd.f32 %v1304_v31, %v1261_v17 }
  0xe9   : > { %v1263_v35 = vpop.f32.mrf.mxu1 }
  0xea   : > { %v1349_v37 = vadd.f32 %v1348_v23, %v1305_v32  ;;  %v1264_v38 = vadd.f32 %v1263_v35, %v1220_v15  ;;  %v1922_v15 = vld [vmem:[%s2541_s7 + $0x19c] sm:$0xf0]  ;;  %v1936_v35 = vld [vmem:[%s2541_s7 + $0x188] sm:$0xf] }
  0xeb   : > { %v1928_v32 = vld [vmem:[%s2541_s7 + $0x180] sm:$0xf]  ;;  %v1925_v14 = vor.u32 %v2311_v29, %v1922_v15 }
  0xec   : > { %1443 = vmatmul.bf16.gmra.mxu1 %v1853_v33  ;;  %1487 = vmatmul.bf16.gmra.mxu2 %v1857_v34  ;;  %v2883_v40 = vadd.f32 %v1392_v18, %v1349_v37  ;;  %v2316_v33 = vld [vmem:[%s2541_s7 + $0x1a0] sm:$0xf0] }
  0xed   : > { %1531 = vmatmul.bf16.gmra.mxu3 %v1861_v28  ;;  %v1395_v39 = vpop.f32.mrf.mxu0  ;;  %v1930_v28 = vld [vmem:[%s2541_s7 + $0x1a4] sm:$0xf0] }
  0xee   : > { %v1933_v34 = vor.u32 %v2312_v26, %v1930_v28 }
  0xef   : > { %v1307_v48 = vpop.f32.mrf.mxu2 }
  0xf0   : > { %v1351_v41 = vpop.f32.mrf.mxu3  ;;  %1575 = vmatmul.bf16.gmra.mxu0 %v1865_v36  ;;  %v1308_v43 = vadd.f32 %v1307_v48, %v1264_v38  ;;  %v2317_v36 = vld [vmem:[%s2541_s7 + $0x1a8] sm:$0xf0]  ;;  %v1929_v38 = vor.u32 %v2316_v33, %v1928_v32 }
  0xf1   : > { %v1265_v44 = vpop.f32.mrf.mxu1 }
  0xf2   : > { %v1352_v46 = vadd.f32 %v1351_v41, %v1308_v43  ;;  %v1266_v47 = vadd.f32 %v1265_v44, %v1222_v42  ;;  %v1937_v41 = vor.u32 %v2317_v36, %v1936_v35 }
  0xf4   : > { %v2890_v58 = vadd.f32 %v1395_v39, %v1352_v46 }
  0xf5   : > { %v1397_v49 = vpop.f32.mrf.mxu0 }
  0xf7   : > { %v1309_v1 = vpop.f32.mrf.mxu2 }
  0xf8   : > { %v1353_v59 = vpop.f32.mrf.mxu3  ;;  %v1310_v2 = vadd.f32 %v1309_v1, %v1266_v47  ;;  %v2325_v1 = vld [vmem:[%s2541_s7 + $0x1e8] sm:$0xf0] }
  0xf9   : > { %v1268_v8 = vpop.f32.mrf.mxu1 }
  0xfa   : > { %v1354_v10 = vadd.f32 %v1353_v59, %v1310_v2  ;;  %v1269_v12 = vadd.f32 %v1268_v8, %v1225_v54  ;;  %v2321_v59 = vld [vmem:[%s2541_s7 + $0x1cc] sm:$0xf]  ;;  %v1972_v2 = vld [vmem:[%s2541_s7 + $0x1d0] sm:$0xf] }
  0xfb   : > { %v1969_v54 = vor.u32 %v2321_v59, %v1966_v56 }
  0xfc   : > { %1448 = vmatmul.bf16.gmra.mxu1 %v1889_v3  ;;  %1492 = vmatmul.bf16.gmra.mxu2 %v1893_v6  ;;  %v2899_v17 = vadd.f32 %v1397_v49, %v1354_v10  ;;  %v2326_v3 = vld [vmem:[%s2541_s7 + $0x1f0] sm:$0xf0]  ;;  %v1965_v10 = vor.u32 %v2325_v1, %v1964_v0  ;;  %s1721_s7 = sshll.u32 %s3007_s22, 3 }
  0xfd   : > { %1536 = vmatmul.bf16.gmra.mxu3 %v1897_v62  ;;  %v1400_v16 = vpop.f32.mrf.mxu0  ;;  %s2946_s10 = scalar_lea.vmem %s3001_s3, %s1721_s7 }
  0xff   : > { %v1312_v7 = vpop.f32.mrf.mxu2 }
 0x100   : > { %v1356_v18 = vpop.f32.mrf.mxu3  ;;  %1580 = vmatmul.bf16.gmra.mxu0 %v1901_v9  ;;  %v1313_v20 = vadd.f32 %v1312_v7, %v1269_v12  ;;  %v1961_v9 = vor.u32 %v2320_v60, %v1958_v63 }
 0x101   : > { %v1270_v21 = vpop.f32.mrf.mxu1 }
 0x102   : > { %v1357_v23 = vadd.f32 %v1356_v18, %v1313_v20  ;;  %v1271_v24 = vadd.f32 %v1270_v21, %v1227_v19 }
 0x104   : > { %v2906_v30 = vadd.f32 %v1400_v16, %v1357_v23  ;;  %v1973_v16 = vor.u32 %v2326_v3, %v1972_v2 }
 0x105   : > { %v1402_v25 = vpop.f32.mrf.mxu0 }
 0x107   : > { %v1314_v37 = vpop.f32.mrf.mxu2 }
 0x108   : > { %v1358_v31 = vpop.f32.mrf.mxu3  ;;  %v1315_v51 = vadd.f32 %v1314_v37, %v1271_v24 }
 0x109   : > { %v1273_v39 = vpop.f32.mrf.mxu1 }
 0x10a   : > { %v1359_v48 = vadd.f32 %v1358_v31, %v1315_v51  ;;  %v1274_v42 = vadd.f32 %v1273_v39, %v2816_v53 }
 0x10c   : > { %1453 = vmatmul.bf16.gmra.mxu1 %v1925_v14  ;;  %1497 = vmatmul.bf16.gmra.mxu2 %v1929_v38  ;;  %v2914_v44 = vadd.f32 %v1402_v25, %v1359_v48 }
 0x10d   : > { %1541 = vmatmul.bf16.gmra.mxu3 %v1933_v34  ;;  %v1405_v43 = vpop.f32.mrf.mxu0 }
 0x10f   : > { %v1317_v47 = vpop.f32.mrf.mxu2 }
 0x110   : > { %v1361_v46 = vpop.f32.mrf.mxu3  ;;  %1585 = vmatmul.bf16.gmra.mxu0 %v1937_v41  ;;  %v1318_v49 = vadd.f32 %v1317_v47, %v1274_v42 }
 0x111   : > { %v1275_v50 = vpop.f32.mrf.mxu1 }
 0x112   : > { %v1362_v52 = vadd.f32 %v1361_v46, %v1318_v49  ;;  %v1276_v53 = vadd.f32 %v1275_v50, %v2832_v4 }
 0x114   : > { %v2920_v61 = vadd.f32 %v1405_v43, %v1362_v52 }
 0x115   : > { %v1407_v55 = vpop.f32.mrf.mxu0 }
 0x117   : > { %v1319_v6 = vpop.f32.mrf.mxu2 }
 0x118   : > { %v1363_v62 = vpop.f32.mrf.mxu3  ;;  %v1320_v8 = vadd.f32 %v1319_v6, %v1276_v53 }
 0x119   : > { %v1278_v12 = vpop.f32.mrf.mxu1 }
 0x11a   : > { %v1364_v4 = vadd.f32 %v1363_v62, %v1320_v8  ;;  %v1279_v18 = vadd.f32 %v1278_v12, %v2840_v13 }
 0x11c   : > { %1458 = vmatmul.bf16.gmra.mxu1 %v1961_v9  ;;  %1502 = vmatmul.bf16.gmra.mxu2 %v1965_v10  ;;  %v2928_v19 = vadd.f32 %v1407_v55, %v1364_v4 }
 0x11d   : > { %1546 = vmatmul.bf16.gmra.mxu3 %v1969_v54  ;;  %v1410_v7 = vpop.f32.mrf.mxu0 }
 0x11f   : > { %v1322_v21 = vpop.f32.mrf.mxu2 }
 0x120   : > { %v1366_v20 = vpop.f32.mrf.mxu3  ;;  %1590 = vmatmul.bf16.gmra.mxu0 %v1973_v16  ;;  %v1323_v23 = vadd.f32 %v1322_v21, %v1279_v18 }
 0x121   : > { %v1280_v24 = vpop.f32.mrf.mxu1 }
 0x122   : > { %v1367_v25 = vadd.f32 %v1366_v20, %v1323_v23  ;;  %v1281_v26 = vadd.f32 %v1280_v24, %v2854_v27 }
 0x124   : > { %v2931_v29 = vadd.f32 %v1410_v7, %v1367_v25 }
 0x125   : > { %v1412_v28 = vpop.f32.mrf.mxu0 }
 0x127   : > { %v1324_v15 = vpop.f32.mrf.mxu2 }
 0x128   : > { %v1368_v31 = vpop.f32.mrf.mxu3  ;;  %v1325_v13 = vadd.f32 %v1324_v15, %v1281_v26 }
 0x129   : > { %v1283_v32 = vpop.f32.mrf.mxu1 }
 0x12a   : > { %v1369_v33 = vadd.f32 %v1368_v31, %v1325_v13  ;;  %v1284_v34 = vadd.f32 %v1283_v32, %v2821_v57 }
 0x12c   : > { %v2934_v36 = vadd.f32 %v1412_v28, %v1369_v33 }
 0x12d   : > { %v1415_v35 = vpop.f32.mrf.mxu0 }
 0x12f   : > { %v1327_v51 = vpop.f32.mrf.mxu2 }
 0x130   : > { %v1371_v37 = vpop.f32.mrf.mxu3  ;;  %v1328_v14 = vadd.f32 %v1327_v51, %v1284_v34 }
 0x131   : > { %v1285_v38 = vpop.f32.mrf.mxu1 }
 0x132   : > { %v1372_v39 = vadd.f32 %v1371_v37, %v1328_v14  ;;  %v1286_v27 = vadd.f32 %v1285_v38, %v2837_v11 }
 0x134   : > { %v2937_v48 = vadd.f32 %v1415_v35, %v1372_v39 }
 0x135   : > { %v1417_v41 = vpop.f32.mrf.mxu0 }
 0x137   : > { %v1329_v43 = vpop.f32.mrf.mxu2 }
 0x138   : > { %v1373_v42 = vpop.f32.mrf.mxu3  ;;  %v1330_v46 = vadd.f32 %v1329_v43, %v1286_v27 }
 0x139   : > { %v1429_v47 = vpop.f32.mrf.mxu1 }
 0x13a   : > { %v1374_v49 = vadd.f32 %v1373_v42, %v1330_v46  ;;  %v1430_v53 = vadd.f32 %v1429_v47, %v2860_v45 }
 0x13c   : > { %v2939_v50 = vadd.f32 %v1417_v41, %v1374_v49 }
 0x13d   : > { %v1561_v57 = vpop.f32.mrf.mxu0 }
 0x13f   : > { %v1473_v55 = vpop.f32.mrf.mxu2 }
 0x140   : > { %v1517_v52 = vpop.f32.mrf.mxu3  ;;  %v1474_v59 = vadd.f32 %v1473_v55, %v1430_v53 }
 0x141   : > { %v1431_v56 = vpop.f32.mrf.mxu1 }
 0x142   : > { %v1518_v60 = vadd.f32 %v1517_v52, %v1474_v59  ;;  %v1432_v45 = vadd.f32 %v1431_v56, %v2868_v5 }
 0x144   : > { %v1562_v62 = vadd.f32 %v1561_v57, %v1518_v60 }
 0x145   : > { %v1563_v11 = vpop.f32.mrf.mxu0 }
 0x146   : > { %1597 = vst.msk [vmem:[%s2946_s10] sm:$0xff] %vm1596_vm0, %v1562_v62 }
 0x147   : > { %v1475_v0 = vpop.f32.mrf.mxu2 }
 0x148   : > { %v1519_v63 = vpop.f32.mrf.mxu3  ;;  %v1476_v1 = vadd.f32 %v1475_v0, %v1432_v45 }
 0x149   : > { %v1434_v54 = vpop.f32.mrf.mxu1 }
 0x14a   : > { %v1520_v2 = vadd.f32 %v1519_v63, %v1476_v1  ;;  %v1435_v9 = vadd.f32 %v1434_v54, %v2874_v22 }
 0x14c   : > { %v1564_v6 = vadd.f32 %v1563_v11, %v1520_v2 }
 0x14d   : > { %v1566_v3 = vpop.f32.mrf.mxu0 }
 0x14e   : > { %1598 = vst.msk [vmem:[%s2946_s10 + $0x8] sm:$0xff] %vm1596_vm0, %v1564_v6 }
 0x14f   : > { %v1478_v10 = vpop.f32.mrf.mxu2 }
 0x150   : > { %v1522_v8 = vpop.f32.mrf.mxu3  ;;  %v1479_v12 = vadd.f32 %v1478_v10, %v1435_v9 }
 0x151   : > { %v1436_v16 = vpop.f32.mrf.mxu1 }
 0x152   : > { %v1523_v4 = vadd.f32 %v1522_v8, %v1479_v12  ;;  %v1437_v20 = vadd.f32 %v1436_v16, %v2883_v40 }
 0x154   : > { %v1567_v7 = vadd.f32 %v1566_v3, %v1523_v4 }
 0x155   : > { %v1568_v18 = vpop.f32.mrf.mxu0 }
 0x156   : > { %1599 = vst.msk [vmem:[%s2946_s10 + $0x10] sm:$0xff] %vm1596_vm0, %v1567_v7 }
 0x157   : > { %v1480_v21 = vpop.f32.mrf.mxu2 }
 0x158   : > { %v1524_v5 = vpop.f32.mrf.mxu3  ;;  %v1481_v23 = vadd.f32 %v1480_v21, %v1437_v20 }
 0x159   : > { %v1439_v24 = vpop.f32.mrf.mxu1 }
 0x15a   : > { %v1525_v25 = vadd.f32 %v1524_v5, %v1481_v23  ;;  %v1440_v31 = vadd.f32 %v1439_v24, %v2890_v58 }
 0x15c   : > { %v1569_v28 = vadd.f32 %v1568_v18, %v1525_v25 }
 0x15d   : > { %v1571_v26 = vpop.f32.mrf.mxu0 }
 0x15e   : > { %1600 = vst.msk [vmem:[%s2946_s10 + $0x18] sm:$0xff] %vm1596_vm0, %v1569_v28 }
 0x15f   : > { %v1483_v15 = vpop.f32.mrf.mxu2 }
 0x160   : > { %v1527_v22 = vpop.f32.mrf.mxu3  ;;  %v1484_v13 = vadd.f32 %v1483_v15, %v1440_v31 }
 0x161   : > { %v1441_v32 = vpop.f32.mrf.mxu1 }
 0x162   : > { %v1528_v33 = vadd.f32 %v1527_v22, %v1484_v13  ;;  %v1442_v37 = vadd.f32 %v1441_v32, %v2899_v17 }
 0x164   : > { %v1572_v35 = vadd.f32 %v1571_v26, %v1528_v33 }
 0x165   : > { %v1573_v34 = vpop.f32.mrf.mxu0 }
 0x166   : > { %1601 = vst.msk [vmem:[%s2946_s10 + $0x20] sm:$0xff] %vm1596_vm0, %v1572_v35 }
 0x167   : > { %v1485_v51 = vpop.f32.mrf.mxu2 }
 0x168   : > { %v1529_v40 = vpop.f32.mrf.mxu3  ;;  %v1486_v14 = vadd.f32 %v1485_v51, %v1442_v37 }
 0x169   : > { %v1444_v38 = vpop.f32.mrf.mxu1 }
 0x16a   : > { %v1530_v39 = vadd.f32 %v1529_v40, %v1486_v14  ;;  %v1445_v42 = vadd.f32 %v1444_v38, %v2906_v30 }
 0x16c   : > { %v1574_v41 = vadd.f32 %v1573_v34, %v1530_v39 }
 0x16d   : > { %v1576_v27 = vpop.f32.mrf.mxu0 }
 0x16e   : > { %1602 = vst.msk [vmem:[%s2946_s10 + $0x28] sm:$0xff] %vm1596_vm0, %v1574_v41 }
 0x16f   : > { %v1488_v43 = vpop.f32.mrf.mxu2 }
 0x170   : > { %v1532_v58 = vpop.f32.mrf.mxu3  ;;  %v1489_v46 = vadd.f32 %v1488_v43, %v1445_v42 }
 0x171   : > { %v1446_v47 = vpop.f32.mrf.mxu1 }
 0x172   : > { %v1533_v49 = vadd.f32 %v1532_v58, %v1489_v46  ;;  %v1447_v53 = vadd.f32 %v1446_v47, %v2914_v44 }
 0x174   : > { %v1577_v52 = vadd.f32 %v1576_v27, %v1533_v49 }
 0x175   : > { %v1578_v57 = vpop.f32.mrf.mxu0 }
 0x176   : > { %1603 = vst.msk [vmem:[%s2946_s10 + $0x30] sm:$0xff] %vm1596_vm0, %v1577_v52 }
 0x177   : > { %v1490_v55 = vpop.f32.mrf.mxu2 }
 0x178   : > { %v1534_v17 = vpop.f32.mrf.mxu3  ;;  %v1491_v59 = vadd.f32 %v1490_v55, %v1447_v53 }
 0x179   : > { %v1449_v56 = vpop.f32.mrf.mxu1 }
 0x17a   : > { %v1535_v60 = vadd.f32 %v1534_v17, %v1491_v59  ;;  %v1450_v63 = vadd.f32 %v1449_v56, %v2920_v61 }
 0x17c   : > { %v1579_v62 = vadd.f32 %v1578_v57, %v1535_v60 }
 0x17d   : > { %v1581_v11 = vpop.f32.mrf.mxu0 }
 0x17e   : > { %1604 = vst.msk [vmem:[%s2946_s10 + $0x38] sm:$0xff] %vm1596_vm0, %v1579_v62 }
 0x17f   : > { %v1493_v45 = vpop.f32.mrf.mxu2 }
 0x180   : > { %v1537_v30 = vpop.f32.mrf.mxu3  ;;  %v1494_v0 = vadd.f32 %v1493_v45, %v1450_v63 }
 0x181   : > { %v1451_v1 = vpop.f32.mrf.mxu1 }
 0x182   : > { %v1538_v54 = vadd.f32 %v1537_v30, %v1494_v0  ;;  %v1452_v6 = vadd.f32 %v1451_v1, %v2928_v19 }
 0x184   : > { %v1582_v3 = vadd.f32 %v1581_v11, %v1538_v54 }
 0x185   : > { %v1583_v2 = vpop.f32.mrf.mxu0 }
 0x186   : > { %1605 = vst.msk [vmem:[%s2946_s10 + $0x40] sm:$0xff] %vm1596_vm0, %v1582_v3 }
 0x187   : > { %v1495_v8 = vpop.f32.mrf.mxu2 }
 0x188   : > { %v1539_v44 = vpop.f32.mrf.mxu3  ;;  %v1496_v9 = vadd.f32 %v1495_v8, %v1452_v6 }
 0x189   : > { %v1454_v10 = vpop.f32.mrf.mxu1 }
 0x18a   : > { %v1540_v12 = vadd.f32 %v1539_v44, %v1496_v9  ;;  %v1455_v18 = vadd.f32 %v1454_v10, %v2931_v29 }
 0x18c   : > { %v1584_v16 = vadd.f32 %v1583_v2, %v1540_v12 }
 0x18d   : > { %v1586_v4 = vpop.f32.mrf.mxu0 }
 0x18e   : > { %1606 = vst.msk [vmem:[%s2946_s10 + $0x48] sm:$0xff] %vm1596_vm0, %v1584_v16 }
 0x18f   : > { %v1498_v7 = vpop.f32.mrf.mxu2 }
 0x190   : > { %v1542_v61 = vpop.f32.mrf.mxu3  ;;  %v1499_v5 = vadd.f32 %v1498_v7, %v1455_v18 }
 0x191   : > { %v1456_v20 = vpop.f32.mrf.mxu1 }
 0x192   : > { %v1543_v21 = vadd.f32 %v1542_v61, %v1499_v5  ;;  %v1457_v19 = vadd.f32 %v1456_v20, %v2934_v36 }
 0x194   : > { %v1587_v23 = vadd.f32 %v1586_v4, %v1543_v21 }
 0x195   : > { %v1588_v25 = vpop.f32.mrf.mxu0 }
 0x196   : > { %1607 = vst.msk [vmem:[%s2946_s10 + $0x50] sm:$0xff] %vm1596_vm0, %v1587_v23 }
 0x197   : > { %v1500_v26 = vpop.f32.mrf.mxu2 }
 0x198   : > { %v1544_v24 = vpop.f32.mrf.mxu3  ;;  %v1501_v28 = vadd.f32 %v1500_v26, %v1457_v19 }
 0x199   : > { %v1459_v22 = vpop.f32.mrf.mxu1 }
 0x19a   : > { %v1545_v31 = vadd.f32 %v1544_v24, %v1501_v28  ;;  %v1460_v29 = vadd.f32 %v1459_v22, %v2937_v48 }
 0x19c   : > { %v1589_v15 = vadd.f32 %v1588_v25, %v1545_v31 }
 0x19d   : > { %v1591_v34 = vpop.f32.mrf.mxu0 }
 0x19e   : > { %1608 = vst.msk [vmem:[%s2946_s10 + $0x58] sm:$0xff] %vm1596_vm0, %v1589_v15 }
 0x19f   : > { %v1503_v32 = vpop.f32.mrf.mxu2 }
 0x1a0   : > { %v1547_v13 = vpop.f32.mrf.mxu3  ;;  %v1504_v33 = vadd.f32 %v1503_v32, %v1460_v29 }
 0x1a1   : > { %v1461_v40 = vpop.f32.mrf.mxu1 }
 0x1a2   : > { %v1548_v35 = vadd.f32 %v1547_v13, %v1504_v33  ;;  %v1462_v36 = vadd.f32 %v1461_v40, %v2939_v50 }
 0x1a4   : > { %v1592_v37 = vadd.f32 %v1591_v34, %v1548_v35 }
 0x1a5   : > { %v1593_v27 = vpop.f32.mrf.mxu0 }
 0x1a6   : > { %1609 = vst.msk [vmem:[%s2946_s10 + $0x60] sm:$0xff] %vm1596_vm0, %v1592_v37 }
 0x1a7   : > { %v1505_v51 = vpop.f32.mrf.mxu2 }
 0x1a8   : > { %v1506_v14 = vadd.f32 %v1505_v51, %v1462_v36  ;;  %v1549_v38 = vpop.f32.mrf.mxu3 }
 0x1aa   : > { %v1550_v39 = vadd.f32 %v1549_v38, %v1506_v14 }
 0x1ac   : > { %v1594_v41 = vadd.f32 %v1593_v27, %v1550_v39 }
 0x1ae   : > { %1610 = vst.msk [vmem:[%s2946_s10 + $0x68] sm:$0xff] %vm1596_vm0, %v1594_v41 }
 0x1af PF: > { %s13_s14 = sadd.s32 1, %s2471_s14   ;;  %s3002_s12 = smov %s2467_s13 }
 0x1b0   : > { %p10_p5 = scmp.ge.s32.totalorder %s13_s14, 8   ;;  %s3003_s13 = smov %s3005_s15 }
 0x1b2   :  { %12 = sbr.rel (!%p10_p5) target bundleno = 2 (0x2), region = 68 }

// kernel: refine_forward.20
= control target key start
LH: loop header
LB: loop body
LE: loop exit
PB: predicated region body
PF: predicated region fallthrough
CT: control target
= control target key end

     0   :  { %s669_s12 = smov 0   ;;  %s671_s13 = smov 0   ;;  %s762_s0 = inlined_call_operand.vmem [shape: bf16[192,128], index: 0, kind: input, shape index: {}]   ;;  %s763_s1 = inlined_call_operand.vmem [shape: bf16[128,8], index: 1, kind: input, shape index: {}]   ;;  %s764_s2 = inlined_call_operand.vmem [shape: f32[1,8], index: 2, kind: input, shape index: {}]   ;;  %s765_s3 = inlined_call_operand.vmem [shape: f32[192,8], index: 3, kind: output, shape index: {}]  }
   0x1   :  { %s673_s14 = smov 0  }
   0x2 LB: > { %s25_s15 = sadd.s32 1, %s643_s13  ;;  %p501_p0 = scmp.ge.s32.totalorder %s647_s14, 1  ;;  %s647_s14 = sphi %s673_s14, %s13_s14   ;;  %s643_s13 = sphi %s671_s13, %s767_s13   ;;  %s639_s12 = sphi %s669_s12, %s766_s12  }
   0x3   : > { %p27_p1 = scmp.ge.s32.totalorder %s25_s15, 2  ;;  %p169_p2 = scmp.lt.s32.totalorder %s647_s14, 3 }
   0x5   : > { %s769_s15 = smov (%p27_p1, %s25_s15), 0  ;;  %p170_p3 = pnand %p501_p0, %p169_p2 }
   0x6   : > { %s203_s24 = smul.u32 (!%p170_p3), 12, %s639_s12 }
   0x7   : > { %173 = sbr.rel (%p170_p3) target bundleno = 204 (0xcc), region = 32 }
   0x8   : > { %p204_p4 = scmp.lt.s32.totalorder (!%p170_p3), %s203_s24, 23 }
   0xc   : > { %v575_v0 = vld [vmem:[%s763_s1 + $0x38] sm:$0xff]  ;;  %v574_v1 = vld [vmem:[%s763_s1 + $0x30] sm:$0xff]  ;;  %v573_v2 = vld [vmem:[%s763_s1 + $0x28] sm:$0xff]  ;;  %s771_s24 = smov (!%p204_p4, %s203_s24), 23  ;;  %vm380_vm0 = vcmask 64512  }
   0xd   : > { %577 = vmatpush.bf16.msra.mxu2 %v575_v0  ;;  %578 = vmatpush.bf16.msra.mxu3 %v575_v0  ;;  %v572_v3 = vld [vmem:[%s763_s1 + $0x20] sm:$0xff]  ;;  %v571_v4 = vld [vmem:[%s763_s1 + $0x18] sm:$0xff]  ;;  %v570_v5 = vld [vmem:[%s763_s1 + $0x10] sm:$0xff]  ;;  %s502_s4 = sshll.u32 %s771_s24, 2  ;;  %s503_s10 = sshll.u32 %s771_s24, 3 }
   0xe   : > { %341 = vmatpush.bf16.msra.mxu0 %v575_v0  ;;  %576 = vmatpush.bf16.msra.mxu1 %v575_v0  ;;  %v569_v6 = vld [vmem:[%s763_s1 + $0x8] sm:$0xff]  ;;  %v568_v7 = vld [vmem:[%s763_s1] sm:$0xff]  ;;  %s207_s9 = scalar_lea.vmem %s762_s0, %s502_s4  ;;  %s727_s18 = scalar_lea.vmem %s765_s3, %s503_s10 }
   0xf   : > { %v564_v8 = vld [vmem:[%s207_s9 + $0x10] sm:$0xff]  ;;  %v566_v9 = vld [vmem:[%s207_s9 + $0x20] sm:$0xff]  ;;  %v563_v11 = vld [vmem:[%s207_s9 + $0x8] sm:$0xff] }
  0x10   : > { %v562_v10 = vld [vmem:[%s207_s9] sm:$0xff]  ;;  %v565_v12 = vld [vmem:[%s207_s9 + $0x18] sm:$0xff]  ;;  %v567_v13 = vld [vmem:[%s207_s9 + $0x28] sm:$0xff] }
  0x11   : > { %580 = vmatpush.bf16.msra.mxu2 %v574_v1  ;;  %581 = vmatpush.bf16.msra.mxu3 %v574_v1  ;;  %v624_v14 = vld [vmem:[%s764_s2] ss:$0 sm:$0xff] }
  0x12   : > { %342 = vmatpush.bf16.msra.mxu0 %v574_v1  ;;  %579 = vmatpush.bf16.msra.mxu1 %v574_v1 }
  0x15   : > { %583 = vmatpush.bf16.msra.mxu2 %v573_v2  ;;  %584 = vmatpush.bf16.msra.mxu3 %v573_v2 }
  0x16   : > { %343 = vmatpush.bf16.msra.mxu0 %v573_v2  ;;  %582 = vmatpush.bf16.msra.mxu1 %v573_v2 }
  0x19   : > { %586 = vmatpush.bf16.msra.mxu2 %v572_v3  ;;  %587 = vmatpush.bf16.msra.mxu3 %v572_v3 }
  0x1a   : > { %344 = vmatpush.bf16.msra.mxu0 %v572_v3  ;;  %585 = vmatpush.bf16.msra.mxu1 %v572_v3 }
  0x1d   : > { %589 = vmatpush.bf16.msra.mxu2 %v571_v4  ;;  %590 = vmatpush.bf16.msra.mxu3 %v571_v4 }
  0x1e   : > { %345 = vmatpush.bf16.msra.mxu0 %v571_v4  ;;  %588 = vmatpush.bf16.msra.mxu1 %v571_v4 }
  0x21   : > { %592 = vmatpush.bf16.msra.mxu2 %v570_v5  ;;  %593 = vmatpush.bf16.msra.mxu3 %v570_v5 }
  0x22   : > { %346 = vmatpush.bf16.msra.mxu0 %v570_v5  ;;  %591 = vmatpush.bf16.msra.mxu1 %v570_v5 }
  0x25   : > { %595 = vmatpush.bf16.msra.mxu2 %v569_v6  ;;  %596 = vmatpush.bf16.msra.mxu3 %v569_v6 }
  0x26   : > { %347 = vmatpush.bf16.msra.mxu0 %v569_v6  ;;  %594 = vmatpush.bf16.msra.mxu1 %v569_v6 }
  0x29   : > { %598 = vmatpush.bf16.msra.mxu2 %v568_v7  ;;  %599 = vmatpush.bf16.msra.mxu3 %v568_v7 }
  0x2a   : > { %348 = vmatpush.bf16.msra.mxu0 %v568_v7  ;;  %597 = vmatpush.bf16.msra.mxu1 %v568_v7 }
  0x2c   : > { %359 = vmatmul.bf16.vlgmr.msra.gmra.mxu2 %v564_v8  ;;  %369 = vmatmul.bf16.vlgmr.msra.gmra.mxu3 %v566_v9 }
  0x2d   : > { %349 = vmatmul.bf16.vlgmr.msra.gmra.mxu0 %v562_v10  ;;  %354 = vmatmul.bf16.vlgmr.msra.gmra.mxu1 %v563_v11 }
  0x3c   : > { %364 = vmatmul.bf16.gmra.mxu2 %v565_v12  ;;  %374 = vmatmul.bf16.gmra.mxu3 %v567_v13 }
  0xaa   : > { %v350_v15 = vpop.f32.mrf.mxu0  ;;  %v355_v16 = vpop.f32.mrf.mxu1 }
  0xab   : > { %v351_v17 = vadd.f32 %v624_v14, %v350_v15  ;;  %v356_v18 = vadd.f32 %v624_v14, %v355_v16 }
  0xad   : > { %381 = vst.msk [vmem:[%s727_s18] sm:$0xff] %vm380_vm0, %v351_v17 }
  0xae   : > { %383 = vst.msk [vmem:[%s727_s18 + $0x10] sm:$0xff] %vm380_vm0, %v356_v18 }
  0xaf   : > { %v360_v19 = vpop.f32.mrf.mxu2  ;;  %v370_v20 = vpop.f32.mrf.mxu3 }
  0xb0   : > { %v361_v21 = vadd.f32 %v624_v14, %v360_v19  ;;  %v371_v22 = vadd.f32 %v624_v14, %v370_v20 }
  0xb2   : > { %385 = vst.msk [vmem:[%s727_s18 + $0x20] sm:$0xff] %vm380_vm0, %v361_v21  ;;  %v352_v23 = vpop.f32.mrf.mxu0  ;;  %v357_v24 = vpop.f32.mrf.mxu1 }
  0xb3   : > { %389 = vst.msk [vmem:[%s727_s18 + $0x40] sm:$0xff] %vm380_vm0, %v371_v22  ;;  %v353_v25 = vadd.f32 %v624_v14, %v352_v23  ;;  %v358_v26 = vadd.f32 %v624_v14, %v357_v24 }
  0xb5   : > { %382 = vst.msk [vmem:[%s727_s18 + $0x8] sm:$0xff] %vm380_vm0, %v353_v25 }
  0xb6   : > { %384 = vst.msk [vmem:[%s727_s18 + $0x18] sm:$0xff] %vm380_vm0, %v358_v26 }
  0xb7   : > { %v362_v27 = vpop.f32.mrf.mxu2  ;;  %v372_v28 = vpop.f32.mrf.mxu3 }
  0xb8   : > { %v363_v29 = vadd.f32 %v624_v14, %v362_v27  ;;  %v373_v30 = vadd.f32 %v624_v14, %v372_v28 }
  0xba   : > { %386 = vst.msk [vmem:[%s727_s18 + $0x28] sm:$0xff] %vm380_vm0, %v363_v29 }
  0xbb   : > { %390 = vst.msk [vmem:[%s727_s18 + $0x48] sm:$0xff] %vm380_vm0, %v373_v30 }
  0xbf   : > { %v365_v31 = vpop.f32.mrf.mxu2  ;;  %v375_v32 = vpop.f32.mrf.mxu3 }
  0xc0   : > { %v366_v33 = vadd.f32 %v624_v14, %v365_v31  ;;  %v376_v34 = vadd.f32 %v624_v14, %v375_v32 }
  0xc2   : > { %387 = vst.msk [vmem:[%s727_s18 + $0x30] sm:$0xff] %vm380_vm0, %v366_v33 }
  0xc3   : > { %391 = vst.msk [vmem:[%s727_s18 + $0x50] sm:$0xff] %vm380_vm0, %v376_v34 }
  0xc7   : > { %v367_v35 = vpop.f32.mrf.mxu2  ;;  %v377_v36 = vpop.f32.mrf.mxu3 }
  0xc8   : > { %v368_v37 = vadd.f32 %v624_v14, %v367_v35  ;;  %v378_v38 = vadd.f32 %v624_v14, %v377_v36 }
  0xca   : > { %388 = vst.msk [vmem:[%s727_s18 + $0x38] sm:$0xff] %vm380_vm0, %v368_v37 }
  0xcb   : > { %392 = vst.msk [vmem:[%s727_s18 + $0x58] sm:$0xff] %vm380_vm0, %v378_v38 }
  0xcc PF: > { %s13_s14 = sadd.s32 1, %s647_s14   ;;  %s766_s12 = smov %s643_s13 }
  0xcd   : > { %p10_p5 = scmp.ge.s32.totalorder %s13_s14, 4   ;;  %s767_s13 = smov %s769_s15 }
  0xcf   :  { %12 = sbr.rel (!%p10_p5) target bundleno = 2 (0x2), region = 68 }

// kernel: tile.40
= control target key start
LH: loop header
LB: loop body
LE: loop exit
PB: predicated region body
PF: predicated region fallthrough
CT: control target
= control target key end

     0   :  { %s28_s0 = inlined_call_operand.vmem [shape: f32[2], index: 0, kind: input, shape index: {}]   ;;  %s29_s1 = inlined_call_operand.vmem [shape: f32[16,2], index: 1, kind: output, shape index: {}]  }
   0x1   :  { %v4_v0 = vld [vmem:[%s28_s0] ss:$0 sm:$0xff] }
   0x2   :  { %5 = vst [vmem:[%s29_s1] sm:$0xff] %v4_v0 }
   0x3   :  { %8 = vst [vmem:[%s29_s1 + $0x8] sm:$0xff] %v4_v0 }

// kernel: tile.41
= control target key start
LH: loop header
LB: loop body
LE: loop exit
PB: predicated region body
PF: predicated region fallthrough
CT: control target
= control target key end

     0   :  { %s131_s10 = smov 30   ;;  %s132_s11 = smov 26   ;;  %vm3_vm0 = vcmask 15360   ;;  %vm9_vm1 = vcmask 261360   ;;  %vm15_vm2 = vcmask 244960   ;;  %vm21_vm3 = vcmask 228560   ;;  %s207_s0 = inlined_call_operand.vmem [shape: f32[16,2], index: 0, kind: input, shape index: {}]   ;;  %s208_s1 = inlined_call_operand.vmem [shape: f32[1,32], index: 1, kind: output, shape index: {}]  }
   0x1   :  { %v101_v0 = vld [vmem:[%s207_s0 + $0xf] sm:$0x1]   ;;  %v103_v1 = vld [vmem:[%s207_s0 + $0xd] sm:$0x1]   ;;  %v105_v2 = vld [vmem:[%s207_s0 + $0xb] sm:$0x1]  }
   0x2   :  { %7 = vrot.lane.b32.xlu0 %v101_v0, %s131_s10  ;;  %19 = vrot.lane.b32.xlu1 %v103_v1, %s132_s11  ;;  %s133_s14 = smov 22   ;;  %v102_v3 = vld [vmem:[%s207_s0 + $0xe] sm:$0x1]   ;;  %v104_v4 = vld [vmem:[%s207_s0 + $0xc] sm:$0x1]   ;;  %s134_s19 = smov 28  }
   0x3   :  { %31 = vrot.lane.b32.xlu2 %v105_v2, %s133_s14  ;;  %s135_s20 = smov 24   ;;  %v106_v5 = vld [vmem:[%s207_s0 + $0xa] sm:$0x1]   ;;  %s136_s23 = smov 20   ;;  %v107_v6 = vld [vmem:[%s207_s0 + $0x9] sm:$0x1]  }
   0x4   :  { %v108_v7 = vld [vmem:[%s207_s0 + $0x8] sm:$0x1]   ;;  %s137_s28 = smov 18   ;;  %s138_s29 = smov 16   ;;  %v109_v8 = vld [vmem:[%s207_s0 + $0x7] sm:$0x1]  }
   0x5   :  { %s139_s3 = smov 14   ;;  %v110_v9 = vld [vmem:[%s207_s0 + $0x6] sm:$0x1]   ;;  %v111_v10 = vld [vmem:[%s207_s0 + $0x5] sm:$0x1]   ;;  %s140_s8 = smov 12  }
   0x6   :  { %s141_s9 = smov 10   ;;  %v112_v11 = vld [vmem:[%s207_s0 + $0x4] sm:$0x1]   ;;  %s142_s12 = smov 8   ;;  %v113_v12 = vld [vmem:[%s207_s0 + $0x3] sm:$0x1]  }
   0x7   :  { %v114_v13 = vld [vmem:[%s207_s0 + $0x2] sm:$0x1]   ;;  %s143_s17 = smov 6   ;;  %s144_s18 = smov 4   ;;  %v115_v14 = vld [vmem:[%s207_s0 + $0x1] sm:$0x1]  }
   0x8   :  { %s145_s21 = smov 2   ;;  %v2_v15 = vld [vmem:[%s207_s0] sm:$0x1]   ;;  %vm27_vm4 = vcmask 212160   ;;  %vm33_vm5 = vcmask 195760   ;;  %vm39_vm6 = vcmask 179360  }
   0x9   :  { %4 = vst.msk [vmem:[#allocation0] sm:$0x1] %vm3_vm0, %v2_v15   ;;  %vm45_vm7 = vcmask 162960   ;;  %vm51_vm8 = vcmask 146560   ;;  %vm57_vm9 = vcmask 130160   ;;  %vm63_vm10 = vcmask 113760  }
   0xa   :  { %13 = vrot.lane.b32.xlu0 %v102_v3, %s134_s19  ;;  %25 = vrot.lane.b32.xlu1 %v104_v4, %s135_s20  ;;  %vm69_vm11 = vcmask 97360   ;;  %vm75_vm12 = vcmask 80960   ;;  %vm81_vm13 = vcmask 64560   ;;  %vm87_vm14 = vcmask 48160  }
   0xb   :  { %37 = vrot.lane.b32.xlu2 %v106_v5, %s136_s23  ;;  %vm93_vm15 = vcmask 31760  }
  0x12   :  { %43 = vrot.lane.b32.xlu0 %v107_v6, %s137_s28  ;;  %49 = vrot.lane.b32.xlu1 %v108_v7, %s138_s29 }
  0x13   :  { %55 = vrot.lane.b32.xlu2 %v109_v8, %s139_s3 }
  0x1a   :  { %61 = vrot.lane.b32.xlu0 %v110_v9, %s140_s8  ;;  %67 = vrot.lane.b32.xlu1 %v111_v10, %s141_s9 }
  0x1b   :  { %73 = vrot.lane.b32.xlu2 %v112_v11, %s142_s12 }
  0x22   :  { %79 = vrot.lane.b32.xlu0 %v113_v12, %s143_s17  ;;  %85 = vrot.lane.b32.xlu1 %v114_v13, %s144_s18 }
  0x23   :  { %91 = vrot.lane.b32.xlu2 %v115_v14, %s145_s21 }
  0x5d   :  { %v32_v16 = vpop.permute.xlu2 %31  }
  0x65   :  { %v38_v17 = vpop.permute.xlu2 %37  }
  0x6d   :  { %v56_v18 = vpop.permute.xlu2 %55  }
  0x74   :  { %v8_v19 = vpop.permute.xlu0 %7   ;;  %v20_v20 = vpop.permute.xlu1 %19  }
  0x75   :  { %10 = vst.msk [vmem:[#allocation0] sm:$0x1] %vm9_vm1, %v8_v19   ;;  %v74_v21 = vpop.permute.xlu2 %73  }
  0x7c   :  { %v14_v22 = vpop.permute.xlu0 %13   ;;  %v26_v23 = vpop.permute.xlu1 %25  }
  0x7d   :  { %16 = vst.msk [vmem:[#allocation0] sm:$0x1] %vm15_vm2, %v14_v22   ;;  %v92_v24 = vpop.permute.xlu2 %91  }
  0x7e   :  { %22 = vst.msk [vmem:[#allocation0] sm:$0x1] %vm21_vm3, %v20_v20  }
  0x7f   :  { %28 = vst.msk [vmem:[#allocation0] sm:$0x1] %vm27_vm4, %v26_v23  }
  0x80   :  { %34 = vst.msk [vmem:[#allocation0] sm:$0x1] %vm33_vm5, %v32_v16  }
  0x81   :  { %40 = vst.msk [vmem:[#allocation0] sm:$0x1] %vm39_vm6, %v38_v17  }
  0x84   :  { %v44_v25 = vpop.permute.xlu0 %43   ;;  %v50_v26 = vpop.permute.xlu1 %49  }
  0x85   :  { %46 = vst.msk [vmem:[#allocation0] sm:$0x1] %vm45_vm7, %v44_v25  }
  0x86   :  { %52 = vst.msk [vmem:[#allocation0] sm:$0x1] %vm51_vm8, %v50_v26  }
  0x87   :  { %58 = vst.msk [vmem:[#allocation0] sm:$0x1] %vm57_vm9, %v56_v18  }
  0x8c   :  { %v62_v27 = vpop.permute.xlu0 %61   ;;  %v68_v28 = vpop.permute.xlu1 %67  }
  0x8d   :  { %64 = vst.msk [vmem:[#allocation0] sm:$0x1] %vm63_vm10, %v62_v27  }
  0x8e   :  { %70 = vst.msk [vmem:[#allocation0] sm:$0x1] %vm69_vm11, %v68_v28  }
  0x8f   :  { %76 = vst.msk [vmem:[#allocation0] sm:$0x1] %vm75_vm12, %v74_v21  }
  0x94   :  { %v80_v29 = vpop.permute.xlu0 %79   ;;  %v86_v30 = vpop.permute.xlu1 %85  }
  0x95   :  { %82 = vst.msk [vmem:[#allocation0] sm:$0x1] %vm81_vm13, %v80_v29  }
  0x96   :  { %88 = vst.msk [vmem:[#allocation0] sm:$0x1] %vm87_vm14, %v86_v30  }
  0x97   :  { %94 = vst.msk [vmem:[#allocation0] sm:$0x1] %vm93_vm15, %v92_v24  }
  0x9e   :  { %v97_v31 = vld [vmem:[#allocation0] sm:$0x1] }
  0x9f   :  { %100 = vst [vmem:[%s208_s1] sm:$0x1] %v97_v31 }

// kernel: refine_forward.21
= control target key start
LH: loop header
LB: loop body
LE: loop exit
PB: predicated region body
PF: predicated region fallthrough
CT: control target
= control target key end

     0   :  { %s711_s12 = smov 0   ;;  %s713_s13 = smov 0   ;;  %s812_s0 = inlined_call_operand.vmem [shape: bf16[640,128], index: 0, kind: input, shape index: {}]   ;;  %s813_s1 = inlined_call_operand.vmem [shape: bf16[128,32], index: 1, kind: input, shape index: {}]   ;;  %s814_s2 = inlined_call_operand.vmem [shape: f32[1,32], index: 2, kind: input, shape index: {}]   ;;  %s815_s3 = inlined_call_operand.vmem [shape: f32[640,32], index: 3, kind: output, shape index: {}]  }
   0x1   :  { %s715_s14 = smov 0  }
   0x2 LB: > { %s25_s15 = sadd.s32 1, %s685_s13  ;;  %p531_p0 = scmp.ge.s32.totalorder %s689_s14, 1  ;;  %s689_s14 = sphi %s715_s14, %s13_s14   ;;  %s685_s13 = sphi %s713_s13, %s817_s13   ;;  %s681_s12 = sphi %s711_s12, %s816_s12  }
   0x3   : > { %p27_p1 = scmp.ge.s32.totalorder %s25_s15, 5  ;;  %p169_p2 = scmp.lt.s32.totalorder %s689_s14, 6 }
   0x5   : > { %s819_s15 = smov (%p27_p1, %s25_s15), 0  ;;  %p170_p3 = pnand %p531_p0, %p169_p2 }
   0x6   : > { %s532_s24 = sshll.u32 (!%p170_p3), %s681_s12, 4 }
   0x7   : > { %173 = sbr.rel (%p170_p3) target bundleno = 205 (0xcd), region = 32  ;;  %p204_p4 = scmp.lt.s32.totalorder (!%p170_p3), %s532_s24, 79 }
   0xc   : > { %v617_v0 = vld [vmem:[%s813_s1 + $0x38] sm:$0xff]  ;;  %v616_v1 = vld [vmem:[%s813_s1 + $0x30] sm:$0xff]  ;;  %v615_v2 = vld [vmem:[%s813_s1 + $0x28] sm:$0xff]  ;;  %s821_s24 = smov (!%p204_p4, %s532_s24), 79  ;;  %vm406_vm0 = vcmask 261120  }
   0xd   : > { %357 = vmatpush.bf16.msra.mxu0 %v617_v0  ;;  %618 = vmatpush.bf16.msra.mxu1 %v617_v0  ;;  %v614_v3 = vld [vmem:[%s813_s1 + $0x20] sm:$0xff]  ;;  %v613_v4 = vld [vmem:[%s813_s1 + $0x18] sm:$0xff]  ;;  %v612_v5 = vld [vmem:[%s813_s1 + $0x10] sm:$0xff]  ;;  %s533_s4 = sshll.u32 %s821_s24, 2  ;;  %s535_s10 = sshll.u32 %s821_s24, 3 }
   0xe   : > { %619 = vmatpush.bf16.msra.mxu2 %v617_v0  ;;  %620 = vmatpush.bf16.msra.mxu3 %v617_v0  ;;  %v611_v6 = vld [vmem:[%s813_s1 + $0x8] sm:$0xff]  ;;  %v610_v7 = vld [vmem:[%s813_s1] sm:$0xff]  ;;  %s207_s9 = scalar_lea.vmem %s812_s0, %s533_s4  ;;  %s769_s18 = scalar_lea.vmem %s815_s3, %s535_s10 }
   0xf   : > { %v602_v8 = vld [vmem:[%s207_s9] sm:$0xff]  ;;  %v604_v9 = vld [vmem:[%s207_s9 + $0x10] sm:$0xff]  ;;  %v603_v12 = vld [vmem:[%s207_s9 + $0x8] sm:$0xff] }
  0x10   : > { %v606_v10 = vld [vmem:[%s207_s9 + $0x20] sm:$0xff]  ;;  %v608_v11 = vld [vmem:[%s207_s9 + $0x30] sm:$0xff]  ;;  %v605_v13 = vld [vmem:[%s207_s9 + $0x18] sm:$0xff] }
  0x11   : > { %358 = vmatpush.bf16.msra.mxu0 %v616_v1  ;;  %621 = vmatpush.bf16.msra.mxu1 %v616_v1  ;;  %v607_v14 = vld [vmem:[%s207_s9 + $0x28] sm:$0xff]  ;;  %v609_v15 = vld [vmem:[%s207_s9 + $0x38] sm:$0xff]  ;;  %v666_v16 = vld [vmem:[%s814_s2] ss:$0 sm:$0xff] }
  0x12   : > { %622 = vmatpush.bf16.msra.mxu2 %v616_v1  ;;  %623 = vmatpush.bf16.msra.mxu3 %v616_v1 }
  0x15   : > { %359 = vmatpush.bf16.msra.mxu0 %v615_v2  ;;  %624 = vmatpush.bf16.msra.mxu1 %v615_v2 }
  0x16   : > { %625 = vmatpush.bf16.msra.mxu2 %v615_v2  ;;  %626 = vmatpush.bf16.msra.mxu3 %v615_v2 }
  0x19   : > { %360 = vmatpush.bf16.msra.mxu0 %v614_v3  ;;  %627 = vmatpush.bf16.msra.mxu1 %v614_v3 }
  0x1a   : > { %628 = vmatpush.bf16.msra.mxu2 %v614_v3  ;;  %629 = vmatpush.bf16.msra.mxu3 %v614_v3 }
  0x1d   : > { %361 = vmatpush.bf16.msra.mxu0 %v613_v4  ;;  %630 = vmatpush.bf16.msra.mxu1 %v613_v4 }
  0x1e   : > { %631 = vmatpush.bf16.msra.mxu2 %v613_v4  ;;  %632 = vmatpush.bf16.msra.mxu3 %v613_v4 }
  0x21   : > { %362 = vmatpush.bf16.msra.mxu0 %v612_v5  ;;  %633 = vmatpush.bf16.msra.mxu1 %v612_v5 }
  0x22   : > { %634 = vmatpush.bf16.msra.mxu2 %v612_v5  ;;  %635 = vmatpush.bf16.msra.mxu3 %v612_v5 }
  0x25   : > { %363 = vmatpush.bf16.msra.mxu0 %v611_v6  ;;  %636 = vmatpush.bf16.msra.mxu1 %v611_v6 }
  0x26   : > { %637 = vmatpush.bf16.msra.mxu2 %v611_v6  ;;  %638 = vmatpush.bf16.msra.mxu3 %v611_v6 }
  0x29   : > { %364 = vmatpush.bf16.msra.mxu0 %v610_v7  ;;  %639 = vmatpush.bf16.msra.mxu1 %v610_v7 }
  0x2a   : > { %640 = vmatpush.bf16.msra.mxu2 %v610_v7  ;;  %641 = vmatpush.bf16.msra.mxu3 %v610_v7 }
  0x2c   : > { %365 = vmatmul.bf16.vlgmr.msra.gmra.mxu0 %v602_v8  ;;  %375 = vmatmul.bf16.vlgmr.msra.gmra.mxu1 %v604_v9 }
  0x2d   : > { %385 = vmatmul.bf16.vlgmr.msra.gmra.mxu2 %v606_v10  ;;  %395 = vmatmul.bf16.vlgmr.msra.gmra.mxu3 %v608_v11 }
  0x3c   : > { %370 = vmatmul.bf16.gmra.mxu0 %v603_v12  ;;  %380 = vmatmul.bf16.gmra.mxu1 %v605_v13 }
  0x3d   : > { %390 = vmatmul.bf16.gmra.mxu2 %v607_v14  ;;  %400 = vmatmul.bf16.gmra.mxu3 %v609_v15 }
  0xa9   : > { %v366_v17 = vpop.f32.mrf.mxu0  ;;  %v376_v18 = vpop.f32.mrf.mxu1 }
  0xaa   : > { %v367_v19 = vadd.f32 %v666_v16, %v366_v17  ;;  %v377_v20 = vadd.f32 %v666_v16, %v376_v18 }
  0xac   : > { %407 = vst.msk [vmem:[%s769_s18] sm:$0xff] %vm406_vm0, %v367_v19 }
  0xad   : > { %411 = vst.msk [vmem:[%s769_s18 + $0x20] sm:$0xff] %vm406_vm0, %v377_v20 }
  0xb0   : > { %v386_v21 = vpop.f32.mrf.mxu2  ;;  %v396_v22 = vpop.f32.mrf.mxu3 }
  0xb1   : > { %v387_v23 = vadd.f32 %v666_v16, %v386_v21  ;;  %v397_v24 = vadd.f32 %v666_v16, %v396_v22  ;;  %v368_v25 = vpop.f32.mrf.mxu0  ;;  %v378_v26 = vpop.f32.mrf.mxu1 }
  0xb2   : > { %v369_v27 = vadd.f32 %v666_v16, %v368_v25  ;;  %v379_v28 = vadd.f32 %v666_v16, %v378_v26 }
  0xb3   : > { %415 = vst.msk [vmem:[%s769_s18 + $0x40] sm:$0xff] %vm406_vm0, %v387_v23 }
  0xb4   : > { %419 = vst.msk [vmem:[%s769_s18 + $0x60] sm:$0xff] %vm406_vm0, %v397_v24 }
  0xb5   : > { %408 = vst.msk [vmem:[%s769_s18 + $0x8] sm:$0xff] %vm406_vm0, %v369_v27 }
  0xb6   : > { %412 = vst.msk [vmem:[%s769_s18 + $0x28] sm:$0xff] %vm406_vm0, %v379_v28 }
  0xb8   : > { %v388_v29 = vpop.f32.mrf.mxu2  ;;  %v398_v30 = vpop.f32.mrf.mxu3 }
  0xb9   : > { %v389_v31 = vadd.f32 %v666_v16, %v388_v29  ;;  %v399_v32 = vadd.f32 %v666_v16, %v398_v30  ;;  %v371_v33 = vpop.f32.mrf.mxu0  ;;  %v381_v34 = vpop.f32.mrf.mxu1 }
  0xba   : > { %v372_v35 = vadd.f32 %v666_v16, %v371_v33  ;;  %v382_v36 = vadd.f32 %v666_v16, %v381_v34 }
  0xbb   : > { %416 = vst.msk [vmem:[%s769_s18 + $0x48] sm:$0xff] %vm406_vm0, %v389_v31 }
  0xbc   : > { %420 = vst.msk [vmem:[%s769_s18 + $0x68] sm:$0xff] %vm406_vm0, %v399_v32 }
  0xbd   : > { %409 = vst.msk [vmem:[%s769_s18 + $0x10] sm:$0xff] %vm406_vm0, %v372_v35 }
  0xbe   : > { %413 = vst.msk [vmem:[%s769_s18 + $0x30] sm:$0xff] %vm406_vm0, %v382_v36 }
  0xc0   : > { %v391_v37 = vpop.f32.mrf.mxu2  ;;  %v401_v38 = vpop.f32.mrf.mxu3 }
  0xc1   : > { %v392_v39 = vadd.f32 %v666_v16, %v391_v37  ;;  %v402_v40 = vadd.f32 %v666_v16, %v401_v38  ;;  %v373_v41 = vpop.f32.mrf.mxu0  ;;  %v383_v42 = vpop.f32.mrf.mxu1 }
  0xc2   : > { %v374_v43 = vadd.f32 %v666_v16, %v373_v41  ;;  %v384_v44 = vadd.f32 %v666_v16, %v383_v42 }
  0xc3   : > { %417 = vst.msk [vmem:[%s769_s18 + $0x50] sm:$0xff] %vm406_vm0, %v392_v39 }
  0xc4   : > { %421 = vst.msk [vmem:[%s769_s18 + $0x70] sm:$0xff] %vm406_vm0, %v402_v40 }
  0xc5   : > { %410 = vst.msk [vmem:[%s769_s18 + $0x18] sm:$0xff] %vm406_vm0, %v374_v43 }
  0xc6   : > { %414 = vst.msk [vmem:[%s769_s18 + $0x38] sm:$0xff] %vm406_vm0, %v384_v44 }
  0xc8   : > { %v393_v45 = vpop.f32.mrf.mxu2  ;;  %v403_v46 = vpop.f32.mrf.mxu3 }
  0xc9   : > { %v394_v47 = vadd.f32 %v666_v16, %v393_v45  ;;  %v404_v48 = vadd.f32 %v666_v16, %v403_v46 }
  0xcb   : > { %418 = vst.msk [vmem:[%s769_s18 + $0x58] sm:$0xff] %vm406_vm0, %v394_v47 }
  0xcc   : > { %422 = vst.msk [vmem:[%s769_s18 + $0x78] sm:$0xff] %vm406_vm0, %v404_v48 }
  0xcd PF: > { %s13_s14 = sadd.s32 1, %s689_s14   ;;  %s816_s12 = smov %s685_s13 }
  0xce   : > { %p10_p5 = scmp.ge.s32.totalorder %s13_s14, 7   ;;  %s817_s13 = smov %s819_s15 }
  0xd0   :  { %12 = sbr.rel (!%p10_p5) target bundleno = 2 (0x2), region = 68 }

</bundles_post_ra>
